<compile_context>
chip_gen: v6e
topology: v6e:2x2x1
jax: 0.10.0
libtpu: 0.0.40
codegen_flags: <defaults>
</compile_context>

<pallas_src>
import functools
import math

import jax
import jax.numpy as jnp
from jax.experimental import pallas as pl
from jax.experimental.pallas import tpu as pltpu

_CP = 128          # channel padding for conv activations (lane-dense)
_TARGET_M = 2048   # target matmul rows per conv grid step


def _round_up(x, m):
    return ((x + m - 1) // m) * m


@functools.lru_cache(maxsize=None)
def _vmem_limit():
    """Generation-aware VMEM cap: <= 7/8 of physical, capped at 100 MiB."""
    default = 48 * 1024 * 1024
    try:
        info = pltpu.get_tpu_info()
        cap = getattr(info, "vmem_capacity_bytes", None)
        if cap:
            return int(min(cap * 7 // 8, 100 * 1024 * 1024))
    except Exception:
        return default
    return default


def _pick_batch_tile(batch, target):
    """Largest divisor of `batch` that is <= target (>=1)."""
    t = max(1, min(target, batch))
    for tb in range(t, 0, -1):
        if batch % tb == 0:
            return tb
    return 1


def _crop_or_pad(a, axis, size):
    cur = a.shape[axis]
    if cur > size:
        a = jax.lax.slice_in_dim(a, 0, size, axis=axis)
    elif cur < size:
        pad = [(0, 0)] * a.ndim
        pad[axis] = (0, size - cur)
        a = jnp.pad(a, pad)
    return a


# ----------------------------------------------------------------------------
# Conv layer: phase-packed input, taps accumulated as shifted matmuls.
# ----------------------------------------------------------------------------
def _phase_pack(a, k, s, oh, ow8):
    """a: (B, H, W, C) bf16 -> (B, OHp, s, OWp, s*C).

    Pure pad+reshape in XLA (element order preserved, no kh*kw duplication).
    Row h = ohp*s + ph, col w = owp*s + pw, minor packs (pw, c).
    """
    B, _, _, C = a.shape
    kdiv = k // s
    ohp = oh + (k - 1) // s
    owp = ow8 + kdiv - 1
    a = _crop_or_pad(a, 1, ohp * s)
    a = _crop_or_pad(a, 2, owp * s)
    return a.reshape(B, ohp, s, owp, s * C)


def _conv_tap_matmul_kernel(x_ref, w_ref, b_ref, o_ref, *, k, s, OH, OW8):
    kdiv = k // s
    tb = x_ref.shape[0]
    sc = x_ref.shape[-1]          # s * C_in
    cp = o_ref.shape[-1]          # padded output channels (128)
    M = tb * OH * OW8

    acc = jnp.zeros((M, cp), jnp.float32)
    for ki in range(k):
        di, pi = ki // s, ki % s
        for dj in range(kdiv):
            # static, contiguous slice; OW8 % 8 == 0 so the reshape is
            # tile-trivial (lane dim unchanged, sublane groups preserved).
            lhs = x_ref[:, di:di + OH, pi:pi + 1, dj:dj + OW8, :].reshape(M, sc)
            row0 = (ki * kdiv + dj) * sc
            acc = acc + jnp.dot(lhs, w_ref[row0:row0 + sc, :],
                                preferred_element_type=jnp.float32)

    acc = jnp.maximum(acc + b_ref[...], 0.0)
    o_ref[...] = acc.reshape(tb, OH, OW8, cp).astype(o_ref.dtype)


def conv2d_relu(a, h_in, w_in, w_flat, b_pad, *, k, s):
    """a: (B, H, >=w_in, C) bf16 (cols >= w_in may be junk from a previous
    layer's width padding; they are never read for valid outputs).
    Returns ((B, OH, OW8, 128) bf16, OH, OW)."""
    B, _, _, C = a.shape
    assert k % s == 0
    assert w_flat.shape[0] == k * k * C
    OH = (h_in - k) // s + 1
    OW = (w_in - k) // s + 1
    OW8 = _round_up(OW, 8)
    c_out_p = w_flat.shape[1]

    # TODO(synk): have the kernel write its output directly in the next
    # layer's phase-packed layout to remove this per-layer XLA repack copy.
    x5 = _phase_pack(a, k, s, OH, OW8)

    tb = _pick_batch_tile(B, max(1, _TARGET_M // (OH * OW8)))
    kernel = functools.partial(_conv_tap_matmul_kernel, k=k, s=s, OH=OH, OW8=OW8)
    out = pl.pallas_call(
        kernel,
        out_shape=jax.ShapeDtypeStruct((B, OH, OW8, c_out_p), jnp.bfloat16),
        grid=(B // tb,),
        in_specs=[
            pl.BlockSpec((tb,) + x5.shape[1:], lambda i: (i, 0, 0, 0, 0)),
            pl.BlockSpec(w_flat.shape, lambda i: (0, 0)),   # weight resident
            pl.BlockSpec(b_pad.shape, lambda i: (0, 0)),    # bias resident
        ],
        out_specs=pl.BlockSpec((tb, OH, OW8, c_out_p), lambda i: (i, 0, 0, 0)),
        compiler_params=pltpu.CompilerParams(
            dimension_semantics=("parallel",),
            vmem_limit_bytes=_vmem_limit(),
        ),
    )(x5, w_flat, b_pad)
    return out, OH, OW


# ----------------------------------------------------------------------------
# Fused tail: FC1 (value|advantage) + FC2 heads + dueling combine + softmax.
# ----------------------------------------------------------------------------
def _dueling_tail_kernel(x_ref, w1_ref, b1_ref, wv_ref, bv_ref, wa_ref, ba_ref,
                         o_ref, *, n_actions, n_atoms, hid, ap):
    h = jnp.dot(x_ref[...], w1_ref[...], preferred_element_type=jnp.float32)
    h = jnp.maximum(h + b1_ref[...], 0.0)
    hv = h[:, :hid].astype(jnp.bfloat16)            # value-stream hidden
    ha = h[:, hid:2 * hid].astype(jnp.bfloat16)     # advantage-stream hidden

    v = jnp.dot(hv, wv_ref[...], preferred_element_type=jnp.float32) + bv_ref[...]
    a = jnp.dot(ha, wa_ref[...], preferred_element_type=jnp.float32) + ba_ref[...]

    a_sum = a[:, 0:ap]
    for i in range(1, n_actions):
        a_sum = a_sum + a[:, i * ap:(i + 1) * ap]
    a_mean = a_sum * (1.0 / n_actions)

    lane = jax.lax.broadcasted_iota(jnp.int32, v.shape, 1)
    valid = lane < n_atoms
    neg = jnp.float32(jnp.finfo(jnp.float32).min)

    for i in range(n_actions):
        q = v + a[:, i * ap:(i + 1) * ap] - a_mean
        m = jnp.max(jnp.where(valid, q, neg), axis=-1, keepdims=True)
        e = jnp.where(valid, jnp.exp(q - m), 0.0)
        inv = pl.reciprocal(jnp.sum(e, axis=-1, keepdims=True), approx=True)
        o_ref[:, i * ap:(i + 1) * ap] = (e * inv).astype(o_ref.dtype)


def dueling_tail(xf, w1, b1, wv, bv, wa, ba, *, n_actions, n_atoms, max_tile=256):
    """xf: (B, F) bf16 flattened conv features.  -> (B, n_actions, n_atoms) f32."""
    B, F = xf.shape
    hid, ap = wv.shape
    if B <= max_tile:
        tb, Bp = B, B
    else:
        tb = max_tile
        Bp = _round_up(B, tb)
    if Bp != B:
        xf = jnp.zeros((Bp, F), xf.dtype).at[:B].set(xf)

    kernel = functools.partial(_dueling_tail_kernel, n_actions=n_actions,
                               n_atoms=n_atoms, hid=hid, ap=ap)
    out = pl.pallas_call(
        kernel,
        out_shape=jax.ShapeDtypeStruct((Bp, n_actions * ap), jnp.float32),
        grid=(Bp // tb,),
        in_specs=[
            pl.BlockSpec((tb, F), lambda i: (i, 0)),
            pl.BlockSpec(w1.shape, lambda i: (0, 0)),
            pl.BlockSpec(b1.shape, lambda i: (0, 0)),
            pl.BlockSpec(wv.shape, lambda i: (0, 0)),
            pl.BlockSpec(bv.shape, lambda i: (0, 0)),
            pl.BlockSpec(wa.shape, lambda i: (0, 0)),
            pl.BlockSpec(ba.shape, lambda i: (0, 0)),
        ],
        out_specs=pl.BlockSpec((tb, n_actions * ap), lambda i: (i, 0)),
        compiler_params=pltpu.CompilerParams(
            dimension_semantics=("parallel",),
            vmem_limit_bytes=_vmem_limit(),
        ),
    )(xf, w1, b1, wv, bv, wa, ba)
    out = out[:B].reshape(B, n_actions, ap)
    return out[:, :, :n_atoms]


# ----------------------------------------------------------------------------
# Parameters: PyTorch-style init + one-time prep (layout / pad / fuse / bf16).
# ----------------------------------------------------------------------------
def _init_linear(key, fan_in, fan_out):
    k_w, k_b = jax.random.split(key)
    bound = 1.0 / math.sqrt(fan_in)
    w = jax.random.uniform(k_w, (fan_in, fan_out), jnp.float32, -bound, bound)
    b = jax.random.uniform(k_b, (fan_out,), jnp.float32, -bound, bound)
    return w, b


def _init_conv(key, c_in, c_out, k):
    k_w, k_b = jax.random.split(key)
    fan_in = c_in * k * k
    bound = 1.0 / math.sqrt(fan_in)
    w = jax.random.uniform(k_w, (c_out, c_in, k, k), jnp.float32, -bound, bound)
    b = jax.random.uniform(k_b, (c_out,), jnp.float32, -bound, bound)
    return w, b


def _conv_chain_dims(input_shape):
    _, h, w = input_shape
    dims = []
    for (k, s) in ((8, 4), (4, 2), (3, 1)):
        h = (h - k) // s + 1
        w = (w - k) // s + 1
        dims.append((h, w))
    return dims


def init_params(key, input_shape, n_actions, n_atoms):
    c_in = input_shape[0]
    keys = jax.random.split(key, 7)
    p = {}
    p["conv1_w"], p["conv1_b"] = _init_conv(keys[0], c_in, 32, 8)
    p["conv2_w"], p["conv2_b"] = _init_conv(keys[1], 32, 64, 4)
    p["conv3_w"], p["conv3_b"] = _init_conv(keys[2], 64, 64, 3)
    (_, _), (_, _), (oh3, ow3) = _conv_chain_dims(input_shape)
    conv_out_size = 64 * oh3 * ow3
    p["adv1_w"], p["adv1_b"] = _init_linear(keys[3], conv_out_size, 512)
    p["adv2_w"], p["adv2_b"] = _init_linear(keys[4], 512, n_actions * n_atoms)
    p["val1_w"], p["val1_b"] = _init_linear(keys[5], conv_out_size, 512)
    p["val2_w"], p["val2_b"] = _init_linear(keys[6], 512, n_atoms)
    return p


def _prep_conv_w(w, c_in_eff, c_out_p):
    # torch (C_out, C_in, KH, KW) -> rows (ki, kj, c_in_eff) x cols c_out_p, bf16
    c_out, c_in, kh, kw = w.shape
    wt = jnp.transpose(w, (2, 3, 1, 0))
    wp = jnp.zeros((kh, kw, c_in_eff, c_out_p), jnp.float32)
    wp = wp.at[:, :, :c_in, :c_out].set(wt)
    return wp.reshape(kh * kw * c_in_eff, c_out_p).astype(jnp.bfloat16)


def _prep_bias(b, n_p):
    return jnp.zeros((1, n_p), jnp.float32).at[0, :b.shape[0]].set(b)


def prepare_params(p, input_shape, n_actions, n_atoms):
    c_in = input_shape[0]
    (_, _), (_, _), (oh3, ow3) = _conv_chain_dims(input_shape)
    ow8_3 = _round_up(ow3, 8)
    c_out3 = p["conv3_w"].shape[0]
    hid = p["val1_w"].shape[1]
    ap = _round_up(n_atoms, _CP)

    prep = {
        "c1_w": _prep_conv_w(p["conv1_w"], c_in, _CP), "c1_b": _prep_bias(p["conv1_b"], _CP),
        "c2_w": _prep_conv_w(p["conv2_w"], _CP, _CP),  "c2_b": _prep_bias(p["conv2_b"], _CP),
        "c3_w": _prep_conv_w(p["conv3_w"], _CP, _CP),  "c3_b": _prep_bias(p["conv3_b"], _CP),
    }

    # Fused FC1 ([value|advantage]) with rows permuted from PyTorch's NCHW
    # flatten order to the kernel's padded-NHWC flatten order.  Junk width
    # columns (ow >= ow3) and padded channels (c >= 64) stay as zero rows.
    F = oh3 * ow8_3 * _CP
    w1 = jnp.concatenate([p["val1_w"], p["adv1_w"]], axis=1)   # (conv_out, 2*hid)
    b1 = jnp.concatenate([p["val1_b"], p["adv1_b"]], axis=0)
    oh_i = jnp.arange(oh3)[:, None, None]
    ow_i = jnp.arange(ow3)[None, :, None]
    c_i = jnp.arange(c_out3)[None, None, :]
    new_idx = ((oh_i * ow8_3 + ow_i) * _CP + c_i).reshape(-1)
    old_idx = (c_i * (oh3 * ow3) + oh_i * ow3 + ow_i).reshape(-1)
    w1p = jnp.zeros((F, 2 * hid), jnp.float32).at[new_idx].set(w1[old_idx])
    prep["fc1_w"] = w1p.astype(jnp.bfloat16)
    prep["fc1_b"] = b1.reshape(1, 2 * hid).astype(jnp.float32)

    # FC2 heads, atoms padded to 128 lanes per action.
    prep["v2_w"] = (jnp.zeros((hid, ap), jnp.float32)
                    .at[:, :n_atoms].set(p["val2_w"]).astype(jnp.bfloat16))
    prep["v2_b"] = _prep_bias(p["val2_b"], ap)
    wa = p["adv2_w"].reshape(hid, n_actions, n_atoms)
    prep["a2_w"] = (jnp.zeros((hid, n_actions, ap), jnp.float32)
                    .at[:, :, :n_atoms].set(wa)
                    .reshape(hid, n_actions * ap).astype(jnp.bfloat16))
    ba = p["adv2_b"].reshape(n_actions, n_atoms)
    prep["a2_b"] = (jnp.zeros((1, n_actions, ap), jnp.float32)
                    .at[0, :, :n_atoms].set(ba).reshape(1, n_actions * ap))
    return prep


# ----------------------------------------------------------------------------
# Forward pass
# ----------------------------------------------------------------------------
def forward(prep, x, n_actions, n_atoms):
    """x: (B, C, H, W) f32 NCHW.  Returns q_dist: (B, n_actions, n_atoms) f32."""
    B = x.shape[0]
    a = jnp.transpose(x, (0, 2, 3, 1)).astype(jnp.bfloat16)   # one boundary transpose
    h_in, w_in = a.shape[1], a.shape[2]
    a, h_in, w_in = conv2d_relu(a, h_in, w_in, prep["c1_w"], prep["c1_b"], k=8, s=4)
    a, h_in, w_in = conv2d_relu(a, h_in, w_in, prep["c2_w"], prep["c2_b"], k=4, s=2)
    a, h_in, w_in = conv2d_relu(a, h_in, w_in, prep["c3_w"], prep["c3_b"], k=3, s=1)
    xf = a.reshape(B, -1)   # (B, OH3*OW8_3*128) bf16; fc1_w rows already permuted
    return dueling_tail(xf, prep["fc1_w"], prep["fc1_b"], prep["v2_w"], prep["v2_b"],
                        prep["a2_w"], prep["a2_b"],
                        n_actions=n_actions, n_atoms=n_atoms)


def _reference_forward(params, x, n_actions, n_atoms):
    """Plain-JAX f32 reference mirroring the PyTorch module exactly."""
    def conv(h, w, b, stride):
        y = jax.lax.conv_general_dilated(
            h, w, window_strides=(stride, stride), padding="VALID",
            dimension_numbers=("NCHW", "OIHW", "NCHW"))
        return jax.nn.relu(y + b[None, :, None, None])

    h = conv(x, params["conv1_w"], params["conv1_b"], 4)
    h = conv(h, params["conv2_w"], params["conv2_b"], 2)
    h = conv(h, params["conv3_w"], params["conv3_b"], 1)
    B = x.shape[0]
    flat = h.reshape(B, -1)
    v = jax.nn.relu(flat @ params["val1_w"] + params["val1_b"])
    v = (v @ params["val2_w"] + params["val2_b"]).reshape(B, 1, n_atoms)
    a = jax.nn.relu(flat @ params["adv1_w"] + params["adv1_b"])
    a = (a @ params["adv2_w"] + params["adv2_b"]).reshape(B, n_actions, n_atoms)
    q = v + (a - a.mean(axis=1, keepdims=True))
    return jax.nn.softmax(q, axis=-1)


if __name__ == "__main__":
    # Smallest spatial size the conv stack supports: (36-8)/4+1=8 -> 3 -> 1.
    batch = 2
    input_shape = (4, 36, 36)
    n_actions = 4
    n_atoms = 51

    key = jax.random.PRNGKey(0)
    k_param, k_x = jax.random.split(key)
    params = init_params(k_param, input_shape, n_actions, n_atoms)
    prep = prepare_params(params, input_shape, n_actions, n_atoms)
    x = jax.random.normal(k_x, (batch,) + input_shape, dtype=jnp.float32)

    fwd = jax.jit(functools.partial(forward, n_actions=n_actions, n_atoms=n_atoms))
    q_dist = jax.block_until_ready(fwd(prep, x))

    assert q_dist.shape == (batch, n_actions, n_atoms)
    row_sums = jnp.sum(q_dist, axis=-1)
    assert jnp.allclose(row_sums, 1.0, atol=1e-2), row_sums

    # Validate against a pure-f32 JAX reference of the PyTorch module
    # (bf16 operands/activations introduce only small logit noise).
    q_ref = _reference_forward(params, x, n_actions, n_atoms)
    err = float(jnp.max(jnp.abs(q_dist - q_ref)))
    signal = float(jnp.max(jnp.abs(q_ref - 1.0 / n_atoms)))
    assert err < 5e-3, err
    assert err < 0.35 * max(signal, 1e-6), (err, signal)

    print("KERNEL_OK")
</pallas_src>

<mosaic_0001>
module attributes {stable_mosaic.version = 11 : i64} {
  func.func @_conv_tap_matmul_kernel(%arg0: i32, %arg1: memref<2x9x4x9x16xbf16, #tpu.memory_space<vmem>>, %arg2: memref<256x128xbf16, #tpu.memory_space<vmem>>, %arg3: memref<1x128xf32, #tpu.memory_space<vmem>>, %arg4: memref<2x8x8x128xbf16, #tpu.memory_space<vmem>>) attributes {dimension_semantics = [#tpu.dimension_semantics<parallel>], iteration_bounds = array<i64: 1>, scalar_prefetch = 0 : i64, scratch_operands = 0 : i64, tpu.core_type = #tpu.core_type<tc>, window_params = [{transform_indices = @transform_0, window_bounds = array<i64: 2, 9, 4, 9, 16>}, {pipeline_mode = #tpu.pipeline_mode<synchronous>, transform_indices = @transform_1, window_bounds = array<i64: 256, 128>}, {pipeline_mode = #tpu.pipeline_mode<synchronous>, transform_indices = @transform_2, window_bounds = array<i64: 1, 128>}, {transform_indices = @transform_3, window_bounds = array<i64: 2, 8, 8, 128>}]} {
    %cst = arith.constant 0.000000e+00 : f32
    %0 = vector.broadcast %cst : f32 to vector<128x128xf32>
    %c0 = arith.constant 0 : index
    %c0_0 = arith.constant 0 : index
    %c0_1 = arith.constant 0 : index
    %c0_2 = arith.constant 0 : index
    %c0_3 = arith.constant 0 : index
    %1 = vector.load %arg1[%c0, %c0_0, %c0_1, %c0_2, %c0_3] : memref<2x9x4x9x16xbf16, #tpu.memory_space<vmem>>, vector<2x8x1x8x16xbf16>
    %2 = vector.shape_cast %1 : vector<2x8x1x8x16xbf16> to vector<128x16xbf16>
    %c0_4 = arith.constant 0 : index
    %c0_5 = arith.constant 0 : index
    %3 = vector.load %arg2[%c0_4, %c0_5] : memref<256x128xbf16, #tpu.memory_space<vmem>>, vector<16x128xbf16>
    %cst_6 = arith.constant dense<0.000000e+00> : vector<128x128xf32>
    %4 = tpu.matmul %2, %3, %cst_6 {dimension_numbers = #tpu.dot_dimension_numbers<[1], [0], [0], [1], [0, 0, 1, 1], [], []>} : vector<128x16xbf16>, vector<16x128xbf16>, vector<128x128xf32> -> vector<128x128xf32>
    %5 = arith.addf %0, %4 : vector<128x128xf32>
    %c0_7 = arith.constant 0 : index
    %c0_8 = arith.constant 0 : index
    %c0_9 = arith.constant 0 : index
    %c1 = arith.constant 1 : index
    %c0_10 = arith.constant 0 : index
    %6 = vector.load %arg1[%c0_7, %c0_8, %c0_9, %c1, %c0_10] : memref<2x9x4x9x16xbf16, #tpu.memory_space<vmem>>, vector<2x8x1x8x16xbf16>
    %7 = vector.shape_cast %6 : vector<2x8x1x8x16xbf16> to vector<128x16xbf16>
    %c16 = arith.constant 16 : index
    %c0_11 = arith.constant 0 : index
    %8 = vector.load %arg2[%c16, %c0_11] : memref<256x128xbf16, #tpu.memory_space<vmem>>, vector<16x128xbf16>
    %cst_12 = arith.constant dense<0.000000e+00> : vector<128x128xf32>
    %9 = tpu.matmul %7, %8, %cst_12 {dimension_numbers = #tpu.dot_dimension_numbers<[1], [0], [0], [1], [0, 0, 1, 1], [], []>} : vector<128x16xbf16>, vector<16x128xbf16>, vector<128x128xf32> -> vector<128x128xf32>
    %10 = arith.addf %5, %9 : vector<128x128xf32>
    %c0_13 = arith.constant 0 : index
    %c0_14 = arith.constant 0 : index
    %c1_15 = arith.constant 1 : index
    %c0_16 = arith.constant 0 : index
    %c0_17 = arith.constant 0 : index
    %11 = vector.load %arg1[%c0_13, %c0_14, %c1_15, %c0_16, %c0_17] : memref<2x9x4x9x16xbf16, #tpu.memory_space<vmem>>, vector<2x8x1x8x16xbf16>
    %12 = vector.shape_cast %11 : vector<2x8x1x8x16xbf16> to vector<128x16xbf16>
    %c32 = arith.constant 32 : index
    %c0_18 = arith.constant 0 : index
    %13 = vector.load %arg2[%c32, %c0_18] : memref<256x128xbf16, #tpu.memory_space<vmem>>, vector<16x128xbf16>
    %cst_19 = arith.constant dense<0.000000e+00> : vector<128x128xf32>
    %14 = tpu.matmul %12, %13, %cst_19 {dimension_numbers = #tpu.dot_dimension_numbers<[1], [0], [0], [1], [0, 0, 1, 1], [], []>} : vector<128x16xbf16>, vector<16x128xbf16>, vector<128x128xf32> -> vector<128x128xf32>
    %15 = arith.addf %10, %14 : vector<128x128xf32>
    %c0_20 = arith.constant 0 : index
    %c0_21 = arith.constant 0 : index
    %c1_22 = arith.constant 1 : index
    %c1_23 = arith.constant 1 : index
    %c0_24 = arith.constant 0 : index
    %16 = vector.load %arg1[%c0_20, %c0_21, %c1_22, %c1_23, %c0_24] : memref<2x9x4x9x16xbf16, #tpu.memory_space<vmem>>, vector<2x8x1x8x16xbf16>
    %17 = vector.shape_cast %16 : vector<2x8x1x8x16xbf16> to vector<128x16xbf16>
    %c48 = arith.constant 48 : index
    %c0_25 = arith.constant 0 : index
    %18 = vector.load %arg2[%c48, %c0_25] : memref<256x128xbf16, #tpu.memory_space<vmem>>, vector<16x128xbf16>
    %cst_26 = arith.constant dense<0.000000e+00> : vector<128x128xf32>
    %19 = tpu.matmul %17, %18, %cst_26 {dimension_numbers = #tpu.dot_dimension_numbers<[1], [0], [0], [1], [0, 0, 1, 1], [], []>} : vector<128x16xbf16>, vector<16x128xbf16>, vector<128x128xf32> -> vector<128x128xf32>
    %20 = arith.addf %15, %19 : vector<128x128xf32>
    %c0_27 = arith.constant 0 : index
    %c0_28 = arith.constant 0 : index
    %c2 = arith.constant 2 : index
    %c0_29 = arith.constant 0 : index
    %c0_30 = arith.constant 0 : index
    %21 = vector.load %arg1[%c0_27, %c0_28, %c2, %c0_29, %c0_30] : memref<2x9x4x9x16xbf16, #tpu.memory_space<vmem>>, vector<2x8x1x8x16xbf16>
    %22 = vector.shape_cast %21 : vector<2x8x1x8x16xbf16> to vector<128x16xbf16>
    %c64 = arith.constant 64 : index
    %c0_31 = arith.constant 0 : index
    %23 = vector.load %arg2[%c64, %c0_31] : memref<256x128xbf16, #tpu.memory_space<vmem>>, vector<16x128xbf16>
    %cst_32 = arith.constant dense<0.000000e+00> : vector<128x128xf32>
    %24 = tpu.matmul %22, %23, %cst_32 {dimension_numbers = #tpu.dot_dimension_numbers<[1], [0], [0], [1], [0, 0, 1, 1], [], []>} : vector<128x16xbf16>, vector<16x128xbf16>, vector<128x128xf32> -> vector<128x128xf32>
    %25 = arith.addf %20, %24 : vector<128x128xf32>
    %c0_33 = arith.constant 0 : index
    %c0_34 = arith.constant 0 : index
    %c2_35 = arith.constant 2 : index
    %c1_36 = arith.constant 1 : index
    %c0_37 = arith.constant 0 : index
    %26 = vector.load %arg1[%c0_33, %c0_34, %c2_35, %c1_36, %c0_37] : memref<2x9x4x9x16xbf16, #tpu.memory_space<vmem>>, vector<2x8x1x8x16xbf16>
    %27 = vector.shape_cast %26 : vector<2x8x1x8x16xbf16> to vector<128x16xbf16>
    %c80 = arith.constant 80 : index
    %c0_38 = arith.constant 0 : index
    %28 = vector.load %arg2[%c80, %c0_38] : memref<256x128xbf16, #tpu.memory_space<vmem>>, vector<16x128xbf16>
    %cst_39 = arith.constant dense<0.000000e+00> : vector<128x128xf32>
    %29 = tpu.matmul %27, %28, %cst_39 {dimension_numbers = #tpu.dot_dimension_numbers<[1], [0], [0], [1], [0, 0, 1, 1], [], []>} : vector<128x16xbf16>, vector<16x128xbf16>, vector<128x128xf32> -> vector<128x128xf32>
    %30 = arith.addf %25, %29 : vector<128x128xf32>
    %c0_40 = arith.constant 0 : index
    %c0_41 = arith.constant 0 : index
    %c3 = arith.constant 3 : index
    %c0_42 = arith.constant 0 : index
    %c0_43 = arith.constant 0 : index
    %31 = vector.load %arg1[%c0_40, %c0_41, %c3, %c0_42, %c0_43] : memref<2x9x4x9x16xbf16, #tpu.memory_space<vmem>>, vector<2x8x1x8x16xbf16>
    %32 = vector.shape_cast %31 : vector<2x8x1x8x16xbf16> to vector<128x16xbf16>
    %c96 = arith.constant 96 : index
    %c0_44 = arith.constant 0 : index
    %33 = vector.load %arg2[%c96, %c0_44] : memref<256x128xbf16, #tpu.memory_space<vmem>>, vector<16x128xbf16>
    %cst_45 = arith.constant dense<0.000000e+00> : vector<128x128xf32>
    %34 = tpu.matmul %32, %33, %cst_45 {dimension_numbers = #tpu.dot_dimension_numbers<[1], [0], [0], [1], [0, 0, 1, 1], [], []>} : vector<128x16xbf16>, vector<16x128xbf16>, vector<128x128xf32> -> vector<128x128xf32>
    %35 = arith.addf %30, %34 : vector<128x128xf32>
    %c0_46 = arith.constant 0 : index
    %c0_47 = arith.constant 0 : index
    %c3_48 = arith.constant 3 : index
    %c1_49 = arith.constant 1 : index
    %c0_50 = arith.constant 0 : index
    %36 = vector.load %arg1[%c0_46, %c0_47, %c3_48, %c1_49, %c0_50] : memref<2x9x4x9x16xbf16, #tpu.memory_space<vmem>>, vector<2x8x1x8x16xbf16>
    %37 = vector.shape_cast %36 : vector<2x8x1x8x16xbf16> to vector<128x16xbf16>
    %c112 = arith.constant 112 : index
    %c0_51 = arith.constant 0 : index
    %38 = vector.load %arg2[%c112, %c0_51] : memref<256x128xbf16, #tpu.memory_space<vmem>>, vector<16x128xbf16>
    %cst_52 = arith.constant dense<0.000000e+00> : vector<128x128xf32>
    %39 = tpu.matmul %37, %38, %cst_52 {dimension_numbers = #tpu.dot_dimension_numbers<[1], [0], [0], [1], [0, 0, 1, 1], [], []>} : vector<128x16xbf16>, vector<16x128xbf16>, vector<128x128xf32> -> vector<128x128xf32>
    %40 = arith.addf %35, %39 : vector<128x128xf32>
    %c0_53 = arith.constant 0 : index
    %c1_54 = arith.constant 1 : index
    %c0_55 = arith.constant 0 : index
    %c0_56 = arith.constant 0 : index
    %c0_57 = arith.constant 0 : index
    %41 = vector.load %arg1[%c0_53, %c1_54, %c0_55, %c0_56, %c0_57] : memref<2x9x4x9x16xbf16, #tpu.memory_space<vmem>>, vector<2x8x1x8x16xbf16>
    %42 = vector.shape_cast %41 : vector<2x8x1x8x16xbf16> to vector<128x16xbf16>
    %c128 = arith.constant 128 : index
    %c0_58 = arith.constant 0 : index
    %43 = vector.load %arg2[%c128, %c0_58] : memref<256x128xbf16, #tpu.memory_space<vmem>>, vector<16x128xbf16>
    %cst_59 = arith.constant dense<0.000000e+00> : vector<128x128xf32>
    %44 = tpu.matmul %42, %43, %cst_59 {dimension_numbers = #tpu.dot_dimension_numbers<[1], [0], [0], [1], [0, 0, 1, 1], [], []>} : vector<128x16xbf16>, vector<16x128xbf16>, vector<128x128xf32> -> vector<128x128xf32>
    %45 = arith.addf %40, %44 : vector<128x128xf32>
    %c0_60 = arith.constant 0 : index
    %c1_61 = arith.constant 1 : index
    %c0_62 = arith.constant 0 : index
    %c1_63 = arith.constant 1 : index
    %c0_64 = arith.constant 0 : index
    %46 = vector.load %arg1[%c0_60, %c1_61, %c0_62, %c1_63, %c0_64] : memref<2x9x4x9x16xbf16, #tpu.memory_space<vmem>>, vector<2x8x1x8x16xbf16>
    %47 = vector.shape_cast %46 : vector<2x8x1x8x16xbf16> to vector<128x16xbf16>
    %c144 = arith.constant 144 : index
    %c0_65 = arith.constant 0 : index
    %48 = vector.load %arg2[%c144, %c0_65] : memref<256x128xbf16, #tpu.memory_space<vmem>>, vector<16x128xbf16>
    %cst_66 = arith.constant dense<0.000000e+00> : vector<128x128xf32>
    %49 = tpu.matmul %47, %48, %cst_66 {dimension_numbers = #tpu.dot_dimension_numbers<[1], [0], [0], [1], [0, 0, 1, 1], [], []>} : vector<128x16xbf16>, vector<16x128xbf16>, vector<128x128xf32> -> vector<128x128xf32>
    %50 = arith.addf %45, %49 : vector<128x128xf32>
    %c0_67 = arith.constant 0 : index
    %c1_68 = arith.constant 1 : index
    %c1_69 = arith.constant 1 : index
    %c0_70 = arith.constant 0 : index
    %c0_71 = arith.constant 0 : index
    %51 = vector.load %arg1[%c0_67, %c1_68, %c1_69, %c0_70, %c0_71] : memref<2x9x4x9x16xbf16, #tpu.memory_space<vmem>>, vector<2x8x1x8x16xbf16>
    %52 = vector.shape_cast %51 : vector<2x8x1x8x16xbf16> to vector<128x16xbf16>
    %c160 = arith.constant 160 : index
    %c0_72 = arith.constant 0 : index
    %53 = vector.load %arg2[%c160, %c0_72] : memref<256x128xbf16, #tpu.memory_space<vmem>>, vector<16x128xbf16>
    %cst_73 = arith.constant dense<0.000000e+00> : vector<128x128xf32>
    %54 = tpu.matmul %52, %53, %cst_73 {dimension_numbers = #tpu.dot_dimension_numbers<[1], [0], [0], [1], [0, 0, 1, 1], [], []>} : vector<128x16xbf16>, vector<16x128xbf16>, vector<128x128xf32> -> vector<128x128xf32>
    %55 = arith.addf %50, %54 : vector<128x128xf32>
    %c0_74 = arith.constant 0 : index
    %c1_75 = arith.constant 1 : index
    %c1_76 = arith.constant 1 : index
    %c1_77 = arith.constant 1 : index
    %c0_78 = arith.constant 0 : index
    %56 = vector.load %arg1[%c0_74, %c1_75, %c1_76, %c1_77, %c0_78] : memref<2x9x4x9x16xbf16, #tpu.memory_space<vmem>>, vector<2x8x1x8x16xbf16>
    %57 = vector.shape_cast %56 : vector<2x8x1x8x16xbf16> to vector<128x16xbf16>
    %c176 = arith.constant 176 : index
    %c0_79 = arith.constant 0 : index
    %58 = vector.load %arg2[%c176, %c0_79] : memref<256x128xbf16, #tpu.memory_space<vmem>>, vector<16x128xbf16>
    %cst_80 = arith.constant dense<0.000000e+00> : vector<128x128xf32>
    %59 = tpu.matmul %57, %58, %cst_80 {dimension_numbers = #tpu.dot_dimension_numbers<[1], [0], [0], [1], [0, 0, 1, 1], [], []>} : vector<128x16xbf16>, vector<16x128xbf16>, vector<128x128xf32> -> vector<128x128xf32>
    %60 = arith.addf %55, %59 : vector<128x128xf32>
    %c0_81 = arith.constant 0 : index
    %c1_82 = arith.constant 1 : index
    %c2_83 = arith.constant 2 : index
    %c0_84 = arith.constant 0 : index
    %c0_85 = arith.constant 0 : index
    %61 = vector.load %arg1[%c0_81, %c1_82, %c2_83, %c0_84, %c0_85] : memref<2x9x4x9x16xbf16, #tpu.memory_space<vmem>>, vector<2x8x1x8x16xbf16>
    %62 = vector.shape_cast %61 : vector<2x8x1x8x16xbf16> to vector<128x16xbf16>
    %c192 = arith.constant 192 : index
    %c0_86 = arith.constant 0 : index
    %63 = vector.load %arg2[%c192, %c0_86] : memref<256x128xbf16, #tpu.memory_space<vmem>>, vector<16x128xbf16>
    %cst_87 = arith.constant dense<0.000000e+00> : vector<128x128xf32>
    %64 = tpu.matmul %62, %63, %cst_87 {dimension_numbers = #tpu.dot_dimension_numbers<[1], [0], [0], [1], [0, 0, 1, 1], [], []>} : vector<128x16xbf16>, vector<16x128xbf16>, vector<128x128xf32> -> vector<128x128xf32>
    %65 = arith.addf %60, %64 : vector<128x128xf32>
    %c0_88 = arith.constant 0 : index
    %c1_89 = arith.constant 1 : index
    %c2_90 = arith.constant 2 : index
    %c1_91 = arith.constant 1 : index
    %c0_92 = arith.constant 0 : index
    %66 = vector.load %arg1[%c0_88, %c1_89, %c2_90, %c1_91, %c0_92] : memref<2x9x4x9x16xbf16, #tpu.memory_space<vmem>>, vector<2x8x1x8x16xbf16>
    %67 = vector.shape_cast %66 : vector<2x8x1x8x16xbf16> to vector<128x16xbf16>
    %c208 = arith.constant 208 : index
    %c0_93 = arith.constant 0 : index
    %68 = vector.load %arg2[%c208, %c0_93] : memref<256x128xbf16, #tpu.memory_space<vmem>>, vector<16x128xbf16>
    %cst_94 = arith.constant dense<0.000000e+00> : vector<128x128xf32>
    %69 = tpu.matmul %67, %68, %cst_94 {dimension_numbers = #tpu.dot_dimension_numbers<[1], [0], [0], [1], [0, 0, 1, 1], [], []>} : vector<128x16xbf16>, vector<16x128xbf16>, vector<128x128xf32> -> vector<128x128xf32>
    %70 = arith.addf %65, %69 : vector<128x128xf32>
    %c0_95 = arith.constant 0 : index
    %c1_96 = arith.constant 1 : index
    %c3_97 = arith.constant 3 : index
    %c0_98 = arith.constant 0 : index
    %c0_99 = arith.constant 0 : index
    %71 = vector.load %arg1[%c0_95, %c1_96, %c3_97, %c0_98, %c0_99] : memref<2x9x4x9x16xbf16, #tpu.memory_space<vmem>>, vector<2x8x1x8x16xbf16>
    %72 = vector.shape_cast %71 : vector<2x8x1x8x16xbf16> to vector<128x16xbf16>
    %c224 = arith.constant 224 : index
    %c0_100 = arith.constant 0 : index
    %73 = vector.load %arg2[%c224, %c0_100] : memref<256x128xbf16, #tpu.memory_space<vmem>>, vector<16x128xbf16>
    %cst_101 = arith.constant dense<0.000000e+00> : vector<128x128xf32>
    %74 = tpu.matmul %72, %73, %cst_101 {dimension_numbers = #tpu.dot_dimension_numbers<[1], [0], [0], [1], [0, 0, 1, 1], [], []>} : vector<128x16xbf16>, vector<16x128xbf16>, vector<128x128xf32> -> vector<128x128xf32>
    %75 = arith.addf %70, %74 : vector<128x128xf32>
    %c0_102 = arith.constant 0 : index
    %c1_103 = arith.constant 1 : index
    %c3_104 = arith.constant 3 : index
    %c1_105 = arith.constant 1 : index
    %c0_106 = arith.constant 0 : index
    %76 = vector.load %arg1[%c0_102, %c1_103, %c3_104, %c1_105, %c0_106] : memref<2x9x4x9x16xbf16, #tpu.memory_space<vmem>>, vector<2x8x1x8x16xbf16>
    %77 = vector.shape_cast %76 : vector<2x8x1x8x16xbf16> to vector<128x16xbf16>
    %c240 = arith.constant 240 : index
    %c0_107 = arith.constant 0 : index
    %78 = vector.load %arg2[%c240, %c0_107] : memref<256x128xbf16, #tpu.memory_space<vmem>>, vector<16x128xbf16>
    %cst_108 = arith.constant dense<0.000000e+00> : vector<128x128xf32>
    %79 = tpu.matmul %77, %78, %cst_108 {dimension_numbers = #tpu.dot_dimension_numbers<[1], [0], [0], [1], [0, 0, 1, 1], [], []>} : vector<128x16xbf16>, vector<16x128xbf16>, vector<128x128xf32> -> vector<128x128xf32>
    %80 = arith.addf %75, %79 : vector<128x128xf32>
    %c0_109 = arith.constant 0 : index
    %c0_110 = arith.constant 0 : index
    %81 = vector.load %arg3[%c0_109, %c0_110] : memref<1x128xf32, #tpu.memory_space<vmem>>, vector<1x128xf32>
    %82 = vector.broadcast %81 : vector<1x128xf32> to vector<128x128xf32>
    %83 = arith.addf %80, %82 : vector<128x128xf32>
    %cst_111 = arith.constant 0.000000e+00 : f32
    %84 = vector.broadcast %cst_111 : f32 to vector<128x128xf32>
    %85 = arith.maximumf %83, %84 : vector<128x128xf32>
    %86 = vector.shape_cast %85 : vector<128x128xf32> to vector<2x8x8x128xf32>
    %87 = arith.truncf %86 : vector<2x8x8x128xf32> to vector<2x8x8x128xbf16>
    %c0_112 = arith.constant 0 : index
    %c0_113 = arith.constant 0 : index
    %c0_114 = arith.constant 0 : index
    %c0_115 = arith.constant 0 : index
    %88 = vector.load %arg4[%c0_112, %c0_113, %c0_114, %c0_115] : memref<2x8x8x128xbf16, #tpu.memory_space<vmem>>, vector<2x8x8x128xbf16>
    tpu.vector_store %arg4[%c0_112, %c0_113, %c0_114, %c0_115], %87 {strides = array<i32>} : memref<2x8x8x128xbf16, #tpu.memory_space<vmem>>, vector<2x8x8x128xbf16>,
    return
  }
  func.func @transform_0(%arg0: i32) -> (i32, i32, i32, i32, i32) {
    %c0_i32 = arith.constant 0 : i32
    %c0_i32_0 = arith.constant 0 : i32
    %c0_i32_1 = arith.constant 0 : i32
    %c0_i32_2 = arith.constant 0 : i32
    %c0_i32_3 = arith.constant 0 : i32
    return %arg0, %c0_i32, %c0_i32_0, %c0_i32_1, %c0_i32_2 : i32, i32, i32, i32, i32
  }
  func.func @transform_1(%arg0: i32) -> (i32, i32) {
    %c0_i32 = arith.constant 0 : i32
    %c0_i32_0 = arith.constant 0 : i32
    %c0_i32_1 = arith.constant 0 : i32
    return %c0_i32, %c0_i32_0 : i32, i32
  }
  func.func @transform_2(%arg0: i32) -> (i32, i32) {
    %c0_i32 = arith.constant 0 : i32
    %c0_i32_0 = arith.constant 0 : i32
    %c0_i32_1 = arith.constant 0 : i32
    return %c0_i32, %c0_i32_0 : i32, i32
  }
  func.func @transform_3(%arg0: i32) -> (i32, i32, i32, i32) {
    %c0_i32 = arith.constant 0 : i32
    %c0_i32_0 = arith.constant 0 : i32
    %c0_i32_1 = arith.constant 0 : i32
    %c0_i32_2 = arith.constant 0 : i32
    return %arg0, %c0_i32, %c0_i32_0, %c0_i32_1 : i32, i32, i32, i32
  }
}

module attributes {stable_mosaic.version = 11 : i64} {
  func.func @_conv_tap_matmul_kernel(%arg0: i32, %arg1: memref<2x3x1x10x128xbf16, #tpu.memory_space<vmem>>, %arg2: memref<1152x128xbf16, #tpu.memory_space<vmem>>, %arg3: memref<1x128xf32, #tpu.memory_space<vmem>>, %arg4: memref<2x1x8x128xbf16, #tpu.memory_space<vmem>>) attributes {dimension_semantics = [#tpu.dimension_semantics<parallel>], iteration_bounds = array<i64: 1>, scalar_prefetch = 0 : i64, scratch_operands = 0 : i64, tpu.core_type = #tpu.core_type<tc>, window_params = [{transform_indices = @transform_0, window_bounds = array<i64: 2, 3, 1, 10, 128>}, {pipeline_mode = #tpu.pipeline_mode<synchronous>, transform_indices = @transform_1, window_bounds = array<i64: 1152, 128>}, {pipeline_mode = #tpu.pipeline_mode<synchronous>, transform_indices = @transform_2, window_bounds = array<i64: 1, 128>}, {transform_indices = @transform_3, window_bounds = array<i64: 2, 1, 8, 128>}]} {
    %cst = arith.constant 0.000000e+00 : f32
    %0 = vector.broadcast %cst : f32 to vector<16x128xf32>
    %c0 = arith.constant 0 : index
    %c0_0 = arith.constant 0 : index
    %c0_1 = arith.constant 0 : index
    %c0_2 = arith.constant 0 : index
    %c0_3 = arith.constant 0 : index
    %1 = vector.load %arg1[%c0, %c0_0, %c0_1, %c0_2, %c0_3] : memref<2x3x1x10x128xbf16, #tpu.memory_space<vmem>>, vector<2x1x1x8x128xbf16>
    %2 = vector.shape_cast %1 : vector<2x1x1x8x128xbf16> to vector<16x128xbf16>
    %c0_4 = arith.constant 0 : index
    %c0_5 = arith.constant 0 : index
    %3 = vector.load %arg2[%c0_4, %c0_5] : memref<1152x128xbf16, #tpu.memory_space<vmem>>, vector<128x128xbf16>
    %cst_6 = arith.constant dense<0.000000e+00> : vector<16x128xf32>
    %4 = tpu.matmul %2, %3, %cst_6 {dimension_numbers = #tpu.dot_dimension_numbers<[1], [0], [0], [1], [0, 0, 1, 1], [], []>} : vector<16x128xbf16>, vector<128x128xbf16>, vector<16x128xf32> -> vector<16x128xf32>
    %5 = arith.addf %0, %4 : vector<16x128xf32>
    %c0_7 = arith.constant 0 : index
    %c0_8 = arith.constant 0 : index
    %c0_9 = arith.constant 0 : index
    %c1 = arith.constant 1 : index
    %c0_10 = arith.constant 0 : index
    %6 = vector.load %arg1[%c0_7, %c0_8, %c0_9, %c1, %c0_10] : memref<2x3x1x10x128xbf16, #tpu.memory_space<vmem>>, vector<2x1x1x8x128xbf16>
    %7 = vector.shape_cast %6 : vector<2x1x1x8x128xbf16> to vector<16x128xbf16>
    %c128 = arith.constant 128 : index
    %c0_11 = arith.constant 0 : index
    %8 = vector.load %arg2[%c128, %c0_11] : memref<1152x128xbf16, #tpu.memory_space<vmem>>, vector<128x128xbf16>
    %cst_12 = arith.constant dense<0.000000e+00> : vector<16x128xf32>
    %9 = tpu.matmul %7, %8, %cst_12 {dimension_numbers = #tpu.dot_dimension_numbers<[1], [0], [0], [1], [0, 0, 1, 1], [], []>} : vector<16x128xbf16>, vector<128x128xbf16>, vector<16x128xf32> -> vector<16x128xf32>
    %10 = arith.addf %5, %9 : vector<16x128xf32>
    %c0_13 = arith.constant 0 : index
    %c0_14 = arith.constant 0 : index
    %c0_15 = arith.constant 0 : index
    %c2 = arith.constant 2 : index
    %c0_16 = arith.constant 0 : index
    %11 = vector.load %arg1[%c0_13, %c0_14, %c0_15, %c2, %c0_16] : memref<2x3x1x10x128xbf16, #tpu.memory_space<vmem>>, vector<2x1x1x8x128xbf16>
    %12 = vector.shape_cast %11 : vector<2x1x1x8x128xbf16> to vector<16x128xbf16>
    %c256 = arith.constant 256 : index
    %c0_17 = arith.constant 0 : index
    %13 = vector.load %arg2[%c256, %c0_17] : memref<1152x128xbf16, #tpu.memory_space<vmem>>, vector<128x128xbf16>
    %cst_18 = arith.constant dense<0.000000e+00> : vector<16x128xf32>
    %14 = tpu.matmul %12, %13, %cst_18 {dimension_numbers = #tpu.dot_dimension_numbers<[1], [0], [0], [1], [0, 0, 1, 1], [], []>} : vector<16x128xbf16>, vector<128x128xbf16>, vector<16x128xf32> -> vector<16x128xf32>
    %15 = arith.addf %10, %14 : vector<16x128xf32>
    %c0_19 = arith.constant 0 : index
    %c1_20 = arith.constant 1 : index
    %c0_21 = arith.constant 0 : index
    %c0_22 = arith.constant 0 : index
    %c0_23 = arith.constant 0 : index
    %16 = vector.load %arg1[%c0_19, %c1_20, %c0_21, %c0_22, %c0_23] : memref<2x3x1x10x128xbf16, #tpu.memory_space<vmem>>, vector<2x1x1x8x128xbf16>
    %17 = vector.shape_cast %16 : vector<2x1x1x8x128xbf16> to vector<16x128xbf16>
    %c384 = arith.constant 384 : index
    %c0_24 = arith.constant 0 : index
    %18 = vector.load %arg2[%c384, %c0_24] : memref<1152x128xbf16, #tpu.memory_space<vmem>>, vector<128x128xbf16>
    %cst_25 = arith.constant dense<0.000000e+00> : vector<16x128xf32>
    %19 = tpu.matmul %17, %18, %cst_25 {dimension_numbers = #tpu.dot_dimension_numbers<[1], [0], [0], [1], [0, 0, 1, 1], [], []>} : vector<16x128xbf16>, vector<128x128xbf16>, vector<16x128xf32> -> vector<16x128xf32>
    %20 = arith.addf %15, %19 : vector<16x128xf32>
    %c0_26 = arith.constant 0 : index
    %c1_27 = arith.constant 1 : index
    %c0_28 = arith.constant 0 : index
    %c1_29 = arith.constant 1 : index
    %c0_30 = arith.constant 0 : index
    %21 = vector.load %arg1[%c0_26, %c1_27, %c0_28, %c1_29, %c0_30] : memref<2x3x1x10x128xbf16, #tpu.memory_space<vmem>>, vector<2x1x1x8x128xbf16>
    %22 = vector.shape_cast %21 : vector<2x1x1x8x128xbf16> to vector<16x128xbf16>
    %c512 = arith.constant 512 : index
    %c0_31 = arith.constant 0 : index
    %23 = vector.load %arg2[%c512, %c0_31] : memref<1152x128xbf16, #tpu.memory_space<vmem>>, vector<128x128xbf16>
    %cst_32 = arith.constant dense<0.000000e+00> : vector<16x128xf32>
    %24 = tpu.matmul %22, %23, %cst_32 {dimension_numbers = #tpu.dot_dimension_numbers<[1], [0], [0], [1], [0, 0, 1, 1], [], []>} : vector<16x128xbf16>, vector<128x128xbf16>, vector<16x128xf32> -> vector<16x128xf32>
    %25 = arith.addf %20, %24 : vector<16x128xf32>
    %c0_33 = arith.constant 0 : index
    %c1_34 = arith.constant 1 : index
    %c0_35 = arith.constant 0 : index
    %c2_36 = arith.constant 2 : index
    %c0_37 = arith.constant 0 : index
    %26 = vector.load %arg1[%c0_33, %c1_34, %c0_35, %c2_36, %c0_37] : memref<2x3x1x10x128xbf16, #tpu.memory_space<vmem>>, vector<2x1x1x8x128xbf16>
    %27 = vector.shape_cast %26 : vector<2x1x1x8x128xbf16> to vector<16x128xbf16>
    %c640 = arith.constant 640 : index
    %c0_38 = arith.constant 0 : index
    %28 = vector.load %arg2[%c640, %c0_38] : memref<1152x128xbf16, #tpu.memory_space<vmem>>, vector<128x128xbf16>
    %cst_39 = arith.constant dense<0.000000e+00> : vector<16x128xf32>
    %29 = tpu.matmul %27, %28, %cst_39 {dimension_numbers = #tpu.dot_dimension_numbers<[1], [0], [0], [1], [0, 0, 1, 1], [], []>} : vector<16x128xbf16>, vector<128x128xbf16>, vector<16x128xf32> -> vector<16x128xf32>
    %30 = arith.addf %25, %29 : vector<16x128xf32>
    %c0_40 = arith.constant 0 : index
    %c2_41 = arith.constant 2 : index
    %c0_42 = arith.constant 0 : index
    %c0_43 = arith.constant 0 : index
    %c0_44 = arith.constant 0 : index
    %31 = vector.load %arg1[%c0_40, %c2_41, %c0_42, %c0_43, %c0_44] : memref<2x3x1x10x128xbf16, #tpu.memory_space<vmem>>, vector<2x1x1x8x128xbf16>
    %32 = vector.shape_cast %31 : vector<2x1x1x8x128xbf16> to vector<16x128xbf16>
    %c768 = arith.constant 768 : index
    %c0_45 = arith.constant 0 : index
    %33 = vector.load %arg2[%c768, %c0_45] : memref<1152x128xbf16, #tpu.memory_space<vmem>>, vector<128x128xbf16>
    %cst_46 = arith.constant dense<0.000000e+00> : vector<16x128xf32>
    %34 = tpu.matmul %32, %33, %cst_46 {dimension_numbers = #tpu.dot_dimension_numbers<[1], [0], [0], [1], [0, 0, 1, 1], [], []>} : vector<16x128xbf16>, vector<128x128xbf16>, vector<16x128xf32> -> vector<16x128xf32>
    %35 = arith.addf %30, %34 : vector<16x128xf32>
    %c0_47 = arith.constant 0 : index
    %c2_48 = arith.constant 2 : index
    %c0_49 = arith.constant 0 : index
    %c1_50 = arith.constant 1 : index
    %c0_51 = arith.constant 0 : index
    %36 = vector.load %arg1[%c0_47, %c2_48, %c0_49, %c1_50, %c0_51] : memref<2x3x1x10x128xbf16, #tpu.memory_space<vmem>>, vector<2x1x1x8x128xbf16>
    %37 = vector.shape_cast %36 : vector<2x1x1x8x128xbf16> to vector<16x128xbf16>
    %c896 = arith.constant 896 : index
    %c0_52 = arith.constant 0 : index
    %38 = vector.load %arg2[%c896, %c0_52] : memref<1152x128xbf16, #tpu.memory_space<vmem>>, vector<128x128xbf16>
    %cst_53 = arith.constant dense<0.000000e+00> : vector<16x128xf32>
    %39 = tpu.matmul %37, %38, %cst_53 {dimension_numbers = #tpu.dot_dimension_numbers<[1], [0], [0], [1], [0, 0, 1, 1], [], []>} : vector<16x128xbf16>, vector<128x128xbf16>, vector<16x128xf32> -> vector<16x128xf32>
    %40 = arith.addf %35, %39 : vector<16x128xf32>
    %c0_54 = arith.constant 0 : index
    %c2_55 = arith.constant 2 : index
    %c0_56 = arith.constant 0 : index
    %c2_57 = arith.constant 2 : index
    %c0_58 = arith.constant 0 : index
    %41 = vector.load %arg1[%c0_54, %c2_55, %c0_56, %c2_57, %c0_58] : memref<2x3x1x10x128xbf16, #tpu.memory_space<vmem>>, vector<2x1x1x8x128xbf16>
    %42 = vector.shape_cast %41 : vector<2x1x1x8x128xbf16> to vector<16x128xbf16>
    %c1024 = arith.constant 1024 : index
    %c0_59 = arith.constant 0 : index
    %43 = vector.load %arg2[%c1024, %c0_59] : memref<1152x128xbf16, #tpu.memory_space<vmem>>, vector<128x128xbf16>
    %cst_60 = arith.constant dense<0.000000e+00> : vector<16x128xf32>
    %44 = tpu.matmul %42, %43, %cst_60 {dimension_numbers = #tpu.dot_dimension_numbers<[1], [0], [0], [1], [0, 0, 1, 1], [], []>} : vector<16x128xbf16>, vector<128x128xbf16>, vector<16x128xf32> -> vector<16x128xf32>
    %45 = arith.addf %40, %44 : vector<16x128xf32>
    %c0_61 = arith.constant 0 : index
    %c0_62 = arith.constant 0 : index
    %46 = vector.load %arg3[%c0_61, %c0_62] : memref<1x128xf32, #tpu.memory_space<vmem>>, vector<1x128xf32>
    %47 = vector.broadcast %46 : vector<1x128xf32> to vector<16x128xf32>
    %48 = arith.addf %45, %47 : vector<16x128xf32>
    %cst_63 = arith.constant 0.000000e+00 : f32
    %49 = vector.broadcast %cst_63 : f32 to vector<16x128xf32>
    %50 = arith.maximumf %48, %49 : vector<16x128xf32>
    %51 = vector.shape_cast %50 : vector<16x128xf32> to vector<2x1x8x128xf32>
    %52 = arith.truncf %51 : vector<2x1x8x128xf32> to vector<2x1x8x128xbf16>
    %c0_64 = arith.constant 0 : index
    %c0_65 = arith.constant 0 : index
    %c0_66 = arith.constant 0 : index
    %c0_67 = arith.constant 0 : index
    %53 = vector.load %arg4[%c0_64, %c0_65, %c0_66, %c0_67] : memref<2x1x8x128xbf16, #tpu.memory_space<vmem>>, vector<2x1x8x128xbf16>
    tpu.vector_store %arg4[%c0_64, %c0_65, %c0_66, %c0_67], %52 {strides = array<i32>} : memref<2x1x8x128xbf16, #tpu.memory_space<vmem>>, vector<2x1x8x128xbf16>,
    return
  }
  func.func @transform_0(%arg0: i32) -> (i32, i32, i32, i32, i32) {
    %c0_i32 = arith.constant 0 : i32
    %c0_i32_0 = arith.constant 0 : i32
    %c0_i32_1 = arith.constant 0 : i32
    %c0_i32_2 = arith.constant 0 : i32
    %c0_i32_3 = arith.constant 0 : i32
    return %arg0, %c0_i32, %c0_i32_0, %c0_i32_1, %c0_i32_2 : i32, i32, i32, i32, i32
  }
  func.func @transform_1(%arg0: i32) -> (i32, i32) {
    %c0_i32 = arith.constant 0 : i32
    %c0_i32_0 = arith.constant 0 : i32
    %c0_i32_1 = arith.constant 0 : i32
    return %c0_i32, %c0_i32_0 : i32, i32
  }
  func.func @transform_2(%arg0: i32) -> (i32, i32) {
    %c0_i32 = arith.constant 0 : i32
    %c0_i32_0 = arith.constant 0 : i32
    %c0_i32_1 = arith.constant 0 : i32
    return %c0_i32, %c0_i32_0 : i32, i32
  }
  func.func @transform_3(%arg0: i32) -> (i32, i32, i32, i32) {
    %c0_i32 = arith.constant 0 : i32
    %c0_i32_0 = arith.constant 0 : i32
    %c0_i32_1 = arith.constant 0 : i32
    %c0_i32_2 = arith.constant 0 : i32
    return %arg0, %c0_i32, %c0_i32_0, %c0_i32_1 : i32, i32, i32, i32
  }
}

module attributes {stable_mosaic.version = 11 : i64} {
  func.func @_conv_tap_matmul_kernel(%arg0: i32, %arg1: memref<2x4x2x9x256xbf16, #tpu.memory_space<vmem>>, %arg2: memref<2048x128xbf16, #tpu.memory_space<vmem>>, %arg3: memref<1x128xf32, #tpu.memory_space<vmem>>, %arg4: memref<2x3x8x128xbf16, #tpu.memory_space<vmem>>) attributes {dimension_semantics = [#tpu.dimension_semantics<parallel>], iteration_bounds = array<i64: 1>, scalar_prefetch = 0 : i64, scratch_operands = 0 : i64, tpu.core_type = #tpu.core_type<tc>, window_params = [{transform_indices = @transform_0, window_bounds = array<i64: 2, 4, 2, 9, 256>}, {pipeline_mode = #tpu.pipeline_mode<synchronous>, transform_indices = @transform_1, window_bounds = array<i64: 2048, 128>}, {pipeline_mode = #tpu.pipeline_mode<synchronous>, transform_indices = @transform_2, window_bounds = array<i64: 1, 128>}, {transform_indices = @transform_3, window_bounds = array<i64: 2, 3, 8, 128>}]} {
    %cst = arith.constant 0.000000e+00 : f32
    %0 = vector.broadcast %cst : f32 to vector<48x128xf32>
    %c0 = arith.constant 0 : index
    %c0_0 = arith.constant 0 : index
    %c0_1 = arith.constant 0 : index
    %c0_2 = arith.constant 0 : index
    %c0_3 = arith.constant 0 : index
    %1 = vector.load %arg1[%c0, %c0_0, %c0_1, %c0_2, %c0_3] : memref<2x4x2x9x256xbf16, #tpu.memory_space<vmem>>, vector<2x3x1x8x256xbf16>
    %2 = vector.shape_cast %1 : vector<2x3x1x8x256xbf16> to vector<48x256xbf16>
    %c0_4 = arith.constant 0 : index
    %c0_5 = arith.constant 0 : index
    %3 = vector.load %arg2[%c0_4, %c0_5] : memref<2048x128xbf16, #tpu.memory_space<vmem>>, vector<256x128xbf16>
    %cst_6 = arith.constant dense<0.000000e+00> : vector<48x128xf32>
    %4 = tpu.matmul %2, %3, %cst_6 {dimension_numbers = #tpu.dot_dimension_numbers<[1], [0], [0], [1], [0, 0, 1, 1], [], []>} : vector<48x256xbf16>, vector<256x128xbf16>, vector<48x128xf32> -> vector<48x128xf32>
    %5 = arith.addf %0, %4 : vector<48x128xf32>
    %c0_7 = arith.constant 0 : index
    %c0_8 = arith.constant 0 : index
    %c0_9 = arith.constant 0 : index
    %c1 = arith.constant 1 : index
    %c0_10 = arith.constant 0 : index
    %6 = vector.load %arg1[%c0_7, %c0_8, %c0_9, %c1, %c0_10] : memref<2x4x2x9x256xbf16, #tpu.memory_space<vmem>>, vector<2x3x1x8x256xbf16>
    %7 = vector.shape_cast %6 : vector<2x3x1x8x256xbf16> to vector<48x256xbf16>
    %c256 = arith.constant 256 : index
    %c0_11 = arith.constant 0 : index
    %8 = vector.load %arg2[%c256, %c0_11] : memref<2048x128xbf16, #tpu.memory_space<vmem>>, vector<256x128xbf16>
    %cst_12 = arith.constant dense<0.000000e+00> : vector<48x128xf32>
    %9 = tpu.matmul %7, %8, %cst_12 {dimension_numbers = #tpu.dot_dimension_numbers<[1], [0], [0], [1], [0, 0, 1, 1], [], []>} : vector<48x256xbf16>, vector<256x128xbf16>, vector<48x128xf32> -> vector<48x128xf32>
    %10 = arith.addf %5, %9 : vector<48x128xf32>
    %c0_13 = arith.constant 0 : index
    %c0_14 = arith.constant 0 : index
    %c1_15 = arith.constant 1 : index
    %c0_16 = arith.constant 0 : index
    %c0_17 = arith.constant 0 : index
    %11 = vector.load %arg1[%c0_13, %c0_14, %c1_15, %c0_16, %c0_17] : memref<2x4x2x9x256xbf16, #tpu.memory_space<vmem>>, vector<2x3x1x8x256xbf16>
    %12 = vector.shape_cast %11 : vector<2x3x1x8x256xbf16> to vector<48x256xbf16>
    %c512 = arith.constant 512 : index
    %c0_18 = arith.constant 0 : index
    %13 = vector.load %arg2[%c512, %c0_18] : memref<2048x128xbf16, #tpu.memory_space<vmem>>, vector<256x128xbf16>
    %cst_19 = arith.constant dense<0.000000e+00> : vector<48x128xf32>
    %14 = tpu.matmul %12, %13, %cst_19 {dimension_numbers = #tpu.dot_dimension_numbers<[1], [0], [0], [1], [0, 0, 1, 1], [], []>} : vector<48x256xbf16>, vector<256x128xbf16>, vector<48x128xf32> -> vector<48x128xf32>
    %15 = arith.addf %10, %14 : vector<48x128xf32>
    %c0_20 = arith.constant 0 : index
    %c0_21 = arith.constant 0 : index
    %c1_22 = arith.constant 1 : index
    %c1_23 = arith.constant 1 : index
    %c0_24 = arith.constant 0 : index
    %16 = vector.load %arg1[%c0_20, %c0_21, %c1_22, %c1_23, %c0_24] : memref<2x4x2x9x256xbf16, #tpu.memory_space<vmem>>, vector<2x3x1x8x256xbf16>
    %17 = vector.shape_cast %16 : vector<2x3x1x8x256xbf16> to vector<48x256xbf16>
    %c768 = arith.constant 768 : index
    %c0_25 = arith.constant 0 : index
    %18 = vector.load %arg2[%c768, %c0_25] : memref<2048x128xbf16, #tpu.memory_space<vmem>>, vector<256x128xbf16>
    %cst_26 = arith.constant dense<0.000000e+00> : vector<48x128xf32>
    %19 = tpu.matmul %17, %18, %cst_26 {dimension_numbers = #tpu.dot_dimension_numbers<[1], [0], [0], [1], [0, 0, 1, 1], [], []>} : vector<48x256xbf16>, vector<256x128xbf16>, vector<48x128xf32> -> vector<48x128xf32>
    %20 = arith.addf %15, %19 : vector<48x128xf32>
    %c0_27 = arith.constant 0 : index
    %c1_28 = arith.constant 1 : index
    %c0_29 = arith.constant 0 : index
    %c0_30 = arith.constant 0 : index
    %c0_31 = arith.constant 0 : index
    %21 = vector.load %arg1[%c0_27, %c1_28, %c0_29, %c0_30, %c0_31] : memref<2x4x2x9x256xbf16, #tpu.memory_space<vmem>>, vector<2x3x1x8x256xbf16>
    %22 = vector.shape_cast %21 : vector<2x3x1x8x256xbf16> to vector<48x256xbf16>
    %c1024 = arith.constant 1024 : index
    %c0_32 = arith.constant 0 : index
    %23 = vector.load %arg2[%c1024, %c0_32] : memref<2048x128xbf16, #tpu.memory_space<vmem>>, vector<256x128xbf16>
    %cst_33 = arith.constant dense<0.000000e+00> : vector<48x128xf32>
    %24 = tpu.matmul %22, %23, %cst_33 {dimension_numbers = #tpu.dot_dimension_numbers<[1], [0], [0], [1], [0, 0, 1, 1], [], []>} : vector<48x256xbf16>, vector<256x128xbf16>, vector<48x128xf32> -> vector<48x128xf32>
    %25 = arith.addf %20, %24 : vector<48x128xf32>
    %c0_34 = arith.constant 0 : index
    %c1_35 = arith.constant 1 : index
    %c0_36 = arith.constant 0 : index
    %c1_37 = arith.constant 1 : index
    %c0_38 = arith.constant 0 : index
    %26 = vector.load %arg1[%c0_34, %c1_35, %c0_36, %c1_37, %c0_38] : memref<2x4x2x9x256xbf16, #tpu.memory_space<vmem>>, vector<2x3x1x8x256xbf16>
    %27 = vector.shape_cast %26 : vector<2x3x1x8x256xbf16> to vector<48x256xbf16>
    %c1280 = arith.constant 1280 : index
    %c0_39 = arith.constant 0 : index
    %28 = vector.load %arg2[%c1280, %c0_39] : memref<2048x128xbf16, #tpu.memory_space<vmem>>, vector<256x128xbf16>
    %cst_40 = arith.constant dense<0.000000e+00> : vector<48x128xf32>
    %29 = tpu.matmul %27, %28, %cst_40 {dimension_numbers = #tpu.dot_dimension_numbers<[1], [0], [0], [1], [0, 0, 1, 1], [], []>} : vector<48x256xbf16>, vector<256x128xbf16>, vector<48x128xf32> -> vector<48x128xf32>
    %30 = arith.addf %25, %29 : vector<48x128xf32>
    %c0_41 = arith.constant 0 : index
    %c1_42 = arith.constant 1 : index
    %c1_43 = arith.constant 1 : index
    %c0_44 = arith.constant 0 : index
    %c0_45 = arith.constant 0 : index
    %31 = vector.load %arg1[%c0_41, %c1_42, %c1_43, %c0_44, %c0_45] : memref<2x4x2x9x256xbf16, #tpu.memory_space<vmem>>, vector<2x3x1x8x256xbf16>
    %32 = vector.shape_cast %31 : vector<2x3x1x8x256xbf16> to vector<48x256xbf16>
    %c1536 = arith.constant 1536 : index
    %c0_46 = arith.constant 0 : index
    %33 = vector.load %arg2[%c1536, %c0_46] : memref<2048x128xbf16, #tpu.memory_space<vmem>>, vector<256x128xbf16>
    %cst_47 = arith.constant dense<0.000000e+00> : vector<48x128xf32>
    %34 = tpu.matmul %32, %33, %cst_47 {dimension_numbers = #tpu.dot_dimension_numbers<[1], [0], [0], [1], [0, 0, 1, 1], [], []>} : vector<48x256xbf16>, vector<256x128xbf16>, vector<48x128xf32> -> vector<48x128xf32>
    %35 = arith.addf %30, %34 : vector<48x128xf32>
    %c0_48 = arith.constant 0 : index
    %c1_49 = arith.constant 1 : index
    %c1_50 = arith.constant 1 : index
    %c1_51 = arith.constant 1 : index
    %c0_52 = arith.constant 0 : index
    %36 = vector.load %arg1[%c0_48, %c1_49, %c1_50, %c1_51, %c0_52] : memref<2x4x2x9x256xbf16, #tpu.memory_space<vmem>>, vector<2x3x1x8x256xbf16>
    %37 = vector.shape_cast %36 : vector<2x3x1x8x256xbf16> to vector<48x256xbf16>
    %c1792 = arith.constant 1792 : index
    %c0_53 = arith.constant 0 : index
    %38 = vector.load %arg2[%c1792, %c0_53] : memref<2048x128xbf16, #tpu.memory_space<vmem>>, vector<256x128xbf16>
    %cst_54 = arith.constant dense<0.000000e+00> : vector<48x128xf32>
    %39 = tpu.matmul %37, %38, %cst_54 {dimension_numbers = #tpu.dot_dimension_numbers<[1], [0], [0], [1], [0, 0, 1, 1], [], []>} : vector<48x256xbf16>, vector<256x128xbf16>, vector<48x128xf32> -> vector<48x128xf32>
    %40 = arith.addf %35, %39 : vector<48x128xf32>
    %c0_55 = arith.constant 0 : index
    %c0_56 = arith.constant 0 : index
    %41 = vector.load %arg3[%c0_55, %c0_56] : memref<1x128xf32, #tpu.memory_space<vmem>>, vector<1x128xf32>
    %42 = vector.broadcast %41 : vector<1x128xf32> to vector<48x128xf32>
    %43 = arith.addf %40, %42 : vector<48x128xf32>
    %cst_57 = arith.constant 0.000000e+00 : f32
    %44 = vector.broadcast %cst_57 : f32 to vector<48x128xf32>
    %45 = arith.maximumf %43, %44 : vector<48x128xf32>
    %46 = vector.shape_cast %45 : vector<48x128xf32> to vector<2x3x8x128xf32>
    %47 = arith.truncf %46 : vector<2x3x8x128xf32> to vector<2x3x8x128xbf16>
    %c0_58 = arith.constant 0 : index
    %c0_59 = arith.constant 0 : index
    %c0_60 = arith.constant 0 : index
    %c0_61 = arith.constant 0 : index
    %48 = vector.load %arg4[%c0_58, %c0_59, %c0_60, %c0_61] : memref<2x3x8x128xbf16, #tpu.memory_space<vmem>>, vector<2x3x8x128xbf16>
    tpu.vector_store %arg4[%c0_58, %c0_59, %c0_60, %c0_61], %47 {strides = array<i32>} : memref<2x3x8x128xbf16, #tpu.memory_space<vmem>>, vector<2x3x8x128xbf16>,
    return
  }
  func.func @transform_0(%arg0: i32) -> (i32, i32, i32, i32, i32) {
    %c0_i32 = arith.constant 0 : i32
    %c0_i32_0 = arith.constant 0 : i32
    %c0_i32_1 = arith.constant 0 : i32
    %c0_i32_2 = arith.constant 0 : i32
    %c0_i32_3 = arith.constant 0 : i32
    return %arg0, %c0_i32, %c0_i32_0, %c0_i32_1, %c0_i32_2 : i32, i32, i32, i32, i32
  }
  func.func @transform_1(%arg0: i32) -> (i32, i32) {
    %c0_i32 = arith.constant 0 : i32
    %c0_i32_0 = arith.constant 0 : i32
    %c0_i32_1 = arith.constant 0 : i32
    return %c0_i32, %c0_i32_0 : i32, i32
  }
  func.func @transform_2(%arg0: i32) -> (i32, i32) {
    %c0_i32 = arith.constant 0 : i32
    %c0_i32_0 = arith.constant 0 : i32
    %c0_i32_1 = arith.constant 0 : i32
    return %c0_i32, %c0_i32_0 : i32, i32
  }
  func.func @transform_3(%arg0: i32) -> (i32, i32, i32, i32) {
    %c0_i32 = arith.constant 0 : i32
    %c0_i32_0 = arith.constant 0 : i32
    %c0_i32_1 = arith.constant 0 : i32
    %c0_i32_2 = arith.constant 0 : i32
    return %arg0, %c0_i32, %c0_i32_0, %c0_i32_1 : i32, i32, i32, i32
  }
}

module attributes {stable_mosaic.version = 11 : i64} {
  func.func @_dueling_tail_kernel(%arg0: i32, %arg1: memref<2x1024xbf16, #tpu.memory_space<vmem>>, %arg2: memref<1024x1024xbf16, #tpu.memory_space<vmem>>, %arg3: memref<1x1024xf32, #tpu.memory_space<vmem>>, %arg4: memref<512x128xbf16, #tpu.memory_space<vmem>>, %arg5: memref<1x128xf32, #tpu.memory_space<vmem>>, %arg6: memref<512x512xbf16, #tpu.memory_space<vmem>>, %arg7: memref<1x512xf32, #tpu.memory_space<vmem>>, %arg8: memref<2x512xf32, #tpu.memory_space<vmem>>) attributes {dimension_semantics = [#tpu.dimension_semantics<parallel>], iteration_bounds = array<i64: 1>, scalar_prefetch = 0 : i64, scratch_operands = 0 : i64, tpu.core_type = #tpu.core_type<tc>, window_params = [{transform_indices = @transform_0, window_bounds = array<i64: 2, 1024>}, {pipeline_mode = #tpu.pipeline_mode<synchronous>, transform_indices = @transform_1, window_bounds = array<i64: 1024, 1024>}, {pipeline_mode = #tpu.pipeline_mode<synchronous>, transform_indices = @transform_2, window_bounds = array<i64: 1, 1024>}, {pipeline_mode = #tpu.pipeline_mode<synchronous>, transform_indices = @transform_3, window_bounds = array<i64: 512, 128>}, {pipeline_mode = #tpu.pipeline_mode<synchronous>, transform_indices = @transform_4, window_bounds = array<i64: 1, 128>}, {pipeline_mode = #tpu.pipeline_mode<synchronous>, transform_indices = @transform_5, window_bounds = array<i64: 512, 512>}, {pipeline_mode = #tpu.pipeline_mode<synchronous>, transform_indices = @transform_6, window_bounds = array<i64: 1, 512>}, {transform_indices = @transform_7, window_bounds = array<i64: 2, 512>}]} {
    %c0 = arith.constant 0 : index
    %c0_0 = arith.constant 0 : index
    %0 = vector.load %arg1[%c0, %c0_0] : memref<2x1024xbf16, #tpu.memory_space<vmem>>, vector<2x1024xbf16>
    %c0_1 = arith.constant 0 : index
    %c0_2 = arith.constant 0 : index
    %1 = vector.load %arg2[%c0_1, %c0_2] : memref<1024x1024xbf16, #tpu.memory_space<vmem>>, vector<1024x1024xbf16>
    %cst = arith.constant dense<0.000000e+00> : vector<2x1024xf32>
    %2 = tpu.matmul %0, %1, %cst {dimension_numbers = #tpu.dot_dimension_numbers<[1], [0], [0], [1], [0, 0, 1, 1], [], []>} : vector<2x1024xbf16>, vector<1024x1024xbf16>, vector<2x1024xf32> -> vector<2x1024xf32>
    %c0_3 = arith.constant 0 : index
    %c0_4 = arith.constant 0 : index
    %3 = vector.load %arg3[%c0_3, %c0_4] : memref<1x1024xf32, #tpu.memory_space<vmem>>, vector<1x1024xf32>
    %4 = vector.broadcast %3 : vector<1x1024xf32> to vector<2x1024xf32>
    %5 = arith.addf %2, %4 : vector<2x1024xf32>
    %cst_5 = arith.constant 0.000000e+00 : f32
    %6 = vector.broadcast %cst_5 : f32 to vector<2x1024xf32>
    %7 = arith.maximumf %5, %6 : vector<2x1024xf32>
    %8 = vector.extract_strided_slice %7 {offsets = [0, 0], sizes = [2, 512], strides = [1, 1]} : vector<2x1024xf32> to vector<2x512xf32>
    %9 = arith.truncf %8 : vector<2x512xf32> to vector<2x512xbf16>
    %10 = vector.extract_strided_slice %7 {offsets = [0, 512], sizes = [2, 512], strides = [1, 1]} : vector<2x1024xf32> to vector<2x512xf32>
    %11 = arith.truncf %10 : vector<2x512xf32> to vector<2x512xbf16>
    %c0_6 = arith.constant 0 : index
    %c0_7 = arith.constant 0 : index
    %12 = vector.load %arg4[%c0_6, %c0_7] : memref<512x128xbf16, #tpu.memory_space<vmem>>, vector<512x128xbf16>
    %cst_8 = arith.constant dense<0.000000e+00> : vector<2x128xf32>
    %13 = tpu.matmul %9, %12, %cst_8 {dimension_numbers = #tpu.dot_dimension_numbers<[1], [0], [0], [1], [0, 0, 1, 1], [], []>} : vector<2x512xbf16>, vector<512x128xbf16>, vector<2x128xf32> -> vector<2x128xf32>
    %c0_9 = arith.constant 0 : index
    %c0_10 = arith.constant 0 : index
    %14 = vector.load %arg5[%c0_9, %c0_10] : memref<1x128xf32, #tpu.memory_space<vmem>>, vector<1x128xf32>
    %15 = vector.broadcast %14 : vector<1x128xf32> to vector<2x128xf32>
    %16 = arith.addf %13, %15 : vector<2x128xf32>
    %c0_11 = arith.constant 0 : index
    %c0_12 = arith.constant 0 : index
    %17 = vector.load %arg6[%c0_11, %c0_12] : memref<512x512xbf16, #tpu.memory_space<vmem>>, vector<512x512xbf16>
    %cst_13 = arith.constant dense<0.000000e+00> : vector<2x512xf32>
    %18 = tpu.matmul %11, %17, %cst_13 {dimension_numbers = #tpu.dot_dimension_numbers<[1], [0], [0], [1], [0, 0, 1, 1], [], []>} : vector<2x512xbf16>, vector<512x512xbf16>, vector<2x512xf32> -> vector<2x512xf32>
    %c0_14 = arith.constant 0 : index
    %c0_15 = arith.constant 0 : index
    %19 = vector.load %arg7[%c0_14, %c0_15] : memref<1x512xf32, #tpu.memory_space<vmem>>, vector<1x512xf32>
    %20 = vector.broadcast %19 : vector<1x512xf32> to vector<2x512xf32>
    %21 = arith.addf %18, %20 : vector<2x512xf32>
    %22 = vector.extract_strided_slice %21 {offsets = [0, 0], sizes = [2, 128], strides = [1, 1]} : vector<2x512xf32> to vector<2x128xf32>
    %23 = vector.extract_strided_slice %21 {offsets = [0, 128], sizes = [2, 128], strides = [1, 1]} : vector<2x512xf32> to vector<2x128xf32>
    %24 = arith.addf %22, %23 : vector<2x128xf32>
    %25 = vector.extract_strided_slice %21 {offsets = [0, 256], sizes = [2, 128], strides = [1, 1]} : vector<2x512xf32> to vector<2x128xf32>
    %26 = arith.addf %24, %25 : vector<2x128xf32>
    %27 = vector.extract_strided_slice %21 {offsets = [0, 384], sizes = [2, 128], strides = [1, 1]} : vector<2x512xf32> to vector<2x128xf32>
    %28 = arith.addf %26, %27 : vector<2x128xf32>
    %cst_16 = arith.constant 2.500000e-01 : f32
    %29 = vector.broadcast %cst_16 : f32 to vector<2x128xf32>
    %30 = arith.mulf %28, %29 : vector<2x128xf32>
    %31 = tpu.iota {dimensions = array<i32: 1>} : vector<2x128xi32>
    %c51_i32 = arith.constant 51 : i32
    %32 = vector.broadcast %c51_i32 : i32 to vector<2x128xi32>
    %33 = arith.cmpi slt, %31, %32 : vector<2x128xi32>
    %34 = vector.extract_strided_slice %21 {offsets = [0, 0], sizes = [2, 128], strides = [1, 1]} : vector<2x512xf32> to vector<2x128xf32>
    %35 = arith.addf %16, %34 : vector<2x128xf32>
    %36 = arith.subf %35, %30 : vector<2x128xf32>
    %cst_17 = arith.constant -3.40282347E+38 : f32
    %37 = vector.broadcast %cst_17 : f32 to vector<2x128xf32>
    %38 = arith.select %33, %36, %37 : vector<2x128xi1>, vector<2x128xf32>
    %cst_18 = arith.constant dense<0xFF800000> : vector<2xf32>
    %39 = vector.multi_reduction <maximumf>, %38, %cst_18 [1] : vector<2x128xf32> to vector<2xf32>
    %40 = vector.shape_cast %39 : vector<2xf32> to vector<2x1xf32>
    %41 = vector.broadcast %40 : vector<2x1xf32> to vector<2x128xf32>
    %42 = arith.subf %36, %41 : vector<2x128xf32>
    %43 = math.exp %42 : vector<2x128xf32>
    %cst_19 = arith.constant 0.000000e+00 : f32
    %44 = vector.broadcast %cst_19 : f32 to vector<2x128xf32>
    %45 = arith.select %33, %43, %44 : vector<2x128xi1>, vector<2x128xf32>
    %cst_20 = arith.constant dense<0.000000e+00> : vector<2xf32>
    %46 = vector.multi_reduction <add>, %45, %cst_20 [1] : vector<2x128xf32> to vector<2xf32>
    %47 = vector.shape_cast %46 : vector<2xf32> to vector<2x1xf32>
    %48 = tpu.reciprocal %47 {approx = true} : vector<2x1xf32> -> vector<2x1xf32>
    %49 = vector.broadcast %48 : vector<2x1xf32> to vector<2x128xf32>
    %50 = arith.mulf %45, %49 : vector<2x128xf32>
    %c0_21 = arith.constant 0 : index
    %c0_22 = arith.constant 0 : index
    %51 = vector.load %arg8[%c0_21, %c0_22] : memref<2x512xf32, #tpu.memory_space<vmem>>, vector<2x128xf32>
    tpu.vector_store %arg8[%c0_21, %c0_22], %50 {strides = array<i32>} : memref<2x512xf32, #tpu.memory_space<vmem>>, vector<2x128xf32>,
    %52 = vector.extract_strided_slice %21 {offsets = [0, 128], sizes = [2, 128], strides = [1, 1]} : vector<2x512xf32> to vector<2x128xf32>
    %53 = arith.addf %16, %52 : vector<2x128xf32>
    %54 = arith.subf %53, %30 : vector<2x128xf32>
    %cst_23 = arith.constant -3.40282347E+38 : f32
    %55 = vector.broadcast %cst_23 : f32 to vector<2x128xf32>
    %56 = arith.select %33, %54, %55 : vector<2x128xi1>, vector<2x128xf32>
    %cst_24 = arith.constant dense<0xFF800000> : vector<2xf32>
    %57 = vector.multi_reduction <maximumf>, %56, %cst_24 [1] : vector<2x128xf32> to vector<2xf32>
    %58 = vector.shape_cast %57 : vector<2xf32> to vector<2x1xf32>
    %59 = vector.broadcast %58 : vector<2x1xf32> to vector<2x128xf32>
    %60 = arith.subf %54, %59 : vector<2x128xf32>
    %61 = math.exp %60 : vector<2x128xf32>
    %cst_25 = arith.constant 0.000000e+00 : f32
    %62 = vector.broadcast %cst_25 : f32 to vector<2x128xf32>
    %63 = arith.select %33, %61, %62 : vector<2x128xi1>, vector<2x128xf32>
    %cst_26 = arith.constant dense<0.000000e+00> : vector<2xf32>
    %64 = vector.multi_reduction <add>, %63, %cst_26 [1] : vector<2x128xf32> to vector<2xf32>
    %65 = vector.shape_cast %64 : vector<2xf32> to vector<2x1xf32>
    %66 = tpu.reciprocal %65 {approx = true} : vector<2x1xf32> -> vector<2x1xf32>
    %67 = vector.broadcast %66 : vector<2x1xf32> to vector<2x128xf32>
    %68 = arith.mulf %63, %67 : vector<2x128xf32>
    %c0_27 = arith.constant 0 : index
    %c128 = arith.constant 128 : index
    %69 = vector.load %arg8[%c0_27, %c128] : memref<2x512xf32, #tpu.memory_space<vmem>>, vector<2x128xf32>
    tpu.vector_store %arg8[%c0_27, %c128], %68 {strides = array<i32>} : memref<2x512xf32, #tpu.memory_space<vmem>>, vector<2x128xf32>,
    %70 = vector.extract_strided_slice %21 {offsets = [0, 256], sizes = [2, 128], strides = [1, 1]} : vector<2x512xf32> to vector<2x128xf32>
    %71 = arith.addf %16, %70 : vector<2x128xf32>
    %72 = arith.subf %71, %30 : vector<2x128xf32>
    %cst_28 = arith.constant -3.40282347E+38 : f32
    %73 = vector.broadcast %cst_28 : f32 to vector<2x128xf32>
    %74 = arith.select %33, %72, %73 : vector<2x128xi1>, vector<2x128xf32>
    %cst_29 = arith.constant dense<0xFF800000> : vector<2xf32>
    %75 = vector.multi_reduction <maximumf>, %74, %cst_29 [1] : vector<2x128xf32> to vector<2xf32>
    %76 = vector.shape_cast %75 : vector<2xf32> to vector<2x1xf32>
    %77 = vector.broadcast %76 : vector<2x1xf32> to vector<2x128xf32>
    %78 = arith.subf %72, %77 : vector<2x128xf32>
    %79 = math.exp %78 : vector<2x128xf32>
    %cst_30 = arith.constant 0.000000e+00 : f32
    %80 = vector.broadcast %cst_30 : f32 to vector<2x128xf32>
    %81 = arith.select %33, %79, %80 : vector<2x128xi1>, vector<2x128xf32>
    %cst_31 = arith.constant dense<0.000000e+00> : vector<2xf32>
    %82 = vector.multi_reduction <add>, %81, %cst_31 [1] : vector<2x128xf32> to vector<2xf32>
    %83 = vector.shape_cast %82 : vector<2xf32> to vector<2x1xf32>
    %84 = tpu.reciprocal %83 {approx = true} : vector<2x1xf32> -> vector<2x1xf32>
    %85 = vector.broadcast %84 : vector<2x1xf32> to vector<2x128xf32>
    %86 = arith.mulf %81, %85 : vector<2x128xf32>
    %c0_32 = arith.constant 0 : index
    %c256 = arith.constant 256 : index
    %87 = vector.load %arg8[%c0_32, %c256] : memref<2x512xf32, #tpu.memory_space<vmem>>, vector<2x128xf32>
    tpu.vector_store %arg8[%c0_32, %c256], %86 {strides = array<i32>} : memref<2x512xf32, #tpu.memory_space<vmem>>, vector<2x128xf32>,
    %88 = vector.extract_strided_slice %21 {offsets = [0, 384], sizes = [2, 128], strides = [1, 1]} : vector<2x512xf32> to vector<2x128xf32>
    %89 = arith.addf %16, %88 : vector<2x128xf32>
    %90 = arith.subf %89, %30 : vector<2x128xf32>
    %cst_33 = arith.constant -3.40282347E+38 : f32
    %91 = vector.broadcast %cst_33 : f32 to vector<2x128xf32>
    %92 = arith.select %33, %90, %91 : vector<2x128xi1>, vector<2x128xf32>
    %cst_34 = arith.constant dense<0xFF800000> : vector<2xf32>
    %93 = vector.multi_reduction <maximumf>, %92, %cst_34 [1] : vector<2x128xf32> to vector<2xf32>
    %94 = vector.shape_cast %93 : vector<2xf32> to vector<2x1xf32>
    %95 = vector.broadcast %94 : vector<2x1xf32> to vector<2x128xf32>
    %96 = arith.subf %90, %95 : vector<2x128xf32>
    %97 = math.exp %96 : vector<2x128xf32>
    %cst_35 = arith.constant 0.000000e+00 : f32
    %98 = vector.broadcast %cst_35 : f32 to vector<2x128xf32>
    %99 = arith.select %33, %97, %98 : vector<2x128xi1>, vector<2x128xf32>
    %cst_36 = arith.constant dense<0.000000e+00> : vector<2xf32>
    %100 = vector.multi_reduction <add>, %99, %cst_36 [1] : vector<2x128xf32> to vector<2xf32>
    %101 = vector.shape_cast %100 : vector<2xf32> to vector<2x1xf32>
    %102 = tpu.reciprocal %101 {approx = true} : vector<2x1xf32> -> vector<2x1xf32>
    %103 = vector.broadcast %102 : vector<2x1xf32> to vector<2x128xf32>
    %104 = arith.mulf %99, %103 : vector<2x128xf32>
    %c0_37 = arith.constant 0 : index
    %c384 = arith.constant 384 : index
    %105 = vector.load %arg8[%c0_37, %c384] : memref<2x512xf32, #tpu.memory_space<vmem>>, vector<2x128xf32>
    tpu.vector_store %arg8[%c0_37, %c384], %104 {strides = array<i32>} : memref<2x512xf32, #tpu.memory_space<vmem>>, vector<2x128xf32>,
    return
  }
  func.func @transform_0(%arg0: i32) -> (i32, i32) {
    %c0_i32 = arith.constant 0 : i32
    %c0_i32_0 = arith.constant 0 : i32
    return %arg0, %c0_i32 : i32, i32
  }
  func.func @transform_1(%arg0: i32) -> (i32, i32) {
    %c0_i32 = arith.constant 0 : i32
    %c0_i32_0 = arith.constant 0 : i32
    %c0_i32_1 = arith.constant 0 : i32
    return %c0_i32, %c0_i32_0 : i32, i32
  }
  func.func @transform_2(%arg0: i32) -> (i32, i32) {
    %c0_i32 = arith.constant 0 : i32
    %c0_i32_0 = arith.constant 0 : i32
    %c0_i32_1 = arith.constant 0 : i32
    return %c0_i32, %c0_i32_0 : i32, i32
  }
  func.func @transform_3(%arg0: i32) -> (i32, i32) {
    %c0_i32 = arith.constant 0 : i32
    %c0_i32_0 = arith.constant 0 : i32
    %c0_i32_1 = arith.constant 0 : i32
    return %c0_i32, %c0_i32_0 : i32, i32
  }
  func.func @transform_4(%arg0: i32) -> (i32, i32) {
    %c0_i32 = arith.constant 0 : i32
    %c0_i32_0 = arith.constant 0 : i32
    %c0_i32_1 = arith.constant 0 : i32
    return %c0_i32, %c0_i32_0 : i32, i32
  }
  func.func @transform_5(%arg0: i32) -> (i32, i32) {
    %c0_i32 = arith.constant 0 : i32
    %c0_i32_0 = arith.constant 0 : i32
    %c0_i32_1 = arith.constant 0 : i32
    return %c0_i32, %c0_i32_0 : i32, i32
  }
  func.func @transform_6(%arg0: i32) -> (i32, i32) {
    %c0_i32 = arith.constant 0 : i32
    %c0_i32_0 = arith.constant 0 : i32
    %c0_i32_1 = arith.constant 0 : i32
    return %c0_i32, %c0_i32_0 : i32, i32
  }
  func.func @transform_7(%arg0: i32) -> (i32, i32) {
    %c0_i32 = arith.constant 0 : i32
    %c0_i32_0 = arith.constant 0 : i32
    return %arg0, %c0_i32 : i32, i32
  }
}

</mosaic_0001>

<bundles_post_ra>
// kernel: forward.6
= control target key start
LH: loop header
LB: loop body
LE: loop exit
PB: predicated region body
PF: predicated region fallthrough
CT: control target
= control target key end

     0   :  { %v1632_v0 = vmov 0.0   ;;  %vm1633_vm0 = vmmov 0   ;;  %vm35_vm1 = vsmask.f32 3328  ;;  %vm36_vm2 = vsmask.f32 7440  ;;  %s2075_s1 = inlined_call_operand.vmem [shape: bf16[1152,128], index: 1, kind: input, shape index: {}]   ;;  %s2076_s0 = inlined_call_operand.vmem [shape: bf16[2,3,1,10,128], index: 0, kind: input, shape index: {}]   ;;  %s2077_s2 = inlined_call_operand.vmem [shape: f32[1,128], index: 2, kind: input, shape index: {}]   ;;  %s2078_s3 = inlined_call_operand.vmem [shape: bf16[2,1,8,128], index: 3, kind: output, shape index: {}]  }
   0x1   :  { %1375 = vmatprep.subr.bf16.mxu0 %v1632_v0  ;;  %1395 = vmatprep.subr.bf16.mxu1 %v1632_v0  ;;  %v1557_v1 = vld [vmem:[%s2075_s1 + $0x78] sm:$0xff]   ;;  %v1559_v3 = vld [vmem:[%s2075_s1 + $0x70] sm:$0xff]   ;;  %v1561_v5 = vld [vmem:[%s2075_s1 + $0x68] sm:$0xff]   ;;  %vm276_vm4 = vcmask 1042432   ;;  %vm277_vm5 = vcmask 1046532  }
   0x2   :  { %v1558_v2 = vld [vmem:[%s2075_s1 + $0x38] sm:$0xff]   ;;  %1391 = vmatprep.mubr.msk.bf16.mxu0 %vm1633_vm0, %v1632_v0  ;;  %1411 = vmatprep.mubr.msk.bf16.mxu1 %vm1633_vm0, %v1632_v0  ;;  %v1560_v4 = vld [vmem:[%s2075_s1 + $0x30] sm:$0xff]   ;;  %v1562_v6 = vld [vmem:[%s2075_s1 + $0x28] sm:$0xff]  }
   0x3   :  { %1376 = vmatpush3.bf16.msra.mxu0 %v1557_v1  ;;  %1396 = vmatpush3.bf16.msra.mxu1 %v1558_v2  ;;  %v1563_v7 = vld [vmem:[%s2075_s1 + $0x60] sm:$0xff]   ;;  %v1565_v9 = vld [vmem:[%s2075_s1 + $0x58] sm:$0xff]   ;;  %v1567_v18 = vld [vmem:[%s2075_s1 + $0x50] sm:$0xff]  }
   0x4   :  { %1377 = vmatprep.subr.bf16.mxu0 %v1632_v0  ;;  %1397 = vmatprep.subr.bf16.mxu1 %v1632_v0  ;;  %v1564_v8 = vld [vmem:[%s2075_s1 + $0x20] sm:$0xff]   ;;  %v1566_v10 = vld [vmem:[%s2075_s1 + $0x18] sm:$0xff]   ;;  %v1568_v22 = vld [vmem:[%s2075_s1 + $0x10] sm:$0xff]  }
   0x5   :  { %v15_v11 = vld [vmem:[%s2076_s0] sm:$0xf]  ;;  %v16_v12 = vld [vmem:[%s2076_s0 + $0x18] sm:$0xf]  ;;  %v1707_v13 = vld [vmem:[%s2076_s0 + $0x4] sm:$0x1] }
   0x6   :  { %v1712_v14 = vld [vmem:[%s2076_s0 + $0x1c] sm:$0x1]  ;;  %v39_v15 = vshrl.u32 %v15_v11, 16  ;;  %v42_v16 = vshll.u32 %v15_v11, 16  ;;  %v53_v17 = vshrl.u32 %v16_v12, 16  ;;  %v48_v19 = vshll.u32 %v1707_v13, 16  ;;  %vm1732_vm3 = vmor %vm35_vm1, %vm36_vm2 }
   0x7   :  { %1378 = vmatpush3.bf16.msra.mxu0 %v1559_v3  ;;  %1398 = vmatpush3.bf16.msra.mxu1 %v1560_v4  ;;  %v56_v20 = vshll.u32 %v16_v12, 16  ;;  %v62_v21 = vshll.u32 %v1712_v14, 16  ;;  %v1569_v26 = vld [vmem:[%s2075_s1 + $0x48] sm:$0xff]   ;;  %v1571_v36 = vld [vmem:[%s2075_s1 + $0x40] sm:$0xff]   ;;  %v1194_v41 = vcombine.low %v15_v11, %v16_v12  ;;  %v1574_v42 = vld [vmem:[%s2075_s1 + $0xb8] sm:$0xff]   ;;  %v281_v56 = vrot.slane %v1707_v13, 5 }
   0x8   :  { %1379 = vmatprep.subr.bf16.mxu0 %v1632_v0  ;;  %1399 = vmatprep.subr.bf16.mxu1 %v1632_v0  ;;  %v41_v23 = vrot.slane %v39_v15, 4  ;;  %v44_v24 = vrot.slane %v42_v16, 5  ;;  %v55_v25 = vrot.slane %v53_v17, 4  ;;  %v1570_v28 = vld [vmem:[%s2075_s1 + $0x8] sm:$0xff]   ;;  %v50_v30 = vrot.slane %v48_v19, 5  ;;  %v1572_v39 = vld [vmem:[%s2075_s1] sm:$0xff]   ;;  %vm1816_vm6 = vmor %vm276_vm4, %vm277_vm5 }
   0x9   :  { %v58_v27 = vrot.slane %v56_v20, 5  ;;  %v64_v32 = vrot.slane %v62_v21, 5  ;;  %v1575_v43 = vld [vmem:[%s2075_s1 + $0xf8] sm:$0xff]   ;;  %v1576_v44 = vld [vmem:[%s2075_s1 + $0xb0] sm:$0xff]   ;;  %v1578_v46 = vld [vmem:[%s2075_s1 + $0xa8] sm:$0xff]   ;;  %v285_v57 = vrot.slane %v1712_v14, 5 }
   0xa   :  { %v45_v29 = vor.u32 %v44_v24, %v41_v23  ;;  %v1577_v45 = vld [vmem:[%s2075_s1 + $0xf0] sm:$0xff]   ;;  %v1579_v47 = vld [vmem:[%s2075_s1 + $0xe8] sm:$0xff]   ;;  %v1580_v48 = vld [vmem:[%s2075_s1 + $0xa0] sm:$0xff]  }
   0xb   :  { %1380 = vmatpush3.bf16.msra.mxu0 %v1561_v5  ;;  %1400 = vmatpush3.bf16.msra.mxu1 %v1562_v6  ;;  %v59_v31 = vor.u32 %v58_v27, %v55_v25  ;;  %v1581_v49 = vld [vmem:[%s2075_s1 + $0xe0] sm:$0xff]   ;;  %v1582_v50 = vld [vmem:[%s2075_s1 + $0x98] sm:$0xff]   ;;  %v1584_v52 = vld [vmem:[%s2075_s1 + $0x90] sm:$0xff]  }
   0xc   :  { %1381 = vmatprep.subr.bf16.mxu0 %v1632_v0  ;;  %1401 = vmatprep.subr.bf16.mxu1 %v1632_v0  ;;  %v46_v34 = vrot.slane %v45_v29, 4  ;;  %v1583_v51 = vld [vmem:[%s2075_s1 + $0xd8] sm:$0xff]   ;;  %v1585_v53 = vld [vmem:[%s2075_s1 + $0xd0] sm:$0xff]   ;;  %v270_v54 = vld [vmem:[%s2076_s0] sm:$0xe] }
   0xd   :  { %v60_v35 = vrot.slane %v59_v31, 4  ;;  %v271_v55 = vld [vmem:[%s2076_s0 + $0x18] sm:$0xe]  ;;  %v1586_v58 = vld [vmem:[%s2075_s1 + $0x88] sm:$0xff]   ;;  %v1203_v59 = vrot.slane %v270_v54, 9  ;;  %v1588_v63 = vld [vmem:[%s2075_s1 + $0x80] sm:$0xff]  }
   0xe   :  { %v51_v37 = vsel %vm1732_vm3, %v46_v34, %v50_v30  ;;  %v1204_v60 = vrot.slane %v271_v55, 9  ;;  %v1587_v61 = vld [vmem:[%s2075_s1 + $0xc8] sm:$0xff]   ;;  %v1589_v3 = vld [vmem:[%s2075_s1 + $0xc0] sm:$0xff]   ;;  %v1590_v5 = vld [vmem:[%s2075_s1 + $0x138] sm:$0xff]  }
   0xf   :  { %1382 = vmatpush3.bf16.msra.mxu0 %v1563_v7  ;;  %1402 = vmatpush3.bf16.msra.mxu1 %v1564_v8  ;;  %v65_v38 = vsel %vm1732_vm3, %v60_v35, %v64_v32  ;;  %v282_v1 = vsel %vm1816_vm6, %v1203_v59, %v281_v56  ;;  %v1591_v6 = vld [vmem:[%s2076_s0 + $0x8] ss:$24 sps:$4 sm:$0xff]   ;;  %v1592_v7 = vld [vmem:[%s2075_s1 + $0x178] sm:$0xff]   ;;  %v1593_v8 = vld [vmem:[%s2075_s1 + $0x130] sm:$0xff]  }
  0x10   :  { %1383 = vmatprep.subr.bf16.mxu0 %v1632_v0  ;;  %1403 = vmatprep.subr.bf16.mxu1 %v1632_v0  ;;  %v1185_v40 = vcombine.low %v51_v37, %v65_v38  ;;  %v286_v2 = vsel %vm1816_vm6, %v1204_v60, %v285_v57  ;;  %v1596_v11 = vld [vmem:[%s2075_s1 + $0x168] sm:$0xff]   ;;  %v1227_v13 = vld [vmem:[%s2076_s0 + $0x20] sm:$0xf]  ;;  %v1599_v20 = vld [vmem:[%s2075_s1 + $0x118] sm:$0xff]  }
  0x11   :  { %v1205_v4 = vcombine.low %v282_v1, %v286_v2  ;;  %v1225_v12 = vld [vmem:[%s2076_s0 + $0x8] sm:$0xf]  ;;  %v1597_v14 = vld [vmem:[%s2075_s1 + $0x120] sm:$0xff]   ;;  %v533_v17 = vshrl.u32 %v1227_v13, 16  ;;  %v1600_v21 = vld [vmem:[%s2075_s1 + $0x158] sm:$0xff]  }
  0x12   :  { %v519_v15 = vshrl.u32 %v1225_v12, 16  ;;  %v522_v16 = vshll.u32 %v1225_v12, 16  ;;  %v1598_v19 = vld [vmem:[%s2075_s1 + $0x160] sm:$0xff]   ;;  %v1602_v29 = vld [vmem:[%s2075_s1 + $0x150] sm:$0xff]   ;;  %v1238_v35 = vld [vmem:[%s2076_s0 + $0x8] sm:$0xe] }
  0x13   :  { %1384 = vmatpush3.bf16.msra.mxu0 %v1565_v9  ;;  %1404 = vmatpush3.bf16.msra.mxu1 %v1566_v10  ;;  %v1594_v9 = vld [vmem:[%s2075_s1 + $0x170] sm:$0xff]   ;;  %v1595_v10 = vld [vmem:[%s2075_s1 + $0x128] sm:$0xff]   ;;  %v535_v24 = vrot.slane %v533_v17, 4  ;;  %v1228_v27 = vld [vmem:[%s2076_s0 + $0x24] sm:$0x1] }
  0x14   :  { %1385 = vmatprep.subr.bf16.mxu0 %v1632_v0  ;;  %1405 = vmatprep.subr.bf16.mxu1 %v1632_v0  ;;  %v524_v23 = vrot.slane %v522_v16, 5  ;;  %v542_v34 = vshll.u32 %v1228_v27, 16  ;;  %v1603_v37 = vld [vmem:[%s2075_s1 + $0x108] sm:$0xff]   ;;  %v1607_v54 = vld [vmem:[%s2075_s1 + $0x1b8] sm:$0xff]   ;;  %v1609_v57 = vld [vmem:[%s2075_s1 + $0x1b0] sm:$0xff]  }
  0x15   :  { %v1608_v56 = vld [vmem:[%s2075_s1 + $0x1f8] sm:$0xff]   ;;  %v1611_v59 = vld [vmem:[%s2075_s1 + $0x1a8] sm:$0xff]   ;;  %v1613_v1 = vld [vmem:[%s2075_s1 + $0x1a0] sm:$0xff]  }
  0x16   :  { %v1612_v60 = vld [vmem:[%s2075_s1 + $0x1e8] sm:$0xff]   ;;  %v1614_v2 = vld [vmem:[%s2075_s1 + $0x1e0] sm:$0xff]   ;;  %v1618_v16 = vld [vmem:[%s2075_s1 + $0x1d0] sm:$0xff]  }
  0x17   :  { %1386 = vmatpush3.bf16.msra.mxu0 %v1567_v18  ;;  %1406 = vmatpush3.bf16.msra.mxu1 %v1568_v22  ;;  %v536_v18 = vshll.u32 %v1227_v13, 16  ;;  %v521_v22 = vrot.slane %v519_v15, 4  ;;  %v1983_v13 = vld [vmem:[%s2076_s0 + $0x14] sm:$0x1] }
  0x18   :  { %1387 = vmatprep.subr.bf16.mxu0 %v1632_v0  ;;  %1407 = vmatprep.subr.bf16.mxu1 %v1632_v0  ;;  %v1617_v15 = vld [vmem:[%s2075_s1 + $0x190] sm:$0xff]  }
  0x19   :  { %v538_v25 = vrot.slane %v536_v18, 5  ;;  %v525_v30 = vor.u32 %v524_v23, %v521_v22  ;;  %v912_v18 = vshll.u32 %v1983_v13, 16  ;;  %v1620_v22 = vld [vmem:[%s2075_s1 + $0x1c8] sm:$0xff]   ;;  %v1625_v33 = vld [vmem:[%s2075_s1 + $0x230] sm:$0xff]  }
  0x1b   :  { %1388 = vmatpush3.bf16.msra.mxu0 %v1569_v26  ;;  %1408 = vmatpush3.bf16.msra.mxu1 %v1570_v28  ;;  %v1226_v26 = vld [vmem:[%s2076_s0 + $0xc] sm:$0x1]  ;;  %v1601_v28 = vld [vmem:[%s2075_s1 + $0x110] sm:$0xff]   ;;  %v539_v32 = vor.u32 %v538_v25, %v535_v24  ;;  %v526_v38 = vrot.slane %v525_v30, 4  ;;  %v914_v24 = vrot.slane %v912_v18, 5 }
  0x1c   :  { %1389 = vmatprep.subr.bf16.mxu0 %v1632_v0  ;;  %1409 = vmatprep.subr.bf16.mxu1 %v1632_v0  ;;  %v528_v31 = vshll.u32 %v1226_v26, 16 }
  0x1f   :  { %1390 = vmatpush3.bf16.msra.mxu0 %v1571_v36  ;;  %1410 = vmatpush3.bf16.msra.mxu1 %v1572_v39  ;;  %v1239_v36 = vld [vmem:[%s2076_s0 + $0x20] sm:$0xe]  ;;  %v530_v39 = vrot.slane %v528_v31, 5  ;;  %v1623_v31 = vld [vmem:[%s2076_s0 + $0x10] ss:$24 sps:$4 sm:$0xff]  }
  0x20   :  { %1415 = vmatprep.subr.bf16.mxu0 %v1632_v0  ;;  %1435 = vmatprep.subr.bf16.mxu1 %v1632_v0 }
  0x22   :  { %1392 = vmatmul.mubr.bf16.vlgmr.msra.gmra.mxu0 %v1185_v40  ;;  %1412 = vmatmul.mubr.bf16.vlgmr.msra.gmra.mxu1 %v1194_v41  ;;  %v540_v40 = vrot.slane %v539_v32, 4  ;;  %v544_v41 = vrot.slane %v542_v34, 5  ;;  %v1624_v32 = vld [vmem:[%s2075_s1 + $0x238] sm:$0xff]  }
  0x23   :  { %1416 = vmatpush3.bf16.msra.mxu0 %v1574_v42  ;;  %1436 = vmatpush3.bf16.msra.mxu1 %v1575_v43  ;;  %v1604_v42 = vld [vmem:[%s2075_s1 + $0x148] sm:$0xff]   ;;  %v1240_v43 = vrot.slane %v1238_v35, 9 }
  0x24   :  { %1417 = vmatprep.subr.bf16.mxu0 %v1632_v0  ;;  %1437 = vmatprep.subr.bf16.mxu1 %v1632_v0  ;;  %v1626_v35 = vld [vmem:[%s2075_s1 + $0x228] sm:$0xff]  }
  0x25   :  { %1431 = vmatprep.mubr.msk.bf16.mxu0 %vm1633_vm0, %v1632_v0  ;;  %1451 = vmatprep.mubr.msk.bf16.mxu1 %vm1633_vm0, %v1632_v0 }
  0x27   :  { %1418 = vmatpush3.bf16.msra.mxu0 %v1576_v44  ;;  %1438 = vmatpush3.bf16.msra.mxu1 %v1577_v45  ;;  %v665_v44 = vrot.slane %v1226_v26, 5  ;;  %v1241_v45 = vrot.slane %v1239_v36, 9  ;;  %v1627_v36 = vld [vmem:[%s2075_s1 + $0x220] sm:$0xff]  }
  0x28   :  { %1419 = vmatprep.subr.bf16.mxu0 %v1632_v0  ;;  %1439 = vmatprep.subr.bf16.mxu1 %v1632_v0 }
  0x2b   :  { %1420 = vmatpush3.bf16.msra.mxu0 %v1578_v46  ;;  %1440 = vmatpush3.bf16.msra.mxu1 %v1579_v47  ;;  %v669_v46 = vrot.slane %v1228_v27, 5  ;;  %v1605_v47 = vld [vmem:[%s2075_s1 + $0x100] sm:$0xff]  }
  0x2c   :  { %1421 = vmatprep.subr.bf16.mxu0 %v1632_v0  ;;  %1441 = vmatprep.subr.bf16.mxu1 %v1632_v0  ;;  %v1621_v27 = vld [vmem:[%s2075_s1 + $0x180] sm:$0xff]  }
  0x2f   :  { %1422 = vmatpush3.bf16.msra.mxu0 %v1580_v48  ;;  %1442 = vmatpush3.bf16.msra.mxu1 %v1581_v49  ;;  %v531_v48 = vsel %vm1732_vm3, %v526_v38, %v530_v39  ;;  %v545_v49 = vsel %vm1732_vm3, %v540_v40, %v544_v41  ;;  %v1629_v38 = vld [vmem:[%s2075_s1 + $0x210] sm:$0xff]   ;;  %v1276_v40 = vld [vmem:[%s2076_s0 + $0x28] sm:$0xe] }
  0x30   :  { %1423 = vmatprep.subr.bf16.mxu0 %v1632_v0  ;;  %1443 = vmatprep.subr.bf16.mxu1 %v1632_v0  ;;  %v1275_v39 = vld [vmem:[%s2076_s0 + $0x10] sm:$0xe]  ;;  %v1630_v41 = vld [vmem:[%s2075_s1 + $0x208] sm:$0xff]  }
  0x33   :  { %1424 = vmatpush3.bf16.msra.mxu0 %v1582_v50  ;;  %1444 = vmatpush3.bf16.msra.mxu1 %v1583_v51  ;;  %v1606_v50 = vld [vmem:[%s2075_s1 + $0x140] sm:$0xff]   ;;  %v666_v51 = vsel %vm1816_vm6, %v1240_v43, %v665_v44  ;;  %v1049_v43 = vrot.slane %v1983_v13, 5  ;;  %v1278_v44 = vrot.slane %v1276_v40, 9 }
  0x34   :  { %1425 = vmatprep.subr.bf16.mxu0 %v1632_v0  ;;  %1445 = vmatprep.subr.bf16.mxu1 %v1632_v0 }
  0x37   :  { %1426 = vmatpush3.bf16.msra.mxu0 %v1584_v52  ;;  %1446 = vmatpush3.bf16.msra.mxu1 %v1585_v53  ;;  %v670_v52 = vsel %vm1816_vm6, %v1241_v45, %v669_v46  ;;  %v1229_v53 = vcombine.low %v531_v48, %v545_v49  ;;  %v1631_v46 = vld [vmem:[%s2075_s1 + $0x200] sm:$0xff]  }
  0x38   :  { %1427 = vmatprep.subr.bf16.mxu0 %v1632_v0  ;;  %1447 = vmatprep.subr.bf16.mxu1 %v1632_v0  ;;  %v1242_v55 = vcombine.low %v666_v51, %v670_v52 }
  0x3b   :  { %1428 = vmatpush3.bf16.msra.mxu0 %v1586_v58  ;;  %1448 = vmatpush3.bf16.msra.mxu1 %v1587_v61  ;;  %v1610_v58 = vld [vmem:[%s2075_s1 + $0x1f0] sm:$0xff]  }
  0x3c   :  { %1429 = vmatprep.subr.bf16.mxu0 %v1632_v0  ;;  %1449 = vmatprep.subr.bf16.mxu1 %v1632_v0  ;;  %v1262_v61 = vld [vmem:[%s2076_s0 + $0x10] sm:$0xf] }
  0x3f   :  { %1430 = vmatpush3.bf16.msra.mxu0 %v1588_v63  ;;  %1450 = vmatpush3.bf16.msra.mxu1 %v1589_v3  ;;  %v1264_v63 = vld [vmem:[%s2076_s0 + $0x28] sm:$0xf]  ;;  %v903_v3 = vshrl.u32 %v1262_v61, 16 }
  0x40   :  { %1455 = vmatprep.subr.bf16.mxu0 %v1632_v0  ;;  %1475 = vmatprep.subr.bf16.mxu1 %v1632_v0 }
  0x42   :  { %1432 = vmatmul.mubr.bf16.vlgmr.msra.gmra.mxu0 %v1205_v4  ;;  %1452 = vmatmul.mubr.bf16.vlgmr.msra.gmra.mxu1 %v1591_v6  ;;  %v906_v4 = vshll.u32 %v1262_v61, 16  ;;  %v920_v6 = vshll.u32 %v1264_v63, 16 }
  0x43   :  { %1456 = vmatpush3.bf16.msra.mxu0 %v1590_v5  ;;  %1476 = vmatpush3.bf16.msra.mxu1 %v1592_v7  ;;  %v917_v5 = vshrl.u32 %v1264_v63, 16  ;;  %v1615_v7 = vld [vmem:[%s2075_s1 + $0x198] sm:$0xff]  }
  0x44   :  { %1457 = vmatprep.subr.bf16.mxu0 %v1632_v0  ;;  %1477 = vmatprep.subr.bf16.mxu1 %v1632_v0  ;;  %v922_v12 = vrot.slane %v920_v6, 5 }
  0x45   :  { %1471 = vmatprep.mubr.msk.bf16.mxu0 %vm1633_vm0, %v1632_v0  ;;  %1491 = vmatprep.mubr.msk.bf16.mxu1 %vm1633_vm0, %v1632_v0 }
  0x47   :  { %1458 = vmatpush3.bf16.msra.mxu0 %v1593_v8  ;;  %1478 = vmatpush3.bf16.msra.mxu1 %v1594_v9  ;;  %v1616_v8 = vld [vmem:[%s2075_s1 + $0x1d8] sm:$0xff]   ;;  %v905_v9 = vrot.slane %v903_v3, 4 }
  0x48   :  { %1459 = vmatprep.subr.bf16.mxu0 %v1632_v0  ;;  %1479 = vmatprep.subr.bf16.mxu1 %v1632_v0 }
  0x4b   :  { %1460 = vmatpush3.bf16.msra.mxu0 %v1595_v10  ;;  %1480 = vmatpush3.bf16.msra.mxu1 %v1596_v11  ;;  %v908_v10 = vrot.slane %v906_v4, 5  ;;  %v919_v11 = vrot.slane %v917_v5, 4 }
  0x4c   :  { %1461 = vmatprep.subr.bf16.mxu0 %v1632_v0  ;;  %1481 = vmatprep.subr.bf16.mxu1 %v1632_v0 }
  0x4d   :  { %v909_v17 = vor.u32 %v908_v10, %v905_v9 }
  0x4f   :  { %1462 = vmatpush3.bf16.msra.mxu0 %v1597_v14  ;;  %1482 = vmatpush3.bf16.msra.mxu1 %v1598_v19  ;;  %v1988_v14 = vld [vmem:[%s2076_s0 + $0x2c] sm:$0x1]  ;;  %v923_v19 = vor.u32 %v922_v12, %v919_v11  ;;  %v910_v23 = vrot.slane %v909_v17, 4 }
  0x50   :  { %1463 = vmatprep.subr.bf16.mxu0 %v1632_v0  ;;  %1483 = vmatprep.subr.bf16.mxu1 %v1632_v0  ;;  %v1053_v45 = vrot.slane %v1988_v14, 5 }
  0x51   :  { %v924_v25 = vrot.slane %v923_v19, 4 }
  0x52   :  { %v1054_v48 = vsel %vm1816_vm6, %v1278_v44, %v1053_v45 }
  0x53   :  { %1464 = vmatpush3.bf16.msra.mxu0 %v1599_v20  ;;  %1484 = vmatpush3.bf16.msra.mxu1 %v1600_v21  ;;  %v926_v20 = vshll.u32 %v1988_v14, 16  ;;  %v1619_v21 = vld [vmem:[%s2075_s1 + $0x188] sm:$0xff]  }
  0x54   :  { %1465 = vmatprep.subr.bf16.mxu0 %v1632_v0  ;;  %1485 = vmatprep.subr.bf16.mxu1 %v1632_v0 }
  0x55   :  { %v928_v26 = vrot.slane %v926_v20, 5 }
  0x57   :  { %1466 = vmatpush3.bf16.msra.mxu0 %v1601_v28  ;;  %1486 = vmatpush3.bf16.msra.mxu1 %v1602_v29  ;;  %v1622_v28 = vld [vmem:[%s2075_s1 + $0x1c0] sm:$0xff]   ;;  %v915_v29 = vsel %vm1732_vm3, %v910_v23, %v914_v24  ;;  %v929_v30 = vsel %vm1732_vm3, %v924_v25, %v928_v26 }
  0x58   :  { %1467 = vmatprep.subr.bf16.mxu0 %v1632_v0  ;;  %1487 = vmatprep.subr.bf16.mxu1 %v1632_v0  ;;  %v1266_v34 = vcombine.low %v915_v29, %v929_v30 }
  0x5b   :  { %1468 = vmatpush3.bf16.msra.mxu0 %v1603_v37  ;;  %1488 = vmatpush3.bf16.msra.mxu1 %v1604_v42  ;;  %v1628_v37 = vld [vmem:[%s2075_s1 + $0x218] sm:$0xff]   ;;  %v1277_v42 = vrot.slane %v1275_v39, 9 }
  0x5c   :  { %1469 = vmatprep.subr.bf16.mxu0 %v1632_v0  ;;  %1489 = vmatprep.subr.bf16.mxu1 %v1632_v0 }
  0x5f   :  { %1470 = vmatpush3.bf16.msra.mxu0 %v1605_v47  ;;  %1490 = vmatpush3.bf16.msra.mxu1 %v1606_v50  ;;  %v1050_v47 = vsel %vm1816_vm6, %v1277_v42, %v1049_v43 }
  0x60   :  { %1495 = vmatprep.subr.bf16.mxu0 %v1632_v0  ;;  %1515 = vmatprep.subr.bf16.mxu1 %v1632_v0  ;;  %v1279_v49 = vcombine.low %v1050_v47, %v1054_v48 }
  0x62   :  { %1472 = vmatmul.mubr.bf16.vlgmr.msra.gmra.mxu0 %v1229_v53  ;;  %1492 = vmatmul.mubr.bf16.vlgmr.msra.gmra.mxu1 %v1242_v55 }
  0x63   :  { %1496 = vmatpush3.bf16.msra.mxu0 %v1607_v54  ;;  %1516 = vmatpush3.bf16.msra.mxu1 %v1608_v56 }
  0x64   :  { %1497 = vmatprep.subr.bf16.mxu0 %v1632_v0  ;;  %1517 = vmatprep.subr.bf16.mxu1 %v1632_v0 }
  0x65   :  { %1511 = vmatprep.mubr.msk.bf16.mxu0 %vm1633_vm0, %v1632_v0  ;;  %1531 = vmatprep.mubr.msk.bf16.mxu1 %vm1633_vm0, %v1632_v0 }
  0x67   :  { %1498 = vmatpush3.bf16.msra.mxu0 %v1609_v57  ;;  %1518 = vmatpush3.bf16.msra.mxu1 %v1610_v58 }
  0x68   :  { %1499 = vmatprep.subr.bf16.mxu0 %v1632_v0  ;;  %1519 = vmatprep.subr.bf16.mxu1 %v1632_v0 }
  0x6b   :  { %1500 = vmatpush3.bf16.msra.mxu0 %v1611_v59  ;;  %1520 = vmatpush3.bf16.msra.mxu1 %v1612_v60 }
  0x6c   :  { %1501 = vmatprep.subr.bf16.mxu0 %v1632_v0  ;;  %1521 = vmatprep.subr.bf16.mxu1 %v1632_v0 }
  0x6f   :  { %1502 = vmatpush3.bf16.msra.mxu0 %v1613_v1  ;;  %1522 = vmatpush3.bf16.msra.mxu1 %v1614_v2 }
  0x70   :  { %1503 = vmatprep.subr.bf16.mxu0 %v1632_v0  ;;  %1523 = vmatprep.subr.bf16.mxu1 %v1632_v0 }
  0x73   :  { %1504 = vmatpush3.bf16.msra.mxu0 %v1615_v7  ;;  %1524 = vmatpush3.bf16.msra.mxu1 %v1616_v8 }
  0x74   :  { %1505 = vmatprep.subr.bf16.mxu0 %v1632_v0  ;;  %1525 = vmatprep.subr.bf16.mxu1 %v1632_v0 }
  0x77   :  { %1506 = vmatpush3.bf16.msra.mxu0 %v1617_v15  ;;  %1526 = vmatpush3.bf16.msra.mxu1 %v1618_v16 }
  0x78   :  { %1507 = vmatprep.subr.bf16.mxu0 %v1632_v0  ;;  %1527 = vmatprep.subr.bf16.mxu1 %v1632_v0 }
  0x7b   :  { %1508 = vmatpush3.bf16.msra.mxu0 %v1619_v21  ;;  %1528 = vmatpush3.bf16.msra.mxu1 %v1620_v22 }
  0x7c   :  { %1509 = vmatprep.subr.bf16.mxu0 %v1632_v0  ;;  %1529 = vmatprep.subr.bf16.mxu1 %v1632_v0 }
  0x7f   :  { %1510 = vmatpush3.bf16.msra.mxu0 %v1621_v27  ;;  %1530 = vmatpush3.bf16.msra.mxu1 %v1622_v28 }
  0x80   :  { %1535 = vmatprep.subr.bf16.mxu0 %v1632_v0 }
  0x82   :  { %1512 = vmatmul.mubr.bf16.vlgmr.msra.gmra.mxu0 %v1623_v31  ;;  %1532 = vmatmul.mubr.bf16.vlgmr.msra.gmra.mxu1 %v1266_v34  ;;  %v1288_v34 = vld [vmem:[%s2077_s2] ss:$0 sm:$0xff] }
  0x83   :  { %1536 = vmatpush3.bf16.msra.mxu0 %v1624_v32  ;;  %1551 = vmatprep.mubr.msk.bf16.mxu0 %vm1633_vm0, %v1632_v0 }
  0x84   :  { %1537 = vmatprep.subr.bf16.mxu0 %v1632_v0 }
  0x87   :  { %1538 = vmatpush3.bf16.msra.mxu0 %v1625_v33 }
  0x88   :  { %1539 = vmatprep.subr.bf16.mxu0 %v1632_v0 }
  0x8b   :  { %1540 = vmatpush3.bf16.msra.mxu0 %v1626_v35 }
  0x8c   :  { %1541 = vmatprep.subr.bf16.mxu0 %v1632_v0 }
  0x8f   :  { %1542 = vmatpush3.bf16.msra.mxu0 %v1627_v36 }
  0x90   :  { %1543 = vmatprep.subr.bf16.mxu0 %v1632_v0 }
  0x93   :  { %1544 = vmatpush3.bf16.msra.mxu0 %v1628_v37 }
  0x94   :  { %1545 = vmatprep.subr.bf16.mxu0 %v1632_v0 }
  0x97   :  { %1546 = vmatpush3.bf16.msra.mxu0 %v1629_v38 }
  0x98   :  { %1547 = vmatprep.subr.bf16.mxu0 %v1632_v0 }
  0x9b   :  { %1548 = vmatpush3.bf16.msra.mxu0 %v1630_v41 }
  0x9c   :  { %1549 = vmatprep.subr.bf16.mxu0 %v1632_v0 }
  0x9f   :  { %1550 = vmatpush3.bf16.msra.mxu0 %v1631_v46 }
  0xa2   :  { %1552 = vmatmul.mubr.bf16.vlgmr.msra.gmra.mxu0 %v1279_v49 }
  0xe2   :  { %v168_v50 = vpop.f32.mrf.mxu0  ;;  %v263_v51 = vpop.f32.mrf.mxu1 }
  0xe3   :  { %v264_v52 = vadd.f32 %v263_v51, %v168_v50 }
  0xe4   :  { %v1393_v53 = vpop.f32.mrf.mxu0  ;;  %v1413_v54 = vpop.f32.mrf.mxu1 }
  0xe6   :  { %v171_v55 = vpop.f32.mrf.mxu0  ;;  %v266_v56 = vpop.f32.mrf.mxu1 }
  0xe7   :  { %v267_v57 = vadd.f32 %v266_v56, %v171_v55 }
  0xe8   :  { %v1394_v58 = vpop.f32.mrf.mxu0  ;;  %v1414_v59 = vpop.f32.mrf.mxu1 }
 0x102   :  { %v389_v60 = vpop.f32.mrf.mxu0  ;;  %v505_v63 = vpop.f32.mrf.mxu1 }
 0x103   :  { %v396_v61 = vadd.f32 %v389_v60, %v264_v52 }
 0x104   :  { %v1433_v62 = vpop.f32.mrf.mxu0  ;;  %v1453_v2 = vpop.f32.mrf.mxu1 }
 0x105   :  { %v512_v1 = vadd.f32 %v505_v63, %v396_v61 }
 0x106   :  { %v392_v0 = vpop.f32.mrf.mxu0  ;;  %v508_v4 = vpop.f32.mrf.mxu1 }
 0x107   :  { %v397_v3 = vadd.f32 %v392_v0, %v267_v57 }
 0x108   :  { %v1434_v5 = vpop.f32.mrf.mxu0  ;;  %v1454_v7 = vpop.f32.mrf.mxu1 }
 0x109   :  { %v513_v6 = vadd.f32 %v508_v4, %v397_v3 }
 0x122   :  { %v648_v8 = vpop.f32.mrf.mxu0  ;;  %v773_v9 = vpop.f32.mrf.mxu1 }
 0x123   :  { %v655_v24 = vadd.f32 %v648_v8, %v512_v1 }
 0x124   :  { %v1473_v10 = vpop.f32.mrf.mxu0  ;;  %v1493_v11 = vpop.f32.mrf.mxu1 }
 0x125   :  { %v780_v25 = vadd.f32 %v773_v9, %v655_v24 }
 0x126   :  { %v651_v12 = vpop.f32.mrf.mxu0  ;;  %v776_v13 = vpop.f32.mrf.mxu1 }
 0x127   :  { %v656_v26 = vadd.f32 %v651_v12, %v513_v6 }
 0x128   :  { %v1474_v14 = vpop.f32.mrf.mxu0  ;;  %v1494_v15 = vpop.f32.mrf.mxu1 }
 0x129   :  { %v781_v28 = vadd.f32 %v776_v13, %v656_v26 }
 0x142   :  { %v889_v16 = vpop.f32.mrf.mxu0  ;;  %v1032_v17 = vpop.f32.mrf.mxu1 }
 0x143   :  { %v896_v27 = vadd.f32 %v889_v16, %v780_v25 }
 0x144   :  { %v1513_v18 = vpop.f32.mrf.mxu0  ;;  %v1533_v19 = vpop.f32.mrf.mxu1 }
 0x145   :  { %v1039_v29 = vadd.f32 %v1032_v17, %v896_v27 }
 0x146   :  { %v892_v20 = vpop.f32.mrf.mxu0  ;;  %v1035_v21 = vpop.f32.mrf.mxu1 }
 0x147   :  { %v897_v30 = vadd.f32 %v892_v20, %v781_v28 }
 0x148   :  { %v1514_v22 = vpop.f32.mrf.mxu0  ;;  %v1534_v23 = vpop.f32.mrf.mxu1 }
 0x149   :  { %v1040_v35 = vadd.f32 %v1035_v21, %v897_v30 }
 0x162   :  { %v1157_v31 = vpop.f32.mrf.mxu0 }
 0x163   :  { %v1164_v32 = vadd.f32 %v1157_v31, %v1039_v29 }
 0x164   :  { %v1553_v33 = vpop.f32.mrf.mxu0 }
 0x165   :  { %v1173_v37 = vadd.f32 %v1288_v34, %v1164_v32 }
 0x166   :  { %v1160_v36 = vpop.f32.mrf.mxu0 }
 0x167   :  { %v1165_v38 = vadd.f32 %v1160_v36, %v1040_v35  ;;  %v1175_v41 = vmax.f32 %v1173_v37, 0.0 }
 0x168   :  { %v1554_v39 = vpop.f32.mrf.mxu0 }
 0x169   :  { %v1174_v40 = vadd.f32 %v1288_v34, %v1165_v38 }
 0x16b   :  { %v1176_v42 = vmax.f32 %v1174_v40, 0.0 }
 0x16d   :  { %v1292_v43 = vpack.c.bf16 %v1176_v42, %v1175_v41 }
 0x16f   :  { %1293 = vst [vmem:[%s2078_s3] sm:$0xff] %v1292_v43  }

// kernel: forward.5
= control target key start
LH: loop header
LB: loop body
LE: loop exit
PB: predicated region body
PF: predicated region fallthrough
CT: control target
= control target key end

     0   :  { %8 = vsyncpa [#allocation3], 0  ;;  %s2874_s12 = smov [#allocation2]   ;;  %s3660_s0 = inlined_call_operand.vmem [shape: bf16[2,4,2,9,256], index: 0, kind: input, shape index: {}]   ;;  %s3661_s1 = inlined_call_operand.vmem [shape: bf16[2048,128], index: 1, kind: input, shape index: {}]   ;;  %s3662_s2 = inlined_call_operand.hbm [shape: f32[1,128], index: 2, kind: input, shape index: {}]   ;;  %s3663_s3 = inlined_call_operand.vmem [shape: bf16[2,3,8,128], index: 3, kind: output, shape index: {}]  }
   0x1   :  { %s19_s13 = sshll.u32 %s2874_s12, 4  ;;  %s20_s13 = int_to_ptr.vmem [resolvable:$true] %s19_s13 }
   0x2   :  { %s2860_s14 = scalar_lea.vmem %s20_s13, 16  ;;  %s2864_s15 = scalar_lea.vmem %s20_s13, 32 }
   0x3   :  { %p2861_p0 = scmp.ne.s32.totalorder %s20_s13, %s2860_s14  ;;  %p2865_p1 = scmp.lt.s32.totalorder %s20_s13, %s20_s13 }
   0x4   :  { %p2866_p2 = scmp.lt.s32.totalorder %s2864_s15, %s2860_s14 }
   0x6   :  { %p2867_p3 = por %p2866_p2, %p2865_p1 }
   0x8   :  { %p2868_p4 = pnand %p2867_p3, %p2861_p0 }
   0xa   :  { %2871 = shalt.err (!%p2868_p4)
}
   0xb   :  { %22 = dma.hbm_to_vmem [thread:$0]  %s3662_s2, 16, %s20_s13, [#allocation3]  }
   0xc   :  { %2872 = dma.done.wait [#allocation3], 16  }
   0xd   :  { %2873 = vsyncadd [#allocation3], 4294967280  ;;  %v2724_v0 = vld [vmem:[%s3661_s1 + $0xf8] sm:$0xff]   ;;  %v2728_v4 = vld [vmem:[%s3661_s1 + $0xf0] sm:$0xff]   ;;  %vm71_vm0 = vsmask.f32 3328 }
   0xe   :  { %v2725_v1 = vld [vmem:[%s3661_s1 + $0x78] sm:$0xff]   ;;  %2451 = vmatprep.subr.bf16.mxu0 %v2724_v0  ;;  %v2729_v5 = vld [vmem:[%s3661_s1 + $0x70] sm:$0xff]   ;;  %v2732_v8 = vld [vmem:[%s3661_s1 + $0xe8] sm:$0xff]   ;;  %vm72_vm1 = vsmask.f32 7440 }
   0xf   :  { %v2726_v2 = vld [vmem:[%s3661_s1 + $0xb8] sm:$0xff]   ;;  %2485 = vmatprep.subr.bf16.mxu1 %v2725_v1  ;;  %v2730_v6 = vld [vmem:[%s3661_s1 + $0xb0] sm:$0xff]   ;;  %v2733_v9 = vld [vmem:[%s3661_s1 + $0x68] sm:$0xff]  }
  0x10   :  { %v2727_v3 = vld [vmem:[%s3661_s1 + $0x38] sm:$0xff]   ;;  %2452 = vmatpush3.bf16.msra.mxu0 %v2726_v2  ;;  %v2731_v7 = vld [vmem:[%s3661_s1 + $0x30] sm:$0xff]   ;;  %v2734_v10 = vld [vmem:[%s3661_s1 + $0xa8] sm:$0xff]  }
  0x11   :  { %2486 = vmatpush3.bf16.msra.mxu1 %v2727_v3  ;;  %2453 = vmatprep.subr.bf16.mxu0 %v2728_v4  ;;  %v2735_v11 = vld [vmem:[%s3661_s1 + $0x28] sm:$0xff]   ;;  %v2736_v12 = vld [vmem:[%s3661_s1 + $0xe0] sm:$0xff]   ;;  %v2740_v16 = vld [vmem:[%s3661_s1 + $0xd8] sm:$0xff]  }
  0x12   :  { %2487 = vmatprep.subr.bf16.mxu1 %v2729_v5  ;;  %v2737_v13 = vld [vmem:[%s3661_s1 + $0x60] sm:$0xff]   ;;  %v2741_v17 = vld [vmem:[%s3661_s1 + $0x58] sm:$0xff]   ;;  %v2744_v20 = vld [vmem:[%s3661_s1 + $0xd0] sm:$0xff]  }
  0x13   :  { %v2738_v14 = vld [vmem:[%s3661_s1 + $0xa0] sm:$0xff]   ;;  %v2742_v18 = vld [vmem:[%s3661_s1 + $0x98] sm:$0xff]   ;;  %v2745_v21 = vld [vmem:[%s3661_s1 + $0x50] sm:$0xff]  }
  0x14   :  { %2454 = vmatpush3.bf16.msra.mxu0 %v2730_v6  ;;  %v2739_v15 = vld [vmem:[%s3661_s1 + $0x20] sm:$0xff]   ;;  %v2743_v19 = vld [vmem:[%s3661_s1 + $0x18] sm:$0xff]   ;;  %v2746_v22 = vld [vmem:[%s3661_s1 + $0x90] sm:$0xff]  }
  0x15   :  { %2488 = vmatpush3.bf16.msra.mxu1 %v2731_v7  ;;  %2455 = vmatprep.subr.bf16.mxu0 %v2732_v8  ;;  %v2747_v23 = vld [vmem:[%s3661_s1 + $0x10] sm:$0xff]   ;;  %v2748_v24 = vld [vmem:[%s3661_s1 + $0xc8] sm:$0xff]   ;;  %v2752_v28 = vld [vmem:[%s3661_s1 + $0xc0] sm:$0xff]  }
  0x16   :  { %2489 = vmatprep.subr.bf16.mxu1 %v2733_v9  ;;  %v2749_v25 = vld [vmem:[%s3661_s1 + $0x48] sm:$0xff]   ;;  %v2753_v29 = vld [vmem:[%s3661_s1 + $0x40] sm:$0xff]   ;;  %v2756_v47 = vld [vmem:[%s3661_s1 + $0x178] sm:$0xff]  }
  0x17   :  { %v2750_v26 = vld [vmem:[%s3661_s1 + $0x88] sm:$0xff]   ;;  %v2754_v30 = vld [vmem:[%s3661_s1 + $0x80] sm:$0xff]   ;;  %v2757_v48 = vld [vmem:[%s3661_s1 + $0x1f8] sm:$0xff]  }
  0x18   :  { %2456 = vmatpush3.bf16.msra.mxu0 %v2734_v10  ;;  %v2751_v27 = vld [vmem:[%s3661_s1 + $0x8] sm:$0xff]   ;;  %v2755_v31 = vld [vmem:[%s3661_s1] sm:$0xff]   ;;  %vm3020_vm2 = vmor %vm71_vm0, %vm72_vm1 }
  0x19   :  { %2490 = vmatpush3.bf16.msra.mxu1 %v2735_v11  ;;  %2457 = vmatprep.subr.bf16.mxu0 %v2736_v12  ;;  %v27_v32 = vld [vmem:[%s3660_s0] sm:$0xff]  ;;  %v65_v34 = vld [vmem:[%s3660_s0 + $0x8] sm:$0x11]  ;;  %v2759_v55 = vld [vmem:[%s3661_s1 + $0x1b8] sm:$0xff]  }
  0x1a   :  { %2491 = vmatprep.subr.bf16.mxu1 %v2737_v13  ;;  %v3000_v33 = vld [vmem:[%s3660_s0 + $0x20] sm:$0xff]  ;;  %v66_v35 = vld [vmem:[%s3660_s0 + $0x28] sm:$0x11]  ;;  %v75_v36 = vshrl.u32 %v27_v32, 16  ;;  %v78_v37 = vshll.u32 %v27_v32, 16  ;;  %v84_v38 = vshll.u32 %v65_v34, 16 }
  0x1b   :  { %v89_v39 = vshrl.u32 %v3000_v33, 16  ;;  %v92_v40 = vshll.u32 %v3000_v33, 16  ;;  %v98_v41 = vshll.u32 %v66_v35, 16  ;;  %v2226_v42 = vcombine.high %v27_v32, %v3000_v33  ;;  %v2761_v58 = vld [vmem:[%s3661_s1 + $0x1f0] sm:$0xff]   ;;  %v2758_v60 = vld [vmem:[%s3661_s1 + $0x138] sm:$0xff]   ;;  %v2765_v2 = vld [vmem:[%s3661_s1 + $0x1e8] sm:$0xff]  }
  0x1c   :  { %2458 = vmatpush3.bf16.msra.mxu0 %v2738_v14  ;;  %v2225_v43 = vcombine.low %v27_v32, %v3000_v33  ;;  %v77_v44 = vrot.slane %v75_v36, 4  ;;  %v80_v45 = vrot.slane %v78_v37, 5  ;;  %v86_v52 = vrot.slane %v84_v38, 5  ;;  %v2763_v62 = vld [vmem:[%s3661_s1 + $0x1b0] sm:$0xff]   ;;  %v2764_v4 = vld [vmem:[%s3661_s1 + $0x168] sm:$0xff]   ;;  %v3061_v6 = vld [vmem:[%s3660_s0 + $0x40] sm:$0xff] }
  0x1d   :  { %2492 = vmatpush3.bf16.msra.mxu1 %v2739_v15  ;;  %2459 = vmatprep.subr.bf16.mxu0 %v2740_v16  ;;  %v91_v46 = vrot.slane %v89_v39, 4  ;;  %v94_v49 = vrot.slane %v92_v40, 5  ;;  %v100_v54 = vrot.slane %v98_v41, 5  ;;  %v2760_v1 = vld [vmem:[%s3661_s1 + $0x170] sm:$0xff]   ;;  %v2767_v5 = vld [vmem:[%s3661_s1 + $0x1a8] sm:$0xff]   ;;  %v30_v7 = vld [vmem:[%s3660_s0 + $0x80] sm:$0xff] }
  0x1e   :  { %2493 = vmatprep.subr.bf16.mxu1 %v2741_v17  ;;  %525 = vmatprep.mubr.bf16.mxu1 %v2226_v42  ;;  %v81_v51 = vor.u32 %v80_v45, %v77_v44  ;;  %v2762_v3 = vld [vmem:[%s3661_s1 + $0x130] sm:$0xff]   ;;  %v67_v8 = vld [vmem:[%s3660_s0 + $0x48] sm:$0x11]  ;;  %v103_v10 = vshrl.u32 %v3061_v6, 16  ;;  %v106_v11 = vshll.u32 %v3061_v6, 16  ;;  %v117_v13 = vshrl.u32 %v30_v7, 16 }
  0x1f   :  { %v95_v53 = vor.u32 %v94_v49, %v91_v46  ;;  %v68_v9 = vld [vmem:[%s3660_s0 + $0x88] sm:$0x11]  ;;  %v112_v12 = vshll.u32 %v67_v8, 16  ;;  %v120_v14 = vshll.u32 %v30_v7, 16  ;;  %v2228_v16 = vcombine.high %v3061_v6, %v30_v7  ;;  %v2770_v32 = vld [vmem:[%s3661_s1 + $0x120] sm:$0xff]   ;;  %v2773_v35 = vld [vmem:[%s3661_s1 + $0x1d8] sm:$0xff]  }
  0x20   :  { %2460 = vmatpush3.bf16.msra.mxu0 %v2742_v18  ;;  %v82_v56 = vrot.slane %v81_v51, 4  ;;  %v126_v15 = vshll.u32 %v68_v9, 16  ;;  %v2227_v17 = vcombine.low %v3061_v6, %v30_v7  ;;  %v105_v18 = vrot.slane %v103_v10, 4  ;;  %v2772_v37 = vld [vmem:[%s3661_s1 + $0x158] sm:$0xff]   ;;  %v3120_v44 = vld [vmem:[%s3660_s0 + $0xc0] sm:$0xff]  ;;  %v2780_v7 = vld [vmem:[%s3661_s1 + $0x148] sm:$0xff]  }
  0x21   :  { %2494 = vmatpush3.bf16.msra.mxu1 %v2743_v19  ;;  %2461 = vmatprep.subr.bf16.mxu0 %v2744_v20  ;;  %v3027_v57 = vrot.slane %v95_v53, 4  ;;  %v108_v19 = vrot.slane %v106_v11, 5  ;;  %v119_v20 = vrot.slane %v117_v13, 4  ;;  %v2774_v39 = vld [vmem:[%s3661_s1 + $0x118] sm:$0xff]   ;;  %v69_v45 = vld [vmem:[%s3660_s0 + $0xa8] sm:$0x11] }
  0x22   :  { %2495 = vmatprep.subr.bf16.mxu1 %v2745_v21  ;;  %v87_v59 = vsel %vm3020_vm2, %v82_v56, %v86_v52  ;;  %v2769_v21 = vld [vmem:[%s3661_s1 + $0x1e0] sm:$0xff]   ;;  %v2775_v40 = vld [vmem:[%s3661_s1 + $0x198] sm:$0xff]   ;;  %v70_v46 = vld [vmem:[%s3660_s0 + $0xc8] sm:$0x11]  ;;  %v140_v49 = vshll.u32 %v69_v45, 16  ;;  %v145_v51 = vshrl.u32 %v3120_v44, 16 }
  0x23   :  { %v101_v61 = vsel %vm3020_vm2, %v3027_v57, %v100_v54  ;;  %v148_v52 = vshll.u32 %v3120_v44, 16  ;;  %v154_v53 = vshll.u32 %v70_v46, 16  ;;  %v2781_v9 = vld [vmem:[%s3661_s1 + $0x1c8] sm:$0xff]   ;;  %v2790_v45 = vld [vmem:[%s3661_s1 + $0x238] sm:$0xff]  }
  0x24   :  { %2462 = vmatpush3.bf16.msra.mxu0 %v2746_v22  ;;  %v2203_v63 = vcombine.low %v87_v59, %v101_v61  ;;  %v2204_v0 = vcombine.high %v87_v59, %v101_v61  ;;  %v2766_v22 = vld [vmem:[%s3661_s1 + $0x128] sm:$0xff]   ;;  %v147_v59 = vrot.slane %v145_v51, 4  ;;  %v2777_v61 = vld [vmem:[%s3661_s1 + $0x1d0] sm:$0xff]  }
  0x25   :  { %2496 = vmatpush3.bf16.msra.mxu1 %v2747_v23  ;;  %2463 = vmatprep.subr.bf16.mxu0 %v2748_v24  ;;  %v122_v23 = vrot.slane %v120_v14, 5  ;;  %v2315_v24 = vcombine.low %v3000_v33, %v3061_v6  ;;  %v2782_v11 = vld [vmem:[%s3661_s1 + $0x108] sm:$0xff]  }
  0x26   :  { %2497 = vmatprep.subr.bf16.mxu1 %v2749_v25  ;;  %342 = vmatprep.mubr.bf16.mxu0 %v2204_v0  ;;  %v109_v25 = vor.u32 %v108_v19, %v105_v18  ;;  %v142_v0 = vrot.slane %v140_v49, 5  ;;  %v2783_v13 = vld [vmem:[%s3661_s1 + $0x188] sm:$0xff]   ;;  %v2786_v18 = vld [vmem:[%s3661_s1 + $0x100] sm:$0xff]   ;;  %v2792_v49 = vld [vmem:[%s3661_s1 + $0x270] sm:$0xff]  }
  0x27   :  { %v2787_v19 = vld [vmem:[%s3661_s1 + $0x180] sm:$0xff]  }
  0x28   :  { %2464 = vmatpush3.bf16.msra.mxu0 %v2750_v26  ;;  %v114_v26 = vrot.slane %v112_v12, 5 }
  0x29   :  { %2498 = vmatpush3.bf16.msra.mxu1 %v2751_v27  ;;  %2465 = vmatprep.subr.bf16.mxu0 %v2752_v28  ;;  %v2768_v27 = vld [vmem:[%s3661_s1 + $0x160] sm:$0xff]   ;;  %v123_v28 = vor.u32 %v122_v23, %v119_v20  ;;  %v2247_v20 = vld [vmem:[%s3660_s0 + $0x10] sm:$0xff] }
  0x2a   :  { %2499 = vmatprep.subr.bf16.mxu1 %v2753_v29  ;;  %v128_v29 = vrot.slane %v126_v15, 5 }
  0x2b   :  { %v124_v34 = vrot.slane %v123_v28, 4 }
  0x2c   :  { %2466 = vmatpush3.bf16.msra.mxu0 %v2754_v30  ;;  %v2771_v30 = vld [vmem:[%s3661_s1 + $0x1a0] sm:$0xff]  }
  0x2d   :  { %2500 = vmatpush3.bf16.msra.mxu1 %v2755_v31  ;;  %2519 = vmatprep.subr.bf16.mxu0 %v2756_v47  ;;  %v3090_v31 = vrot.slane %v109_v25, 4  ;;  %v129_v38 = vsel %vm3020_vm2, %v124_v34, %v128_v29  ;;  %v2278_v25 = vld [vmem:[%s3660_s0 + $0x38] sm:$0x11] }
  0x2e   :  { %2553 = vmatprep.subr.bf16.mxu1 %v2757_v48 }
  0x2f   :  { %343 = vmatmul.mubr.bf16.vlgmr.msra.gmra.mxu0 %v2203_v63  ;;  %v115_v36 = vsel %vm3020_vm2, %v3090_v31, %v114_v26  ;;  %v791_v26 = vshrl.u32 %v2247_v20, 16 }
  0x30   :  { %526 = vmatmul.mubr.bf16.vlgmr.msra.gmra.mxu1 %v2225_v43  ;;  %2520 = vmatpush3.bf16.msra.mxu0 %v2758_v60  ;;  %v2206_v41 = vcombine.high %v115_v36, %v129_v38  ;;  %v2205_v42 = vcombine.low %v115_v36, %v129_v38  ;;  %v3115_v43 = vld [vmem:[%s3660_s0 + $0xa0] sm:$0xff]  ;;  %v2776_v60 = vld [vmem:[%s3661_s1 + $0x150] sm:$0xff]   ;;  %v2789_v38 = vld [vmem:[%s3661_s1 + $0x2f8] sm:$0xff]  }
  0x31   :  { %2554 = vmatpush3.bf16.msra.mxu1 %v2759_v55  ;;  %2521 = vmatprep.subr.bf16.mxu0 %v2760_v1  ;;  %v131_v47 = vshrl.u32 %v3115_v43, 16  ;;  %v134_v48 = vshll.u32 %v3115_v43, 16  ;;  %v2230_v54 = vcombine.high %v3115_v43, %v3120_v44  ;;  %v2229_v55 = vcombine.low %v3115_v43, %v3120_v44  ;;  %v2778_v1 = vld [vmem:[%s3661_s1 + $0x110] sm:$0xff]  }
  0x32   :  { %2555 = vmatprep.subr.bf16.mxu1 %v2761_v58  ;;  %533 = vmatprep.mubr.bf16.mxu1 %v2228_v16  ;;  %v2784_v16 = vld [vmem:[%s3661_s1 + $0x140] sm:$0xff]  }
  0x33   :  { %350 = vmatprep.mubr.bf16.mxu0 %v2206_v41  ;;  %v133_v56 = vrot.slane %v131_v47, 4  ;;  %v136_v58 = vrot.slane %v134_v48, 5 }
  0x34   :  { %2522 = vmatpush3.bf16.msra.mxu0 %v2762_v3  ;;  %v156_v3 = vrot.slane %v154_v53, 5  ;;  %v2791_v53 = vld [vmem:[%s3661_s1 + $0x2b8] sm:$0xff]  }
  0x35   :  { %2556 = vmatpush3.bf16.msra.mxu1 %v2763_v62  ;;  %2523 = vmatprep.subr.bf16.mxu0 %v2764_v4  ;;  %v150_v62 = vrot.slane %v148_v52, 5  ;;  %v137_v63 = vor.u32 %v136_v58, %v133_v56  ;;  %v2779_v4 = vld [vmem:[%s3661_s1 + $0x190] sm:$0xff]  }
  0x36   :  { %2557 = vmatprep.subr.bf16.mxu1 %v2765_v2  ;;  %v2793_v56 = vld [vmem:[%s3661_s1 + $0x2f0] sm:$0xff]  }
  0x37   :  { %351 = vmatmul.mubr.bf16.gmra.mxu0 %v2205_v42  ;;  %v151_v2 = vor.u32 %v150_v62, %v147_v59 }
  0x38   :  { %534 = vmatmul.mubr.bf16.gmra.mxu1 %v2227_v17  ;;  %2524 = vmatpush3.bf16.msra.mxu0 %v2766_v22  ;;  %v2785_v17 = vld [vmem:[%s3661_s1 + $0x1c0] sm:$0xff]   ;;  %v2276_v22 = vld [vmem:[%s3660_s0 + $0x18] sm:$0x11] }
  0x39   :  { %2558 = vmatpush3.bf16.msra.mxu1 %v2767_v5  ;;  %2525 = vmatprep.subr.bf16.mxu0 %v2768_v27  ;;  %v3148_v5 = vrot.slane %v137_v63, 4  ;;  %v3153_v8 = vrot.slane %v151_v2, 4  ;;  %v794_v27 = vshll.u32 %v2247_v20, 16  ;;  %v800_v28 = vshll.u32 %v2276_v22, 16 }
  0x3a   :  { %2559 = vmatprep.subr.bf16.mxu1 %v2769_v21  ;;  %541 = vmatprep.mubr.bf16.mxu1 %v2230_v54  ;;  %v3188_v21 = vld [vmem:[%s3660_s0 + $0x30] sm:$0xff] }
  0x3b   :  { %v143_v10 = vsel %vm3020_vm2, %v3148_v5, %v142_v0  ;;  %v157_v12 = vsel %vm3020_vm2, %v3153_v8, %v156_v3  ;;  %v2254_v23 = vcombine.high %v2247_v20, %v3188_v21  ;;  %v805_v29 = vshrl.u32 %v3188_v21, 16  ;;  %v2794_v54 = vld [vmem:[%s3661_s1 + $0x230] sm:$0xff]   ;;  %v2796_v0 = vld [vmem:[%s3661_s1 + $0x268] sm:$0xff]  }
  0x3c   :  { %2526 = vmatpush3.bf16.msra.mxu0 %v2770_v32  ;;  %v2208_v14 = vcombine.high %v143_v10, %v157_v12  ;;  %v2207_v15 = vcombine.low %v143_v10, %v157_v12  ;;  %v814_v32 = vshll.u32 %v2278_v25, 16  ;;  %v2253_v34 = vcombine.low %v2247_v20, %v3188_v21  ;;  %v2795_v3 = vld [vmem:[%s3661_s1 + $0x2b0] sm:$0xff]  }
  0x3d   :  { %2560 = vmatpush3.bf16.msra.mxu1 %v2771_v30  ;;  %2527 = vmatprep.subr.bf16.mxu0 %v2772_v37  ;;  %v808_v30 = vshll.u32 %v3188_v21, 16  ;;  %v796_v36 = vrot.slane %v794_v27, 5  ;;  %v2788_v37 = vld [vmem:[%s3661_s1 + $0x278] sm:$0xff]   ;;  %v802_v42 = vrot.slane %v800_v28, 5  ;;  %v2800_v27 = vld [vmem:[%s3661_s1 + $0x260] sm:$0xff]  }
  0x3e   :  { %2561 = vmatprep.subr.bf16.mxu1 %v2773_v35  ;;  %358 = vmatprep.mubr.bf16.mxu0 %v2208_v14  ;;  %v793_v35 = vrot.slane %v791_v26, 4  ;;  %v816_v47 = vrot.slane %v814_v32, 5  ;;  %v2802_v32 = vld [vmem:[%s3661_s1 + $0x220] sm:$0xff]  }
  0x3f   :  { %359 = vmatmul.mubr.bf16.gmra.mxu0 %v2207_v15 }
  0x40   :  { %2528 = vmatpush3.bf16.msra.mxu0 %v2774_v39  ;;  %542 = vmatmul.mubr.bf16.gmra.mxu1 %v2229_v55  ;;  %v807_v39 = vrot.slane %v805_v29, 4  ;;  %v797_v41 = vor.u32 %v796_v36, %v793_v35  ;;  %v2801_v29 = vld [vmem:[%s3661_s1 + $0x2e0] sm:$0xff]   ;;  %v3283_v36 = vld [vmem:[%s3660_s0 + $0xb0] sm:$0xff] }
  0x41   :  { %2562 = vmatpush3.bf16.msra.mxu1 %v2775_v40  ;;  %2529 = vmatprep.subr.bf16.mxu0 %v2776_v60  ;;  %v810_v40 = vrot.slane %v808_v30, 5  ;;  %v3231_v60 = vld [vmem:[%s3660_s0 + $0x50] sm:$0xff]  ;;  %v2803_v35 = vld [vmem:[%s3661_s1 + $0x2a0] sm:$0xff]  }
  0x42   :  { %2563 = vmatprep.subr.bf16.mxu1 %v2777_v61  ;;  %747 = vmatprep.mubr.bf16.mxu0 %v2254_v23  ;;  %v798_v48 = vrot.slane %v797_v41, 4  ;;  %v2250_v61 = vld [vmem:[%s3660_s0 + $0x90] sm:$0xff]  ;;  %v2377_v2 = vcombine.low %v3188_v21, %v3231_v60  ;;  %v2799_v23 = vld [vmem:[%s3661_s1 + $0x2a8] sm:$0xff]  }
  0x43   :  { %v811_v46 = vor.u32 %v810_v40, %v807_v39  ;;  %v2256_v62 = vcombine.high %v3231_v60, %v2250_v61  ;;  %v2255_v63 = vcombine.low %v3231_v60, %v2250_v61  ;;  %v833_v12 = vshrl.u32 %v2250_v61, 16 }
  0x44   :  { %2530 = vmatpush3.bf16.msra.mxu0 %v2778_v1  ;;  %v803_v52 = vsel %vm3020_vm2, %v798_v48, %v802_v42  ;;  %v819_v1 = vshrl.u32 %v3231_v60, 16  ;;  %v847_v39 = vshrl.u32 %v3283_v36, 16  ;;  %v2284_v48 = vld [vmem:[%s3660_s0 + $0xb8] sm:$0x11] }
  0x45   :  { %2564 = vmatpush3.bf16.msra.mxu1 %v2779_v4  ;;  %2531 = vmatprep.subr.bf16.mxu0 %v2780_v7  ;;  %v3212_v51 = vrot.slane %v811_v46, 4  ;;  %v2280_v4 = vld [vmem:[%s3660_s0 + $0x58] sm:$0x11]  ;;  %v822_v7 = vshll.u32 %v3231_v60, 16 }
  0x46   :  { %2565 = vmatprep.subr.bf16.mxu1 %v2781_v9  ;;  %v2282_v9 = vld [vmem:[%s3660_s0 + $0x98] sm:$0x11]  ;;  %v821_v10 = vrot.slane %v819_v1, 4 }
  0x47   :  { %v817_v55 = vsel %vm3020_vm2, %v3212_v51, %v816_v47  ;;  %v824_v14 = vrot.slane %v822_v7, 5  ;;  %v842_v15 = vshll.u32 %v2282_v9, 16  ;;  %v2804_v46 = vld [vmem:[%s3661_s1 + $0x258] sm:$0xff]  }
  0x48   :  { %2532 = vmatpush3.bf16.msra.mxu0 %v2782_v11  ;;  %v2287_v58 = vcombine.low %v803_v52, %v817_v55  ;;  %v2288_v59 = vcombine.high %v803_v52, %v817_v55  ;;  %v828_v11 = vshll.u32 %v2280_v4, 16  ;;  %v2805_v47 = vld [vmem:[%s3661_s1 + $0x2d8] sm:$0xff]   ;;  %v849_v52 = vrot.slane %v847_v39, 4 }
  0x49   :  { %2566 = vmatpush3.bf16.msra.mxu1 %v2783_v13  ;;  %2533 = vmatprep.subr.bf16.mxu0 %v2784_v16  ;;  %v836_v13 = vshll.u32 %v2250_v61, 16  ;;  %v2797_v16 = vld [vmem:[%s3661_s1 + $0x2e8] sm:$0xff]   ;;  %v825_v20 = vor.u32 %v824_v14, %v821_v10  ;;  %v844_v26 = vrot.slane %v842_v15, 5  ;;  %v856_v55 = vshll.u32 %v2284_v48, 16  ;;  %v2806_v61 = vld [vmem:[%s3661_s1 + $0x218] sm:$0xff]   ;;  %v2808_v10 = vld [vmem:[%s3661_s1 + $0x250] sm:$0xff]  }
  0x4a   :  { %2567 = vmatprep.subr.bf16.mxu1 %v2785_v17  ;;  %1058 = vmatprep.mubr.bf16.mxu1 %v2288_v59  ;;  %v835_v17 = vrot.slane %v833_v12, 4  ;;  %v830_v22 = vrot.slane %v828_v11, 5  ;;  %v2809_v11 = vld [vmem:[%s3661_s1 + $0x2d0] sm:$0xff]   ;;  %v2820_v39 = vld [vmem:[%s3661_s1 + $0x378] sm:$0xff]  }
  0x4b   :  { %v3266_v28 = vrot.slane %v825_v20, 4  ;;  %v858_v1 = vrot.slane %v856_v55, 5  ;;  %v2810_v14 = vld [vmem:[%s3661_s1 + $0x210] sm:$0xff]   ;;  %v2823_v48 = vld [vmem:[%s3661_s1 + $0x3b8] sm:$0xff]   ;;  %v2828_v55 = vld [vmem:[%s3661_s1 + $0x368] sm:$0xff]  }
  0x4c   :  { %2534 = vmatpush3.bf16.msra.mxu0 %v2786_v18  ;;  %v838_v18 = vrot.slane %v836_v13, 5  ;;  %v2811_v15 = vld [vmem:[%s3661_s1 + $0x290] sm:$0xff]  }
  0x4d   :  { %2568 = vmatpush3.bf16.msra.mxu1 %v2787_v19  ;;  %2587 = vmatprep.subr.bf16.mxu0 %v2788_v37  ;;  %v2798_v19 = vld [vmem:[%s3661_s1 + $0x228] sm:$0xff]  }
  0x4e   :  { %2621 = vmatprep.subr.bf16.mxu1 %v2789_v38  ;;  %v839_v25 = vor.u32 %v838_v18, %v835_v17  ;;  %v3290_v38 = vld [vmem:[%s3660_s0 + $0xd0] sm:$0xff]  ;;  %v2812_v18 = vld [vmem:[%s3661_s1 + $0x248] sm:$0xff]  }
  0x4f   :  { %748 = vmatmul.mubr.bf16.vlgmr.msra.gmra.mxu0 %v2253_v34  ;;  %v831_v34 = vsel %vm3020_vm2, %v3266_v28, %v830_v22  ;;  %v2258_v42 = vcombine.high %v3283_v36, %v3290_v38  ;;  %v2813_v22 = vld [vmem:[%s3661_s1 + $0x2c8] sm:$0xff]  }
  0x50   :  { %2588 = vmatpush3.bf16.msra.mxu0 %v2790_v45  ;;  %1059 = vmatmul.mubr.bf16.vlgmr.msra.gmra.mxu1 %v2287_v58  ;;  %v840_v30 = vrot.slane %v839_v25, 4  ;;  %v2257_v45 = vcombine.low %v3283_v36, %v3290_v38  ;;  %v864_v58 = vshll.u32 %v3290_v38, 16  ;;  %v2815_v25 = vld [vmem:[%s3661_s1 + $0x288] sm:$0xff]  }
  0x51   :  { %2589 = vmatprep.subr.bf16.mxu0 %v2792_v49  ;;  %755 = vmatprep.mubr.bf16.mxu0 %v2256_v62  ;;  %v2286_v49 = vld [vmem:[%s3660_s0 + $0xd8] sm:$0x11] }
  0x52   :  { %2622 = vmatpush3.bf16.msra.mxu1 %v2791_v53  ;;  %v845_v37 = vsel %vm3020_vm2, %v840_v30, %v844_v26  ;;  %v2316_v53 = vcombine.high %v3000_v33, %v3061_v6  ;;  %v870_v59 = vshll.u32 %v2286_v49, 16  ;;  %v2816_v26 = vld [vmem:[%s3661_s1 + $0x240] sm:$0xff]   ;;  %v2824_v33 = vld [vmem:[%s3661_s1 + $0x370] sm:$0xff]  }
  0x53   :  { %2623 = vmatprep.subr.bf16.mxu1 %v2793_v56  ;;  %v2290_v40 = vcombine.high %v831_v34, %v845_v37  ;;  %v2289_v41 = vcombine.low %v831_v34, %v845_v37  ;;  %v861_v56 = vshrl.u32 %v3290_v38, 16  ;;  %v2819_v30 = vld [vmem:[%s3661_s1 + $0x280] sm:$0xff]   ;;  %v2340_v34 = vld [vmem:[%s3660_s0 + $0x48] sm:$0x11]  ;;  %v2826_v6 = vld [vmem:[%s3661_s1 + $0x330] sm:$0xff]  }
  0x54   :  { %2590 = vmatpush3.bf16.msra.mxu0 %v2794_v54  ;;  %v850_v54 = vshll.u32 %v3283_v36, 16  ;;  %v872_v9 = vrot.slane %v870_v59, 5  ;;  %v1353_v37 = vshll.u32 %v2340_v34, 16  ;;  %v2342_v59 = vld [vmem:[%s3660_s0 + $0x68] sm:$0x11] }
  0x55   :  { %2591 = vmatprep.subr.bf16.mxu0 %v2796_v0  ;;  %1066 = vmatprep.mubr.bf16.mxu1 %v2290_v40  ;;  %v866_v0 = vrot.slane %v864_v58, 5  ;;  %v2829_v58 = vld [vmem:[%s3661_s1 + $0x3e8] sm:$0xff]  }
  0x56   :  { %2624 = vmatpush3.bf16.msra.mxu1 %v2795_v3  ;;  %v852_v62 = vrot.slane %v850_v54, 5  ;;  %v2807_v3 = vld [vmem:[%s3661_s1 + $0x298] sm:$0xff]  }
  0x57   :  { %756 = vmatmul.mubr.bf16.gmra.mxu0 %v2255_v63  ;;  %2625 = vmatprep.subr.bf16.mxu1 %v2797_v16  ;;  %v863_v63 = vrot.slane %v861_v56, 4 }
  0x58   :  { %2592 = vmatpush3.bf16.msra.mxu0 %v2798_v19  ;;  %763 = vmatprep.mubr.bf16.mxu0 %v2258_v42  ;;  %v853_v4 = vor.u32 %v852_v62, %v849_v52  ;;  %v2821_v42 = vld [vmem:[%s3661_s1 + $0x3f8] sm:$0xff]  }
  0x59   :  { %2593 = vmatprep.subr.bf16.mxu0 %v2800_v27  ;;  %1067 = vmatmul.mubr.bf16.gmra.mxu1 %v2289_v41  ;;  %v867_v7 = vor.u32 %v866_v0, %v863_v63  ;;  %v2817_v27 = vld [vmem:[%s3661_s1 + $0x2c0] sm:$0xff]   ;;  %v1355_v41 = vrot.slane %v1353_v37, 5  ;;  %v1367_v63 = vshll.u32 %v2342_v59, 16  ;;  %v2378_v37 = vcombine.high %v3188_v21, %v3231_v60 }
  0x5a   :  { %2626 = vmatpush3.bf16.msra.mxu1 %v2799_v23  ;;  %v3326_v12 = vrot.slane %v853_v4, 4  ;;  %v2814_v23 = vld [vmem:[%s3661_s1 + $0x208] sm:$0xff]   ;;  %v2849_v59 = vld [vmem:[%s3661_s1 + $0x3c0] sm:$0xff]  }
  0x5b   :  { %2627 = vmatprep.subr.bf16.mxu1 %v2801_v29  ;;  %v3328_v13 = vrot.slane %v867_v7, 4  ;;  %v2818_v29 = vld [vmem:[%s3661_s1 + $0x200] sm:$0xff]   ;;  %v2831_v4 = vld [vmem:[%s3661_s1 + $0x3a8] sm:$0xff]   ;;  %v1369_v7 = vrot.slane %v1367_v63, 5  ;;  %v2402_v63 = vld [vmem:[%s3660_s0 + $0x58] sm:$0x11] }
  0x5c   :  { %2594 = vmatpush3.bf16.msra.mxu0 %v2802_v32  ;;  %v859_v16 = vsel %vm3020_vm2, %v3326_v12, %v858_v1  ;;  %v2338_v32 = vld [vmem:[%s3660_s0 + $0x28] sm:$0x11] }
  0x5d   :  { %2595 = vmatprep.subr.bf16.mxu0 %v2804_v46  ;;  %v873_v17 = vsel %vm3020_vm2, %v3328_v13, %v872_v9  ;;  %v2832_v9 = vld [vmem:[%s3661_s1 + $0x360] sm:$0xff]  }
  0x5e   :  { %2628 = vmatpush3.bf16.msra.mxu1 %v2803_v35  ;;  %v2292_v19 = vcombine.high %v859_v16, %v873_v17  ;;  %v2291_v20 = vcombine.low %v859_v16, %v873_v17  ;;  %v1339_v35 = vshll.u32 %v2338_v32, 16  ;;  %v2834_v17 = vld [vmem:[%s3661_s1 + $0x320] sm:$0xff]   ;;  %v2346_v32 = vld [vmem:[%s3660_s0 + $0xc8] sm:$0x11] }
  0x5f   :  { %764 = vmatmul.mubr.bf16.gmra.mxu0 %v2257_v45  ;;  %2629 = vmatprep.subr.bf16.mxu1 %v2805_v47  ;;  %v2822_v45 = vld [vmem:[%s3661_s1 + $0x338] sm:$0xff]   ;;  %v1356_v47 = vsel %vm3020_vm2, %v3090_v31, %v1355_v41  ;;  %v2311_v31 = vld [vmem:[%s3660_s0 + $0x60] sm:$0xff] }
  0x60   :  { %2596 = vmatpush3.bf16.msra.mxu0 %v2806_v61  ;;  %1286 = vmatprep.mubr.bf16.mxu0 %v2316_v53  ;;  %v1341_v40 = vrot.slane %v1339_v35, 5  ;;  %v2318_v53 = vcombine.high %v2311_v31, %v3115_v43  ;;  %v2317_v54 = vcombine.low %v2311_v31, %v3115_v43  ;;  %v1358_v56 = vshrl.u32 %v2311_v31, 16  ;;  %v2344_v43 = vld [vmem:[%s3660_s0 + $0xa8] sm:$0x11]  ;;  %v2838_v35 = vld [vmem:[%s3661_s1 + $0x318] sm:$0xff]  }
  0x61   :  { %2597 = vmatprep.subr.bf16.mxu0 %v2808_v10  ;;  %1074 = vmatprep.mubr.bf16.mxu1 %v2292_v19  ;;  %v1361_v61 = vshll.u32 %v2311_v31, 16  ;;  %v1381_v1 = vshll.u32 %v2344_v43, 16  ;;  %v2314_v19 = vld [vmem:[%s3660_s0 + $0xe0] sm:$0xff] }
  0x62   :  { %2630 = vmatpush3.bf16.msra.mxu1 %v2807_v3  ;;  %v1342_v46 = vsel %vm3020_vm2, %v3027_v57, %v1341_v40  ;;  %v2825_v57 = vld [vmem:[%s3661_s1 + $0x3f0] sm:$0xff]   ;;  %v1360_v62 = vrot.slane %v1358_v56, 4  ;;  %v2830_v3 = vld [vmem:[%s3661_s1 + $0x328] sm:$0xff]   ;;  %v2851_v43 = vld [vmem:[%s3661_s1 + $0x380] sm:$0xff]  }
  0x63   :  { %2631 = vmatprep.subr.bf16.mxu1 %v2809_v11  ;;  %1075 = vmatmul.mubr.bf16.gmra.mxu1 %v2291_v20  ;;  %v2349_v49 = vcombine.low %v1342_v46, %v1356_v47  ;;  %v2350_v52 = vcombine.high %v1342_v46, %v1356_v47  ;;  %v1363_v0 = vrot.slane %v1361_v61, 5  ;;  %v1383_v11 = vrot.slane %v1381_v1, 5  ;;  %v2847_v56 = vld [vmem:[%s3661_s1 + $0x388] sm:$0xff]   ;;  %v2850_v61 = vld [vmem:[%s3661_s1 + $0x300] sm:$0xff]  }
  0x64   :  { %2598 = vmatpush3.bf16.msra.mxu0 %v2810_v14  ;;  %v2833_v14 = vld [vmem:[%s3661_s1 + $0x3e0] sm:$0xff]   ;;  %v1892_v1 = vshll.u32 %v2402_v63, 16 }
  0x65   :  { %2599 = vmatprep.subr.bf16.mxu0 %v2812_v18  ;;  %1597 = vmatprep.mubr.bf16.mxu1 %v2350_v52  ;;  %v1364_v10 = vor.u32 %v1363_v0, %v1360_v62  ;;  %v1384_v16 = vsel %vm3020_vm2, %v3148_v5, %v1383_v11  ;;  %v2835_v18 = vld [vmem:[%s3661_s1 + $0x3a0] sm:$0xff]   ;;  %v2320_v5 = vcombine.high %v3120_v44, %v2314_v19  ;;  %v2400_v62 = vld [vmem:[%s3660_s0 + $0x38] sm:$0x11] }
  0x66   :  { %2632 = vmatpush3.bf16.msra.mxu1 %v2811_v15  ;;  %v1878_v0 = vshll.u32 %v2400_v62, 16 }
  0x67   :  { %2633 = vmatprep.subr.bf16.mxu1 %v2813_v22  ;;  %v1365_v15 = vrot.slane %v1364_v10, 4  ;;  %v2319_v22 = vcombine.low %v3120_v44, %v2314_v19  ;;  %v2348_v44 = vld [vmem:[%s3660_s0 + $0xe8] sm:$0x11] }
  0x68   :  { %2600 = vmatpush3.bf16.msra.mxu0 %v2814_v23  ;;  %v2836_v23 = vld [vmem:[%s3661_s1 + $0x358] sm:$0xff]   ;;  %v1409_v41 = vshll.u32 %v2348_v44, 16 }
  0x69   :  { %2601 = vmatprep.subr.bf16.mxu0 %v2816_v26  ;;  %v1370_v20 = vsel %vm3020_vm2, %v1365_v15, %v1369_v7  ;;  %v1880_v15 = vrot.slane %v1878_v0, 5 }
  0x6a   :  { %2634 = vmatpush3.bf16.msra.mxu1 %v2815_v25  ;;  %v1400_v25 = vshrl.u32 %v2314_v19, 16  ;;  %v2352_v26 = vcombine.high %v1370_v20, %v1384_v16  ;;  %v1411_v47 = vrot.slane %v1409_v41, 5 }
  0x6b   :  { %2635 = vmatprep.subr.bf16.mxu1 %v2817_v27  ;;  %v2351_v27 = vcombine.low %v1370_v20, %v1384_v16  ;;  %v1894_v16 = vrot.slane %v1892_v1, 5 }
  0x6c   :  { %2602 = vmatpush3.bf16.msra.mxu0 %v2818_v29  ;;  %v2837_v29 = vld [vmem:[%s3661_s1 + $0x3d8] sm:$0xff]   ;;  %v1402_v34 = vrot.slane %v1400_v25, 4  ;;  %v1881_v25 = vsel %vm3020_vm2, %v3212_v51, %v1880_v15 }
  0x6d   :  { %2655 = vmatprep.subr.bf16.mxu0 %v2820_v39  ;;  %v1395_v39 = vshll.u32 %v2346_v32, 16 }
  0x6e   :  { %2636 = vmatpush3.bf16.msra.mxu1 %v2819_v30  ;;  %v1403_v30 = vshll.u32 %v2314_v19, 16  ;;  %v2408_v19 = vld [vmem:[%s3660_s0 + $0xd8] sm:$0x11] }
  0x6f   :  { %1287 = vmatmul.mubr.bf16.vlgmr.msra.gmra.mxu0 %v2315_v24  ;;  %2689 = vmatprep.subr.bf16.mxu1 %v2821_v42  ;;  %v2827_v24 = vld [vmem:[%s3661_s1 + $0x3b0] sm:$0xff]   ;;  %v2839_v42 = vld [vmem:[%s3661_s1 + $0x398] sm:$0xff]  }
  0x70   :  { %2656 = vmatpush3.bf16.msra.mxu0 %v2822_v45  ;;  %1294 = vmatprep.mubr.bf16.mxu0 %v2318_v53  ;;  %v1405_v40 = vrot.slane %v1403_v30, 5  ;;  %v1397_v45 = vrot.slane %v1395_v39, 5  ;;  %v2844_v53 = vld [vmem:[%s3661_s1 + $0x348] sm:$0xff]  }
  0x71   :  { %2657 = vmatprep.subr.bf16.mxu0 %v2824_v33  ;;  %1598 = vmatmul.mubr.bf16.vlgmr.msra.gmra.mxu1 %v2349_v49  ;;  %v2841_v33 = vld [vmem:[%s3661_s1 + $0x3d0] sm:$0xff]  }
  0x72   :  { %2690 = vmatpush3.bf16.msra.mxu1 %v2823_v48  ;;  %1605 = vmatprep.mubr.bf16.mxu1 %v2352_v26  ;;  %v1406_v46 = vor.u32 %v1405_v40, %v1402_v34  ;;  %v2840_v48 = vld [vmem:[%s3661_s1 + $0x350] sm:$0xff]   ;;  %v1398_v49 = vsel %vm3020_vm2, %v3153_v8, %v1397_v45  ;;  %v1895_v26 = vsel %vm3020_vm2, %v3266_v28, %v1894_v16 }
  0x73   :  { %2691 = vmatprep.subr.bf16.mxu1 %v2825_v57  ;;  %v2842_v57 = vld [vmem:[%s3661_s1 + $0x310] sm:$0xff]   ;;  %v2411_v21 = vcombine.low %v1881_v25, %v1895_v26  ;;  %v2412_v60 = vcombine.high %v1881_v25, %v1895_v26 }
  0x74   :  { %2658 = vmatpush3.bf16.msra.mxu0 %v2826_v6  ;;  %v1407_v52 = vrot.slane %v1406_v46, 4 }
  0x75   :  { %2659 = vmatprep.subr.bf16.mxu0 %v2828_v55  ;;  %v2846_v55 = vld [vmem:[%s3661_s1 + $0x308] sm:$0xff]  }
  0x76   :  { %2692 = vmatpush3.bf16.msra.mxu1 %v2827_v24  ;;  %v1412_v6 = vsel %vm3020_vm2, %v1407_v52, %v1411_v47  ;;  %v2843_v24 = vld [vmem:[%s3661_s1 + $0x390] sm:$0xff]  }
  0x77   :  { %1295 = vmatmul.mubr.bf16.gmra.mxu0 %v2317_v54  ;;  %2693 = vmatprep.subr.bf16.mxu1 %v2829_v58  ;;  %v2354_v8 = vcombine.high %v1398_v49, %v1412_v6  ;;  %v2353_v31 = vcombine.low %v1398_v49, %v1412_v6  ;;  %v2845_v54 = vld [vmem:[%s3661_s1 + $0x3c8] sm:$0xff]   ;;  %v2848_v58 = vld [vmem:[%s3661_s1 + $0x340] sm:$0xff]  }
  0x78   :  { %2660 = vmatpush3.bf16.msra.mxu0 %v2830_v3  ;;  %1302 = vmatprep.mubr.bf16.mxu0 %v2320_v5  ;;  %v2373_v3 = vld [vmem:[%s3660_s0 + $0x70] sm:$0xff] }
  0x79   :  { %2661 = vmatprep.subr.bf16.mxu0 %v2832_v9  ;;  %1606 = vmatmul.mubr.bf16.gmra.mxu1 %v2351_v27  ;;  %v2380_v7 = vcombine.high %v2373_v3, %v3283_v36  ;;  %v2406_v9 = vld [vmem:[%s3660_s0 + $0xb8] sm:$0x11]  ;;  %v1897_v10 = vshrl.u32 %v2373_v3, 16  ;;  %v1900_v11 = vshll.u32 %v2373_v3, 16  ;;  %v2379_v51 = vcombine.low %v2373_v3, %v3283_v36 }
  0x7a   :  { %2694 = vmatpush3.bf16.msra.mxu1 %v2831_v4  ;;  %1613 = vmatprep.mubr.bf16.mxu1 %v2354_v8  ;;  %v2404_v4 = vld [vmem:[%s3660_s0 + $0x78] sm:$0x11] }
  0x7b   :  { %2695 = vmatprep.subr.bf16.mxu1 %v2833_v14  ;;  %v1906_v14 = vshll.u32 %v2404_v4, 16  ;;  %v1899_v20 = vrot.slane %v1897_v10, 4  ;;  %v1902_v5 = vrot.slane %v1900_v11, 5 }
  0x7c   :  { %2662 = vmatpush3.bf16.msra.mxu0 %v2834_v17  ;;  %v1920_v17 = vshll.u32 %v2406_v9, 16 }
  0x7d   :  { %2663 = vmatprep.subr.bf16.mxu0 %v2836_v23  ;;  %v2410_v23 = vld [vmem:[%s3660_s0 + $0xf8] sm:$0x11] }
  0x7e   :  { %2696 = vmatpush3.bf16.msra.mxu1 %v2835_v18  ;;  %v2376_v18 = vld [vmem:[%s3660_s0 + $0xf0] sm:$0xff]  ;;  %v1922_v27 = vrot.slane %v1920_v17, 5  ;;  %v1948_v44 = vshll.u32 %v2410_v23, 16 }
  0x7f   :  { %1303 = vmatmul.mubr.bf16.gmra.mxu0 %v2319_v22  ;;  %2697 = vmatprep.subr.bf16.mxu1 %v2837_v29  ;;  %v1908_v22 = vrot.slane %v1906_v14, 5  ;;  %v1934_v29 = vshll.u32 %v2408_v19, 16  ;;  %v1939_v30 = vshrl.u32 %v2376_v18, 16  ;;  %v1942_v32 = vshll.u32 %v2376_v18, 16 }
  0x80   :  { %2664 = vmatpush3.bf16.msra.mxu0 %v2838_v35  ;;  %1825 = vmatprep.mubr.bf16.mxu0 %v2378_v37  ;;  %v1923_v35 = vsel %vm3020_vm2, %v3326_v12, %v1922_v27  ;;  %v2382_v28 = vcombine.high %v3290_v38, %v2376_v18  ;;  %v1950_v46 = vrot.slane %v1948_v44, 5  ;;  %v2381_v52 = vcombine.low %v3290_v38, %v2376_v18 }
  0x81   :  { %2665 = vmatprep.subr.bf16.mxu0 %v2840_v48  ;;  %1614 = vmatmul.mubr.bf16.gmra.mxu1 %v2353_v31  ;;  %v1941_v37 = vrot.slane %v1939_v30, 4  ;;  %v1936_v39 = vrot.slane %v1934_v29, 5  ;;  %v1944_v40 = vrot.slane %v1942_v32, 5 }
  0x82   :  { %2698 = vmatpush3.bf16.msra.mxu1 %v2839_v42  ;;  %2136 = vmatprep.mubr.bf16.mxu1 %v2412_v60 }
  0x83   :  { %2699 = vmatprep.subr.bf16.mxu1 %v2841_v33  ;;  %v1945_v45 = vor.u32 %v1944_v40, %v1941_v37  ;;  %v1937_v36 = vsel %vm3020_vm2, %v3328_v13, %v1936_v39 }
  0x84   :  { %2666 = vmatpush3.bf16.msra.mxu0 %v2842_v57 }
  0x85   :  { %2667 = vmatprep.subr.bf16.mxu0 %v2844_v53  ;;  %v1946_v12 = vrot.slane %v1945_v45, 4 }
  0x86   :  { %2700 = vmatpush3.bf16.msra.mxu1 %v2843_v24 }
  0x87   :  { %2701 = vmatprep.subr.bf16.mxu1 %v2845_v54  ;;  %v1951_v48 = vsel %vm3020_vm2, %v1946_v12, %v1950_v46 }
  0x88   :  { %2668 = vmatpush3.bf16.msra.mxu0 %v2846_v55  ;;  %v2416_v49 = vcombine.high %v1937_v36, %v1951_v48  ;;  %v2415_v33 = vcombine.low %v1937_v36, %v1951_v48 }
  0x89   :  { %2669 = vmatprep.subr.bf16.mxu0 %v2848_v58 }
  0x8a   :  { %2702 = vmatpush3.bf16.msra.mxu1 %v2847_v56 }
  0x8b   :  { %2703 = vmatprep.subr.bf16.mxu1 %v2849_v59 }
  0x8c   :  { %2670 = vmatpush3.bf16.msra.mxu0 %v2850_v61 }
  0x8e   :  { %2704 = vmatpush3.bf16.msra.mxu1 %v2851_v43 }
  0x8f   :  { %1826 = vmatmul.mubr.bf16.vlgmr.msra.gmra.mxu0 %v2377_v2  ;;  %v1903_v2 = vor.u32 %v1902_v5, %v1899_v20 }
  0x90   :  { %1833 = vmatprep.mubr.bf16.mxu0 %v2380_v7 }
  0x91   :  { %v1904_v34 = vrot.slane %v1903_v2, 4  ;;  %2137 = vmatmul.mubr.bf16.vlgmr.msra.gmra.mxu1 %v2411_v21 }
  0x93   :  { %v1909_v41 = vsel %vm3020_vm2, %v1904_v34, %v1908_v22 }
  0x94   :  { %v2414_v42 = vcombine.high %v1909_v41, %v1923_v35  ;;  %v2413_v47 = vcombine.low %v1909_v41, %v1923_v35 }
  0x96   :  { %2144 = vmatprep.mubr.bf16.mxu1 %v2414_v42 }
  0x97   :  { %1834 = vmatmul.mubr.bf16.gmra.mxu0 %v2379_v51 }
  0x98   :  { %1841 = vmatprep.mubr.bf16.mxu0 %v2382_v28 }
  0x99   :  { %2145 = vmatmul.mubr.bf16.gmra.mxu1 %v2413_v47 }
  0x9a   :  { %2152 = vmatprep.mubr.bf16.mxu1 %v2416_v49 }
  0x9f   :  { %1842 = vmatmul.mubr.bf16.gmra.mxu0 %v2381_v52 }
  0xa1   :  { %2153 = vmatmul.mubr.bf16.gmra.mxu1 %v2415_v33 }
  0xef   :  { %v2467_v8 = vpop.f32.mrf.mxu0 }
  0xf0   :  { %v2501_v57 = vpop.f32.mrf.mxu1 }
  0xf1   :  { %v2468_v53 = vpop.f32.mrf.mxu0 }
  0xf2   :  { %v2502_v6 = vpop.f32.mrf.mxu1  ;;  %v2469_v13 = vadd.f32 %v2468_v53, %v2467_v8 }
  0xf3   :  { %v2503_v24 = vadd.f32 %v2502_v6, %v2501_v57  ;;  %v3564_v38 = vpop.f32.mrf.mxu0 }
  0xf4   :  { %v3558_v31 = vpop.f32.mrf.mxu1 }
  0xf5   :  { %v3562_v50 = vadd.f32 %v2503_v24, %v2469_v13  ;;  %v2471_v61 = vpop.f32.mrf.mxu0 }
  0xf6   :  { %v3560_v54 = vpop.f32.mrf.mxu1 }
  0xf7   :  { %v2473_v62 = vpop.f32.mrf.mxu0 }
  0xf8   :  { %v2507_v55 = vpop.f32.mrf.mxu1 }
  0xf9   :  { %v2474_v63 = vpop.f32.mrf.mxu0 }
  0xfa   :  { %v2508_v56 = vpop.f32.mrf.mxu1  ;;  %v2475_v1 = vadd.f32 %v2474_v63, %v2473_v62 }
  0xfb   :  { %v2509_v58 = vadd.f32 %v2508_v56, %v2507_v55  ;;  %v3570_v3 = vpop.f32.mrf.mxu0 }
  0xfc   :  { %v3566_v59 = vpop.f32.mrf.mxu1 }
  0xfd   :  { %v3572_v7 = vadd.f32 %v2509_v58, %v2475_v1  ;;  %v3574_v10 = vpop.f32.mrf.mxu0  ;;  %v2472_v1 = vadd.f32 %v2471_v61, %v3564_v38 }
  0xfe   :  { %v3568_v43 = vpop.f32.mrf.mxu1 }
  0xff   :  { %v2479_v11 = vpop.f32.mrf.mxu0 }
 0x100   :  { %v2513_v0 = vpop.f32.mrf.mxu1 }
 0x101   :  { %v2480_v14 = vpop.f32.mrf.mxu0 }
 0x102   :  { %v2514_v4 = vpop.f32.mrf.mxu1  ;;  %v2481_v15 = vadd.f32 %v2480_v14, %v2479_v11 }
 0x103   :  { %v2515_v9 = vadd.f32 %v2514_v4, %v2513_v0  ;;  %v3576_v16 = vpop.f32.mrf.mxu0  ;;  %v2506_v4 = vadd.f32 %v3560_v54, %v3558_v31  ;;  %v2478_v54 = vadd.f32 %v3574_v10, %v3570_v3 }
 0x104   :  { %v3582_v20 = vpop.f32.mrf.mxu1 }
 0x105   :  { %v3578_v17 = vadd.f32 %v2515_v9, %v2481_v15  ;;  %v3580_v18 = vpop.f32.mrf.mxu0 }
 0x106   :  { %v3584_v23 = vpop.f32.mrf.mxu1 }
 0x10f   :  { %v2535_v19 = vpop.f32.mrf.mxu0 }
 0x110   :  { %v2569_v26 = vpop.f32.mrf.mxu1 }
 0x111   :  { %v2536_v5 = vpop.f32.mrf.mxu0 }
 0x112   :  { %v2570_v29 = vpop.f32.mrf.mxu1  ;;  %v2537_v63 = vadd.f32 %v2536_v5, %v2535_v19 }
 0x113   :  { %v2538_v22 = vpop.f32.mrf.mxu0  ;;  %v2571_v15 = vadd.f32 %v2570_v29, %v2569_v26 }
 0x114   :  { %v2572_v60 = vpop.f32.mrf.mxu1  ;;  %v772_v14 = vadd.f32 %v2537_v63, %v3562_v50  ;;  %v2512_v50 = vadd.f32 %v3568_v43, %v3566_v59 }
 0x115   :  { %v2539_v25 = vpop.f32.mrf.mxu0 }
 0x116   :  { %v2573_v30 = vpop.f32.mrf.mxu1  ;;  %v2540_v11 = vadd.f32 %v2539_v25, %v2538_v22  ;;  %v1083_v19 = vadd.f32 %v2571_v15, %v772_v14 }
 0x117   :  { %v2541_v27 = vpop.f32.mrf.mxu0  ;;  %v2574_v38 = vadd.f32 %v2573_v30, %v2572_v60 }
 0x119   :  { %v2542_v21 = vpop.f32.mrf.mxu0  ;;  %v2575_v32 = vpop.f32.mrf.mxu1 }
 0x11a   :  { %v2543_v5 = vadd.f32 %v2542_v21, %v2541_v27 }
 0x11b   :  { %v2544_v2 = vpop.f32.mrf.mxu0  ;;  %v2576_v34 = vpop.f32.mrf.mxu1 }
 0x11d   :  { %v2545_v44 = vpop.f32.mrf.mxu0  ;;  %v3586_v35 = vpop.f32.mrf.mxu1 }
 0x11e   :  { %v2546_v27 = vadd.f32 %v2545_v44, %v2544_v2  ;;  %v2484_v2 = vadd.f32 %v3580_v18, %v3576_v16  ;;  %v2518_v44 = vadd.f32 %v3584_v23, %v3582_v20 }
 0x11f   :  { %v2547_v51 = vpop.f32.mrf.mxu0  ;;  %v3588_v37 = vpop.f32.mrf.mxu1 }
 0x120   :  { %v547_v14 = vadd.f32 %v2518_v44, %v2484_v2 }
 0x121   :  { %v2548_v28 = vpop.f32.mrf.mxu0 }
 0x122   :  { %v2549_v10 = vadd.f32 %v2548_v28, %v2547_v51 }
 0x123   :  { %v3590_v39 = vpop.f32.mrf.mxu1  ;;  %v3592_v40 = vpop.f32.mrf.mxu0 }
 0x125   :  { %v3594_v41 = vpop.f32.mrf.mxu1  ;;  %v3596_v42 = vpop.f32.mrf.mxu0 }
 0x126   :  { %3666 = vst [vmem:[#allocation5_spill] sm:$0xff] %v3596_v42 }
 0x127   :  { %v3598_v45 = vpop.f32.mrf.mxu1 }
 0x128   :  { %3667 = vst [vmem:[#allocation6_spill] sm:$0xff] %v3598_v45  ;;  %v531_v45 = vadd.f32 %v2506_v4, %v2472_v1 }
 0x129   :  { %v3600_v36 = vpop.f32.mrf.mxu1 }
 0x12a   :  { %3668 = vst [vmem:[#allocation7_spill] sm:$0xff] %v3600_v36 }
 0x12f   :  { %v2603_v46 = vpop.f32.mrf.mxu0 }
 0x131   :  { %v2604_v47 = vpop.f32.mrf.mxu0  ;;  %v2637_v48 = vpop.f32.mrf.mxu1 }
 0x133   :  { %v2606_v12 = vpop.f32.mrf.mxu0  ;;  %v2638_v52 = vpop.f32.mrf.mxu1 }
 0x134   :  { %v2639_v25 = vadd.f32 %v2638_v52, %v2637_v48  ;;  %v2580_v52 = vadd.f32 %v3588_v37, %v3586_v35  ;;  %v2583_v35 = vadd.f32 %v3594_v41, %v3590_v39  ;;  %v3672_v37 = vld [vmem:[#allocation5_spill] sm:$0xff] }
 0x135   :  { %v2607_v49 = vpop.f32.mrf.mxu0  ;;  %v2640_v6 = vpop.f32.mrf.mxu1  ;;  %v2552_v4 = vadd.f32 %v3672_v37, %v3592_v40 }
 0x136   :  { %v2608_v61 = vadd.f32 %v2607_v49, %v2606_v12  ;;  %v539_v12 = vadd.f32 %v2512_v50, %v2478_v54  ;;  %v3676_v50 = vld [vmem:[#allocation6_spill] sm:$0xff] }
 0x137   :  { %v2609_v33 = vpop.f32.mrf.mxu0  ;;  %v2641_v8 = vpop.f32.mrf.mxu1  ;;  %v777_v40 = vadd.f32 %v2552_v4, %v547_v14 }
 0x138   :  { %v2642_v1 = vadd.f32 %v2641_v8, %v2640_v6  ;;  %v775_v48 = vadd.f32 %v2546_v27, %v539_v12 }
 0x139   :  { %v2610_v57 = vpop.f32.mrf.mxu0  ;;  %v2643_v13 = vpop.f32.mrf.mxu1 }
 0x13a   :  { %v2611_v63 = vadd.f32 %v2610_v57, %v2609_v33  ;;  %v1086_v18 = vadd.f32 %v2580_v52, %v775_v48 }
 0x13b   :  { %v2612_v24 = vpop.f32.mrf.mxu0  ;;  %v2644_v55 = vpop.f32.mrf.mxu1 }
 0x13c   :  { %v2645_v51 = vadd.f32 %v2644_v55, %v2643_v13  ;;  %v2433_v13 = vld [vmem:[#allocation2] ss:$0 sm:$0xff] }
 0x13d   :  { %v2613_v53 = vpop.f32.mrf.mxu0  ;;  %v3604_v58 = vpop.f32.mrf.mxu1 }
 0x13e   :  { %3670 = vst [vmem:[#allocation9_spill] sm:$0xff] %v3604_v58  ;;  %v2605_v58 = vadd.f32 %v2604_v47, %v2603_v46  ;;  %v2577_v46 = vadd.f32 %v2576_v34, %v2575_v32  ;;  %v2614_v28 = vadd.f32 %v2613_v53, %v2612_v24 }
 0x13f   :  { %v3602_v56 = vpop.f32.mrf.mxu0  ;;  %v3606_v62 = vpop.f32.mrf.mxu1 }
 0x140   :  { %3669 = vst [vmem:[#allocation8_spill] sm:$0xff] %v3602_v56  ;;  %3671 = vst [vmem:[#allocation10_spill] sm:$0xff] %v3606_v62  ;;  %v773_v62 = vadd.f32 %v2540_v11, %v531_v45  ;;  %v1311_v22 = vadd.f32 %v2605_v58, %v1083_v19  ;;  %v774_v45 = vadd.f32 %v2543_v5, %v3572_v7 }
 0x141   :  { %v2616_v0 = vpop.f32.mrf.mxu0  ;;  %v3611_v9 = vpop.f32.mrf.mxu1  ;;  %v1314_v5 = vadd.f32 %v2614_v28, %v1086_v18 }
 0x142   :  { %v1084_v29 = vadd.f32 %v2574_v38, %v773_v62  ;;  %v1622_v49 = vadd.f32 %v2639_v25, %v1311_v22  ;;  %v1085_v43 = vadd.f32 %v2577_v46, %v774_v45  ;;  %v776_v62 = vadd.f32 %v2549_v10, %v3578_v17  ;;  %v3677_v22 = vld [vmem:[#allocation7_spill] sm:$0xff] }
 0x143   :  { %v3614_v36 = vpop.f32.mrf.mxu0  ;;  %v3616_v56 = vpop.f32.mrf.mxu1  ;;  %v2586_v25 = vadd.f32 %v3677_v22, %v3676_v50 }
 0x144   :  { %v1312_v47 = vadd.f32 %v2608_v61, %v1084_v29  ;;  %v1313_v57 = vadd.f32 %v2611_v63, %v1085_v43  ;;  %v1087_v54 = vadd.f32 %v2583_v35, %v776_v62 }
 0x145   :  { %v3618_v42 = vpop.f32.mrf.mxu0  ;;  %v3620_v31 = vpop.f32.mrf.mxu1  ;;  %v3674_v17 = vld [vmem:[#allocation9_spill] sm:$0xff] }
 0x146   :  { %v1623_v34 = vadd.f32 %v2642_v1, %v1312_v47  ;;  %v1624_v55 = vadd.f32 %v2645_v51, %v1313_v57  ;;  %v1088_v1 = vadd.f32 %v2586_v25, %v777_v40 }
 0x147   :  { %v3627_v60 = vpop.f32.mrf.mxu1  ;;  %v3673_v15 = vld [vmem:[#allocation8_spill] sm:$0xff]  ;;  %v3675_v38 = vld [vmem:[#allocation10_spill] sm:$0xff] }
 0x148   :  { %v2617_v19 = vadd.f32 %v2616_v0, %v3673_v15  ;;  %v2648_v61 = vadd.f32 %v3675_v38, %v3674_v17 }
 0x14a   :  { %v1315_v27 = vadd.f32 %v2617_v19, %v1087_v54  ;;  %v1625_v12 = vadd.f32 %v2648_v61, %v1314_v5 }
 0x14f   :  { %v2671_v26 = vpop.f32.mrf.mxu0 }
 0x151   :  { %v2672_v21 = vpop.f32.mrf.mxu0  ;;  %v2705_v59 = vpop.f32.mrf.mxu1 }
 0x152   :  { %v2673_v30 = vadd.f32 %v2672_v21, %v2671_v26  ;;  %v2620_v21 = vadd.f32 %v3618_v42, %v3614_v36  ;;  %v2654_v36 = vadd.f32 %v3627_v60, %v3620_v31 }
 0x153   :  { %v2674_v3 = vpop.f32.mrf.mxu0  ;;  %v2706_v58 = vpop.f32.mrf.mxu1 }
 0x154   :  { %v1850_v7 = vadd.f32 %v2673_v30, %v1622_v49  ;;  %v2707_v6 = vadd.f32 %v2706_v58, %v2705_v59  ;;  %v2651_v49 = vadd.f32 %v3616_v56, %v3611_v9  ;;  %v1316_v2 = vadd.f32 %v2620_v21, %v1088_v1 }
 0x155   :  { %v2675_v32 = vpop.f32.mrf.mxu0  ;;  %v2708_v16 = vpop.f32.mrf.mxu1 }
 0x156   :  { %v2676_v33 = vadd.f32 %v2675_v32, %v2674_v3  ;;  %v2161_v11 = vadd.f32 %v2707_v6, %v1850_v7  ;;  %v1626_v42 = vadd.f32 %v2651_v49, %v1315_v27  ;;  %v1627_v35 = vadd.f32 %v2654_v36, %v1316_v2 }
 0x157   :  { %v2677_v8 = vpop.f32.mrf.mxu0  ;;  %v2709_v24 = vpop.f32.mrf.mxu1 }
 0x158   :  { %v1851_v20 = vadd.f32 %v2676_v33, %v1623_v34  ;;  %v2710_v39 = vadd.f32 %v2709_v24, %v2708_v16  ;;  %v2174_v29 = vadd.f32 %v2433_v13, %v2161_v11 }
 0x159   :  { %v2678_v23 = vpop.f32.mrf.mxu0  ;;  %v2711_v26 = vpop.f32.mrf.mxu1 }
 0x15a   :  { %v2679_v53 = vadd.f32 %v2678_v23, %v2677_v8  ;;  %v2162_v45 = vadd.f32 %v2710_v39, %v1851_v20  ;;  %v2180_v43 = vmax.f32 %v2174_v29, 0.0 }
 0x15b   :  { %v2680_v41 = vpop.f32.mrf.mxu0  ;;  %v2712_v47 = vpop.f32.mrf.mxu1 }
 0x15c   :  { %v1852_v46 = vadd.f32 %v2679_v53, %v1624_v55  ;;  %v2175_v63 = vadd.f32 %v2433_v13, %v2162_v45  ;;  %v2713_v3 = vadd.f32 %v2712_v47, %v2711_v26 }
 0x15d   :  { %v2681_v0 = vpop.f32.mrf.mxu0  ;;  %v2714_v59 = vpop.f32.mrf.mxu1 }
 0x15e   :  { %v2682_v30 = vadd.f32 %v2681_v0, %v2680_v41  ;;  %v2181_v48 = vmax.f32 %v2175_v63, 0.0  ;;  %v2163_v52 = vadd.f32 %v2713_v3, %v1852_v46 }
 0x15f   :  { %v2683_v10 = vpop.f32.mrf.mxu0  ;;  %v2715_v44 = vpop.f32.mrf.mxu1 }
 0x160   :  { %v1853_v7 = vadd.f32 %v2682_v30, %v1625_v12  ;;  %v2437_v58 = vpack.c.bf16 %v2181_v48, %v2180_v43  ;;  %v2716_v33 = vadd.f32 %v2715_v44, %v2714_v59  ;;  %v2176_v57 = vadd.f32 %v2433_v13, %v2163_v52 }
 0x161   :  { %v2684_v32 = vpop.f32.mrf.mxu0  ;;  %v2717_v9 = vpop.f32.mrf.mxu1 }
 0x162   :  { %v2685_v34 = vadd.f32 %v2684_v32, %v2683_v10  ;;  %2438 = vst [vmem:[%s3663_s3] sm:$0xff] %v2437_v58   ;;  %v2164_v51 = vadd.f32 %v2716_v33, %v1853_v7  ;;  %v2182_v18 = vmax.f32 %v2176_v57, 0.0 }
 0x163   :  { %v2686_v56 = vpop.f32.mrf.mxu0  ;;  %v2718_v8 = vpop.f32.mrf.mxu1 }
 0x164   :  { %v1854_v28 = vadd.f32 %v2685_v34, %v1626_v42  ;;  %v2177_v37 = vadd.f32 %v2433_v13, %v2164_v51  ;;  %v2719_v4 = vadd.f32 %v2718_v8, %v2717_v9 }
 0x165   :  { %v2687_v6 = vpop.f32.mrf.mxu0  ;;  %v2720_v16 = vpop.f32.mrf.mxu1 }
 0x166   :  { %v2688_v62 = vadd.f32 %v2687_v6, %v2686_v56  ;;  %v2183_v31 = vmax.f32 %v2177_v37, 0.0  ;;  %v2165_v60 = vadd.f32 %v2719_v4, %v1854_v28 }
 0x167   :  { %v2721_v20 = vpop.f32.mrf.mxu1 }
 0x168   :  { %v1855_v11 = vadd.f32 %v2688_v62, %v1627_v35  ;;  %v2442_v23 = vpack.c.bf16 %v2183_v31, %v2182_v18  ;;  %v2722_v14 = vadd.f32 %v2721_v20, %v2720_v16  ;;  %v2178_v15 = vadd.f32 %v2433_v13, %v2165_v60 }
 0x16a   :  { %2449 = vst [vmem:[%s3663_s3 + $0x8] sm:$0xff] %v2442_v23   ;;  %v2166_v19 = vadd.f32 %v2722_v14, %v1855_v11  ;;  %v2184_v53 = vmax.f32 %v2178_v15, 0.0 }
 0x16c   :  { %v2179_v24 = vadd.f32 %v2433_v13, %v2166_v19 }
 0x16e   :  { %v2185_v55 = vmax.f32 %v2179_v24, 0.0 }
 0x170   :  { %v2447_v5 = vpack.c.bf16 %v2185_v55, %v2184_v53 }
 0x172   :  { %2450 = vst [vmem:[%s3663_s3 + $0x10] sm:$0xff] %v2447_v5  }
 0x173   :  { %2202 = vsyncpa [#allocation3], 1 }

// kernel: forward.4
= control target key start
LH: loop header
LB: loop body
LE: loop exit
PB: predicated region body
PF: predicated region fallthrough
CT: control target
= control target key end

     0   :  { %8 = vsyncpa [#allocation3], 0  ;;  %s8417_s0 = inlined_call_operand.vmem [shape: bf16[2,9,4,9,16], index: 0, kind: input, shape index: {}]   ;;  %s8418_s1 = inlined_call_operand.hbm [shape: bf16[256,128], index: 1, kind: input, shape index: {}]   ;;  %s8419_s2 = inlined_call_operand.hbm [shape: f32[1,128], index: 2, kind: input, shape index: {}]   ;;  %s8420_s3 = inlined_call_operand.vmem [shape: bf16[2,8,8,128], index: 3, kind: output, shape index: {}]  }
   0x1   :  { %9 = vsyncpa [#allocation5], 0  ;;  %s6241_s12 = smov [#allocation2]  }
   0x2   :  { %s17_s13 = sshll.u32 %s6241_s12, 4  ;;  %s18_s13 = int_to_ptr.vmem [resolvable:$true] %s17_s13 }
   0x3   :  { %s6205_s14 = scalar_lea.vmem %s18_s13, 2048  ;;  %p6210_p1 = scmp.lt.s32.totalorder %s18_s13, %s18_s13 }
   0x4   :  { %p6206_p0 = scmp.ne.s32.totalorder %s18_s13, %s6205_s14  ;;  %p6211_p2 = scmp.lt.s32.totalorder %s6205_s14, %s6205_s14 }
   0x6   :  { %p6212_p3 = por %p6211_p2, %p6210_p1 }
   0x8   :  { %p6213_p4 = pnand %p6212_p3, %p6206_p0 }
   0xa   :  { %6216 = shalt.err (!%p6213_p4)
}
   0xb   :  { %s6242_s15 = smov 64   ;;  %s6243_s16 = smov 4  }
   0xc   :  { %23 = dma.hbm_to_vmem [thread:$0]  %s8418_s1, 2048, %s18_s13, [#allocation3], %s6242_s15, %s6242_s15, %s6243_s16  }
   0xd   :  { %s6244_s19 = smov [#allocation4]  }
   0xe   :  { %s30_s20 = sshll.u32 %s6244_s19, 4  ;;  %s31_s20 = int_to_ptr.vmem [resolvable:$true] %s30_s20 }
   0xf   :  { %s6225_s21 = scalar_lea.vmem %s31_s20, 16  ;;  %s6229_s22 = scalar_lea.vmem %s31_s20, 32 }
  0x10   :  { %p6226_p5 = scmp.ne.s32.totalorder %s31_s20, %s6225_s21  ;;  %p6230_p6 = scmp.lt.s32.totalorder %s31_s20, %s31_s20 }
  0x11   :  { %p6231_p7 = scmp.lt.s32.totalorder %s6229_s22, %s6225_s21 }
  0x13   :  { %p6232_p8 = por %p6231_p7, %p6230_p6 }
  0x15   :  { %p6233_p9 = pnand %p6232_p8, %p6226_p5 }
  0x17   :  { %6236 = shalt.err (!%p6233_p9)
}
  0x18   :  { %33 = dma.hbm_to_vmem [thread:$0]  %s8419_s2, 16, %s31_s20, [#allocation5]  }
  0x19   :  { %6237 = dma.done.wait [#allocation3], 2048  }
  0x1a   :  { %6238 = vsyncadd [#allocation3], 4294965248 }
  0x1b   :  { %6239 = dma.done.wait [#allocation5], 16  }
  0x1c   :  { %6240 = vsyncadd [#allocation5], 4294967280  ;;  %vm75_vm0 = vsmask.f32 3328  ;;  %vm76_vm1 = vsmask.f32 7440 }
  0x1d   :  { %v6181_v0 = vld [vmem:[#allocation2] sm:$0xff]   ;;  %v6182_v1 = vld [vmem:[#allocation2 + $0x8] sm:$0xff]   ;;  %vm334_vm2 = vcmask 130048   ;;  %v6286_v15 = vld [vmem:[#allocation2 + $0x10] sm:$0xff]  }
  0x1e   :  { %5907 = vmatprep.subr.bf16.mxu1 %v6181_v0  ;;  %v41_v2 = vld [vmem:[%s8417_s0] sm:$0xf]  ;;  %5889 = vmatprep.subr.bf16.mxu0 %v6182_v1  ;;  %v59_v14 = vld [vmem:[%s8417_s0 + $0x4] sm:$0x1]  ;;  %v6184_v30 = vld [vmem:[#allocation2 + $0x18] sm:$0xff]  }
  0x1f   :  { %v42_v3 = vld [vmem:[%s8417_s0 + $0x20] sm:$0xf]  ;;  %5908 = vmatpush3.bf16.msra.mxu1 %v6181_v0  ;;  %v79_v5 = vshrl.u32 %v41_v2, 16  ;;  %v82_v6 = vshll.u32 %v41_v2, 16  ;;  %5890 = vmatpush3.bf16.msra.mxu0 %v6182_v1  ;;  %v60_v20 = vld [vmem:[%s8417_s0 + $0x24] sm:$0x1]  ;;  %vm6298_vm3 = vmor %vm75_vm0, %vm76_vm1 }
  0x20   :  { %v43_v4 = vld [vmem:[%s8417_s0 + $0x40] sm:$0xf]  ;;  %v93_v7 = vshrl.u32 %v42_v3, 16  ;;  %v96_v8 = vshll.u32 %v42_v3, 16  ;;  %v5106_v10 = vcombine.low %v41_v2, %v42_v3  ;;  %5925 = vmatprep.subr.bf16.mxu0 %v6286_v15  ;;  %v88_v27 = vshll.u32 %v59_v14, 16  ;;  %5943 = vmatprep.subr.bf16.mxu1 %v6184_v30  ;;  %v6306_v45 = vld [vmem:[#allocation2 + $0x28] sm:$0xff]  }
  0x21   :  { %v44_v9 = vld [vmem:[%s8417_s0 + $0x60] sm:$0xf]  ;;  %v107_v11 = vshrl.u32 %v43_v4, 16  ;;  %v110_v12 = vshll.u32 %v43_v4, 16  ;;  %v81_v16 = vrot.slane %v79_v5, 4  ;;  %v84_v17 = vrot.slane %v82_v6, 5 }
  0x22   :  { %v121_v13 = vshrl.u32 %v44_v9, 16  ;;  %v95_v18 = vrot.slane %v93_v7, 4  ;;  %v98_v19 = vrot.slane %v96_v8, 5  ;;  %5909 = vmatprep.mubr.msk.bf16.mxu1 %vm334_vm2, %v5106_v10  ;;  %v124_v24 = vshll.u32 %v44_v9, 16  ;;  %v61_v29 = vld [vmem:[%s8417_s0 + $0x44] sm:$0x1] }
  0x23   :  { %v109_v21 = vrot.slane %v107_v11, 4  ;;  %v112_v22 = vrot.slane %v110_v12, 5  ;;  %v5107_v25 = vcombine.low %v43_v4, %v44_v9  ;;  %v85_v26 = vor.u32 %v84_v17, %v81_v16  ;;  %v62_v34 = vld [vmem:[%s8417_s0 + $0x64] sm:$0x1]  ;;  %v45_v48 = vld [vmem:[%s8417_s0 + $0x80] sm:$0xf] }
  0x24   :  { %v123_v23 = vrot.slane %v121_v13, 4  ;;  %v99_v28 = vor.u32 %v98_v19, %v95_v18  ;;  %v126_v31 = vrot.slane %v124_v24, 5  ;;  %v102_v33 = vshll.u32 %v60_v20, 16  ;;  %v46_v49 = vld [vmem:[%s8417_s0 + $0xa0] sm:$0xf] }
  0x25   :  { %v113_v35 = vor.u32 %v112_v22, %v109_v21  ;;  %v116_v36 = vshll.u32 %v61_v29, 16  ;;  %5910 = vmatmul.mubr.msk.bf16.vlgmr.msra.gmra.mxu1 %vm334_vm2, %v5107_v25  ;;  %v86_v37 = vrot.slane %v85_v26, 4  ;;  %v90_v38 = vrot.slane %v88_v27, 5  ;;  %v47_v54 = vld [vmem:[%s8417_s0 + $0xc0] sm:$0xf] }
  0x26   :  { %v100_v39 = vrot.slane %v99_v28, 4  ;;  %v130_v40 = vshll.u32 %v62_v34, 16  ;;  %v104_v41 = vrot.slane %v102_v33, 5  ;;  %v127_v44 = vor.u32 %v126_v31, %v123_v23  ;;  %5944 = vmatpush3.bf16.msra.mxu1 %v6184_v30  ;;  %v48_v59 = vld [vmem:[%s8417_s0 + $0xe0] sm:$0xf] }
  0x27   :  { %v114_v42 = vrot.slane %v113_v35, 4  ;;  %v118_v43 = vrot.slane %v116_v36, 5  ;;  %v91_v46 = vsel %vm6298_vm3, %v86_v37, %v90_v38  ;;  %v135_v53 = vshrl.u32 %v45_v48, 16  ;;  %5979 = vmatprep.subr.bf16.mxu1 %v6306_v45  ;;  %v63_v0 = vld [vmem:[%s8417_s0 + $0x84] sm:$0x1] }
  0x28   :  { %v132_v47 = vrot.slane %v130_v40, 5  ;;  %v105_v50 = vsel %vm6298_vm3, %v100_v39, %v104_v41  ;;  %v128_v52 = vrot.slane %v127_v44, 4  ;;  %v138_v56 = vshll.u32 %v45_v48, 16  ;;  %v64_v5 = vld [vmem:[%s8417_s0 + $0xa4] sm:$0x1] }
  0x29   :  { %v119_v51 = vsel %vm6298_vm3, %v114_v42, %v118_v43  ;;  %v5089_v55 = vcombine.low %v91_v46, %v105_v50  ;;  %v149_v57 = vshrl.u32 %v46_v49, 16  ;;  %v152_v58 = vshll.u32 %v46_v49, 16  ;;  %v6336_v6 = vld [vmem:[#allocation2 + $0x20] sm:$0xff]  }
  0x2a   :  { %v133_v60 = vsel %vm6298_vm3, %v128_v52, %v132_v47  ;;  %v137_v61 = vrot.slane %v135_v53, 4  ;;  %v5108_v62 = vcombine.low %v45_v48, %v46_v49  ;;  %v163_v63 = vshrl.u32 %v47_v54, 16  ;;  %v65_v11 = vld [vmem:[%s8417_s0 + $0xc4] sm:$0x1]  ;;  %v49_v22 = vld [vmem:[%s8417_s0 + $0x120] sm:$0xf] }
  0x2b   :  { %5891 = vmatprep.mubr.msk.bf16.mxu0 %vm334_vm2, %v5089_v55  ;;  %v5090_v1 = vcombine.low %v119_v51, %v133_v60  ;;  %v140_v2 = vrot.slane %v138_v56, 5  ;;  %v151_v3 = vrot.slane %v149_v57, 4  ;;  %v154_v4 = vrot.slane %v152_v58, 5  ;;  %v66_v17 = vld [vmem:[%s8417_s0 + $0xe4] sm:$0x1] }
  0x2c   :  { %5913 = vmatprep.mubr.msk.bf16.mxu1 %vm334_vm2, %v5108_v62  ;;  %v165_v7 = vrot.slane %v163_v63, 4  ;;  %v166_v8 = vshll.u32 %v47_v54, 16  ;;  %v177_v9 = vshrl.u32 %v48_v59, 16  ;;  %v180_v10 = vshll.u32 %v48_v59, 16  ;;  %v50_v30 = vld [vmem:[%s8417_s0 + $0x140] sm:$0xf] }
  0x2d   :  { %5892 = vmatmul.mubr.msk.bf16.vlgmr.msra.gmra.mxu0 %vm334_vm2, %v5090_v1  ;;  %v5109_v12 = vcombine.low %v47_v54, %v48_v59  ;;  %v141_v13 = vor.u32 %v140_v2, %v137_v61  ;;  %v144_v14 = vshll.u32 %v63_v0, 16  ;;  %v155_v16 = vor.u32 %v154_v4, %v151_v3  ;;  %v51_v40 = vld [vmem:[%s8417_s0 + $0x160] sm:$0xf]  ;;  %v67_v51 = vld [vmem:[%s8417_s0 + $0x124] sm:$0x1] }
  0x2e   :  { %5926 = vmatpush3.bf16.msra.mxu0 %v6286_v15  ;;  %v168_v18 = vrot.slane %v166_v8, 5  ;;  %v179_v19 = vrot.slane %v177_v9, 4  ;;  %v182_v20 = vrot.slane %v180_v10, 5  ;;  %v158_v21 = vshll.u32 %v64_v5, 16  ;;  %v52_v46 = vld [vmem:[%s8417_s0 + $0x180] sm:$0xf] }
  0x2f   :  { %5914 = vmatmul.mubr.msk.bf16.gmra.mxu1 %vm334_vm2, %v5109_v12  ;;  %v142_v23 = vrot.slane %v141_v13, 4  ;;  %v146_v24 = vrot.slane %v144_v14, 5  ;;  %v156_v25 = vrot.slane %v155_v16, 4  ;;  %v172_v26 = vshll.u32 %v65_v11, 16  ;;  %5961 = vmatprep.subr.bf16.mxu0 %v6336_v6  ;;  %v68_v56 = vld [vmem:[%s8417_s0 + $0x144] sm:$0x1] }
  0x30   :  { %v160_v27 = vrot.slane %v158_v21, 5  ;;  %v169_v28 = vor.u32 %v168_v18, %v165_v7  ;;  %v183_v29 = vor.u32 %v182_v20, %v179_v19  ;;  %v186_v15 = vshll.u32 %v66_v17, 16  ;;  %v69_v61 = vld [vmem:[%s8417_s0 + $0x164] sm:$0x1]  ;;  %v53_v8 = vld [vmem:[%s8417_s0 + $0x1a0] sm:$0xf] }
  0x31   :  { %v147_v31 = vsel %vm6298_vm3, %v142_v23, %v146_v24  ;;  %v174_v33 = vrot.slane %v172_v26, 5  ;;  %v191_v34 = vshrl.u32 %v49_v22, 16  ;;  %v194_v35 = vshll.u32 %v49_v22, 16  ;;  %v70_v2 = vld [vmem:[%s8417_s0 + $0x184] sm:$0x1] }
  0x32   :  { %v161_v36 = vsel %vm6298_vm3, %v156_v25, %v160_v27  ;;  %v170_v37 = vrot.slane %v169_v28, 4  ;;  %v184_v38 = vrot.slane %v183_v29, 4  ;;  %v188_v39 = vrot.slane %v186_v15, 5  ;;  %v54_v18 = vld [vmem:[%s8417_s0 + $0x1c0] sm:$0xf] }
  0x33   :  { %v5091_v41 = vcombine.low %v147_v31, %v161_v36  ;;  %v193_v42 = vrot.slane %v191_v34, 4  ;;  %v196_v43 = vrot.slane %v194_v35, 5  ;;  %v205_v44 = vshrl.u32 %v50_v30, 16  ;;  %v55_v27 = vld [vmem:[%s8417_s0 + $0x1e0] sm:$0xf] }
  0x34   :  { %v175_v47 = vsel %vm6298_vm3, %v170_v37, %v174_v33  ;;  %v189_v48 = vsel %vm6298_vm3, %v184_v38, %v188_v39  ;;  %v208_v49 = vshll.u32 %v50_v30, 16  ;;  %v5110_v50 = vcombine.low %v49_v22, %v50_v30  ;;  %v56_v31 = vld [vmem:[%s8417_s0 + $0x200] sm:$0xf]  ;;  %v71_v33 = vld [vmem:[%s8417_s0 + $0x1a4] sm:$0x1] }
  0x35   :  { %5895 = vmatprep.mubr.msk.bf16.mxu0 %vm334_vm2, %v5091_v41  ;;  %v5092_v52 = vcombine.low %v175_v47, %v189_v48  ;;  %v207_v53 = vrot.slane %v205_v44, 4  ;;  %v219_v54 = vshrl.u32 %v51_v40, 16  ;;  %v222_v55 = vshll.u32 %v51_v40, 16  ;;  %v72_v38 = vld [vmem:[%s8417_s0 + $0x1c4] sm:$0x1] }
  0x36   :  { %v210_v57 = vrot.slane %v208_v49, 5  ;;  %5917 = vmatprep.mubr.msk.bf16.mxu1 %vm334_vm2, %v5110_v50  ;;  %v233_v58 = vshrl.u32 %v52_v46, 16  ;;  %v236_v59 = vshll.u32 %v52_v46, 16  ;;  %v5111_v60 = vcombine.low %v51_v40, %v52_v46  ;;  %v73_v39 = vld [vmem:[%s8417_s0 + $0x1e4] sm:$0x1] }
  0x37   :  { %5896 = vmatmul.mubr.msk.bf16.gmra.mxu0 %vm334_vm2, %v5092_v52  ;;  %v221_v62 = vrot.slane %v219_v54, 4  ;;  %v224_v63 = vrot.slane %v222_v55, 5  ;;  %v197_v0 = vor.u32 %v196_v43, %v193_v42  ;;  %v200_v1 = vshll.u32 %v67_v51, 16  ;;  %v74_v44 = vld [vmem:[%s8417_s0 + $0x204] sm:$0x1] }
  0x38   :  { %v235_v3 = vrot.slane %v233_v58, 4  ;;  %v238_v4 = vrot.slane %v236_v59, 5  ;;  %5918 = vmatmul.mubr.msk.bf16.gmra.mxu1 %vm334_vm2, %v5111_v60  ;;  %v211_v5 = vor.u32 %v210_v57, %v207_v53  ;;  %v214_v7 = vshll.u32 %v68_v56, 16  ;;  %v5156_v50 = vld [vmem:[%s8417_s0 + $0x8] sm:$0xf] }
  0x39   :  { %v198_v9 = vrot.slane %v197_v0, 4  ;;  %v202_v10 = vrot.slane %v200_v1, 5  ;;  %v225_v11 = vor.u32 %v224_v63, %v221_v62  ;;  %v228_v12 = vshll.u32 %v69_v61, 16  ;;  %v5157_v59 = vld [vmem:[%s8417_s0 + $0xc] sm:$0x1] }
  0x3a   :  { %v212_v13 = vrot.slane %v211_v5, 4  ;;  %v216_v14 = vrot.slane %v214_v7, 5  ;;  %v239_v16 = vor.u32 %v238_v4, %v235_v3  ;;  %v242_v17 = vshll.u32 %v70_v2, 16  ;;  %v5158_v0 = vld [vmem:[%s8417_s0 + $0x28] sm:$0xf] }
  0x3b   :  { %v203_v19 = vsel %vm6298_vm3, %v198_v9, %v202_v10  ;;  %v226_v20 = vrot.slane %v225_v11, 4  ;;  %v230_v21 = vrot.slane %v228_v12, 5  ;;  %v247_v22 = vshrl.u32 %v53_v8, 16  ;;  %v5159_v5 = vld [vmem:[%s8417_s0 + $0x2c] sm:$0x1] }
  0x3c   :  { %v217_v23 = vsel %vm6298_vm3, %v212_v13, %v216_v14  ;;  %v240_v24 = vrot.slane %v239_v16, 4  ;;  %v244_v25 = vrot.slane %v242_v17, 5  ;;  %v250_v26 = vshll.u32 %v53_v8, 16  ;;  %v5160_v7 = vld [vmem:[%s8417_s0 + $0x48] sm:$0xf] }
  0x3d   :  { %v5093_v28 = vcombine.low %v203_v19, %v217_v23  ;;  %v231_v29 = vsel %vm6298_vm3, %v226_v20, %v230_v21  ;;  %v249_v15 = vrot.slane %v247_v22, 4  ;;  %v261_v30 = vshrl.u32 %v54_v18, 16  ;;  %v5161_v21 = vld [vmem:[%s8417_s0 + $0x4c] sm:$0x1]  ;;  %v5162_v22 = vld [vmem:[%s8417_s0 + $0x68] sm:$0xf] }
  0x3e   :  { %v245_v34 = vsel %vm6298_vm3, %v240_v24, %v244_v25  ;;  %v252_v35 = vrot.slane %v250_v26, 5  ;;  %v264_v36 = vshll.u32 %v54_v18, 16  ;;  %v5112_v37 = vcombine.low %v53_v8, %v54_v18 }
  0x3f   :  { %5899 = vmatprep.mubr.msk.bf16.mxu0 %vm334_vm2, %v5093_v28  ;;  %v5094_v40 = vcombine.low %v231_v29, %v245_v34  ;;  %v263_v41 = vrot.slane %v261_v30, 4  ;;  %v275_v42 = vshrl.u32 %v55_v27, 16  ;;  %v278_v43 = vshll.u32 %v55_v27, 16  ;;  %v5123_v28 = vld [vmem:[%s8417_s0 + $0x8] sm:$0xf] }
  0x40   :  { %v266_v46 = vrot.slane %v264_v36, 5  ;;  %5921 = vmatprep.mubr.msk.bf16.mxu1 %vm334_vm2, %v5112_v37  ;;  %v289_v47 = vshrl.u32 %v56_v31, 16  ;;  %v292_v48 = vshll.u32 %v56_v31, 16  ;;  %v5113_v49 = vcombine.low %v55_v27, %v56_v31  ;;  %v5163_v27 = vld [vmem:[%s8417_s0 + $0x6c] sm:$0x1] }
  0x41   :  { %5900 = vmatmul.mubr.msk.bf16.gmra.mxu0 %vm334_vm2, %v5094_v40  ;;  %v277_v51 = vrot.slane %v275_v42, 4  ;;  %v280_v52 = vrot.slane %v278_v43, 5  ;;  %v253_v53 = vor.u32 %v252_v35, %v249_v15  ;;  %v256_v54 = vshll.u32 %v71_v33, 16  ;;  %v5124_v33 = vld [vmem:[%s8417_s0 + $0x28] sm:$0xf] }
  0x42   :  { %v291_v55 = vrot.slane %v289_v47, 4  ;;  %v294_v56 = vrot.slane %v292_v48, 5  ;;  %5922 = vmatmul.mubr.msk.bf16.gmra.mxu1 %vm334_vm2, %v5113_v49  ;;  %v267_v57 = vor.u32 %v266_v46, %v263_v41  ;;  %v270_v58 = vshll.u32 %v72_v38, 16  ;;  %v5125_v38 = vld [vmem:[%s8417_s0 + $0x48] sm:$0xf] }
  0x43   :  { %v254_v60 = vrot.slane %v253_v53, 4  ;;  %v258_v61 = vrot.slane %v256_v54, 5  ;;  %v281_v62 = vor.u32 %v280_v52, %v277_v51  ;;  %v284_v63 = vshll.u32 %v73_v39, 16  ;;  %v5126_v43 = vld [vmem:[%s8417_s0 + $0x68] sm:$0xf] }
  0x44   :  { %v268_v1 = vrot.slane %v267_v57, 4  ;;  %v272_v2 = vrot.slane %v270_v58, 5  ;;  %v295_v3 = vor.u32 %v294_v56, %v291_v55  ;;  %v298_v4 = vshll.u32 %v74_v44, 16  ;;  %v5164_v49 = vld [vmem:[%s8417_s0 + $0x88] sm:$0xf] }
  0x45   :  { %v259_v8 = vsel %vm6298_vm3, %v254_v60, %v258_v61  ;;  %v282_v9 = vrot.slane %v281_v62, 4  ;;  %v286_v10 = vrot.slane %v284_v63, 5  ;;  %v858_v11 = vshrl.u32 %v5156_v50, 16  ;;  %v5165_v54 = vld [vmem:[%s8417_s0 + $0x8c] sm:$0x1] }
  0x46   :  { %v273_v12 = vsel %vm6298_vm3, %v268_v1, %v272_v2  ;;  %v296_v13 = vrot.slane %v295_v3, 4  ;;  %v300_v14 = vrot.slane %v298_v4, 5  ;;  %v861_v16 = vshll.u32 %v5156_v50, 16  ;;  %v5167_v62 = vld [vmem:[%s8417_s0 + $0xac] sm:$0x1] }
  0x47   :  { %v5095_v17 = vcombine.low %v259_v8, %v273_v12  ;;  %v287_v18 = vsel %vm6298_vm3, %v282_v9, %v286_v10  ;;  %v860_v19 = vrot.slane %v858_v11, 4  ;;  %v867_v20 = vshll.u32 %v5157_v59, 16  ;;  %v5166_v59 = vld [vmem:[%s8417_s0 + $0xa8] sm:$0xf] }
  0x48   :  { %v301_v23 = vsel %vm6298_vm3, %v296_v13, %v300_v14  ;;  %v863_v24 = vrot.slane %v861_v16, 5  ;;  %v872_v25 = vshrl.u32 %v5158_v0, 16  ;;  %v875_v26 = vshll.u32 %v5158_v0, 16  ;;  %v5170_v12 = vld [vmem:[%s8417_s0 + $0xe8] sm:$0xf]  ;;  %v6493_v13 = vld [vmem:[#allocation2 + $0x30] sm:$0xff]  }
  0x49   :  { %5903 = vmatprep.mubr.msk.bf16.mxu0 %vm334_vm2, %v5095_v17  ;;  %v5096_v29 = vcombine.low %v287_v18, %v301_v23  ;;  %v869_v15 = vrot.slane %v867_v20, 5  ;;  %v881_v30 = vshll.u32 %v5159_v5, 16  ;;  %v886_v31 = vshrl.u32 %v5160_v7, 16  ;;  %v5168_v5 = vld [vmem:[%s8417_s0 + $0xc8] sm:$0xf] }
  0x4a   :  { %v864_v34 = vor.u32 %v863_v24, %v860_v19  ;;  %v874_v35 = vrot.slane %v872_v25, 4  ;;  %v877_v36 = vrot.slane %v875_v26, 5  ;;  %v889_v37 = vshll.u32 %v5160_v7, 16  ;;  %v5169_v7 = vld [vmem:[%s8417_s0 + $0xcc] sm:$0x1] }
  0x4b   :  { %5904 = vmatmul.mubr.msk.bf16.gmra.mxu0 %vm334_vm2, %v5096_v29  ;;  %v883_v39 = vrot.slane %v881_v30, 5  ;;  %v888_v40 = vrot.slane %v886_v31, 4  ;;  %v895_v41 = vshll.u32 %v5161_v21, 16  ;;  %v900_v42 = vshrl.u32 %v5162_v22, 16  ;;  %v5171_v19 = vld [vmem:[%s8417_s0 + $0xec] sm:$0x1] }
  0x4c   :  { %v865_v44 = vrot.slane %v864_v34, 4  ;;  %v878_v46 = vor.u32 %v877_v36, %v874_v35  ;;  %v891_v47 = vrot.slane %v889_v37, 5  ;;  %v903_v48 = vshll.u32 %v5162_v22, 16  ;;  %v5127_v20 = vld [vmem:[%s8417_s0 + $0x88] sm:$0xf]  ;;  %v6518_v36 = vld [vmem:[#allocation2 + $0x38] sm:$0xff]  }
  0x4d   :  { %v897_v50 = vrot.slane %v895_v41, 5  ;;  %v902_v51 = vrot.slane %v900_v42, 4  ;;  %v909_v52 = vshll.u32 %v5163_v27, 16  ;;  %v5139_v53 = vcombine.low %v5123_v28, %v5124_v33  ;;  %v5128_v25 = vld [vmem:[%s8417_s0 + $0xa8] sm:$0xf] }
  0x4e   :  { %v870_v55 = vsel %vm6298_vm3, %v865_v44, %v869_v15  ;;  %v879_v56 = vrot.slane %v878_v46, 4  ;;  %v892_v57 = vor.u32 %v891_v47, %v888_v40  ;;  %v905_v58 = vrot.slane %v903_v48, 5  ;;  %v5129_v15 = vld [vmem:[%s8417_s0 + $0xc8] sm:$0xf]  ;;  %v5173_v46 = vld [vmem:[%s8417_s0 + $0x12c] sm:$0x1] }
  0x4f   :  { %v911_v60 = vrot.slane %v909_v52, 5  ;;  %5927 = vmatprep.mubr.msk.bf16.mxu0 %vm334_vm2, %v5139_v53  ;;  %v5140_v61 = vcombine.low %v5125_v38, %v5126_v43  ;;  %v914_v63 = vshrl.u32 %v5164_v49, 16  ;;  %v917_v0 = vshll.u32 %v5164_v49, 16  ;;  %v5130_v35 = vld [vmem:[%s8417_s0 + $0xe8] sm:$0xf] }
  0x50   :  { %v884_v1 = vsel %vm6298_vm3, %v879_v56, %v883_v39  ;;  %v893_v2 = vrot.slane %v892_v57, 4  ;;  %v906_v3 = vor.u32 %v905_v58, %v902_v51  ;;  %v923_v4 = vshll.u32 %v5165_v54, 16  ;;  %v5172_v40 = vld [vmem:[%s8417_s0 + $0x128] sm:$0xf]  ;;  %v5175_v54 = vld [vmem:[%s8417_s0 + $0x14c] sm:$0x1] }
  0x51   :  { %v5188_v8 = vcombine.low %v870_v55, %v884_v1  ;;  %v916_v9 = vrot.slane %v914_v63, 4  ;;  %v919_v10 = vrot.slane %v917_v0, 5  ;;  %v928_v11 = vshrl.u32 %v5166_v59, 16  ;;  %v5174_v47 = vld [vmem:[%s8417_s0 + $0x148] sm:$0xf] }
  0x52   :  { %v898_v14 = vsel %vm6298_vm3, %v893_v2, %v897_v50  ;;  %v907_v16 = vrot.slane %v906_v3, 4  ;;  %v925_v17 = vrot.slane %v923_v4, 5  ;;  %v931_v18 = vshll.u32 %v5166_v59, 16  ;;  %v5177_v1 = vld [vmem:[%s8417_s0 + $0x16c] sm:$0x1] }
  0x53   :  { %5945 = vmatprep.mubr.msk.bf16.mxu1 %vm334_vm2, %v5188_v8  ;;  %5928 = vmatmul.mubr.msk.bf16.vlgmr.msra.gmra.mxu0 %vm334_vm2, %v5140_v61  ;;  %v920_v21 = vor.u32 %v919_v10, %v916_v9  ;;  %v930_v22 = vrot.slane %v928_v11, 4  ;;  %v937_v23 = vshll.u32 %v5167_v62, 16  ;;  %v942_v24 = vshrl.u32 %v5168_v5, 16  ;;  %v5178_v2 = vld [vmem:[%s8417_s0 + $0x188] sm:$0xf] }
  0x54   :  { %v912_v26 = vsel %vm6298_vm3, %v907_v16, %v911_v60  ;;  %5962 = vmatpush3.bf16.msra.mxu0 %v6336_v6  ;;  %v933_v27 = vrot.slane %v931_v18, 5  ;;  %v945_v28 = vshll.u32 %v5168_v5, 16  ;;  %v951_v29 = vshll.u32 %v5169_v7, 16  ;;  %v5176_v60 = vld [vmem:[%s8417_s0 + $0x168] sm:$0xf] }
  0x55   :  { %v5189_v30 = vcombine.low %v898_v14, %v912_v26  ;;  %v921_v31 = vrot.slane %v920_v21, 4  ;;  %v939_v33 = vrot.slane %v937_v23, 5  ;;  %v944_v34 = vrot.slane %v942_v24, 4  ;;  %5997 = vmatprep.subr.bf16.mxu0 %v6493_v13  ;;  %v5179_v8 = vld [vmem:[%s8417_s0 + $0x18c] sm:$0x1] }
  0x56   :  { %v934_v6 = vor.u32 %v933_v27, %v930_v22  ;;  %v947_v37 = vrot.slane %v945_v28, 5  ;;  %v953_v38 = vrot.slane %v951_v29, 5  ;;  %v956_v39 = vshrl.u32 %v5170_v12, 16  ;;  %v5131_v14 = vld [vmem:[%s8417_s0 + $0x128] sm:$0xf] }
  0x57   :  { %5946 = vmatmul.mubr.msk.bf16.vlgmr.msra.gmra.mxu1 %vm334_vm2, %v5189_v30  ;;  %v926_v41 = vsel %vm6298_vm3, %v921_v31, %v925_v17  ;;  %v959_v42 = vshll.u32 %v5170_v12, 16  ;;  %v965_v43 = vshll.u32 %v5171_v19, 16  ;;  %v5141_v44 = vcombine.low %v5127_v20, %v5128_v25  ;;  %v5132_v16 = vld [vmem:[%s8417_s0 + $0x148] sm:$0xf]  ;;  %v5181_v31 = vld [vmem:[%s8417_s0 + $0x1ac] sm:$0x1] }
  0x58   :  { %5980 = vmatpush3.bf16.msra.mxu1 %v6306_v45  ;;  %v935_v48 = vrot.slane %v934_v6, 4  ;;  %v948_v49 = vor.u32 %v947_v37, %v944_v34  ;;  %v958_v50 = vrot.slane %v956_v39, 4  ;;  %v5142_v51 = vcombine.low %v5129_v15, %v5130_v35  ;;  %v5133_v21 = vld [vmem:[%s8417_s0 + $0x168] sm:$0xf] }
  0x59   :  { %v961_v52 = vrot.slane %v959_v42, 5  ;;  %v967_v53 = vrot.slane %v965_v43, 5  ;;  %5931 = vmatprep.mubr.msk.bf16.mxu0 %vm334_vm2, %v5141_v44  ;;  %v970_v55 = vshrl.u32 %v5172_v40, 16  ;;  %v973_v56 = vshll.u32 %v5172_v40, 16  ;;  %6015 = vmatprep.subr.bf16.mxu1 %v6518_v36  ;;  %v5134_v26 = vld [vmem:[%s8417_s0 + $0x188] sm:$0xf] }
  0x5a   :  { %v940_v57 = vsel %vm6298_vm3, %v935_v48, %v939_v33  ;;  %v949_v45 = vrot.slane %v948_v49, 4  ;;  %v979_v58 = vshll.u32 %v5173_v46, 16  ;;  %v984_v59 = vshrl.u32 %v5174_v47, 16  ;;  %v5180_v30 = vld [vmem:[%s8417_s0 + $0x1a8] sm:$0xf] }
  0x5b   :  { %v5190_v61 = vcombine.low %v926_v41, %v940_v57  ;;  %v962_v62 = vor.u32 %v961_v52, %v958_v50  ;;  %5932 = vmatmul.mubr.msk.bf16.gmra.mxu0 %vm334_vm2, %v5142_v51  ;;  %v972_v63 = vrot.slane %v970_v55, 4  ;;  %v975_v0 = vrot.slane %v973_v56, 5  ;;  %v5182_v37 = vld [vmem:[%s8417_s0 + $0x1c8] sm:$0xf]  ;;  %v5183_v44 = vld [vmem:[%s8417_s0 + $0x1cc] sm:$0x1] }
  0x5c   :  { %v954_v3 = vsel %vm6298_vm3, %v949_v45, %v953_v38  ;;  %v981_v4 = vrot.slane %v979_v58, 5  ;;  %v986_v5 = vrot.slane %v984_v59, 4  ;;  %v987_v7 = vshll.u32 %v5174_v47, 16  ;;  %v5184_v52 = vld [vmem:[%s8417_s0 + $0x1e8] sm:$0xf] }
  0x5d   :  { %5949 = vmatprep.mubr.msk.bf16.mxu1 %vm334_vm2, %v5190_v61  ;;  %v963_v9 = vrot.slane %v962_v62, 4  ;;  %v976_v10 = vor.u32 %v975_v0, %v972_v63  ;;  %v993_v11 = vshll.u32 %v5175_v54, 16  ;;  %v998_v12 = vshrl.u32 %v5176_v60, 16  ;;  %v5185_v57 = vld [vmem:[%s8417_s0 + $0x1ec] sm:$0x1] }
  0x5e   :  { %v989_v17 = vrot.slane %v987_v7, 5  ;;  %v1001_v18 = vshll.u32 %v5176_v60, 16  ;;  %v1007_v19 = vshll.u32 %v5177_v1, 16  ;;  %v1012_v20 = vshrl.u32 %v5178_v2, 16  ;;  %v5186_v45 = vld [vmem:[%s8417_s0 + $0x208] sm:$0xf] }
  0x5f   :  { %v968_v22 = vsel %vm6298_vm3, %v963_v9, %v967_v53  ;;  %v977_v23 = vrot.slane %v976_v10, 4  ;;  %v995_v24 = vrot.slane %v993_v11, 5  ;;  %v1000_v25 = vrot.slane %v998_v12, 4  ;;  %v5187_v62 = vld [vmem:[%s8417_s0 + $0x20c] sm:$0x1] }
  0x60   :  { %v5191_v27 = vcombine.low %v954_v3, %v968_v22  ;;  %v990_v28 = vor.u32 %v989_v17, %v986_v5  ;;  %v1003_v29 = vrot.slane %v1001_v18, 5  ;;  %v1009_v15 = vrot.slane %v1007_v19, 5  ;;  %v5135_v3 = vld [vmem:[%s8417_s0 + $0x1a8] sm:$0xf]  ;;  %v5238_v18 = vld [vmem:[%s8417_s0 + $0x10] sm:$0xf] }
  0x61   :  { %v982_v33 = vsel %vm6298_vm3, %v977_v23, %v981_v4  ;;  %v1014_v34 = vrot.slane %v1012_v20, 4  ;;  %v1015_v35 = vshll.u32 %v5178_v2, 16  ;;  %v1021_v6 = vshll.u32 %v5179_v8, 16  ;;  %v5136_v4 = vld [vmem:[%s8417_s0 + $0x1c8] sm:$0xf] }
  0x62   :  { %5950 = vmatmul.mubr.msk.bf16.gmra.mxu1 %vm334_vm2, %v5191_v27  ;;  %v991_v38 = vrot.slane %v990_v28, 4  ;;  %v1004_v39 = vor.u32 %v1003_v29, %v1000_v25  ;;  %v5143_v40 = vcombine.low %v5131_v14, %v5132_v16  ;;  %v5144_v41 = vcombine.low %v5133_v21, %v5134_v26  ;;  %v5137_v5 = vld [vmem:[%s8417_s0 + $0x1e8] sm:$0xf]  ;;  %v5239_v23 = vld [vmem:[%s8417_s0 + $0x14] sm:$0x1] }
  0x63   :  { %v1017_v42 = vrot.slane %v1015_v35, 5  ;;  %v1023_v43 = vrot.slane %v1021_v6, 5  ;;  %v1026_v46 = vshrl.u32 %v5180_v30, 16  ;;  %v1029_v47 = vshll.u32 %v5180_v30, 16  ;;  %v5138_v11 = vld [vmem:[%s8417_s0 + $0x208] sm:$0xf] }
  0x64   :  { %v996_v48 = vsel %vm6298_vm3, %v991_v38, %v995_v24  ;;  %v1005_v49 = vrot.slane %v1004_v39, 4  ;;  %5935 = vmatprep.mubr.msk.bf16.mxu0 %vm334_vm2, %v5143_v40  ;;  %v1035_v50 = vshll.u32 %v5181_v31, 16  ;;  %v1040_v51 = vshrl.u32 %v5182_v37, 16  ;;  %v5240_v24 = vld [vmem:[%s8417_s0 + $0x30] sm:$0xf] }
  0x65   :  { %v5192_v53 = vcombine.low %v982_v33, %v996_v48  ;;  %v1018_v54 = vor.u32 %v1017_v42, %v1014_v34  ;;  %5936 = vmatmul.mubr.msk.bf16.gmra.mxu0 %vm334_vm2, %v5144_v41  ;;  %v1028_v55 = vrot.slane %v1026_v46, 4  ;;  %v1031_v56 = vrot.slane %v1029_v47, 5  ;;  %v5241_v33 = vld [vmem:[%s8417_s0 + $0x34] sm:$0x1]  ;;  %v5242_v34 = vld [vmem:[%s8417_s0 + $0x50] sm:$0xf] }
  0x66   :  { %v1010_v58 = vsel %vm6298_vm3, %v1005_v49, %v1009_v15  ;;  %v1037_v59 = vrot.slane %v1035_v50, 5  ;;  %v1042_v60 = vrot.slane %v1040_v51, 4  ;;  %v1043_v61 = vshll.u32 %v5182_v37, 16  ;;  %v5243_v39 = vld [vmem:[%s8417_s0 + $0x54] sm:$0x1] }
  0x67   :  { %5953 = vmatprep.mubr.msk.bf16.mxu1 %vm334_vm2, %v5192_v53  ;;  %v1019_v63 = vrot.slane %v1018_v54, 4  ;;  %v1032_v0 = vor.u32 %v1031_v56, %v1028_v55  ;;  %v1049_v1 = vshll.u32 %v5183_v44, 16  ;;  %v1054_v2 = vshrl.u32 %v5184_v52, 16  ;;  %v5244_v49 = vld [vmem:[%s8417_s0 + $0x70] sm:$0xf] }
  0x68   :  { %v1045_v7 = vrot.slane %v1043_v61, 5  ;;  %v1057_v8 = vshll.u32 %v5184_v52, 16  ;;  %v1063_v9 = vshll.u32 %v5185_v57, 16  ;;  %v1068_v10 = vshrl.u32 %v5186_v45, 16  ;;  %v5245_v54 = vld [vmem:[%s8417_s0 + $0x74] sm:$0x1] }
  0x69   :  { %v1024_v12 = vsel %vm6298_vm3, %v1019_v63, %v1023_v43  ;;  %v1033_v14 = vrot.slane %v1032_v0, 4  ;;  %v1051_v16 = vrot.slane %v1049_v1, 5  ;;  %v1056_v17 = vrot.slane %v1054_v2, 4  ;;  %v5207_v0 = vld [vmem:[%s8417_s0 + $0x50] sm:$0xf] }
  0x6a   :  { %v5193_v19 = vcombine.low %v1010_v58, %v1024_v12  ;;  %v1046_v20 = vor.u32 %v1045_v7, %v1042_v60  ;;  %v1059_v21 = vrot.slane %v1057_v8, 5  ;;  %v1065_v22 = vrot.slane %v1063_v9, 5  ;;  %v5205_v58 = vld [vmem:[%s8417_s0 + $0x10] sm:$0xf]  ;;  %v5247_v12 = vld [vmem:[%s8417_s0 + $0x94] sm:$0x1] }
  0x6b   :  { %v1038_v25 = vsel %vm6298_vm3, %v1033_v14, %v1037_v59  ;;  %v1070_v26 = vrot.slane %v1068_v10, 4  ;;  %v1071_v27 = vshll.u32 %v5186_v45, 16  ;;  %v1077_v28 = vshll.u32 %v5187_v62, 16  ;;  %v5206_v59 = vld [vmem:[%s8417_s0 + $0x30] sm:$0xf] }
  0x6c   :  { %5954 = vmatmul.mubr.msk.bf16.gmra.mxu1 %vm334_vm2, %v5193_v19  ;;  %v1047_v29 = vrot.slane %v1046_v20, 4  ;;  %v1060_v15 = vor.u32 %v1059_v21, %v1056_v17  ;;  %v5145_v30 = vcombine.low %v5135_v3, %v5136_v4  ;;  %v5146_v31 = vcombine.low %v5137_v5, %v5138_v11  ;;  %v5208_v5 = vld [vmem:[%s8417_s0 + $0x70] sm:$0xf] }
  0x6d   :  { %v1073_v35 = vrot.slane %v1071_v27, 5  ;;  %v1079_v6 = vrot.slane %v1077_v28, 5  ;;  %v1485_v37 = vshrl.u32 %v5238_v18, 16  ;;  %v1488_v38 = vshll.u32 %v5238_v18, 16  ;;  %v5246_v11 = vld [vmem:[%s8417_s0 + $0x90] sm:$0xf] }
  0x6e   :  { %v1052_v40 = vsel %vm6298_vm3, %v1047_v29, %v1051_v16  ;;  %v1061_v41 = vrot.slane %v1060_v15, 4  ;;  %5939 = vmatprep.mubr.msk.bf16.mxu0 %vm334_vm2, %v5145_v30  ;;  %v1494_v42 = vshll.u32 %v5239_v23, 16  ;;  %v1499_v43 = vshrl.u32 %v5240_v24, 16  ;;  %v5248_v19 = vld [vmem:[%s8417_s0 + $0xb0] sm:$0xf] }
  0x6f   :  { %v5194_v44 = vcombine.low %v1038_v25, %v1052_v40  ;;  %v1074_v46 = vor.u32 %v1073_v35, %v1070_v26  ;;  %5940 = vmatmul.mubr.msk.bf16.gmra.mxu0 %vm334_vm2, %v5146_v31  ;;  %v1487_v47 = vrot.slane %v1485_v37, 4  ;;  %v1490_v48 = vrot.slane %v1488_v38, 5  ;;  %v5249_v27 = vld [vmem:[%s8417_s0 + $0xb4] sm:$0x1]  ;;  %v5252_v40 = vld [vmem:[%s8417_s0 + $0xf0] sm:$0xf] }
  0x70   :  { %v1066_v50 = vsel %vm6298_vm3, %v1061_v41, %v1065_v22  ;;  %v1496_v51 = vrot.slane %v1494_v42, 5  ;;  %v1501_v52 = vrot.slane %v1499_v43, 4  ;;  %v1502_v53 = vshll.u32 %v5240_v24, 16  ;;  %v6678_v24 = vld [vmem:[#allocation2 + $0x40] sm:$0xff]  }
  0x71   :  { %5957 = vmatprep.mubr.msk.bf16.mxu1 %vm334_vm2, %v5194_v44  ;;  %v1075_v55 = vrot.slane %v1074_v46, 4  ;;  %v1491_v56 = vor.u32 %v1490_v48, %v1487_v47  ;;  %v1508_v57 = vshll.u32 %v5241_v33, 16  ;;  %v1513_v45 = vshrl.u32 %v5242_v34, 16  ;;  %v5253_v46 = vld [vmem:[%s8417_s0 + $0xf4] sm:$0x1] }
  0x72   :  { %v1504_v60 = vrot.slane %v1502_v53, 5  ;;  %v1516_v61 = vshll.u32 %v5242_v34, 16  ;;  %v1522_v62 = vshll.u32 %v5243_v39, 16  ;;  %v1527_v63 = vshrl.u32 %v5244_v49, 16  ;;  %v5250_v34 = vld [vmem:[%s8417_s0 + $0xd0] sm:$0xf] }
  0x73   :  { %v1080_v1 = vsel %vm6298_vm3, %v1075_v55, %v1079_v6  ;;  %v1492_v2 = vrot.slane %v1491_v56, 4  ;;  %v1510_v3 = vrot.slane %v1508_v57, 5  ;;  %v1515_v4 = vrot.slane %v1513_v45, 4  ;;  %v5251_v39 = vld [vmem:[%s8417_s0 + $0xd4] sm:$0x1] }
  0x74   :  { %v5195_v7 = vcombine.low %v1066_v50, %v1080_v1  ;;  %v1505_v8 = vor.u32 %v1504_v60, %v1501_v52  ;;  %v1518_v9 = vrot.slane %v1516_v61, 5  ;;  %v1524_v10 = vrot.slane %v1522_v62, 5  ;;  %v5211_v56 = vld [vmem:[%s8417_s0 + $0xd0] sm:$0xf]  ;;  %v6718_v61 = vld [vmem:[#allocation2 + $0x48] sm:$0xff]  }
  0x75   :  { %v1497_v14 = vsel %vm6298_vm3, %v1492_v2, %v1496_v51  ;;  %v1529_v16 = vrot.slane %v1527_v63, 4  ;;  %v1530_v17 = vshll.u32 %v5244_v49, 16  ;;  %v1536_v18 = vshll.u32 %v5245_v54, 16  ;;  %v5209_v51 = vld [vmem:[%s8417_s0 + $0x90] sm:$0xf] }
  0x76   :  { %5958 = vmatmul.mubr.msk.bf16.gmra.mxu1 %vm334_vm2, %v5195_v7  ;;  %v1506_v20 = vrot.slane %v1505_v8, 4  ;;  %v1519_v21 = vor.u32 %v1518_v9, %v1515_v4  ;;  %v5221_v22 = vcombine.low %v5205_v58, %v5206_v59  ;;  %v5222_v23 = vcombine.low %v5207_v0, %v5208_v5  ;;  %v5212_v60 = vld [vmem:[%s8417_s0 + $0xf0] sm:$0xf] }
  0x77   :  { %v1532_v25 = vrot.slane %v1530_v17, 5  ;;  %v1538_v26 = vrot.slane %v1536_v18, 5  ;;  %v1541_v28 = vshrl.u32 %v5246_v11, 16  ;;  %v1544_v29 = vshll.u32 %v5246_v11, 16  ;;  %v5254_v2 = vld [vmem:[%s8417_s0 + $0x130] sm:$0xf] }
  0x78   :  { %v1511_v15 = vsel %vm6298_vm3, %v1506_v20, %v1510_v3  ;;  %v1520_v30 = vrot.slane %v1519_v21, 4  ;;  %5963 = vmatprep.mubr.msk.bf16.mxu0 %vm334_vm2, %v5221_v22  ;;  %v1550_v31 = vshll.u32 %v5247_v12, 16  ;;  %v1555_v33 = vshrl.u32 %v5248_v19, 16  ;;  %v5255_v3 = vld [vmem:[%s8417_s0 + $0x134] sm:$0x1] }
  0x79   :  { %v5270_v35 = vcombine.low %v1497_v14, %v1511_v15  ;;  %v1533_v6 = vor.u32 %v1532_v25, %v1529_v16  ;;  %5964 = vmatmul.mubr.msk.bf16.vlgmr.msra.gmra.mxu0 %vm334_vm2, %v5222_v23  ;;  %v1543_v37 = vrot.slane %v1541_v28, 4  ;;  %v1546_v38 = vrot.slane %v1544_v29, 5  ;;  %v5256_v9 = vld [vmem:[%s8417_s0 + $0x150] sm:$0xf]  ;;  %v5257_v18 = vld [vmem:[%s8417_s0 + $0x154] sm:$0x1] }
  0x7a   :  { %v1525_v41 = vsel %vm6298_vm3, %v1520_v30, %v1524_v10  ;;  %5998 = vmatpush3.bf16.msra.mxu0 %v6493_v13  ;;  %v1552_v42 = vrot.slane %v1550_v31, 5  ;;  %v1557_v43 = vrot.slane %v1555_v33, 4  ;;  %v1558_v44 = vshll.u32 %v5248_v19, 16  ;;  %v5210_v13 = vld [vmem:[%s8417_s0 + $0xb0] sm:$0xf] }
  0x7b   :  { %5981 = vmatprep.mubr.msk.bf16.mxu1 %vm334_vm2, %v5270_v35  ;;  %v1534_v47 = vrot.slane %v1533_v6, 4  ;;  %v1547_v48 = vor.u32 %v1546_v38, %v1543_v37  ;;  %v1564_v49 = vshll.u32 %v5249_v27, 16  ;;  %v1569_v50 = vshrl.u32 %v5250_v34, 16  ;;  %6033 = vmatprep.subr.bf16.mxu0 %v6678_v24  ;;  %v5259_v15 = vld [vmem:[%s8417_s0 + $0x174] sm:$0x1] }
  0x7c   :  { %v1560_v52 = vrot.slane %v1558_v44, 5  ;;  %v1572_v53 = vshll.u32 %v5250_v34, 16  ;;  %v1578_v54 = vshll.u32 %v5251_v39, 16  ;;  %v1583_v55 = vshrl.u32 %v5252_v40, 16  ;;  %v5260_v30 = vld [vmem:[%s8417_s0 + $0x190] sm:$0xf] }
  0x7d   :  { %v1539_v57 = vsel %vm6298_vm3, %v1534_v47, %v1538_v26  ;;  %v1548_v45 = vrot.slane %v1547_v48, 4  ;;  %v1566_v58 = vrot.slane %v1564_v49, 5  ;;  %v1571_v59 = vrot.slane %v1569_v50, 4  ;;  %v5261_v6 = vld [vmem:[%s8417_s0 + $0x194] sm:$0x1] }
  0x7e   :  { %v5271_v62 = vcombine.low %v1525_v41, %v1539_v57  ;;  %v1561_v63 = vor.u32 %v1560_v52, %v1557_v43  ;;  %v1574_v0 = vrot.slane %v1572_v53, 5  ;;  %v1580_v1 = vrot.slane %v1578_v54, 5  ;;  %v5213_v41 = vld [vmem:[%s8417_s0 + $0x130] sm:$0xf] }
  0x7f   :  { %v1553_v4 = vsel %vm6298_vm3, %v1548_v45, %v1552_v42  ;;  %v1585_v5 = vrot.slane %v1583_v55, 4  ;;  %v1586_v7 = vshll.u32 %v5252_v40, 16  ;;  %v1592_v8 = vshll.u32 %v5253_v46, 16  ;;  %v5214_v42 = vld [vmem:[%s8417_s0 + $0x150] sm:$0xf] }
  0x80   :  { %5982 = vmatmul.mubr.msk.bf16.vlgmr.msra.gmra.mxu1 %vm334_vm2, %v5271_v62  ;;  %v1562_v10 = vrot.slane %v1561_v63, 4  ;;  %v1575_v11 = vor.u32 %v1574_v0, %v1571_v59  ;;  %v5223_v12 = vcombine.low %v5209_v51, %v5210_v13  ;;  %v5224_v14 = vcombine.low %v5211_v56, %v5212_v60  ;;  %v5215_v48 = vld [vmem:[%s8417_s0 + $0x170] sm:$0xf]  ;;  %v5263_v45 = vld [vmem:[%s8417_s0 + $0x1b4] sm:$0x1] }
  0x81   :  { %6016 = vmatpush3.bf16.msra.mxu1 %v6518_v36  ;;  %v1588_v16 = vrot.slane %v1586_v7, 5  ;;  %v1594_v17 = vrot.slane %v1592_v8, 5  ;;  %v1597_v19 = vshrl.u32 %v5254_v2, 16  ;;  %v1600_v20 = vshll.u32 %v5254_v2, 16  ;;  %v5258_v36 = vld [vmem:[%s8417_s0 + $0x170] sm:$0xf] }
  0x82   :  { %v1567_v21 = vsel %vm6298_vm3, %v1562_v10, %v1566_v58  ;;  %v1576_v22 = vrot.slane %v1575_v11, 4  ;;  %5967 = vmatprep.mubr.msk.bf16.mxu0 %vm334_vm2, %v5223_v12  ;;  %v1606_v23 = vshll.u32 %v5255_v3, 16  ;;  %v1611_v25 = vshrl.u32 %v5256_v9, 16  ;;  %6051 = vmatprep.subr.bf16.mxu1 %v6718_v61  ;;  %v5216_v52 = vld [vmem:[%s8417_s0 + $0x190] sm:$0xf] }
  0x83   :  { %v5272_v26 = vcombine.low %v1553_v4, %v1567_v21  ;;  %v1589_v27 = vor.u32 %v1588_v16, %v1585_v5  ;;  %5968 = vmatmul.mubr.msk.bf16.gmra.mxu0 %vm334_vm2, %v5224_v14  ;;  %v1599_v28 = vrot.slane %v1597_v19, 4  ;;  %v1602_v29 = vrot.slane %v1600_v20, 5  ;;  %v5262_v57 = vld [vmem:[%s8417_s0 + $0x1b0] sm:$0xf]  ;;  %v5265_v7 = vld [vmem:[%s8417_s0 + $0x1d4] sm:$0x1] }
  0x84   :  { %v1581_v31 = vsel %vm6298_vm3, %v1576_v22, %v1580_v1  ;;  %v1608_v33 = vrot.slane %v1606_v23, 5  ;;  %v1613_v34 = vrot.slane %v1611_v25, 4  ;;  %v1614_v35 = vshll.u32 %v5256_v9, 16  ;;  %v5264_v63 = vld [vmem:[%s8417_s0 + $0x1d0] sm:$0xf] }
  0x85   :  { %5985 = vmatprep.mubr.msk.bf16.mxu1 %vm334_vm2, %v5272_v26  ;;  %v1590_v37 = vrot.slane %v1589_v27, 4  ;;  %v1603_v38 = vor.u32 %v1602_v29, %v1599_v28  ;;  %v1620_v39 = vshll.u32 %v5257_v18, 16  ;;  %v1625_v40 = vshrl.u32 %v5258_v36, 16  ;;  %v5266_v16 = vld [vmem:[%s8417_s0 + $0x1f0] sm:$0xf] }
  0x86   :  { %v1616_v43 = vrot.slane %v1614_v35, 5  ;;  %v1628_v44 = vshll.u32 %v5258_v36, 16  ;;  %v1634_v46 = vshll.u32 %v5259_v15, 16  ;;  %v1639_v47 = vshrl.u32 %v5260_v30, 16  ;;  %v5267_v21 = vld [vmem:[%s8417_s0 + $0x1f4] sm:$0x1] }
  0x87   :  { %v1595_v49 = vsel %vm6298_vm3, %v1590_v37, %v1594_v17  ;;  %v1604_v50 = vrot.slane %v1603_v38, 4  ;;  %v1622_v51 = vrot.slane %v1620_v39, 5  ;;  %v1627_v13 = vrot.slane %v1625_v40, 4  ;;  %v5268_v22 = vld [vmem:[%s8417_s0 + $0x210] sm:$0xf] }
  0x88   :  { %v5273_v53 = vcombine.low %v1581_v31, %v1595_v49  ;;  %v1617_v54 = vor.u32 %v1616_v43, %v1613_v34  ;;  %v1630_v55 = vrot.slane %v1628_v44, 5  ;;  %v1636_v56 = vrot.slane %v1634_v46, 5  ;;  %v5269_v27 = vld [vmem:[%s8417_s0 + $0x214] sm:$0x1]  ;;  %v5217_v31 = vld [vmem:[%s8417_s0 + $0x1b0] sm:$0xf] }
  0x89   :  { %v1609_v58 = vsel %vm6298_vm3, %v1604_v50, %v1608_v33  ;;  %v1641_v59 = vrot.slane %v1639_v47, 4  ;;  %v1642_v60 = vshll.u32 %v5260_v30, 16  ;;  %v1648_v62 = vshll.u32 %v5261_v6, 16  ;;  %v5218_v33 = vld [vmem:[%s8417_s0 + $0x1d0] sm:$0xf] }
  0x8a   :  { %5986 = vmatmul.mubr.msk.bf16.gmra.mxu1 %vm334_vm2, %v5273_v53  ;;  %v1618_v0 = vrot.slane %v1617_v54, 4  ;;  %v1631_v1 = vor.u32 %v1630_v55, %v1627_v13  ;;  %v5225_v2 = vcombine.low %v5213_v41, %v5214_v42  ;;  %v5226_v3 = vcombine.low %v5215_v48, %v5216_v52  ;;  %v5219_v34 = vld [vmem:[%s8417_s0 + $0x1f0] sm:$0xf]  ;;  %v5320_v44 = vld [vmem:[%s8417_s0 + $0x18] sm:$0xf] }
  0x8b   :  { %v1644_v4 = vrot.slane %v1642_v60, 5  ;;  %v1650_v5 = vrot.slane %v1648_v62, 5  ;;  %v1653_v8 = vshrl.u32 %v5262_v57, 16  ;;  %v1656_v9 = vshll.u32 %v5262_v57, 16  ;;  %v5220_v39 = vld [vmem:[%s8417_s0 + $0x210] sm:$0xf] }
  0x8c   :  { %v1623_v10 = vsel %vm6298_vm3, %v1618_v0, %v1622_v51  ;;  %v1632_v11 = vrot.slane %v1631_v1, 4  ;;  %5971 = vmatprep.mubr.msk.bf16.mxu0 %vm334_vm2, %v5225_v2  ;;  %v1662_v12 = vshll.u32 %v5263_v45, 16  ;;  %v1667_v14 = vshrl.u32 %v5264_v63, 16  ;;  %v5321_v50 = vld [vmem:[%s8417_s0 + $0x1c] sm:$0x1] }
  0x8d   :  { %v5274_v17 = vcombine.low %v1609_v58, %v1623_v10  ;;  %v1645_v18 = vor.u32 %v1644_v4, %v1641_v59  ;;  %5972 = vmatmul.mubr.msk.bf16.gmra.mxu0 %vm334_vm2, %v5226_v3  ;;  %v1655_v19 = vrot.slane %v1653_v8, 4  ;;  %v1658_v20 = vrot.slane %v1656_v9, 5  ;;  %v5322_v51 = vld [vmem:[%s8417_s0 + $0x38] sm:$0xf]  ;;  %v5323_v58 = vld [vmem:[%s8417_s0 + $0x3c] sm:$0x1] }
  0x8e   :  { %v1637_v23 = vsel %vm6298_vm3, %v1632_v11, %v1636_v56  ;;  %v1664_v25 = vrot.slane %v1662_v12, 5  ;;  %v1669_v36 = vrot.slane %v1667_v14, 4  ;;  %v1670_v26 = vshll.u32 %v5264_v63, 16  ;;  %v5324_v59 = vld [vmem:[%s8417_s0 + $0x58] sm:$0xf] }
  0x8f   :  { %5989 = vmatprep.mubr.msk.bf16.mxu1 %vm334_vm2, %v5274_v17  ;;  %v1646_v28 = vrot.slane %v1645_v18, 4  ;;  %v1659_v29 = vor.u32 %v1658_v20, %v1655_v19  ;;  %v1676_v15 = vshll.u32 %v5265_v7, 16  ;;  %v1681_v30 = vshrl.u32 %v5266_v16, 16  ;;  %v5325_v1 = vld [vmem:[%s8417_s0 + $0x5c] sm:$0x1] }
  0x90   :  { %v1672_v35 = vrot.slane %v1670_v26, 5  ;;  %v1684_v6 = vshll.u32 %v5266_v16, 16  ;;  %v1690_v37 = vshll.u32 %v5267_v21, 16  ;;  %v1695_v38 = vshrl.u32 %v5268_v22, 16  ;;  %v5326_v11 = vld [vmem:[%s8417_s0 + $0x78] sm:$0xf] }
  0x91   :  { %v1651_v40 = vsel %vm6298_vm3, %v1646_v28, %v1650_v5  ;;  %v1660_v41 = vrot.slane %v1659_v29, 4  ;;  %v1678_v42 = vrot.slane %v1676_v15, 5  ;;  %v1683_v43 = vrot.slane %v1681_v30, 4  ;;  %v5327_v18 = vld [vmem:[%s8417_s0 + $0x7c] sm:$0x1] }
  0x92   :  { %v5275_v46 = vcombine.low %v1637_v23, %v1651_v40  ;;  %v1673_v47 = vor.u32 %v1672_v35, %v1669_v36  ;;  %v1686_v48 = vrot.slane %v1684_v6, 5  ;;  %v1692_v49 = vrot.slane %v1690_v37, 5  ;;  %v5287_v23 = vld [vmem:[%s8417_s0 + $0x18] sm:$0xf]  ;;  %v5329_v40 = vld [vmem:[%s8417_s0 + $0x9c] sm:$0x1] }
  0x93   :  { %v1665_v13 = vsel %vm6298_vm3, %v1660_v41, %v1664_v25  ;;  %v1697_v52 = vrot.slane %v1695_v38, 4  ;;  %v1698_v53 = vshll.u32 %v5268_v22, 16  ;;  %v1704_v54 = vshll.u32 %v5269_v27, 16  ;;  %v5288_v25 = vld [vmem:[%s8417_s0 + $0x38] sm:$0xf] }
  0x94   :  { %5990 = vmatmul.mubr.msk.bf16.gmra.mxu1 %vm334_vm2, %v5275_v46  ;;  %v1674_v55 = vrot.slane %v1673_v47, 4  ;;  %v1687_v56 = vor.u32 %v1686_v48, %v1683_v43  ;;  %v5227_v57 = vcombine.low %v5217_v31, %v5218_v33  ;;  %v5228_v45 = vcombine.low %v5219_v34, %v5220_v39  ;;  %v5289_v29 = vld [vmem:[%s8417_s0 + $0x58] sm:$0xf] }
  0x95   :  { %v1700_v60 = vrot.slane %v1698_v53, 5  ;;  %v1706_v62 = vrot.slane %v1704_v54, 5  ;;  %v2112_v63 = vshrl.u32 %v5320_v44, 16  ;;  %v2115_v0 = vshll.u32 %v5320_v44, 16  ;;  %v5290_v34 = vld [vmem:[%s8417_s0 + $0x78] sm:$0xf] }
  0x96   :  { %v1679_v2 = vsel %vm6298_vm3, %v1674_v55, %v1678_v42  ;;  %v1688_v3 = vrot.slane %v1687_v56, 4  ;;  %5975 = vmatprep.mubr.msk.bf16.mxu0 %vm334_vm2, %v5227_v57  ;;  %v2121_v4 = vshll.u32 %v5321_v50, 16  ;;  %v2126_v5 = vshrl.u32 %v5322_v51, 16  ;;  %v5328_v39 = vld [vmem:[%s8417_s0 + $0x98] sm:$0xf] }
  0x97   :  { %v5276_v7 = vcombine.low %v1665_v13, %v1679_v2  ;;  %v1701_v8 = vor.u32 %v1700_v60, %v1697_v52  ;;  %5976 = vmatmul.mubr.msk.bf16.gmra.mxu0 %vm334_vm2, %v5228_v45  ;;  %v2114_v9 = vrot.slane %v2112_v63, 4  ;;  %v2117_v10 = vrot.slane %v2115_v0, 5  ;;  %v5330_v46 = vld [vmem:[%s8417_s0 + $0xb8] sm:$0xf]  ;;  %v5331_v53 = vld [vmem:[%s8417_s0 + $0xbc] sm:$0x1] }
  0x98   :  { %v1693_v12 = vsel %vm6298_vm3, %v1688_v3, %v1692_v49  ;;  %v2123_v14 = vrot.slane %v2121_v4, 5  ;;  %v2128_v16 = vrot.slane %v2126_v5, 4  ;;  %v2129_v17 = vshll.u32 %v5322_v51, 16  ;;  %v6878_v51 = vld [vmem:[#allocation2 + $0x50] sm:$0xff]   ;;  %v5334_v2 = vld [vmem:[%s8417_s0 + $0xf8] sm:$0xf] }
  0x99   :  { %5993 = vmatprep.mubr.msk.bf16.mxu1 %vm334_vm2, %v5276_v7  ;;  %v1702_v19 = vrot.slane %v1701_v8, 4  ;;  %v2118_v20 = vor.u32 %v2117_v10, %v2114_v9  ;;  %v2135_v21 = vshll.u32 %v5323_v58, 16  ;;  %v2140_v22 = vshrl.u32 %v5324_v59, 16  ;;  %v5335_v8 = vld [vmem:[%s8417_s0 + $0xfc] sm:$0x1] }
  0x9a   :  { %v2131_v36 = vrot.slane %v2129_v17, 5  ;;  %v2143_v26 = vshll.u32 %v5324_v59, 16  ;;  %v2149_v27 = vshll.u32 %v5325_v1, 16  ;;  %v2154_v28 = vshrl.u32 %v5326_v11, 16  ;;  %v5332_v59 = vld [vmem:[%s8417_s0 + $0xd8] sm:$0xf] }
  0x9b   :  { %v1707_v15 = vsel %vm6298_vm3, %v1702_v19, %v1706_v62  ;;  %v2119_v30 = vrot.slane %v2118_v20, 4  ;;  %v2137_v31 = vrot.slane %v2135_v21, 5  ;;  %v2142_v33 = vrot.slane %v2140_v22, 4  ;;  %v5333_v1 = vld [vmem:[%s8417_s0 + $0xdc] sm:$0x1] }
  0x9c   :  { %v5277_v35 = vcombine.low %v1693_v12, %v1707_v15  ;;  %v2132_v6 = vor.u32 %v2131_v36, %v2128_v16  ;;  %v2145_v37 = vrot.slane %v2143_v26, 5  ;;  %v2151_v38 = vrot.slane %v2149_v27, 5  ;;  %v5293_v20 = vld [vmem:[%s8417_s0 + $0xd8] sm:$0xf] }
  0x9d   :  { %v2124_v41 = vsel %vm6298_vm3, %v2119_v30, %v2123_v14  ;;  %v2156_v42 = vrot.slane %v2154_v28, 4  ;;  %v2157_v43 = vshll.u32 %v5326_v11, 16  ;;  %v2163_v44 = vshll.u32 %v5327_v18, 16  ;;  %v5291_v14 = vld [vmem:[%s8417_s0 + $0x98] sm:$0xf] }
  0x9e   :  { %5994 = vmatmul.mubr.msk.bf16.gmra.mxu1 %vm334_vm2, %v5277_v35  ;;  %v2133_v47 = vrot.slane %v2132_v6, 4  ;;  %v2146_v48 = vor.u32 %v2145_v37, %v2142_v33  ;;  %v5303_v49 = vcombine.low %v5287_v23, %v5288_v25  ;;  %v5304_v50 = vcombine.low %v5289_v29, %v5290_v34  ;;  %v5294_v36 = vld [vmem:[%s8417_s0 + $0xf8] sm:$0xf] }
  0x9f   :  { %v2159_v13 = vrot.slane %v2157_v43, 5  ;;  %v2165_v52 = vrot.slane %v2163_v44, 5  ;;  %v2168_v54 = vshrl.u32 %v5328_v39, 16  ;;  %v2171_v55 = vshll.u32 %v5328_v39, 16  ;;  %v6918_v26 = vld [vmem:[#allocation2 + $0x58] sm:$0xff]  }
  0xa0   :  { %v2138_v56 = vsel %vm6298_vm3, %v2133_v47, %v2137_v31  ;;  %v2147_v57 = vrot.slane %v2146_v48, 4  ;;  %5999 = vmatprep.mubr.msk.bf16.mxu0 %vm334_vm2, %v5303_v49  ;;  %v2177_v45 = vshll.u32 %v5329_v40, 16  ;;  %v2182_v58 = vshrl.u32 %v5330_v46, 16  ;;  %v5336_v30 = vld [vmem:[%s8417_s0 + $0x138] sm:$0xf] }
  0xa1   :  { %v5352_v60 = vcombine.low %v2124_v41, %v2138_v56  ;;  %v2160_v62 = vor.u32 %v2159_v13, %v2156_v42  ;;  %6000 = vmatmul.mubr.msk.bf16.vlgmr.msra.gmra.mxu0 %vm334_vm2, %v5304_v50  ;;  %v2170_v63 = vrot.slane %v2168_v54, 4  ;;  %v2173_v0 = vrot.slane %v2171_v55, 5  ;;  %v5337_v31 = vld [vmem:[%s8417_s0 + $0x13c] sm:$0x1]  ;;  %v5338_v37 = vld [vmem:[%s8417_s0 + $0x158] sm:$0xf] }
  0xa2   :  { %v2152_v3 = vsel %vm6298_vm3, %v2147_v57, %v2151_v38  ;;  %6034 = vmatpush3.bf16.msra.mxu0 %v6678_v24  ;;  %v2179_v4 = vrot.slane %v2177_v45, 5  ;;  %v2184_v5 = vrot.slane %v2182_v58, 4  ;;  %v2185_v7 = vshll.u32 %v5330_v46, 16  ;;  %v5292_v24 = vld [vmem:[%s8417_s0 + $0xb8] sm:$0xf] }
  0xa3   :  { %6017 = vmatprep.mubr.msk.bf16.mxu1 %vm334_vm2, %v5352_v60  ;;  %v2161_v9 = vrot.slane %v2160_v62, 4  ;;  %v2174_v10 = vor.u32 %v2173_v0, %v2170_v63  ;;  %v2191_v11 = vshll.u32 %v5331_v53, 16  ;;  %v2196_v12 = vshrl.u32 %v5332_v59, 16  ;;  %6069 = vmatprep.subr.bf16.mxu0 %v6878_v51  ;;  %v5339_v44 = vld [vmem:[%s8417_s0 + $0x15c] sm:$0x1] }
  0xa4   :  { %v2187_v16 = vrot.slane %v2185_v7, 5  ;;  %v2199_v17 = vshll.u32 %v5332_v59, 16  ;;  %v2205_v18 = vshll.u32 %v5333_v1, 16  ;;  %v2210_v19 = vshrl.u32 %v5334_v2, 16  ;;  %v5341_v56 = vld [vmem:[%s8417_s0 + $0x17c] sm:$0x1] }
  0xa5   :  { %v2166_v21 = vsel %vm6298_vm3, %v2161_v9, %v2165_v52  ;;  %v2175_v22 = vrot.slane %v2174_v10, 4  ;;  %v2193_v23 = vrot.slane %v2191_v11, 5  ;;  %v2198_v25 = vrot.slane %v2196_v12, 4  ;;  %v5342_v57 = vld [vmem:[%s8417_s0 + $0x198] sm:$0xf] }
  0xa6   :  { %v5353_v27 = vcombine.low %v2152_v3, %v2166_v21  ;;  %v2188_v28 = vor.u32 %v2187_v16, %v2184_v5  ;;  %v2201_v29 = vrot.slane %v2199_v17, 5  ;;  %v2207_v15 = vrot.slane %v2205_v18, 5  ;;  %v5343_v62 = vld [vmem:[%s8417_s0 + $0x19c] sm:$0x1]  ;;  %v5295_v3 = vld [vmem:[%s8417_s0 + $0x138] sm:$0xf] }
  0xa7   :  { %v2180_v33 = vsel %vm6298_vm3, %v2175_v22, %v2179_v4  ;;  %v2212_v34 = vrot.slane %v2210_v19, 4  ;;  %v2213_v35 = vshll.u32 %v5334_v2, 16  ;;  %v2219_v6 = vshll.u32 %v5335_v8, 16  ;;  %v5296_v4 = vld [vmem:[%s8417_s0 + $0x158] sm:$0xf] }
  0xa8   :  { %6018 = vmatmul.mubr.msk.bf16.vlgmr.msra.gmra.mxu1 %vm334_vm2, %v5353_v27  ;;  %v2189_v38 = vrot.slane %v2188_v28, 4  ;;  %v2202_v39 = vor.u32 %v2201_v29, %v2198_v25  ;;  %v5305_v40 = vcombine.low %v5291_v14, %v5292_v24  ;;  %v5306_v41 = vcombine.low %v5293_v20, %v5294_v36  ;;  %v5297_v10 = vld [vmem:[%s8417_s0 + $0x178] sm:$0xf]  ;;  %v5345_v22 = vld [vmem:[%s8417_s0 + $0x1bc] sm:$0x1] }
  0xa9   :  { %6052 = vmatpush3.bf16.msra.mxu1 %v6718_v61  ;;  %v2215_v42 = vrot.slane %v2213_v35, 5  ;;  %v2221_v43 = vrot.slane %v2219_v6, 5  ;;  %v2224_v46 = vshrl.u32 %v5336_v30, 16  ;;  %v2227_v47 = vshll.u32 %v5336_v30, 16  ;;  %v5340_v61 = vld [vmem:[%s8417_s0 + $0x178] sm:$0xf] }
  0xaa   :  { %v2194_v48 = vsel %vm6298_vm3, %v2189_v38, %v2193_v23  ;;  %v2203_v49 = vrot.slane %v2202_v39, 4  ;;  %6003 = vmatprep.mubr.msk.bf16.mxu0 %vm334_vm2, %v5305_v40  ;;  %v2233_v50 = vshll.u32 %v5337_v31, 16  ;;  %v2238_v13 = vshrl.u32 %v5338_v37, 16  ;;  %6087 = vmatprep.subr.bf16.mxu1 %v6918_v26  ;;  %v5298_v16 = vld [vmem:[%s8417_s0 + $0x198] sm:$0xf] }
  0xab   :  { %v5354_v52 = vcombine.low %v2180_v33, %v2194_v48  ;;  %v2216_v53 = vor.u32 %v2215_v42, %v2212_v34  ;;  %6004 = vmatmul.mubr.msk.bf16.gmra.mxu0 %vm334_vm2, %v5306_v41  ;;  %v2226_v54 = vrot.slane %v2224_v46, 4  ;;  %v2229_v55 = vrot.slane %v2227_v47, 5  ;;  %v5344_v21 = vld [vmem:[%s8417_s0 + $0x1b8] sm:$0xf]  ;;  %v5347_v35 = vld [vmem:[%s8417_s0 + $0x1dc] sm:$0x1] }
  0xac   :  { %v2208_v45 = vsel %vm6298_vm3, %v2203_v49, %v2207_v15  ;;  %v2235_v58 = vrot.slane %v2233_v50, 5  ;;  %v2240_v59 = vrot.slane %v2238_v13, 4  ;;  %v2241_v60 = vshll.u32 %v5338_v37, 16  ;;  %v5346_v28 = vld [vmem:[%s8417_s0 + $0x1d8] sm:$0xf] }
  0xad   :  { %6021 = vmatprep.mubr.msk.bf16.mxu1 %vm334_vm2, %v5354_v52  ;;  %v2217_v63 = vrot.slane %v2216_v53, 4  ;;  %v2230_v0 = vor.u32 %v2229_v55, %v2226_v54  ;;  %v2247_v1 = vshll.u32 %v5339_v44, 16  ;;  %v2252_v2 = vshrl.u32 %v5340_v61, 16  ;;  %v5348_v42 = vld [vmem:[%s8417_s0 + $0x1f8] sm:$0xf] }
  0xae   :  { %v2243_v5 = vrot.slane %v2241_v60, 5  ;;  %v2255_v7 = vshll.u32 %v5340_v61, 16  ;;  %v2261_v8 = vshll.u32 %v5341_v56, 16  ;;  %v2266_v9 = vshrl.u32 %v5342_v57, 16  ;;  %v5349_v48 = vld [vmem:[%s8417_s0 + $0x1fc] sm:$0x1] }
  0xaf   :  { %v2222_v11 = vsel %vm6298_vm3, %v2217_v63, %v2221_v43  ;;  %v2231_v12 = vrot.slane %v2230_v0, 4  ;;  %v2249_v14 = vrot.slane %v2247_v1, 5  ;;  %v2254_v24 = vrot.slane %v2252_v2, 4  ;;  %v5350_v49 = vld [vmem:[%s8417_s0 + $0x218] sm:$0xf] }
  0xb0   :  { %v5355_v17 = vcombine.low %v2208_v45, %v2222_v11  ;;  %v2244_v18 = vor.u32 %v2243_v5, %v2240_v59  ;;  %v2257_v19 = vrot.slane %v2255_v7, 5  ;;  %v2263_v20 = vrot.slane %v2261_v8, 5  ;;  %v5351_v53 = vld [vmem:[%s8417_s0 + $0x21c] sm:$0x1]  ;;  %v5299_v45 = vld [vmem:[%s8417_s0 + $0x1b8] sm:$0xf] }
  0xb1   :  { %v2236_v23 = vsel %vm6298_vm3, %v2231_v12, %v2235_v58  ;;  %v2268_v25 = vrot.slane %v2266_v9, 4  ;;  %v2269_v36 = vshll.u32 %v5342_v57, 16  ;;  %v2275_v27 = vshll.u32 %v5343_v62, 16  ;;  %v5300_v58 = vld [vmem:[%s8417_s0 + $0x1d8] sm:$0xf] }
  0xb2   :  { %6022 = vmatmul.mubr.msk.bf16.gmra.mxu1 %vm334_vm2, %v5355_v17  ;;  %v2245_v29 = vrot.slane %v2244_v18, 4  ;;  %v2258_v15 = vor.u32 %v2257_v19, %v2254_v24  ;;  %v5307_v30 = vcombine.low %v5295_v3, %v5296_v4  ;;  %v5308_v31 = vcombine.low %v5297_v10, %v5298_v16  ;;  %v5301_v59 = vld [vmem:[%s8417_s0 + $0x1f8] sm:$0xf]  ;;  %v5402_v7 = vld [vmem:[%s8417_s0 + $0x20] sm:$0xf] }
  0xb3   :  { %v2271_v33 = vrot.slane %v2269_v36, 5  ;;  %v2277_v34 = vrot.slane %v2275_v27, 5  ;;  %v2280_v6 = vshrl.u32 %v5344_v21, 16  ;;  %v2283_v37 = vshll.u32 %v5344_v21, 16  ;;  %v5302_v1 = vld [vmem:[%s8417_s0 + $0x218] sm:$0xf] }
  0xb4   :  { %v2250_v38 = vsel %vm6298_vm3, %v2245_v29, %v2249_v14  ;;  %v2259_v39 = vrot.slane %v2258_v15, 4  ;;  %6007 = vmatprep.mubr.msk.bf16.mxu0 %vm334_vm2, %v5307_v30  ;;  %v2289_v40 = vshll.u32 %v5345_v22, 16  ;;  %v2294_v41 = vshrl.u32 %v5346_v28, 16  ;;  %v5403_v12 = vld [vmem:[%s8417_s0 + $0x24] sm:$0x1] }
  0xb5   :  { %v5356_v43 = vcombine.low %v2236_v23, %v2250_v38  ;;  %v2272_v44 = vor.u32 %v2271_v33, %v2268_v25  ;;  %6008 = vmatmul.mubr.msk.bf16.gmra.mxu0 %vm334_vm2, %v5308_v31  ;;  %v2282_v46 = vrot.slane %v2280_v6, 4  ;;  %v2285_v47 = vrot.slane %v2283_v37, 5  ;;  %v5404_v14 = vld [vmem:[%s8417_s0 + $0x40] sm:$0xf]  ;;  %v5405_v23 = vld [vmem:[%s8417_s0 + $0x44] sm:$0x1] }
  0xb6   :  { %v2264_v50 = vsel %vm6298_vm3, %v2259_v39, %v2263_v20  ;;  %v2291_v13 = vrot.slane %v2289_v40, 5  ;;  %v2296_v61 = vrot.slane %v2294_v41, 4  ;;  %v2297_v52 = vshll.u32 %v5346_v28, 16  ;;  %v5406_v25 = vld [vmem:[%s8417_s0 + $0x60] sm:$0xf] }
  0xb7   :  { %6025 = vmatprep.mubr.msk.bf16.mxu1 %vm334_vm2, %v5356_v43  ;;  %v2273_v54 = vrot.slane %v2272_v44, 4  ;;  %v2286_v55 = vor.u32 %v2285_v47, %v2282_v46  ;;  %v2303_v56 = vshll.u32 %v5347_v35, 16  ;;  %v2308_v57 = vshrl.u32 %v5348_v42, 16  ;;  %v5407_v15 = vld [vmem:[%s8417_s0 + $0x64] sm:$0x1] }
  0xb8   :  { %v2299_v60 = vrot.slane %v2297_v52, 5  ;;  %v2311_v62 = vshll.u32 %v5348_v42, 16  ;;  %v2317_v63 = vshll.u32 %v5349_v48, 16  ;;  %v2322_v0 = vshrl.u32 %v5350_v49, 16  ;;  %v5408_v39 = vld [vmem:[%s8417_s0 + $0x80] sm:$0xf] }
  0xb9   :  { %v2278_v2 = vsel %vm6298_vm3, %v2273_v54, %v2277_v34  ;;  %v2287_v3 = vrot.slane %v2286_v55, 4  ;;  %v2305_v4 = vrot.slane %v2303_v56, 5  ;;  %v2310_v5 = vrot.slane %v2308_v57, 4  ;;  %v5409_v44 = vld [vmem:[%s8417_s0 + $0x84] sm:$0x1] }
  0xba   :  { %v5357_v8 = vcombine.low %v2264_v50, %v2278_v2  ;;  %v2300_v9 = vor.u32 %v2299_v60, %v2296_v61  ;;  %v2313_v10 = vrot.slane %v2311_v62, 5  ;;  %v2319_v11 = vrot.slane %v2317_v63, 5  ;;  %v5369_v50 = vld [vmem:[%s8417_s0 + $0x20] sm:$0xf]  ;;  %v5411_v2 = vld [vmem:[%s8417_s0 + $0xa4] sm:$0x1] }
  0xbb   :  { %v2292_v24 = vsel %vm6298_vm3, %v2287_v3, %v2291_v13  ;;  %v2324_v16 = vrot.slane %v2322_v0, 4  ;;  %v2325_v17 = vshll.u32 %v5350_v49, 16  ;;  %v2331_v18 = vshll.u32 %v5351_v53, 16  ;;  %v5370_v13 = vld [vmem:[%s8417_s0 + $0x40] sm:$0xf] }
  0xbc   :  { %6026 = vmatmul.mubr.msk.bf16.gmra.mxu1 %vm334_vm2, %v5357_v8  ;;  %v2301_v19 = vrot.slane %v2300_v9, 4  ;;  %v2314_v20 = vor.u32 %v2313_v10, %v2310_v5  ;;  %v5309_v21 = vcombine.low %v5299_v45, %v5300_v58  ;;  %v5310_v22 = vcombine.low %v5301_v59, %v5302_v1  ;;  %v5371_v55 = vld [vmem:[%s8417_s0 + $0x60] sm:$0xf] }
  0xbd   :  { %v2327_v36 = vrot.slane %v2325_v17, 5  ;;  %v2333_v27 = vrot.slane %v2331_v18, 5  ;;  %v2739_v28 = vshrl.u32 %v5402_v7, 16  ;;  %v2742_v29 = vshll.u32 %v5402_v7, 16  ;;  %v5372_v59 = vld [vmem:[%s8417_s0 + $0x80] sm:$0xf] }
  0xbe   :  { %v2306_v30 = vsel %vm6298_vm3, %v2301_v19, %v2305_v4  ;;  %v2315_v31 = vrot.slane %v2314_v20, 4  ;;  %6011 = vmatprep.mubr.msk.bf16.mxu0 %vm334_vm2, %v5309_v21  ;;  %v2748_v33 = vshll.u32 %v5403_v12, 16  ;;  %v2753_v34 = vshrl.u32 %v5404_v14, 16  ;;  %v5410_v1 = vld [vmem:[%s8417_s0 + $0xa0] sm:$0xf] }
  0xbf   :  { %v5358_v35 = vcombine.low %v2292_v24, %v2306_v30  ;;  %v2328_v6 = vor.u32 %v2327_v36, %v2324_v16  ;;  %6012 = vmatmul.mubr.msk.bf16.gmra.mxu0 %vm334_vm2, %v5310_v22  ;;  %v2741_v37 = vrot.slane %v2739_v28, 4  ;;  %v2744_v38 = vrot.slane %v2742_v29, 5  ;;  %v5412_v8 = vld [vmem:[%s8417_s0 + $0xc0] sm:$0xf]  ;;  %v5413_v17 = vld [vmem:[%s8417_s0 + $0xc4] sm:$0x1] }
  0xc0   :  { %v2320_v40 = vsel %vm6298_vm3, %v2315_v31, %v2319_v11  ;;  %v2750_v41 = vrot.slane %v2748_v33, 5  ;;  %v2755_v42 = vrot.slane %v2753_v34, 4  ;;  %v2756_v43 = vshll.u32 %v5404_v14, 16  ;;  %v7078_v14 = vld [vmem:[#allocation2 + $0x60] sm:$0xff]  }
  0xc1   :  { %6029 = vmatprep.mubr.msk.bf16.mxu1 %vm334_vm2, %v5358_v35  ;;  %v2329_v46 = vrot.slane %v2328_v6, 4  ;;  %v2745_v47 = vor.u32 %v2744_v38, %v2741_v37  ;;  %v2762_v48 = vshll.u32 %v5405_v23, 16  ;;  %v2767_v49 = vshrl.u32 %v5406_v25, 16  ;;  %v5416_v30 = vld [vmem:[%s8417_s0 + $0x100] sm:$0xf] }
  0xc2   :  { %v2758_v61 = vrot.slane %v2756_v43, 5  ;;  %v2770_v52 = vshll.u32 %v5406_v25, 16  ;;  %v2776_v53 = vshll.u32 %v5407_v15, 16  ;;  %v2781_v54 = vshrl.u32 %v5408_v39, 16  ;;  %v5414_v25 = vld [vmem:[%s8417_s0 + $0xe0] sm:$0xf] }
  0xc3   :  { %v2334_v56 = vsel %vm6298_vm3, %v2329_v46, %v2333_v27  ;;  %v2746_v57 = vrot.slane %v2745_v47, 4  ;;  %v2764_v45 = vrot.slane %v2762_v48, 5  ;;  %v2769_v58 = vrot.slane %v2767_v49, 4  ;;  %v5415_v15 = vld [vmem:[%s8417_s0 + $0xe4] sm:$0x1] }
  0xc4   :  { %v5359_v60 = vcombine.low %v2320_v40, %v2334_v56  ;;  %v2759_v62 = vor.u32 %v2758_v61, %v2755_v42  ;;  %v2772_v63 = vrot.slane %v2770_v52, 5  ;;  %v2778_v0 = vrot.slane %v2776_v53, 5  ;;  %v5417_v6 = vld [vmem:[%s8417_s0 + $0x104] sm:$0x1]  ;;  %v5375_v47 = vld [vmem:[%s8417_s0 + $0xe0] sm:$0xf] }
  0xc5   :  { %v2751_v3 = vsel %vm6298_vm3, %v2746_v57, %v2750_v41  ;;  %v2783_v4 = vrot.slane %v2781_v54, 4  ;;  %v2784_v5 = vshll.u32 %v5408_v39, 16  ;;  %v2790_v7 = vshll.u32 %v5409_v44, 16  ;;  %v5373_v41 = vld [vmem:[%s8417_s0 + $0xa0] sm:$0xf]  ;;  %v7118_v52 = vld [vmem:[#allocation2 + $0x68] sm:$0xff]  }
  0xc6   :  { %6030 = vmatmul.mubr.msk.bf16.gmra.mxu1 %vm334_vm2, %v5359_v60  ;;  %v2760_v9 = vrot.slane %v2759_v62, 4  ;;  %v2773_v10 = vor.u32 %v2772_v63, %v2769_v58  ;;  %v5385_v11 = vcombine.low %v5369_v50, %v5370_v13  ;;  %v5386_v12 = vcombine.low %v5371_v55, %v5372_v59  ;;  %v5376_v61 = vld [vmem:[%s8417_s0 + $0x100] sm:$0xf] }
  0xc7   :  { %v2786_v24 = vrot.slane %v2784_v5, 5  ;;  %v2792_v16 = vrot.slane %v2790_v7, 5  ;;  %v2795_v18 = vshrl.u32 %v5410_v1, 16  ;;  %v2798_v19 = vshll.u32 %v5410_v1, 16  ;;  %v5418_v57 = vld [vmem:[%s8417_s0 + $0x140] sm:$0xf] }
  0xc8   :  { %v2765_v20 = vsel %vm6298_vm3, %v2760_v9, %v2764_v45  ;;  %v2774_v21 = vrot.slane %v2773_v10, 4  ;;  %6035 = vmatprep.mubr.msk.bf16.mxu0 %vm334_vm2, %v5385_v11  ;;  %v2804_v22 = vshll.u32 %v5411_v2, 16  ;;  %v2809_v23 = vshrl.u32 %v5412_v8, 16  ;;  %v5419_v45 = vld [vmem:[%s8417_s0 + $0x144] sm:$0x1] }
  0xc9   :  { %v5434_v36 = vcombine.low %v2751_v3, %v2765_v20  ;;  %v2787_v27 = vor.u32 %v2786_v24, %v2783_v4  ;;  %6036 = vmatmul.mubr.msk.bf16.vlgmr.msra.gmra.mxu0 %vm334_vm2, %v5386_v12  ;;  %v2797_v28 = vrot.slane %v2795_v18, 4  ;;  %v2800_v29 = vrot.slane %v2798_v19, 5  ;;  %v5420_v63 = vld [vmem:[%s8417_s0 + $0x160] sm:$0xf]  ;;  %v5421_v7 = vld [vmem:[%s8417_s0 + $0x164] sm:$0x1] }
  0xca   :  { %v2779_v31 = vsel %vm6298_vm3, %v2774_v21, %v2778_v0  ;;  %6070 = vmatpush3.bf16.msra.mxu0 %v6878_v51  ;;  %v2806_v33 = vrot.slane %v2804_v22, 5  ;;  %v2811_v34 = vrot.slane %v2809_v23, 4  ;;  %v2812_v35 = vshll.u32 %v5412_v8, 16  ;;  %v5374_v51 = vld [vmem:[%s8417_s0 + $0xc0] sm:$0xf] }
  0xcb   :  { %6053 = vmatprep.mubr.msk.bf16.mxu1 %vm334_vm2, %v5434_v36  ;;  %v2788_v37 = vrot.slane %v2787_v27, 4  ;;  %v2801_v38 = vor.u32 %v2800_v29, %v2797_v28  ;;  %v2818_v39 = vshll.u32 %v5413_v17, 16  ;;  %v2823_v40 = vshrl.u32 %v5414_v25, 16  ;;  %6105 = vmatprep.subr.bf16.mxu0 %v7078_v14  ;;  %v5423_v20 = vld [vmem:[%s8417_s0 + $0x184] sm:$0x1] }
  0xcc   :  { %v2814_v42 = vrot.slane %v2812_v35, 5  ;;  %v2826_v43 = vshll.u32 %v5414_v25, 16  ;;  %v2832_v44 = vshll.u32 %v5415_v15, 16  ;;  %v2837_v46 = vshrl.u32 %v5416_v30, 16  ;;  %v5424_v21 = vld [vmem:[%s8417_s0 + $0x1a0] sm:$0xf] }
  0xcd   :  { %v2793_v48 = vsel %vm6298_vm3, %v2788_v37, %v2792_v16  ;;  %v2802_v49 = vrot.slane %v2801_v38, 4  ;;  %v2820_v50 = vrot.slane %v2818_v39, 5  ;;  %v2825_v13 = vrot.slane %v2823_v40, 4  ;;  %v5425_v27 = vld [vmem:[%s8417_s0 + $0x1a4] sm:$0x1] }
  0xce   :  { %v5435_v53 = vcombine.low %v2779_v31, %v2793_v48  ;;  %v2815_v54 = vor.u32 %v2814_v42, %v2811_v34  ;;  %v2828_v55 = vrot.slane %v2826_v43, 5  ;;  %v2834_v56 = vrot.slane %v2832_v44, 5  ;;  %v5377_v31 = vld [vmem:[%s8417_s0 + $0x140] sm:$0xf] }
  0xcf   :  { %v2807_v58 = vsel %vm6298_vm3, %v2802_v49, %v2806_v33  ;;  %v2839_v59 = vrot.slane %v2837_v46, 4  ;;  %v2840_v60 = vshll.u32 %v5416_v30, 16  ;;  %v2846_v62 = vshll.u32 %v5417_v6, 16  ;;  %v5378_v33 = vld [vmem:[%s8417_s0 + $0x160] sm:$0xf] }
  0xd0   :  { %6054 = vmatmul.mubr.msk.bf16.vlgmr.msra.gmra.mxu1 %vm334_vm2, %v5435_v53  ;;  %v2816_v0 = vrot.slane %v2815_v54, 4  ;;  %v2829_v1 = vor.u32 %v2828_v55, %v2825_v13  ;;  %v5387_v2 = vcombine.low %v5373_v41, %v5374_v51  ;;  %v5388_v3 = vcombine.low %v5375_v47, %v5376_v61  ;;  %v5379_v38 = vld [vmem:[%s8417_s0 + $0x180] sm:$0xf]  ;;  %v5427_v49 = vld [vmem:[%s8417_s0 + $0x1c4] sm:$0x1] }
  0xd1   :  { %6088 = vmatpush3.bf16.msra.mxu1 %v6918_v26  ;;  %v2842_v4 = vrot.slane %v2840_v60, 5  ;;  %v2848_v5 = vrot.slane %v2846_v62, 5  ;;  %v2851_v8 = vshrl.u32 %v5418_v57, 16  ;;  %v2854_v9 = vshll.u32 %v5418_v57, 16  ;;  %v5422_v26 = vld [vmem:[%s8417_s0 + $0x180] sm:$0xf] }
  0xd2   :  { %v2821_v10 = vsel %vm6298_vm3, %v2816_v0, %v2820_v50  ;;  %v2830_v11 = vrot.slane %v2829_v1, 4  ;;  %6039 = vmatprep.mubr.msk.bf16.mxu0 %vm334_vm2, %v5387_v2  ;;  %v2860_v12 = vshll.u32 %v5419_v45, 16  ;;  %v2865_v24 = vshrl.u32 %v5420_v63, 16  ;;  %6123 = vmatprep.subr.bf16.mxu1 %v7118_v52  ;;  %v5380_v42 = vld [vmem:[%s8417_s0 + $0x1a0] sm:$0xf] }
  0xd3   :  { %v5436_v16 = vcombine.low %v2807_v58, %v2821_v10  ;;  %v2843_v17 = vor.u32 %v2842_v4, %v2839_v59  ;;  %6040 = vmatmul.mubr.msk.bf16.gmra.mxu0 %vm334_vm2, %v5388_v3  ;;  %v2853_v18 = vrot.slane %v2851_v8, 4  ;;  %v2856_v19 = vrot.slane %v2854_v9, 5  ;;  %v5426_v48 = vld [vmem:[%s8417_s0 + $0x1c0] sm:$0xf]  ;;  %v5429_v60 = vld [vmem:[%s8417_s0 + $0x1e4] sm:$0x1] }
  0xd4   :  { %v2835_v22 = vsel %vm6298_vm3, %v2830_v11, %v2834_v56  ;;  %v2862_v23 = vrot.slane %v2860_v12, 5  ;;  %v2867_v25 = vrot.slane %v2865_v24, 4  ;;  %v2868_v36 = vshll.u32 %v5420_v63, 16  ;;  %v5428_v54 = vld [vmem:[%s8417_s0 + $0x1e0] sm:$0xf] }
  0xd5   :  { %6057 = vmatprep.mubr.msk.bf16.mxu1 %vm334_vm2, %v5436_v16  ;;  %v2844_v28 = vrot.slane %v2843_v17, 4  ;;  %v2857_v29 = vor.u32 %v2856_v19, %v2853_v18  ;;  %v2874_v15 = vshll.u32 %v5421_v7, 16  ;;  %v2879_v30 = vshrl.u32 %v5422_v26, 16  ;;  %v5430_v4 = vld [vmem:[%s8417_s0 + $0x200] sm:$0xf] }
  0xd6   :  { %v2870_v34 = vrot.slane %v2868_v36, 5  ;;  %v2882_v35 = vshll.u32 %v5422_v26, 16  ;;  %v2888_v6 = vshll.u32 %v5423_v20, 16  ;;  %v2893_v37 = vshrl.u32 %v5424_v21, 16  ;;  %v5431_v10 = vld [vmem:[%s8417_s0 + $0x204] sm:$0x1] }
  0xd7   :  { %v2849_v39 = vsel %vm6298_vm3, %v2844_v28, %v2848_v5  ;;  %v2858_v40 = vrot.slane %v2857_v29, 4  ;;  %v2876_v41 = vrot.slane %v2874_v15, 5  ;;  %v2881_v51 = vrot.slane %v2879_v30, 4  ;;  %v5432_v11 = vld [vmem:[%s8417_s0 + $0x220] sm:$0xf] }
  0xd8   :  { %v5437_v43 = vcombine.low %v2835_v22, %v2849_v39  ;;  %v2871_v44 = vor.u32 %v2870_v34, %v2867_v25  ;;  %v2884_v46 = vrot.slane %v2882_v35, 5  ;;  %v2890_v47 = vrot.slane %v2888_v6, 5  ;;  %v5433_v17 = vld [vmem:[%s8417_s0 + $0x224] sm:$0x1]  ;;  %v5381_v22 = vld [vmem:[%s8417_s0 + $0x1c0] sm:$0xf] }
  0xd9   :  { %v2863_v50 = vsel %vm6298_vm3, %v2858_v40, %v2862_v23  ;;  %v2895_v13 = vrot.slane %v2893_v37, 4  ;;  %v2896_v61 = vshll.u32 %v5424_v21, 16  ;;  %v2902_v53 = vshll.u32 %v5425_v27, 16  ;;  %v5382_v23 = vld [vmem:[%s8417_s0 + $0x1e0] sm:$0xf] }
  0xda   :  { %6058 = vmatmul.mubr.msk.bf16.gmra.mxu1 %vm334_vm2, %v5437_v43  ;;  %v2872_v55 = vrot.slane %v2871_v44, 4  ;;  %v2885_v56 = vor.u32 %v2884_v46, %v2881_v51  ;;  %v5389_v57 = vcombine.low %v5377_v31, %v5378_v33  ;;  %v5390_v45 = vcombine.low %v5379_v38, %v5380_v42  ;;  %v5383_v25 = vld [vmem:[%s8417_s0 + $0x200] sm:$0xf]  ;;  %v5484_v35 = vld [vmem:[%s8417_s0 + $0x28] sm:$0xf] }
  0xdb   :  { %v2898_v58 = vrot.slane %v2896_v61, 5  ;;  %v2904_v59 = vrot.slane %v2902_v53, 5  ;;  %v2907_v62 = vshrl.u32 %v5426_v48, 16  ;;  %v2910_v63 = vshll.u32 %v5426_v48, 16  ;;  %v5384_v15 = vld [vmem:[%s8417_s0 + $0x220] sm:$0xf] }
  0xdc   :  { %v2877_v0 = vsel %vm6298_vm3, %v2872_v55, %v2876_v41  ;;  %v2886_v1 = vrot.slane %v2885_v56, 4  ;;  %6043 = vmatprep.mubr.msk.bf16.mxu0 %vm334_vm2, %v5389_v57  ;;  %v2916_v2 = vshll.u32 %v5427_v49, 16  ;;  %v2921_v3 = vshrl.u32 %v5428_v54, 16  ;;  %v5485_v40 = vld [vmem:[%s8417_s0 + $0x2c] sm:$0x1] }
  0xdd   :  { %v5438_v5 = vcombine.low %v2863_v50, %v2877_v0  ;;  %v2899_v7 = vor.u32 %v2898_v58, %v2895_v13  ;;  %6044 = vmatmul.mubr.msk.bf16.gmra.mxu0 %vm334_vm2, %v5390_v45  ;;  %v2909_v8 = vrot.slane %v2907_v62, 4  ;;  %v2912_v9 = vrot.slane %v2910_v63, 5  ;;  %v5486_v41 = vld [vmem:[%s8417_s0 + $0x48] sm:$0xf]  ;;  %v5487_v50 = vld [vmem:[%s8417_s0 + $0x4c] sm:$0x1] }
  0xde   :  { %v2891_v12 = vsel %vm6298_vm3, %v2886_v1, %v2890_v47  ;;  %v2918_v24 = vrot.slane %v2916_v2, 5  ;;  %v2923_v26 = vrot.slane %v2921_v3, 4  ;;  %v2924_v16 = vshll.u32 %v5428_v54, 16  ;;  %v5488_v13 = vld [vmem:[%s8417_s0 + $0x68] sm:$0xf] }
  0xdf   :  { %6061 = vmatprep.mubr.msk.bf16.mxu1 %vm334_vm2, %v5438_v5  ;;  %v2900_v18 = vrot.slane %v2899_v7, 4  ;;  %v2913_v19 = vor.u32 %v2912_v9, %v2909_v8  ;;  %v2930_v20 = vshll.u32 %v5429_v60, 16  ;;  %v2935_v21 = vshrl.u32 %v5430_v4, 16  ;;  %v5489_v56 = vld [vmem:[%s8417_s0 + $0x6c] sm:$0x1] }
  0xe0   :  { %v2926_v36 = vrot.slane %v2924_v16, 5  ;;  %v2938_v27 = vshll.u32 %v5430_v4, 16  ;;  %v2944_v28 = vshll.u32 %v5431_v10, 16  ;;  %v2949_v29 = vshrl.u32 %v5432_v11, 16  ;;  %v5490_v2 = vld [vmem:[%s8417_s0 + $0x88] sm:$0xf] }
  0xe1   :  { %v2905_v30 = vsel %vm6298_vm3, %v2900_v18, %v2904_v59  ;;  %v2914_v31 = vrot.slane %v2913_v19, 4  ;;  %v2932_v33 = vrot.slane %v2930_v20, 5  ;;  %v2937_v34 = vrot.slane %v2935_v21, 4  ;;  %v5491_v9 = vld [vmem:[%s8417_s0 + $0x8c] sm:$0x1] }
  0xe2   :  { %v5439_v6 = vcombine.low %v2891_v12, %v2905_v30  ;;  %v2927_v37 = vor.u32 %v2926_v36, %v2923_v26  ;;  %v2940_v38 = vrot.slane %v2938_v27, 5  ;;  %v2946_v39 = vrot.slane %v2944_v28, 5  ;;  %v5451_v26 = vld [vmem:[%s8417_s0 + $0x28] sm:$0xf] }
  0xe3   :  { %v2919_v51 = vsel %vm6298_vm3, %v2914_v31, %v2918_v24  ;;  %v2951_v42 = vrot.slane %v2949_v29, 4  ;;  %v2952_v43 = vshll.u32 %v5432_v11, 16  ;;  %v2958_v44 = vshll.u32 %v5433_v17, 16  ;;  %v5452_v16 = vld [vmem:[%s8417_s0 + $0x48] sm:$0xf] }
  0xe4   :  { %6062 = vmatmul.mubr.msk.bf16.gmra.mxu1 %vm334_vm2, %v5439_v6  ;;  %v2928_v46 = vrot.slane %v2927_v37, 4  ;;  %v2941_v47 = vor.u32 %v2940_v38, %v2937_v34  ;;  %v5391_v48 = vcombine.low %v5381_v22, %v5382_v23  ;;  %v5392_v49 = vcombine.low %v5383_v25, %v5384_v15  ;;  %v5453_v22 = vld [vmem:[%s8417_s0 + $0x68] sm:$0xf] }
  0xe5   :  { %v2954_v61 = vrot.slane %v2952_v43, 5  ;;  %v2960_v53 = vrot.slane %v2958_v44, 5  ;;  %v3366_v54 = vshrl.u32 %v5484_v35, 16  ;;  %v3369_v55 = vshll.u32 %v5484_v35, 16  ;;  %v7239_v57 = vpop.f32.mrf.mxu1  ;;  %v5454_v28 = vld [vmem:[%s8417_s0 + $0x88] sm:$0xf] }
  0xe6   :  { %v2933_v45 = vsel %vm6298_vm3, %v2928_v46, %v2932_v33  ;;  %v2942_v58 = vrot.slane %v2941_v47, 4  ;;  %6047 = vmatprep.mubr.msk.bf16.mxu0 %vm334_vm2, %v5391_v48  ;;  %v3375_v59 = vshll.u32 %v5485_v40, 16  ;;  %v3380_v60 = vshrl.u32 %v5486_v41, 16  ;;  %v5492_v34 = vld [vmem:[%s8417_s0 + $0xa8] sm:$0xf]  ;;  %v7290_v46 = vld [vmem:[#allocation2 + $0x70] sm:$0xff]  }
  0xe7   :  { %v5440_v62 = vcombine.low %v2919_v51, %v2933_v45  ;;  %v2955_v63 = vor.u32 %v2954_v61, %v2951_v42  ;;  %6048 = vmatmul.mubr.msk.bf16.gmra.mxu0 %vm334_vm2, %v5392_v49  ;;  %v3368_v0 = vrot.slane %v3366_v54, 4  ;;  %v3371_v1 = vrot.slane %v3369_v55, 5  ;;  %v7248_v3 = vpop.f32.mrf.mxu1  ;;  %v5493_v35 = vld [vmem:[%s8417_s0 + $0xac] sm:$0x1]  ;;  %v5494_v40 = vld [vmem:[%s8417_s0 + $0xc8] sm:$0xf] }
  0xe8   :  { %v2947_v4 = vsel %vm6298_vm3, %v2942_v58, %v2946_v39  ;;  %v3377_v5 = vrot.slane %v3375_v59, 5  ;;  %v3382_v7 = vrot.slane %v3380_v60, 4  ;;  %v3383_v8 = vshll.u32 %v5486_v41, 16  ;;  %v5495_v49 = vld [vmem:[%s8417_s0 + $0xcc] sm:$0x1] }
  0xe9   :  { %6065 = vmatprep.mubr.msk.bf16.mxu1 %vm334_vm2, %v5440_v62  ;;  %v2956_v10 = vrot.slane %v2955_v63, 4  ;;  %v3372_v11 = vor.u32 %v3371_v1, %v3368_v0  ;;  %v3389_v12 = vshll.u32 %v5487_v50, 16  ;;  %v3394_v24 = vshrl.u32 %v5488_v13, 16  ;;  %v7262_v17 = vpop.f32.mrf.mxu1  ;;  %v5496_v58 = vld [vmem:[%s8417_s0 + $0xe8] sm:$0xf] }
  0xea   :  { %v3385_v18 = vrot.slane %v3383_v8, 5  ;;  %v3397_v19 = vshll.u32 %v5488_v13, 16  ;;  %v3403_v20 = vshll.u32 %v5489_v56, 16  ;;  %v3408_v21 = vshrl.u32 %v5490_v2, 16  ;;  %v5497_v0 = vld [vmem:[%s8417_s0 + $0xec] sm:$0x1] }
  0xeb   :  { %v2961_v23 = vsel %vm6298_vm3, %v2956_v10, %v2960_v53  ;;  %v3373_v25 = vrot.slane %v3372_v11, 4  ;;  %v3391_v36 = vrot.slane %v3389_v12, 5  ;;  %v3396_v27 = vrot.slane %v3394_v24, 4  ;;  %v7272_v29 = vpop.f32.mrf.mxu1  ;;  %v5498_v1 = vld [vmem:[%s8417_s0 + $0x108] sm:$0xf] }
  0xec   :  { %v5441_v15 = vcombine.low %v2947_v4, %v2961_v23  ;;  %v3386_v30 = vor.u32 %v3385_v18, %v3382_v7  ;;  %v3399_v31 = vrot.slane %v3397_v19, 5  ;;  %v7274_v33 = vrot.slane %v3403_v20, 5  ;;  %v5499_v10 = vld [vmem:[%s8417_s0 + $0x10c] sm:$0x1] }
  0xed   :  { %v3378_v6 = vsel %vm6298_vm3, %v3373_v25, %v3377_v5  ;;  %v3410_v37 = vrot.slane %v3408_v21, 4  ;;  %v3411_v38 = vshll.u32 %v5490_v2, 16  ;;  %v3417_v39 = vshll.u32 %v5491_v9, 16  ;;  %v7287_v41 = vpop.f32.mrf.mxu0  ;;  %v5457_v25 = vld [vmem:[%s8417_s0 + $0xe8] sm:$0xf] }
  0xee   :  { %6066 = vmatmul.mubr.msk.bf16.gmra.mxu1 %vm334_vm2, %v5441_v15  ;;  %v3387_v51 = vrot.slane %v3386_v30, 4  ;;  %v3400_v42 = vor.u32 %v3399_v31, %v3396_v27  ;;  %v5467_v43 = vcombine.low %v5451_v26, %v5452_v16  ;;  %v5468_v44 = vcombine.low %v5453_v22, %v5454_v28  ;;  %v5455_v16 = vld [vmem:[%s8417_s0 + $0xa8] sm:$0xf]  ;;  %v7343_v31 = vld [vmem:[#allocation2 + $0x78] sm:$0xff]  }
  0xef   :  { %v3413_v47 = vrot.slane %v3411_v38, 5  ;;  %v3419_v48 = vrot.slane %v3417_v39, 5  ;;  %v3422_v50 = vshrl.u32 %v5492_v34, 16  ;;  %v3425_v13 = vshll.u32 %v5492_v34, 16  ;;  %v7295_v61 = vpop.f32.mrf.mxu0  ;;  %v7297_v53 = vpop.f32.mrf.mxu1  ;;  %v5458_v30 = vld [vmem:[%s8417_s0 + $0x108] sm:$0xf] }
  0xf0   :  { %v3392_v54 = vsel %vm6298_vm3, %v3387_v51, %v3391_v36  ;;  %v3401_v55 = vrot.slane %v3400_v42, 4  ;;  %6071 = vmatprep.mubr.msk.bf16.mxu0 %vm334_vm2, %v5467_v43  ;;  %v3431_v56 = vshll.u32 %v5493_v35, 16  ;;  %v3436_v45 = vshrl.u32 %v5494_v40, 16  ;;  %v5500_v38 = vld [vmem:[%s8417_s0 + $0x148] sm:$0xf] }
  0xf1   :  { %v5516_v59 = vcombine.low %v3378_v6, %v3392_v54  ;;  %v3414_v60 = vor.u32 %v3413_v47, %v3410_v37  ;;  %6072 = vmatmul.mubr.msk.bf16.vlgmr.msra.gmra.mxu0 %vm334_vm2, %v5468_v44  ;;  %v3424_v62 = vrot.slane %v3422_v50, 4  ;;  %v3427_v63 = vrot.slane %v3425_v13, 5  ;;  %v7312_v2 = vpop.f32.mrf.mxu0  ;;  %v7314_v4 = vpop.f32.mrf.mxu1  ;;  %v5501_v39 = vld [vmem:[%s8417_s0 + $0x14c] sm:$0x1]  ;;  %v5502_v44 = vld [vmem:[%s8417_s0 + $0x168] sm:$0xf] }
  0xf2   :  { %v3406_v5 = vsel %vm6298_vm3, %v3401_v55, %v7274_v33  ;;  %6106 = vmatpush3.bf16.msra.mxu0 %v7078_v14  ;;  %v3433_v7 = vrot.slane %v3431_v56, 5  ;;  %v3438_v8 = vrot.slane %v3436_v45, 4  ;;  %v3439_v9 = vshll.u32 %v5494_v40, 16  ;;  %v5456_v14 = vld [vmem:[%s8417_s0 + $0xc8] sm:$0xf] }
  0xf3   :  { %6089 = vmatprep.mubr.msk.bf16.mxu1 %vm334_vm2, %v5516_v59  ;;  %v3415_v11 = vrot.slane %v3414_v60, 4  ;;  %v3428_v12 = vor.u32 %v3427_v63, %v3424_v62  ;;  %v3445_v24 = vshll.u32 %v5495_v49, 16  ;;  %v3450_v26 = vshrl.u32 %v5496_v58, 16  ;;  %6141 = vmatprep.subr.bf16.mxu0 %v7290_v46  ;;  %v7331_v18 = vpop.f32.mrf.mxu0  ;;  %v7333_v19 = vpop.f32.mrf.mxu1  ;;  %v5503_v45 = vld [vmem:[%s8417_s0 + $0x16c] sm:$0x1] }
  0xf4   :  { %v3441_v20 = vrot.slane %v3439_v9, 5  ;;  %v3453_v21 = vshll.u32 %v5496_v58, 16  ;;  %v3459_v22 = vshll.u32 %v5497_v0, 16  ;;  %v3464_v23 = vshrl.u32 %v5498_v1, 16 }
  0xf5   :  { %v3420_v36 = vsel %vm6298_vm3, %v3415_v11, %v3419_v48  ;;  %v3429_v27 = vrot.slane %v3428_v12, 4  ;;  %v3447_v28 = vrot.slane %v3445_v24, 5  ;;  %v3452_v15 = vrot.slane %v3450_v26, 4  ;;  %v7345_v33 = vpop.f32.mrf.mxu1  ;;  %v5506_v11 = vld [vmem:[%s8417_s0 + $0x1a8] sm:$0xf] }
  0xf6   :  { %v5517_v34 = vcombine.low %v3406_v5, %v3420_v36  ;;  %v3442_v35 = vor.u32 %v3441_v20, %v3438_v8  ;;  %v3455_v6 = vrot.slane %v3453_v21, 5  ;;  %v7347_v37 = vrot.slane %v3459_v22, 5  ;;  %v5507_v21 = vld [vmem:[%s8417_s0 + $0x1ac] sm:$0x1] }
  0xf7   :  { %v3434_v40 = vsel %vm6298_vm3, %v3429_v27, %v3433_v7  ;;  %v3466_v51 = vrot.slane %v3464_v23, 4  ;;  %v3467_v42 = vshll.u32 %v5498_v1, 16  ;;  %v3473_v43 = vshll.u32 %v5499_v10, 16  ;;  %v7360_v47 = vpop.f32.mrf.mxu0  ;;  %v5505_v10 = vld [vmem:[%s8417_s0 + $0x18c] sm:$0x1] }
  0xf8   :  { %6090 = vmatmul.mubr.msk.bf16.vlgmr.msra.gmra.mxu1 %vm334_vm2, %v5517_v34  ;;  %v3443_v48 = vrot.slane %v3442_v35, 4  ;;  %v3456_v49 = vor.u32 %v3455_v6, %v3452_v15  ;;  %v5469_v50 = vcombine.low %v5455_v16, %v5456_v14  ;;  %v5470_v13 = vcombine.low %v5457_v25, %v5458_v30  ;;  %v7363_v54 = vpop.f32.mrf.mxu1  ;;  %v5459_v27 = vld [vmem:[%s8417_s0 + $0x148] sm:$0xf] }
  0xf9   :  { %6124 = vmatpush3.bf16.msra.mxu1 %v7118_v52  ;;  %v3469_v55 = vrot.slane %v3467_v42, 5  ;;  %v3475_v56 = vrot.slane %v3473_v43, 5  ;;  %v3478_v58 = vshrl.u32 %v5500_v38, 16  ;;  %v3481_v59 = vshll.u32 %v5500_v38, 16  ;;  %v7369_v60 = vpop.f32.mrf.mxu0  ;;  %v5504_v52 = vld [vmem:[%s8417_s0 + $0x188] sm:$0xf] }
  0xfa   :  { %v3448_v62 = vsel %vm6298_vm3, %v3443_v48, %v3447_v28  ;;  %v3457_v63 = vrot.slane %v3456_v49, 4  ;;  %6075 = vmatprep.mubr.msk.bf16.mxu0 %vm334_vm2, %v5469_v50  ;;  %v3487_v0 = vshll.u32 %v5501_v39, 16  ;;  %v3492_v1 = vshrl.u32 %v5502_v44, 16  ;;  %6159 = vmatprep.subr.bf16.mxu1 %v7343_v31  ;;  %v7387_v24 = vpop.f32.mrf.mxu1  ;;  %v5460_v28 = vld [vmem:[%s8417_s0 + $0x168] sm:$0xf] }
  0xfb   :  { %v5518_v5 = vcombine.low %v3434_v40, %v3448_v62  ;;  %v3470_v7 = vor.u32 %v3469_v55, %v3466_v51  ;;  %6076 = vmatmul.mubr.msk.bf16.gmra.mxu0 %vm334_vm2, %v5470_v13  ;;  %v3480_v8 = vrot.slane %v3478_v58, 4  ;;  %v3483_v9 = vrot.slane %v3481_v59, 5  ;;  %v7385_v12 = vpop.f32.mrf.mxu0  ;;  %v5462_v42 = vld [vmem:[%s8417_s0 + $0x1a8] sm:$0xf]  ;;  %v5509_v55 = vld [vmem:[%s8417_s0 + $0x1cc] sm:$0x1] }
  0xfc   :  { %v3462_v26 = vsel %vm6298_vm3, %v3457_v63, %v7347_v37  ;;  %v3489_v16 = vrot.slane %v3487_v0, 5  ;;  %v3494_v14 = vrot.slane %v3492_v1, 4  ;;  %v3495_v20 = vshll.u32 %v5502_v44, 16  ;;  %v5461_v37 = vld [vmem:[%s8417_s0 + $0x188] sm:$0xf]  ;;  %v7412_v43 = vpop.f32.mrf.mxu1 }
  0xfd   :  { %6093 = vmatprep.mubr.msk.bf16.mxu1 %vm334_vm2, %v5518_v5  ;;  %v3471_v22 = vrot.slane %v3470_v7, 4  ;;  %v3484_v23 = vor.u32 %v3483_v9, %v3480_v8  ;;  %v3501_v25 = vshll.u32 %v5503_v45, 16  ;;  %v3506_v36 = vshrl.u32 %v5504_v52, 16  ;;  %v7402_v15 = vpop.f32.mrf.mxu0  ;;  %v5508_v13 = vld [vmem:[%s8417_s0 + $0x1c8] sm:$0xf] }
  0xfe   :  { %v3497_v30 = vrot.slane %v3495_v20, 5  ;;  %v3509_v34 = vshll.u32 %v5504_v52, 16  ;;  %v3515_v35 = vshll.u32 %v5505_v10, 16  ;;  %v3520_v6 = vshrl.u32 %v5506_v11, 16  ;;  %v5510_v62 = vld [vmem:[%s8417_s0 + $0x1e8] sm:$0xf] }
  0xff   :  { %v3476_v38 = vsel %vm6298_vm3, %v3471_v22, %v3475_v56  ;;  %v3485_v39 = vrot.slane %v3484_v23, 4  ;;  %v3503_v40 = vrot.slane %v3501_v25, 5  ;;  %v3508_v51 = vrot.slane %v3506_v36, 4  ;;  %v5511_v9 = vld [vmem:[%s8417_s0 + $0x1ec] sm:$0x1] }
 0x100   :  { %v5519_v44 = vcombine.low %v3462_v26, %v3476_v38  ;;  %v3498_v48 = vor.u32 %v3497_v30, %v3494_v14  ;;  %v3511_v49 = vrot.slane %v3509_v34, 5  ;;  %v3517_v50 = vrot.slane %v3515_v35, 5  ;;  %v5512_v23 = vld [vmem:[%s8417_s0 + $0x208] sm:$0xf]  ;;  %v5513_v30 = vld [vmem:[%s8417_s0 + $0x20c] sm:$0x1] }
 0x101   :  { %v3490_v56 = vsel %vm6298_vm3, %v3485_v39, %v3489_v16  ;;  %v3522_v45 = vrot.slane %v3520_v6, 4  ;;  %v3523_v58 = vshll.u32 %v5506_v11, 16  ;;  %v3529_v59 = vshll.u32 %v5507_v21, 16  ;;  %v7425_v63 = vpop.f32.mrf.mxu0  ;;  %v7433_v16 = vpop.f32.mrf.mxu1  ;;  %v5514_v34 = vld [vmem:[%s8417_s0 + $0x228] sm:$0xf] }
 0x102   :  { %6094 = vmatmul.mubr.msk.bf16.gmra.mxu1 %vm334_vm2, %v5519_v44  ;;  %v3499_v0 = vrot.slane %v3498_v48, 4  ;;  %v3512_v1 = vor.u32 %v3511_v49, %v3508_v51  ;;  %v5471_v52 = vcombine.low %v5459_v27, %v5460_v28  ;;  %v5472_v5 = vcombine.low %v5461_v37, %v5462_v42  ;;  %v5463_v49 = vld [vmem:[%s8417_s0 + $0x1c8] sm:$0xf] }
 0x103   :  { %v3525_v7 = vrot.slane %v3523_v58, 5  ;;  %v3531_v8 = vrot.slane %v3529_v59, 5  ;;  %v3534_v10 = vshrl.u32 %v5508_v13, 16  ;;  %v3537_v11 = vshll.u32 %v5508_v13, 16  ;;  %v7431_v26 = vpop.f32.mrf.mxu0  ;;  %v5465_v13 = vld [vmem:[%s8417_s0 + $0x208] sm:$0xf] }
 0x104   :  { %v3504_v14 = vsel %vm6298_vm3, %v3499_v0, %v3503_v40  ;;  %v3513_v20 = vrot.slane %v3512_v1, 4  ;;  %6079 = vmatprep.mubr.msk.bf16.mxu0 %vm334_vm2, %v5471_v52  ;;  %v3543_v21 = vshll.u32 %v5509_v55, 16  ;;  %v3548_v22 = vshrl.u32 %v5510_v62, 16  ;;  %v5515_v40 = vld [vmem:[%s8417_s0 + $0x22c] sm:$0x1]  ;;  %v7465_v55 = vpop.f32.mrf.mxu1 }
 0x105   :  { %v5520_v25 = vcombine.low %v3490_v56, %v3504_v14  ;;  %v3526_v36 = vor.u32 %v3525_v7, %v3522_v45  ;;  %6080 = vmatmul.mubr.msk.bf16.gmra.mxu0 %vm334_vm2, %v5472_v5  ;;  %v3536_v27 = vrot.slane %v3534_v10, 4  ;;  %v3539_v28 = vrot.slane %v3537_v11, 5  ;;  %v7448_v35 = vpop.f32.mrf.mxu0  ;;  %v5466_v0 = vld [vmem:[%s8417_s0 + $0x228] sm:$0xf] }
 0x106   :  { %v3518_v6 = vsel %vm6298_vm3, %v3513_v20, %v3517_v50  ;;  %v3545_v37 = vrot.slane %v3543_v21, 5  ;;  %v3550_v38 = vrot.slane %v3548_v22, 4  ;;  %v3551_v39 = vshll.u32 %v5510_v62, 16  ;;  %v5464_v50 = vld [vmem:[%s8417_s0 + $0x1e8] sm:$0xf] }
 0x107   :  { %6097 = vmatprep.mubr.msk.bf16.mxu1 %vm334_vm2, %v5520_v25  ;;  %v3527_v51 = vrot.slane %v3526_v36, 4  ;;  %v3540_v42 = vor.u32 %v3539_v28, %v3536_v27  ;;  %v3557_v44 = vshll.u32 %v5511_v9, 16  ;;  %v3562_v48 = vshrl.u32 %v5512_v23, 16  ;;  %v7467_v56 = vpop.f32.mrf.mxu0  ;;  %v5566_v9 = vld [vmem:[%s8417_s0 + $0x30] sm:$0xf]  ;;  %v7485_v27 = vpop.f32.mrf.mxu1 }
 0x108   :  { %v3553_v45 = vrot.slane %v3551_v39, 5  ;;  %v3565_v58 = vshll.u32 %v5512_v23, 16  ;;  %v3571_v59 = vshll.u32 %v5513_v30, 16  ;;  %v3576_v62 = vshrl.u32 %v5514_v34, 16  ;;  %v5567_v21 = vld [vmem:[%s8417_s0 + $0x34] sm:$0x1] }
 0x109   :  { %v3532_v1 = vsel %vm6298_vm3, %v3527_v51, %v3531_v8  ;;  %v3541_v52 = vrot.slane %v3540_v42, 4  ;;  %v3559_v5 = vrot.slane %v3557_v44, 5  ;;  %v3564_v7 = vrot.slane %v3562_v48, 4  ;;  %v5568_v22 = vld [vmem:[%s8417_s0 + $0x50] sm:$0xf] }
 0x10a   :  { %v5521_v10 = vcombine.low %v3518_v6, %v3532_v1  ;;  %v3554_v11 = vor.u32 %v3553_v45, %v3550_v38  ;;  %v3567_v14 = vrot.slane %v3565_v58, 5  ;;  %v3573_v20 = vrot.slane %v3571_v59, 5  ;;  %v5569_v51 = vld [vmem:[%s8417_s0 + $0x54] sm:$0x1] }
 0x10b   :  { %v3546_v8 = vsel %vm6298_vm3, %v3541_v52, %v3545_v37  ;;  %v3578_v23 = vrot.slane %v3576_v62, 4  ;;  %v3579_v25 = vshll.u32 %v5514_v34, 16  ;;  %v3585_v36 = vshll.u32 %v5515_v40, 16  ;;  %v7487_v28 = vpop.f32.mrf.mxu0  ;;  %v5570_v37 = vld [vmem:[%s8417_s0 + $0x70] sm:$0xf] }
 0x10c   :  { %6098 = vmatmul.mubr.msk.bf16.gmra.mxu1 %vm334_vm2, %v5521_v10  ;;  %v3555_v30 = vrot.slane %v3554_v11, 4  ;;  %v3568_v6 = vor.u32 %v3567_v14, %v3564_v7  ;;  %v5473_v38 = vcombine.low %v5463_v49, %v5464_v50  ;;  %v5474_v39 = vcombine.low %v5465_v13, %v5466_v0  ;;  %v5571_v48 = vld [vmem:[%s8417_s0 + $0x74] sm:$0x1]  ;;  %v5572_v52 = vld [vmem:[%s8417_s0 + $0x90] sm:$0xf]  ;;  %v7508_v7 = vpop.f32.mrf.mxu1 }
 0x10d   :  { %v3581_v34 = vrot.slane %v3579_v25, 5  ;;  %v3587_v40 = vrot.slane %v3585_v36, 5  ;;  %v3993_v42 = vshrl.u32 %v5566_v9, 16  ;;  %v3996_v44 = vshll.u32 %v5566_v9, 16  ;;  %v7499_v45 = vpop.f32.mrf.mxu0  ;;  %v5573_v25 = vld [vmem:[%s8417_s0 + $0x94] sm:$0x1] }
 0x10e   :  { %v3560_v49 = vsel %vm6298_vm3, %v3555_v30, %v3559_v5  ;;  %v3569_v50 = vrot.slane %v3568_v6, 4  ;;  %6083 = vmatprep.mubr.msk.bf16.mxu0 %vm334_vm2, %v5473_v38  ;;  %v4002_v13 = vshll.u32 %v5567_v21, 16  ;;  %v4007_v58 = vshrl.u32 %v5568_v22, 16 }
 0x10f   :  { %v5522_v59 = vcombine.low %v3546_v8, %v3560_v49  ;;  %v3582_v62 = vor.u32 %v3581_v34, %v3578_v23  ;;  %6084 = vmatmul.mubr.msk.bf16.gmra.mxu0 %vm334_vm2, %v5474_v39  ;;  %v3995_v0 = vrot.slane %v3993_v42, 4  ;;  %v3998_v1 = vrot.slane %v3996_v44, 5  ;;  %v7510_v9 = vpop.f32.mrf.mxu0  ;;  %v5534_v49 = vld [vmem:[%s8417_s0 + $0x50] sm:$0xf] }
 0x110   :  { %v3574_v5 = vsel %vm6298_vm3, %v3569_v50, %v3573_v20  ;;  %v4004_v10 = vrot.slane %v4002_v13, 5  ;;  %v4009_v11 = vrot.slane %v4007_v58, 4  ;;  %v4010_v14 = vshll.u32 %v5568_v22, 16  ;;  %v5533_v20 = vld [vmem:[%s8417_s0 + $0x30] sm:$0xf]  ;;  %v7528_v50 = vpop.f32.mrf.mxu1 }
 0x111   :  { %6101 = vmatprep.mubr.msk.bf16.mxu1 %vm334_vm2, %v5522_v59  ;;  %v3583_v21 = vrot.slane %v3582_v62, 4  ;;  %v3999_v8 = vor.u32 %v3998_v1, %v3995_v0  ;;  %v4016_v23 = vshll.u32 %v5569_v51, 16  ;;  %v4021_v36 = vshrl.u32 %v5570_v37, 16  ;;  %v7518_v30 = vpop.f32.mrf.mxu0  ;;  %v5535_v62 = vld [vmem:[%s8417_s0 + $0x70] sm:$0xf] }
 0x112   :  { %v4012_v6 = vrot.slane %v4010_v14, 5  ;;  %v4024_v38 = vshll.u32 %v5570_v37, 16  ;;  %v4030_v39 = vshll.u32 %v5571_v48, 16  ;;  %v4035_v34 = vshrl.u32 %v5572_v52, 16 }
 0x113   :  { %v3588_v22 = vsel %vm6298_vm3, %v3583_v21, %v3587_v40  ;;  %v4000_v42 = vrot.slane %v3999_v8, 4  ;;  %v4018_v51 = vrot.slane %v4016_v23, 5  ;;  %v4023_v44 = vrot.slane %v4021_v36, 4  ;;  %v7530_v13 = vpop.f32.mrf.mxu0  ;;  %v5536_v40 = vld [vmem:[%s8417_s0 + $0x90] sm:$0xf] }
 0x114   :  { %v5523_v37 = vcombine.low %v3574_v5, %v3588_v22  ;;  %v4013_v48 = vor.u32 %v4012_v6, %v4009_v11  ;;  %v4026_v58 = vrot.slane %v4024_v38, 5  ;;  %v4032_v59 = vrot.slane %v4030_v39, 5  ;;  %v5574_v5 = vld [vmem:[%s8417_s0 + $0xb0] sm:$0xf] }
 0x115   :  { %v4005_v0 = vsel %vm6298_vm3, %v4000_v42, %v4004_v10  ;;  %v4037_v1 = vrot.slane %v4035_v34, 4  ;;  %v4038_v14 = vshll.u32 %v5572_v52, 16  ;;  %v4044_v21 = vshll.u32 %v5573_v25, 16  ;;  %v7543_v11 = vpop.f32.mrf.mxu0  ;;  %v5575_v52 = vld [vmem:[%s8417_s0 + $0xb4] sm:$0x1] }
 0x116   :  { %6102 = vmatmul.mubr.msk.bf16.gmra.mxu1 %vm334_vm2, %v5523_v37  ;;  %v4014_v8 = vrot.slane %v4013_v48, 4  ;;  %v4027_v23 = vor.u32 %v4026_v58, %v4023_v44  ;;  %v5549_v36 = vcombine.low %v5533_v20, %v5534_v49  ;;  %v7548_v6 = vadd.f32 %v7239_v57, %v7287_v41  ;;  %v5576_v10 = vld [vmem:[%s8417_s0 + $0xd0] sm:$0xf]  ;;  %v5577_v42 = vld [vmem:[%s8417_s0 + $0xd4] sm:$0x1] }
 0x117   :  { %v4040_v25 = vrot.slane %v4038_v14, 5  ;;  %v4046_v38 = vrot.slane %v4044_v21, 5  ;;  %v5550_v39 = vcombine.low %v5535_v62, %v5536_v40  ;;  %v7558_v34 = vadd.f32 %v7248_v3, %v7295_v61  ;;  %v7560_v20 = vpop.f32.mrf.mxu1  ;;  %v7562_v22 = vpop.f32.mrf.mxu0  ;;  %v5578_v58 = vld [vmem:[%s8417_s0 + $0xf0] sm:$0xf]  ;;  %v5579_v21 = vld [vmem:[%s8417_s0 + $0xf4] sm:$0x1] }
 0x118   :  { %v4019_v57 = vsel %vm6298_vm3, %v4014_v8, %v4018_v51  ;;  %v4028_v41 = vrot.slane %v4027_v23, 4  ;;  %6107 = vmatprep.mubr.msk.bf16.mxu0 %vm334_vm2, %v5549_v36  ;;  %v4049_v44 = vshrl.u32 %v5574_v5, 16  ;;  %v4052_v49 = vshll.u32 %v5574_v5, 16 }
 0x119   :  { %v5598_v37 = vcombine.low %v4005_v0, %v4019_v57  ;;  %v4041_v48 = vor.u32 %v4040_v25, %v4037_v1  ;;  %6108 = vmatmul.mubr.msk.bf16.vlgmr.msra.gmra.mxu0 %vm334_vm2, %v5550_v39  ;;  %v4058_v3 = vshll.u32 %v5575_v52, 16  ;;  %v4063_v61 = vshrl.u32 %v5576_v10, 16  ;;  %v7574_v51 = vpop.f32.mrf.mxu1  ;;  %v7576_v62 = vpop.f32.mrf.mxu0  ;;  %v5581_v57 = vld [vmem:[%s8417_s0 + $0x114] sm:$0x1] }
 0x11a   :  { %v4033_v40 = vsel %vm6298_vm3, %v4028_v41, %v4032_v59  ;;  %6142 = vmatpush3.bf16.msra.mxu0 %v7290_v46  ;;  %v4051_v14 = vrot.slane %v4049_v44, 4  ;;  %v4054_v0 = vrot.slane %v4052_v49, 5  ;;  %v4066_v1 = vshll.u32 %v5576_v10, 16  ;;  %v5580_v10 = vld [vmem:[%s8417_s0 + $0x110] sm:$0xf] }
 0x11b   :  { %6125 = vmatprep.mubr.msk.bf16.mxu1 %vm334_vm2, %v5598_v37  ;;  %v4042_v5 = vrot.slane %v4041_v48, 4  ;;  %v4060_v8 = vrot.slane %v4058_v3, 5  ;;  %v4065_v23 = vrot.slane %v4063_v61, 4  ;;  %v4072_v36 = vshll.u32 %v5577_v42, 16  ;;  %v7585_v52 = vpop.f32.mrf.mxu1  ;;  %v7587_v25 = vpop.f32.mrf.mxu0 }
 0x11c   :  { %8423 = vst [vmem:[#allocation8_spill] sm:$0xff] %v7585_v52  ;;  %v4055_v59 = vor.u32 %v4054_v0, %v4051_v14  ;;  %v4068_v39 = vrot.slane %v4066_v1, 5  ;;  %v7591_v46 = vadd.f32 %v7262_v17, %v7312_v2  ;;  %v4077_v41 = vshrl.u32 %v5578_v58, 16  ;;  %v5537_v17 = vld [vmem:[%s8417_s0 + $0xb0] sm:$0xf] }
 0x11d   :  { %v4047_v42 = vsel %vm6298_vm3, %v4042_v5, %v4046_v38  ;;  %v4074_v44 = vrot.slane %v4072_v36, 5  ;;  %v4080_v49 = vshll.u32 %v5578_v58, 16  ;;  %v4086_v37 = vshll.u32 %v5579_v21, 16  ;;  %v7604_v2 = vpop.f32.mrf.mxu0  ;;  %v5538_v0 = vld [vmem:[%s8417_s0 + $0xd0] sm:$0xf]  ;;  %v7612_v58 = vpop.f32.mrf.mxu1 }
 0x11e   :  { %v5599_v48 = vcombine.low %v4033_v40, %v4047_v42  ;;  %v4056_v3 = vrot.slane %v4055_v59, 4  ;;  %v4069_v61 = vor.u32 %v4068_v39, %v4065_v23  ;;  %v4079_v14 = vrot.slane %v4077_v41, 4  ;;  %v5539_v38 = vld [vmem:[%s8417_s0 + $0xf0] sm:$0xf]  ;;  %8424 = vst [vmem:[#allocation9_spill] sm:$0xff] %v7612_v58 }
 0x11f   :  { %v4082_v1 = vrot.slane %v4080_v49, 5  ;;  %v4088_v21 = vrot.slane %v4086_v37, 5  ;;  %v4091_v5 = vshrl.u32 %v5580_v10, 16  ;;  %v4094_v36 = vshll.u32 %v5580_v10, 16  ;;  %v5540_v40 = vld [vmem:[%s8417_s0 + $0x110] sm:$0xf]  ;;  %v7617_v23 = vpop.f32.mrf.mxu0 }
 0x120   :  { %6126 = vmatmul.mubr.msk.bf16.vlgmr.msra.gmra.mxu1 %vm334_vm2, %v5599_v48  ;;  %v4061_v59 = vsel %vm6298_vm3, %v4056_v3, %v4060_v8  ;;  %v4070_v39 = vrot.slane %v4069_v61, 4  ;;  %v4100_v41 = vshll.u32 %v5581_v57, 16  ;;  %v7624_v42 = vadd.f32 %v7272_v29, %v7331_v18  ;;  %v5582_v10 = vld [vmem:[%s8417_s0 + $0x150] sm:$0xf]  ;;  %v5583_v8 = vld [vmem:[%s8417_s0 + $0x154] sm:$0x1] }
 0x121   :  { %6160 = vmatpush3.bf16.msra.mxu1 %v7343_v31  ;;  %v4083_v49 = vor.u32 %v4082_v1, %v4079_v14  ;;  %v4093_v37 = vrot.slane %v4091_v5, 4  ;;  %v4096_v58 = vrot.slane %v4094_v36, 5  ;;  %v5551_v52 = vcombine.low %v5537_v17, %v5538_v0  ;;  %v5584_v57 = vld [vmem:[%s8417_s0 + $0x170] sm:$0xf]  ;;  %v7636_v29 = vpop.f32.mrf.mxu0  ;;  %v5585_v17 = vld [vmem:[%s8417_s0 + $0x174] sm:$0x1] }
 0x122   :  { %v4075_v18 = vsel %vm6298_vm3, %v4070_v39, %v4074_v44  ;;  %v4102_v48 = vrot.slane %v4100_v41, 5  ;;  %v7642_v31 = vadd.f32 %v7297_v53, %v7360_v47  ;;  %v5552_v3 = vcombine.low %v5539_v38, %v5540_v40  ;;  %v7647_v61 = vpop.f32.mrf.mxu1  ;;  %v5586_v36 = vld [vmem:[%s8417_s0 + $0x190] sm:$0xf] }
 0x123   :  { %v5600_v14 = vcombine.low %v4061_v59, %v4075_v18  ;;  %v4084_v0 = vrot.slane %v4083_v49, 4  ;;  %v4097_v1 = vor.u32 %v4096_v58, %v4093_v37  ;;  %6111 = vmatprep.mubr.msk.bf16.mxu0 %vm334_vm2, %v5551_v52  ;;  %v7652_v44 = vadd.f32 %v7314_v4, %v7369_v60  ;;  %v5587_v59 = vld [vmem:[%s8417_s0 + $0x194] sm:$0x1] }
 0x124   :  { %6112 = vmatmul.mubr.msk.bf16.gmra.mxu0 %vm334_vm2, %v5552_v3  ;;  %v4105_v53 = vshrl.u32 %v5582_v10, 16  ;;  %v4108_v47 = vshll.u32 %v5582_v10, 16  ;;  %v4114_v38 = vshll.u32 %v5583_v8, 16  ;;  %v4119_v5 = vshrl.u32 %v5584_v57, 16  ;;  %v7658_v40 = vpop.f32.mrf.mxu1  ;;  %v5588_v8 = vld [vmem:[%s8417_s0 + $0x1b0] sm:$0xf] }
 0x125   :  { %8425 = vst [vmem:[#allocation10_spill] sm:$0xff] %v7658_v40  ;;  %6129 = vmatprep.mubr.msk.bf16.mxu1 %vm334_vm2, %v5600_v14  ;;  %v4089_v52 = vsel %vm6298_vm3, %v4084_v0, %v4088_v21  ;;  %v4098_v58 = vrot.slane %v4097_v1, 4  ;;  %v4122_v4 = vshll.u32 %v5584_v57, 16  ;;  %v4128_v60 = vshll.u32 %v5585_v17, 16  ;;  %v7666_v39 = vpop.f32.mrf.mxu0  ;;  %v5589_v14 = vld [vmem:[%s8417_s0 + $0x1b4] sm:$0x1] }
 0x126   :  { %v4107_v41 = vrot.slane %v4105_v53, 4  ;;  %v4110_v10 = vrot.slane %v4108_v47, 5  ;;  %v4116_v49 = vrot.slane %v4114_v38, 5  ;;  %v4121_v37 = vrot.slane %v4119_v5, 4  ;;  %v7671_v18 = vpop.f32.mrf.mxu1 }
 0x127   :  { %8426 = vst [vmem:[#allocation11_spill] sm:$0xff] %v7671_v18  ;;  %v4103_v21 = vsel %vm6298_vm3, %v4098_v58, %v4102_v48  ;;  %v4124_v57 = vrot.slane %v4122_v4, 5  ;;  %v4130_v3 = vrot.slane %v4128_v60, 5  ;;  %v7677_v17 = vadd.f32 %v7333_v19, %v7385_v12  ;;  %v7682_v0 = vpop.f32.mrf.mxu0  ;;  %v5541_v48 = vld [vmem:[%s8417_s0 + $0x150] sm:$0xf] }
 0x128   :  { %v5601_v1 = vcombine.low %v4089_v52, %v4103_v21  ;;  %v4111_v53 = vor.u32 %v4110_v10, %v4107_v41  ;;  %v4133_v47 = vshrl.u32 %v5586_v36, 16  ;;  %v4136_v38 = vshll.u32 %v5586_v36, 16  ;;  %v7687_v5 = vpop.f32.mrf.mxu1  ;;  %v5542_v60 = vld [vmem:[%s8417_s0 + $0x170] sm:$0xf] }
 0x129   :  { %8427 = vst [vmem:[#allocation12_spill] sm:$0xff] %v7687_v5  ;;  %v4125_v58 = vor.u32 %v4124_v57, %v4121_v37  ;;  %v4142_v4 = vshll.u32 %v5587_v59, 16  ;;  %v4147_v19 = vshrl.u32 %v5588_v8, 16  ;;  %v4150_v12 = vshll.u32 %v5588_v8, 16  ;;  %v7692_v18 = vpop.f32.mrf.mxu0  ;;  %v5543_v21 = vld [vmem:[%s8417_s0 + $0x190] sm:$0xf] }
 0x12a   :  { %6130 = vmatmul.mubr.msk.bf16.gmra.mxu1 %vm334_vm2, %v5601_v1  ;;  %v4112_v52 = vrot.slane %v4111_v53, 4  ;;  %v4135_v36 = vrot.slane %v4133_v47, 4  ;;  %v4138_v41 = vrot.slane %v4136_v38, 5  ;;  %v4156_v10 = vshll.u32 %v5589_v14, 16  ;;  %v5544_v5 = vld [vmem:[%s8417_s0 + $0x1b0] sm:$0xf] }
 0x12b   :  { %v4126_v37 = vrot.slane %v4125_v58, 4  ;;  %v4144_v59 = vrot.slane %v4142_v4, 5  ;;  %v4149_v57 = vrot.slane %v4147_v19, 4  ;;  %v4152_v8 = vrot.slane %v4150_v12, 5  ;;  %v7701_v40 = vpop.f32.mrf.mxu0  ;;  %v5590_v38 = vld [vmem:[%s8417_s0 + $0x1d0] sm:$0xf] }
 0x12c   :  { %v4117_v1 = vsel %vm6298_vm3, %v4112_v52, %v4116_v49  ;;  %v4139_v53 = vor.u32 %v4138_v41, %v4135_v36  ;;  %v4158_v47 = vrot.slane %v4156_v10, 5  ;;  %v7707_v14 = vadd.f32 %v7345_v33, %v7402_v15  ;;  %v5591_v58 = vld [vmem:[%s8417_s0 + $0x1d4] sm:$0x1]  ;;  %v7715_v4 = vpop.f32.mrf.mxu1  ;;  %v5592_v33 = vld [vmem:[%s8417_s0 + $0x1f0] sm:$0xf] }
 0x12d   :  { %8428 = vst [vmem:[#allocation13_spill] sm:$0xff] %v7715_v4  ;;  %v4131_v19 = vsel %vm6298_vm3, %v4126_v37, %v4130_v3  ;;  %v4153_v49 = vor.u32 %v4152_v8, %v4149_v57  ;;  %v5553_v12 = vcombine.low %v5541_v48, %v5542_v60  ;;  %v7721_v52 = vadd.f32 %v7363_v54, %v7425_v63  ;;  %v5593_v15 = vld [vmem:[%s8417_s0 + $0x1f4] sm:$0x1]  ;;  %v5594_v57 = vld [vmem:[%s8417_s0 + $0x210] sm:$0xf] }
 0x12e   :  { %v5602_v36 = vcombine.low %v4117_v1, %v4131_v19  ;;  %v4140_v41 = vrot.slane %v4139_v53, 4  ;;  %v5554_v10 = vcombine.low %v5543_v21, %v5544_v5  ;;  %v7731_v3 = vadd.f32 %v7387_v24, %v7431_v26  ;;  %v7733_v48 = vpop.f32.mrf.mxu1  ;;  %v5595_v1 = vld [vmem:[%s8417_s0 + $0x214] sm:$0x1] }
 0x12f   :  { %8429 = vst [vmem:[#allocation14_spill] sm:$0xff] %v7733_v48  ;;  %v4154_v60 = vrot.slane %v4153_v49, 4  ;;  %6115 = vmatprep.mubr.msk.bf16.mxu0 %vm334_vm2, %v5553_v12  ;;  %v4161_v54 = vshrl.u32 %v5590_v38, 16  ;;  %v4164_v63 = vshll.u32 %v5590_v38, 16  ;;  %v4170_v37 = vshll.u32 %v5591_v58, 16  ;;  %v7739_v8 = vpop.f32.mrf.mxu0 }
 0x130   :  { %6133 = vmatprep.mubr.msk.bf16.mxu1 %vm334_vm2, %v5602_v36  ;;  %v4145_v24 = vsel %vm6298_vm3, %v4140_v41, %v4144_v59  ;;  %6116 = vmatmul.mubr.msk.bf16.gmra.mxu0 %vm334_vm2, %v5554_v10  ;;  %v4175_v26 = vshrl.u32 %v5592_v33, 16  ;;  %v4178_v5 = vshll.u32 %v5592_v33, 16  ;;  %v4184_v21 = vshll.u32 %v5593_v15, 16  ;;  %v7748_v53 = vpop.f32.mrf.mxu1  ;;  %v5596_v59 = vld [vmem:[%s8417_s0 + $0x230] sm:$0xf] }
 0x131   :  { %8430 = vst [vmem:[#allocation15_spill] sm:$0xff] %v7748_v53  ;;  %v4159_v38 = vsel %vm6298_vm3, %v4154_v60, %v4158_v47  ;;  %v4163_v58 = vrot.slane %v4161_v54, 4  ;;  %v4166_v19 = vrot.slane %v4164_v63, 5  ;;  %v4172_v49 = vrot.slane %v4170_v37, 5  ;;  %v7755_v12 = vpop.f32.mrf.mxu0  ;;  %v5597_v10 = vld [vmem:[%s8417_s0 + $0x234] sm:$0x1] }
 0x132   :  { %v5603_v33 = vcombine.low %v4145_v24, %v4159_v38  ;;  %v4177_v15 = vrot.slane %v4175_v26, 4  ;;  %v4180_v36 = vrot.slane %v4178_v5, 5  ;;  %v4186_v41 = vrot.slane %v4184_v21, 5  ;;  %v7760_v53 = vpop.f32.mrf.mxu1  ;;  %v5545_v37 = vld [vmem:[%s8417_s0 + $0x1d0] sm:$0xf] }
 0x133   :  { %8431 = vst [vmem:[#allocation16_spill] sm:$0xff] %v7760_v53  ;;  %v4167_v47 = vor.u32 %v4166_v19, %v4163_v58  ;;  %v7764_v60 = vadd.f32 %v7412_v43, %v7448_v35  ;;  %v4189_v54 = vshrl.u32 %v5594_v57, 16  ;;  %v4192_v63 = vshll.u32 %v5594_v57, 16  ;;  %v7769_v24 = vpop.f32.mrf.mxu0  ;;  %v5546_v58 = vld [vmem:[%s8417_s0 + $0x1f0] sm:$0xf] }
 0x134   :  { %6134 = vmatmul.mubr.msk.bf16.gmra.mxu1 %vm334_vm2, %v5603_v33  ;;  %v4181_v26 = vor.u32 %v4180_v36, %v4177_v15  ;;  %v4198_v5 = vshll.u32 %v5595_v1, 16  ;;  %v4203_v21 = vshrl.u32 %v5596_v59, 16  ;;  %v4206_v38 = vshll.u32 %v5596_v59, 16  ;;  %v5547_v53 = vld [vmem:[%s8417_s0 + $0x210] sm:$0xf] }
 0x135   :  { %v4168_v43 = vrot.slane %v4167_v47, 4  ;;  %v4191_v35 = vrot.slane %v4189_v54, 4  ;;  %v4194_v19 = vrot.slane %v4192_v63, 5  ;;  %v4212_v57 = vshll.u32 %v5597_v10, 16  ;;  %v7778_v48 = vpop.f32.mrf.mxu0  ;;  %v5548_v59 = vld [vmem:[%s8417_s0 + $0x230] sm:$0xf] }
 0x136   :  { %v4182_v4 = vrot.slane %v4181_v26, 4  ;;  %v4200_v33 = vrot.slane %v4198_v5, 5  ;;  %v4205_v15 = vrot.slane %v4203_v21, 4  ;;  %v4208_v1 = vrot.slane %v4206_v38, 5  ;;  %v7783_v36 = vpop.f32.mrf.mxu1  ;;  %v5648_v26 = vld [vmem:[%s8417_s0 + $0x38] sm:$0xf] }
 0x137   :  { %8432 = vst [vmem:[#allocation17_spill] sm:$0xff] %v7783_v36  ;;  %v4173_v47 = vsel %vm6298_vm3, %v4168_v43, %v4172_v49  ;;  %v4195_v10 = vor.u32 %v4194_v19, %v4191_v35  ;;  %v4214_v54 = vrot.slane %v4212_v57, 5  ;;  %v7789_v63 = vadd.f32 %v7433_v16, %v7467_v56  ;;  %v5649_v5 = vld [vmem:[%s8417_s0 + $0x3c] sm:$0x1]  ;;  %v5650_v16 = vld [vmem:[%s8417_s0 + $0x58] sm:$0xf] }
 0x138   :  { %v4187_v21 = vsel %vm6298_vm3, %v4182_v4, %v4186_v41  ;;  %v4209_v38 = vor.u32 %v4208_v1, %v4205_v15  ;;  %v5555_v36 = vcombine.low %v5545_v37, %v5546_v58  ;;  %v7801_v49 = vadd.f32 %v7465_v55, %v7487_v28  ;;  %v5651_v56 = vld [vmem:[%s8417_s0 + $0x5c] sm:$0x1]  ;;  %v7809_v43 = vpop.f32.mrf.mxu1  ;;  %v5652_v15 = vld [vmem:[%s8417_s0 + $0x78] sm:$0xf] }
 0x139   :  { %8433 = vst [vmem:[#allocation18_spill] sm:$0xff] %v7809_v43  ;;  %v5604_v35 = vcombine.low %v4173_v47, %v4187_v21  ;;  %v4196_v19 = vrot.slane %v4195_v10, 4  ;;  %v5556_v57 = vcombine.low %v5547_v53, %v5548_v59  ;;  %v7813_v4 = vadd.f32 %v7485_v27, %v7499_v45  ;;  %v7815_v41 = vpop.f32.mrf.mxu0 }
 0x13a   :  { %v4210_v55 = vrot.slane %v4209_v38, 4  ;;  %6119 = vmatprep.mubr.msk.bf16.mxu0 %vm334_vm2, %v5555_v36  ;;  %v4620_v28 = vshrl.u32 %v5648_v26, 16  ;;  %v4623_v37 = vshll.u32 %v5648_v26, 16  ;;  %v4629_v58 = vshll.u32 %v5649_v5, 16  ;;  %v7821_v1 = vpop.f32.mrf.mxu1  ;;  %v5653_v36 = vld [vmem:[%s8417_s0 + $0x7c] sm:$0x1] }
 0x13b   :  { %8434 = vst [vmem:[#allocation19_spill] sm:$0xff] %v7821_v1  ;;  %6137 = vmatprep.mubr.msk.bf16.mxu1 %vm334_vm2, %v5604_v35  ;;  %v4201_v27 = vsel %vm6298_vm3, %v4196_v19, %v4200_v33  ;;  %6120 = vmatmul.mubr.msk.bf16.gmra.mxu0 %vm334_vm2, %v5556_v57  ;;  %v4634_v45 = vshrl.u32 %v5650_v16, 16  ;;  %v4637_v53 = vshll.u32 %v5650_v16, 16  ;;  %v4643_v59 = vshll.u32 %v5651_v56, 16  ;;  %v7830_v47 = vpop.f32.mrf.mxu0  ;;  %v5654_v33 = vld [vmem:[%s8417_s0 + $0x98] sm:$0xf] }
 0x13c   :  { %v4215_v10 = vsel %vm6298_vm3, %v4210_v55, %v4214_v54  ;;  %v4622_v26 = vrot.slane %v4620_v28, 4  ;;  %v4625_v5 = vrot.slane %v4623_v37, 5  ;;  %v4631_v21 = vrot.slane %v4629_v58, 5  ;;  %v7837_v38 = vpop.f32.mrf.mxu1  ;;  %v5655_v57 = vld [vmem:[%s8417_s0 + $0x9c] sm:$0x1] }
 0x13d   :  { %8435 = vst [vmem:[#allocation20_spill] sm:$0xff] %v7837_v38  ;;  %v5605_v16 = vcombine.low %v4201_v27, %v4215_v10  ;;  %v4636_v56 = vrot.slane %v4634_v45, 4  ;;  %v4639_v35 = vrot.slane %v4637_v53, 5  ;;  %v4645_v19 = vrot.slane %v4643_v59, 5  ;;  %v7842_v1 = vpop.f32.mrf.mxu0  ;;  %v5615_v58 = vld [vmem:[%s8417_s0 + $0x38] sm:$0xf] }
 0x13e   :  { %v4626_v54 = vor.u32 %v4625_v5, %v4622_v26  ;;  %v7846_v55 = vadd.f32 %v7508_v7, %v7510_v9  ;;  %v4648_v28 = vshrl.u32 %v5652_v15, 16  ;;  %v4651_v37 = vshll.u32 %v5652_v15, 16  ;;  %v5616_v10 = vld [vmem:[%s8417_s0 + $0x58] sm:$0xf] }
 0x13f   :  { %6138 = vmatmul.mubr.msk.bf16.gmra.mxu1 %vm334_vm2, %v5605_v16  ;;  %v4640_v27 = vor.u32 %v4639_v35, %v4636_v56  ;;  %v4657_v45 = vshll.u32 %v5653_v36, 16  ;;  %v4662_v53 = vshrl.u32 %v5654_v33, 16  ;;  %v4665_v59 = vshll.u32 %v5654_v33, 16  ;;  %v7855_v26 = vpop.f32.mrf.mxu0  ;;  %v5617_v38 = vld [vmem:[%s8417_s0 + $0x78] sm:$0xf] }
 0x140   :  { %v4627_v7 = vrot.slane %v4626_v54, 4  ;;  %v4650_v9 = vrot.slane %v4648_v28, 4  ;;  %v4653_v5 = vrot.slane %v4651_v37, 5  ;;  %v4671_v15 = vshll.u32 %v5655_v57, 16  ;;  %v7860_v43 = vpop.f32.mrf.mxu1  ;;  %v5618_v35 = vld [vmem:[%s8417_s0 + $0x98] sm:$0xf] }
 0x141   :  { %8436 = vst [vmem:[#allocation21_spill] sm:$0xff] %v7860_v43  ;;  %v4641_v16 = vrot.slane %v4640_v27, 4  ;;  %v4659_v36 = vrot.slane %v4657_v45, 5  ;;  %v4664_v56 = vrot.slane %v4662_v53, 4  ;;  %v4667_v33 = vrot.slane %v4665_v59, 5 }
 0x142   :  { %v4632_v54 = vsel %vm6298_vm3, %v4627_v7, %v4631_v21  ;;  %v4654_v28 = vor.u32 %v4653_v5, %v4650_v9  ;;  %v4673_v37 = vrot.slane %v4671_v15, 5  ;;  %v7869_v57 = vadd.f32 %v7528_v50, %v7518_v30  ;;  %v5656_v27 = vld [vmem:[%s8417_s0 + $0xb8] sm:$0xf]  ;;  %v5657_v45 = vld [vmem:[%s8417_s0 + $0xbc] sm:$0x1]  ;;  %v7877_v53 = vpop.f32.mrf.mxu1 }
 0x143   :  { %8437 = vst [vmem:[#allocation22_spill] sm:$0xff] %v7877_v53  ;;  %v4646_v59 = vsel %vm6298_vm3, %v4641_v16, %v4645_v19  ;;  %v4668_v21 = vor.u32 %v4667_v33, %v4664_v56  ;;  %v5631_v7 = vcombine.low %v5615_v58, %v5616_v10  ;;  %v7883_v9 = vadd.f32 %v7530_v13, %v7548_v6  ;;  %v5658_v30 = vld [vmem:[%s8417_s0 + $0xd8] sm:$0xf]  ;;  %v5659_v50 = vld [vmem:[%s8417_s0 + $0xdc] sm:$0x1]  ;;  %v7891_v5 = vpop.f32.mrf.mxu0 }
 0x144   :  { %v5680_v15 = vcombine.low %v4632_v54, %v4646_v59  ;;  %v4655_v53 = vrot.slane %v4654_v28, 4  ;;  %v5632_v43 = vcombine.low %v5617_v38, %v5618_v35  ;;  %v7895_v19 = vadd.f32 %v7543_v11, %v7558_v34  ;;  %v7897_v58 = vpop.f32.mrf.mxu1  ;;  %v5660_v56 = vld [vmem:[%s8417_s0 + $0xf8] sm:$0xf]  ;;  %v5661_v54 = vld [vmem:[%s8417_s0 + $0xfc] sm:$0x1] }
 0x145   :  { %8438 = vst [vmem:[#allocation23_spill] sm:$0xff] %v7897_v58  ;;  %v4669_v13 = vrot.slane %v4668_v21, 4  ;;  %6143 = vmatprep.mubr.msk.bf16.mxu0 %vm334_vm2, %v5631_v7  ;;  %v4676_v6 = vshrl.u32 %v5656_v27, 16  ;;  %v4679_v10 = vshll.u32 %v5656_v27, 16  ;;  %v4685_v16 = vshll.u32 %v5657_v45, 16  ;;  %v7903_v33 = vpop.f32.mrf.mxu0 }
 0x146   :  { %6161 = vmatprep.mubr.msk.bf16.mxu1 %vm334_vm2, %v5680_v15  ;;  %v4660_v11 = vsel %vm6298_vm3, %v4655_v53, %v4659_v36  ;;  %6144 = vmatmul.mubr.msk.bf16.vlgmr.msra.gmra.mxu0 %vm334_vm2, %v5632_v43  ;;  %v4690_v34 = vshrl.u32 %v5658_v30, 16  ;;  %v4693_v38 = vshll.u32 %v5658_v30, 16  ;;  %v4699_v35 = vshll.u32 %v5659_v50, 16  ;;  %v7912_v28 = vpop.f32.mrf.mxu1  ;;  %v5662_v36 = vld [vmem:[%s8417_s0 + $0x118] sm:$0xf] }
 0x147   :  { %8439 = vst [vmem:[#allocation24_spill] sm:$0xff] %v7912_v28  ;;  %v4674_v27 = vsel %vm6298_vm3, %v4669_v13, %v4673_v37  ;;  %v4678_v45 = vrot.slane %v4676_v6, 4  ;;  %v4681_v59 = vrot.slane %v4679_v10, 5  ;;  %v4687_v21 = vrot.slane %v4685_v16, 5  ;;  %v7919_v43 = vpop.f32.mrf.mxu0  ;;  %v5663_v15 = vld [vmem:[%s8417_s0 + $0x11c] sm:$0x1] }
 0x148   :  { %v5681_v53 = vcombine.low %v4660_v11, %v4674_v27  ;;  %v4692_v7 = vrot.slane %v4690_v34, 4  ;;  %v4695_v30 = vrot.slane %v4693_v38, 5  ;;  %v4701_v50 = vrot.slane %v4699_v35, 5  ;;  %v5619_v10 = vld [vmem:[%s8417_s0 + $0xb8] sm:$0xf] }
 0x149   :  { %v4682_v28 = vor.u32 %v4681_v59, %v4678_v45  ;;  %v7926_v37 = vadd.f32 %v7562_v22, %v7591_v46  ;;  %v4704_v13 = vshrl.u32 %v5660_v56, 16  ;;  %v4707_v6 = vshll.u32 %v5660_v56, 16  ;;  %v7931_v16 = vpop.f32.mrf.mxu0  ;;  %v5620_v27 = vld [vmem:[%s8417_s0 + $0xd8] sm:$0xf] }
 0x14a   :  { %8440 = vst [vmem:[#allocation25_spill] sm:$0xff] %v7931_v16  ;;  %6162 = vmatmul.mubr.msk.bf16.vlgmr.msra.gmra.mxu1 %vm334_vm2, %v5681_v53  ;;  %v4696_v11 = vor.u32 %v4695_v30, %v4692_v7  ;;  %v4713_v34 = vshll.u32 %v5661_v54, 16  ;;  %v4718_v38 = vshrl.u32 %v5662_v36, 16  ;;  %v4721_v35 = vshll.u32 %v5662_v36, 16  ;;  %v7937_v22 = vpop.f32.mrf.mxu1  ;;  %v5621_v58 = vld [vmem:[%s8417_s0 + $0xf8] sm:$0xf] }
 0x14b   :  { %8441 = vst [vmem:[#allocation26_spill] sm:$0xff] %v7937_v22  ;;  %v4683_v46 = vrot.slane %v4682_v28, 4  ;;  %v4706_v56 = vrot.slane %v4704_v13, 4  ;;  %v4709_v45 = vrot.slane %v4707_v6, 5  ;;  %v4727_v59 = vshll.u32 %v5663_v15, 16 }
 0x14c   :  { %v4697_v16 = vrot.slane %v4696_v11, 4  ;;  %v4715_v53 = vrot.slane %v4713_v34, 5  ;;  %v4720_v7 = vrot.slane %v4718_v38, 4  ;;  %v4723_v54 = vrot.slane %v4721_v35, 5  ;;  %v5622_v36 = vld [vmem:[%s8417_s0 + $0x118] sm:$0xf]  ;;  %v7945_v30 = vpop.f32.mrf.mxu1 }
 0x14d   :  { %8442 = vst [vmem:[#allocation27_spill] sm:$0xff] %v7945_v30  ;;  %v4688_v28 = vsel %vm6298_vm3, %v4683_v46, %v4687_v21  ;;  %v4710_v13 = vor.u32 %v4709_v45, %v4706_v56  ;;  %v4729_v6 = vrot.slane %v4727_v59, 5  ;;  %v7951_v15 = vadd.f32 %v7576_v62, %v7624_v42  ;;  %v5664_v11 = vld [vmem:[%s8417_s0 + $0x158] sm:$0xf]  ;;  %v5665_v34 = vld [vmem:[%s8417_s0 + $0x15c] sm:$0x1]  ;;  %v7959_v38 = vpop.f32.mrf.mxu0 }
 0x14e   :  { %v4702_v35 = vsel %vm6298_vm3, %v4697_v16, %v4701_v50  ;;  %v4724_v21 = vor.u32 %v4723_v54, %v4720_v7  ;;  %v5633_v46 = vcombine.low %v5619_v10, %v5620_v27  ;;  %v7965_v56 = vadd.f32 %v7587_v25, %v7642_v31  ;;  %v5666_v62 = vld [vmem:[%s8417_s0 + $0x178] sm:$0xf]  ;;  %v5667_v42 = vld [vmem:[%s8417_s0 + $0x17c] sm:$0x1]  ;;  %v7973_v45 = vpop.f32.mrf.mxu1 }
 0x14f   :  { %8443 = vst [vmem:[#allocation28_spill] sm:$0xff] %v7973_v45  ;;  %v5682_v59 = vcombine.low %v4688_v28, %v4702_v35  ;;  %v4711_v30 = vrot.slane %v4710_v13, 4  ;;  %v5634_v22 = vcombine.low %v5621_v58, %v5622_v36  ;;  %v7977_v50 = vadd.f32 %v7604_v2, %v7652_v44  ;;  %v7979_v10 = vpop.f32.mrf.mxu0  ;;  %v5668_v7 = vld [vmem:[%s8417_s0 + $0x198] sm:$0xf]  ;;  %v5669_v28 = vld [vmem:[%s8417_s0 + $0x19c] sm:$0x1] }
 0x150   :  { %v4725_v25 = vrot.slane %v4724_v21, 4  ;;  %6147 = vmatprep.mubr.msk.bf16.mxu0 %vm334_vm2, %v5633_v46  ;;  %v4732_v31 = vshrl.u32 %v5664_v11, 16  ;;  %v4735_v16 = vshll.u32 %v5664_v11, 16  ;;  %v4741_v27 = vshll.u32 %v5665_v34, 16  ;;  %v7985_v54 = vpop.f32.mrf.mxu1 }
 0x151   :  { %8444 = vst [vmem:[#allocation29_spill] sm:$0xff] %v7985_v54  ;;  %6165 = vmatprep.mubr.msk.bf16.mxu1 %vm334_vm2, %v5682_v59  ;;  %v4716_v2 = vsel %vm6298_vm3, %v4711_v30, %v4715_v53  ;;  %6148 = vmatmul.mubr.msk.bf16.gmra.mxu0 %vm334_vm2, %v5634_v22  ;;  %v4746_v44 = vshrl.u32 %v5666_v62, 16  ;;  %v4749_v58 = vshll.u32 %v5666_v62, 16  ;;  %v4755_v36 = vshll.u32 %v5667_v42, 16  ;;  %v7994_v13 = vpop.f32.mrf.mxu0  ;;  %v5670_v53 = vld [vmem:[%s8417_s0 + $0x1b8] sm:$0xf] }
 0x152   :  { %v4730_v11 = vsel %vm6298_vm3, %v4725_v25, %v4729_v6  ;;  %v4734_v34 = vrot.slane %v4732_v31, 4  ;;  %v4737_v35 = vrot.slane %v4735_v16, 5  ;;  %v4743_v21 = vrot.slane %v4741_v27, 5  ;;  %v5671_v42 = vld [vmem:[%s8417_s0 + $0x1bc] sm:$0x1] }
 0x153   :  { %v5683_v22 = vcombine.low %v4716_v2, %v4730_v11  ;;  %v4748_v30 = vrot.slane %v4746_v44, 4  ;;  %v4751_v46 = vrot.slane %v4749_v58, 5  ;;  %v4757_v62 = vrot.slane %v4755_v36, 5  ;;  %v8004_v59 = vpop.f32.mrf.mxu0  ;;  %v5623_v16 = vld [vmem:[%s8417_s0 + $0x158] sm:$0xf] }
 0x154   :  { %v4738_v54 = vor.u32 %v4737_v35, %v4734_v34  ;;  %v8008_v6 = vadd.f32 %v7617_v23, %v7677_v17  ;;  %v4760_v25 = vshrl.u32 %v5668_v7, 16  ;;  %v4763_v31 = vshll.u32 %v5668_v7, 16  ;;  %v8013_v27 = vpop.f32.mrf.mxu1  ;;  %v5624_v11 = vld [vmem:[%s8417_s0 + $0x178] sm:$0xf] }
 0x155   :  { %8445 = vst [vmem:[#allocation30_spill] sm:$0xff] %v8013_v27  ;;  %6166 = vmatmul.mubr.msk.bf16.gmra.mxu1 %vm334_vm2, %v5683_v22  ;;  %v4752_v2 = vor.u32 %v4751_v46, %v4748_v30  ;;  %v4769_v44 = vshll.u32 %v5669_v28, 16  ;;  %v4774_v58 = vshrl.u32 %v5670_v53, 16  ;;  %v4777_v36 = vshll.u32 %v5670_v53, 16  ;;  %v5625_v35 = vld [vmem:[%s8417_s0 + $0x198] sm:$0xf] }
 0x156   :  { %v4739_v23 = vrot.slane %v4738_v54, 4  ;;  %v4762_v17 = vrot.slane %v4760_v25, 4  ;;  %v4765_v34 = vrot.slane %v4763_v31, 5  ;;  %v4783_v7 = vshll.u32 %v5671_v42, 16  ;;  %v8022_v45 = vpop.f32.mrf.mxu1  ;;  %v5626_v53 = vld [vmem:[%s8417_s0 + $0x1b8] sm:$0xf] }
 0x157   :  { %8446 = vst [vmem:[#allocation31_spill] sm:$0xff] %v8022_v45  ;;  %v4753_v27 = vrot.slane %v4752_v2, 4  ;;  %v4771_v22 = vrot.slane %v4769_v44, 5  ;;  %v4776_v30 = vrot.slane %v4774_v58, 4  ;;  %v4779_v28 = vrot.slane %v4777_v36, 5  ;;  %v8027_v46 = vpop.f32.mrf.mxu0 }
 0x158   :  { %v4744_v54 = vsel %vm6298_vm3, %v4739_v23, %v4743_v21  ;;  %v4766_v42 = vor.u32 %v4765_v34, %v4762_v17  ;;  %v4785_v25 = vrot.slane %v4783_v7, 5  ;;  %v8033_v31 = vadd.f32 %v7636_v29, %v7707_v14  ;;  %v5672_v2 = vld [vmem:[%s8417_s0 + $0x1d8] sm:$0xf]  ;;  %v5673_v44 = vld [vmem:[%s8417_s0 + $0x1dc] sm:$0x1]  ;;  %v8041_v58 = vpop.f32.mrf.mxu1 }
 0x159   :  { %8447 = vst [vmem:[#allocation32_spill] sm:$0xff] %v8041_v58  ;;  %v4758_v36 = vsel %vm6298_vm3, %v4753_v27, %v4757_v62  ;;  %v4780_v21 = vor.u32 %v4779_v28, %v4776_v30  ;;  %v5635_v23 = vcombine.low %v5623_v16, %v5624_v11  ;;  %v8047_v17 = vadd.f32 %v7666_v39, %v7721_v52  ;;  %v5674_v29 = vld [vmem:[%s8417_s0 + $0x1f8] sm:$0xf]  ;;  %v5675_v14 = vld [vmem:[%s8417_s0 + $0x1fc] sm:$0x1]  ;;  %v8055_v34 = vpop.f32.mrf.mxu0 }
 0x15a   :  { %v5684_v7 = vcombine.low %v4744_v54, %v4758_v36  ;;  %v4767_v58 = vrot.slane %v4766_v42, 4  ;;  %v5636_v45 = vcombine.low %v5625_v35, %v5626_v53  ;;  %v8059_v62 = vadd.f32 %v7682_v0, %v7731_v3  ;;  %v8061_v16 = vpop.f32.mrf.mxu1  ;;  %v5676_v30 = vld [vmem:[%s8417_s0 + $0x218] sm:$0xf]  ;;  %v5677_v54 = vld [vmem:[%s8417_s0 + $0x21c] sm:$0x1] }
 0x15b   :  { %8448 = vst [vmem:[#allocation33_spill] sm:$0xff] %v8061_v16  ;;  %v4781_v39 = vrot.slane %v4780_v21, 4  ;;  %6151 = vmatprep.mubr.msk.bf16.mxu0 %vm334_vm2, %v5635_v23  ;;  %v4788_v52 = vshrl.u32 %v5672_v2, 16  ;;  %v4791_v27 = vshll.u32 %v5672_v2, 16  ;;  %v4797_v11 = vshll.u32 %v5673_v44, 16  ;;  %v8067_v28 = vpop.f32.mrf.mxu0 }
 0x15c   :  { %8449 = vst [vmem:[#allocation34_spill] sm:$0xff] %v8067_v28  ;;  %6169 = vmatprep.mubr.msk.bf16.mxu1 %vm334_vm2, %v5684_v7  ;;  %v4772_v0 = vsel %vm6298_vm3, %v4767_v58, %v4771_v22  ;;  %6152 = vmatmul.mubr.msk.bf16.gmra.mxu0 %vm334_vm2, %v5636_v45  ;;  %v4802_v3 = vshrl.u32 %v5674_v29, 16  ;;  %v4805_v35 = vshll.u32 %v5674_v29, 16  ;;  %v4811_v53 = vshll.u32 %v5675_v14, 16  ;;  %v5678_v21 = vld [vmem:[%s8417_s0 + $0x238] sm:$0xf] }
 0x15d   :  { %v4786_v42 = vsel %vm6298_vm3, %v4781_v39, %v4785_v25  ;;  %v4790_v2 = vrot.slane %v4788_v52, 4  ;;  %v4793_v44 = vrot.slane %v4791_v27, 5  ;;  %v4799_v36 = vrot.slane %v4797_v11, 5  ;;  %v8081_v22 = vpop.f32.mrf.mxu0  ;;  %v5679_v14 = vld [vmem:[%s8417_s0 + $0x23c] sm:$0x1] }
 0x15e   :  { %8450 = vst [vmem:[#allocation35_spill] sm:$0xff] %v8081_v22  ;;  %v5685_v45 = vcombine.low %v4772_v0, %v4786_v42  ;;  %v4804_v58 = vrot.slane %v4802_v3, 4  ;;  %v4807_v23 = vrot.slane %v4805_v35, 5  ;;  %v4813_v29 = vrot.slane %v4811_v53, 5  ;;  %v8086_v7 = vpop.f32.mrf.mxu1  ;;  %v5627_v11 = vld [vmem:[%s8417_s0 + $0x1d8] sm:$0xf] }
 0x15f   :  { %8451 = vst [vmem:[#allocation36_spill] sm:$0xff] %v8086_v7  ;;  %v4794_v25 = vor.u32 %v4793_v44, %v4790_v2  ;;  %v8090_v39 = vadd.f32 %v7692_v18, %v7764_v60  ;;  %v4816_v52 = vshrl.u32 %v5676_v30, 16  ;;  %v4819_v27 = vshll.u32 %v5676_v30, 16  ;;  %v5628_v42 = vld [vmem:[%s8417_s0 + $0x1f8] sm:$0xf] }
 0x160   :  { %6170 = vmatmul.mubr.msk.bf16.gmra.mxu1 %vm334_vm2, %v5685_v45  ;;  %v4808_v0 = vor.u32 %v4807_v23, %v4804_v58  ;;  %v4825_v3 = vshll.u32 %v5677_v54, 16  ;;  %v4830_v35 = vshrl.u32 %v5678_v21, 16  ;;  %v4833_v53 = vshll.u32 %v5678_v21, 16  ;;  %v8099_v2 = vpop.f32.mrf.mxu1  ;;  %v5629_v7 = vld [vmem:[%s8417_s0 + $0x218] sm:$0xf] }
 0x161   :  { %8452 = vst [vmem:[#allocation37_spill] sm:$0xff] %v8099_v2  ;;  %v4795_v18 = vrot.slane %v4794_v25, 4  ;;  %v4818_v60 = vrot.slane %v4816_v52, 4  ;;  %v4821_v44 = vrot.slane %v4819_v27, 5  ;;  %v4839_v30 = vshll.u32 %v5679_v14, 16  ;;  %v8104_v16 = vpop.f32.mrf.mxu0 }
 0x162   :  { %8453 = vst [vmem:[#allocation38_spill] sm:$0xff] %v8104_v16  ;;  %v4809_v45 = vrot.slane %v4808_v0, 4  ;;  %v4827_v54 = vrot.slane %v4825_v3, 5  ;;  %v4832_v58 = vrot.slane %v4830_v35, 4  ;;  %v4835_v21 = vrot.slane %v4833_v53, 5  ;;  %v8109_v22 = vpop.f32.mrf.mxu1 }
 0x163   :  { %v5630_v23 = vld [vmem:[%s8417_s0 + $0x238] sm:$0xf]  ;;  %8454 = vst [vmem:[#allocation39_spill] sm:$0xff] %v8109_v22  ;;  %v4800_v25 = vsel %vm6298_vm3, %v4795_v18, %v4799_v36  ;;  %v4822_v14 = vor.u32 %v4821_v44, %v4818_v60  ;;  %v4841_v52 = vrot.slane %v4839_v30, 5  ;;  %v818_v27 = vadd.f32 %v7701_v40, %v7789_v63  ;;  %v8115_v2 = vpop.f32.mrf.mxu0  ;;  %v8459_v44 = vld [vmem:[#allocation12_spill] sm:$0xff] }
 0x164   :  { %v4814_v0 = vsel %vm6298_vm3, %v4809_v45, %v4813_v29  ;;  %v4836_v3 = vor.u32 %v4835_v21, %v4832_v58  ;;  %v5637_v35 = vcombine.low %v5627_v11, %v5628_v42  ;;  %v823_v53 = vadd.f32 %v7739_v8, %v7801_v49  ;;  %v8121_v16 = vpop.f32.mrf.mxu1  ;;  %v8458_v42 = vld [vmem:[#allocation11_spill] sm:$0xff]  ;;  %v8463_v58 = vld [vmem:[#allocation25_spill] sm:$0xff] }
 0x165   :  { %v5686_v22 = vcombine.low %v4800_v25, %v4814_v0  ;;  %v4823_v28 = vrot.slane %v4822_v14, 4  ;;  %v5638_v36 = vcombine.low %v5629_v7, %v5630_v23  ;;  %v821_v18 = vadd.f32 %v7755_v12, %v7813_v4  ;;  %v6002_v60 = vpop.f32.mrf.mxu0  ;;  %v8455_v4 = vld [vmem:[#allocation8_spill] sm:$0xff]  ;;  %v8465_v25 = vld [vmem:[#allocation17_spill] sm:$0xff] }
 0x166   :  { %v4837_v40 = vrot.slane %v4836_v3, 4  ;;  %6155 = vmatprep.mubr.msk.bf16.mxu0 %vm334_vm2, %v5637_v35  ;;  %v824_v63 = vadd.f32 %v7769_v24, %v7846_v55  ;;  %v822_v29 = vadd.f32 %v7778_v48, %v7869_v57  ;;  %v1236_v8 = vadd.f32 %v7560_v20, %v7883_v9  ;;  %v8456_v20 = vld [vmem:[#allocation9_spill] sm:$0xff] }
 0x167   :  { %6173 = vmatprep.mubr.msk.bf16.mxu1 %vm334_vm2, %v5686_v22  ;;  %v4828_v49 = vsel %vm6298_vm3, %v4823_v28, %v4827_v54  ;;  %6156 = vmatmul.mubr.msk.bf16.gmra.mxu0 %vm334_vm2, %v5638_v36  ;;  %v1234_v12 = vadd.f32 %v7574_v51, %v7895_v19  ;;  %v1237_v7 = vadd.f32 %v8455_v4, %v7926_v37  ;;  %v2003_v24 = vpop.f32.mrf.mxu0  ;;  %v8457_v37 = vld [vmem:[#allocation10_spill] sm:$0xff]  ;;  %v8467_v36 = vld [vmem:[#allocation19_spill] sm:$0xff] }
 0x168   :  { %v4842_v48 = vsel %vm6298_vm3, %v4837_v40, %v4841_v52  ;;  %v1438_v55 = vadd.f32 %v7815_v41, %v1236_v8  ;;  %v1235_v57 = vadd.f32 %v8456_v20, %v7951_v15  ;;  %v1240_v9 = vadd.f32 %v7647_v61, %v7965_v56  ;;  %v8147_v28 = vpop.f32.mrf.mxu1  ;;  %v8468_v8 = vld [vmem:[#allocation20_spill] sm:$0xff]  ;;  %v8470_v4 = vld [vmem:[#allocation22_spill] sm:$0xff] }
 0x169   :  { %v5687_v22 = vcombine.low %v4828_v49, %v4842_v48  ;;  %v1436_v51 = vadd.f32 %v7830_v47, %v1234_v12  ;;  %v1439_v19 = vadd.f32 %v7842_v1, %v1237_v7  ;;  %v1238_v11 = vadd.f32 %v8457_v37, %v7977_v50  ;;  %v8460_v1 = vld [vmem:[#allocation13_spill] sm:$0xff]  ;;  %v8461_v50 = vld [vmem:[#allocation14_spill] sm:$0xff]  ;;  %v8471_v7 = vld [vmem:[#allocation23_spill] sm:$0xff] }
 0x16a   :  { %v1437_v32 = vadd.f32 %v7855_v26, %v1235_v57  ;;  %v1442_v41 = vadd.f32 %v7891_v5, %v1240_v9  ;;  %v1241_v15 = vadd.f32 %v8458_v42, %v8008_v6  ;;  %v1239_v61 = vadd.f32 %v8459_v44, %v8033_v31  ;;  %v2425_v56 = vpop.f32.mrf.mxu1  ;;  %v8462_v26 = vld [vmem:[#allocation15_spill] sm:$0xff]  ;;  %v8464_v31 = vld [vmem:[#allocation16_spill] sm:$0xff]  ;;  %v8469_v12 = vld [vmem:[#allocation21_spill] sm:$0xff] }
 0x16b   :  { %6174 = vmatmul.mubr.msk.bf16.gmra.mxu1 %vm334_vm2, %v5687_v22  ;;  %v1440_v47 = vadd.f32 %v7903_v33, %v1238_v11  ;;  %v1244_v30 = vadd.f32 %v8460_v1, %v8047_v17  ;;  %v1242_v45 = vadd.f32 %v8461_v50, %v8059_v62  ;;  %v1245_v5 = vadd.f32 %v8462_v26, %v8090_v39  ;;  %v6005_v54 = vpop.f32.mrf.mxu0  ;;  %v8466_v62 = vld [vmem:[#allocation18_spill] sm:$0xff]  ;;  %v8473_v57 = vld [vmem:[#allocation35_spill] sm:$0xff]  ;;  %v8474_v9 = vld [vmem:[#allocation24_spill] sm:$0xff] }
 0x16c   :  { %v1443_v6 = vadd.f32 %v7919_v43, %v1241_v15  ;;  %v1441_v21 = vadd.f32 %v8463_v58, %v1239_v61  ;;  %v1243_v23 = vadd.f32 %v8464_v31, %v818_v27  ;;  %v1248_v14 = vadd.f32 %v8465_v25, %v823_v53  ;;  %v6020_v52 = vpop.f32.mrf.mxu1  ;;  %v8475_v22 = vld [vmem:[#allocation26_spill] sm:$0xff]  ;;  %v8477_v42 = vld [vmem:[#allocation27_spill] sm:$0xff]  ;;  %v8478_v61 = vld [vmem:[#allocation28_spill] sm:$0xff] }
 0x16d   :  { %v1446_v33 = vadd.f32 %v7959_v38, %v1244_v30  ;;  %v1444_v17 = vadd.f32 %v7979_v10, %v1242_v45  ;;  %v1447_v0 = vadd.f32 %v7994_v13, %v1245_v5  ;;  %v1246_v3 = vadd.f32 %v8466_v62, %v821_v18  ;;  %v2016_v35 = vpop.f32.mrf.mxu0  ;;  %v8472_v18 = vld [vmem:[#allocation34_spill] sm:$0xff]  ;;  %v8479_v30 = vld [vmem:[#allocation29_spill] sm:$0xff]  ;;  %v8481_v5 = vld [vmem:[#allocation31_spill] sm:$0xff] }
 0x16e   :  { %v1445_v39 = vadd.f32 %v8004_v59, %v1243_v23  ;;  %v1450_v43 = vadd.f32 %v8027_v46, %v1248_v14  ;;  %v1249_v40 = vadd.f32 %v8467_v36, %v824_v63  ;;  %v1247_v27 = vadd.f32 %v8468_v8, %v822_v29  ;;  %v2428_v49 = vpop.f32.mrf.mxu1  ;;  %v8476_v37 = vld [vmem:[#allocation38_spill] sm:$0xff]  ;;  %v8482_v58 = vld [vmem:[#allocation32_spill] sm:$0xff]  ;;  %v8483_v25 = vld [vmem:[#allocation33_spill] sm:$0xff] }
 0x16f   :  { %v1448_v53 = vadd.f32 %v8055_v34, %v1246_v3  ;;  %v1863_v38 = vadd.f32 %v8469_v12, %v1438_v55  ;;  %v1861_v10 = vadd.f32 %v8470_v4, %v1436_v51  ;;  %v1864_v13 = vadd.f32 %v8471_v7, %v1439_v19  ;;  %v6006_v48 = vpop.f32.mrf.mxu0  ;;  %v8480_v26 = vld [vmem:[#allocation30_spill] sm:$0xff]  ;;  %v8484_v14 = vld [vmem:[#allocation36_spill] sm:$0xff] }
 0x170   :  { %v1451_v20 = vadd.f32 %v8472_v18, %v1249_v40  ;;  %v1449_v59 = vadd.f32 %v8473_v57, %v1247_v27  ;;  %v1862_v46 = vadd.f32 %v8474_v9, %v1437_v32  ;;  %v1867_v63 = vadd.f32 %v8475_v22, %v1442_v41 }
 0x171   :  { %v2065_v29 = vadd.f32 %v8476_v37, %v1863_v38  ;;  %v2063_v11 = vadd.f32 %v8115_v2, %v1861_v10  ;;  %v2066_v34 = vadd.f32 %v6002_v60, %v1864_v13  ;;  %v1865_v55 = vadd.f32 %v8477_v42, %v1440_v47  ;;  %v2019_v15 = vpop.f32.mrf.mxu0 }
 0x172   :  { %v6023_v51 = vpop.f32.mrf.mxu1  ;;  %v2064_v44 = vadd.f32 %v2003_v24, %v1862_v46  ;;  %v2069_v19 = vadd.f32 %v6005_v54, %v1867_v63  ;;  %v1868_v1 = vadd.f32 %v8478_v61, %v1443_v6  ;;  %v1866_v50 = vadd.f32 %v8479_v30, %v1441_v21  ;;  %v8485_v54 = vld [vmem:[#allocation37_spill] sm:$0xff]  ;;  %v8486_v6 = vld [vmem:[#allocation39_spill] sm:$0xff] }
 0x173   :  { %v2067_v45 = vadd.f32 %v2016_v35, %v1865_v55  ;;  %v1871_v32 = vadd.f32 %v8480_v26, %v1446_v33  ;;  %v1869_v41 = vadd.f32 %v8481_v5, %v1444_v17  ;;  %v1872_v31 = vadd.f32 %v8482_v58, %v1447_v0 }
 0x174   :  { %v2441_v23 = vpop.f32.mrf.mxu1  ;;  %v2070_v2 = vadd.f32 %v6006_v48, %v1868_v1  ;;  %v2068_v60 = vadd.f32 %v2019_v15, %v1866_v50  ;;  %v1870_v47 = vadd.f32 %v8483_v25, %v1445_v39  ;;  %v1875_v62 = vadd.f32 %v8484_v14, %v1450_v43 }
 0x175   :  { %v6009_v24 = vpop.f32.mrf.mxu0  ;;  %v1873_v3 = vadd.f32 %v8485_v54, %v1448_v53  ;;  %v1876_v36 = vadd.f32 %v8486_v6, %v1451_v20  ;;  %v1874_v21 = vadd.f32 %v8121_v16, %v1449_v59  ;;  %v2490_v33 = vadd.f32 %v8147_v28, %v2065_v29 }
 0x176   :  { %v6024_v35 = vpop.f32.mrf.mxu1  ;;  %v2073_v17 = vadd.f32 %v6009_v24, %v1871_v32  ;;  %v2488_v40 = vadd.f32 %v2425_v56, %v2063_v11  ;;  %v2491_v0 = vadd.f32 %v6020_v52, %v2066_v34  ;;  %v2489_v8 = vadd.f32 %v2428_v49, %v2064_v44 }
 0x177   :  { %v2032_v27 = vpop.f32.mrf.mxu0  ;;  %v2494_v12 = vadd.f32 %v6023_v51, %v2069_v19  ;;  %v2492_v38 = vadd.f32 %v2441_v23, %v2067_v45  ;;  %v2495_v39 = vadd.f32 %v6024_v35, %v2070_v2 }
 0x178   :  { %v2444_v4 = vpop.f32.mrf.mxu1  ;;  %v2071_v43 = vadd.f32 %v2032_v27, %v1869_v41 }
 0x179   :  { %v6010_v10 = vpop.f32.mrf.mxu0  ;;  %v2493_v7 = vadd.f32 %v2444_v4, %v2068_v60 }
 0x17a   :  { %v2074_v53 = vadd.f32 %v6010_v10, %v1872_v31 }
 0x17b   :  { %v2035_v13 = vpop.f32.mrf.mxu0 }
 0x17c   :  { %v6027_v48 = vpop.f32.mrf.mxu1  ;;  %v2072_v18 = vadd.f32 %v2035_v13, %v1870_v47 }
 0x17d   :  { %v2498_v16 = vadd.f32 %v6027_v48, %v2073_v17 }
 0x17e   :  { %v2457_v20 = vpop.f32.mrf.mxu1 }
 0x17f   :  { %v6013_v28 = vpop.f32.mrf.mxu0  ;;  %v2496_v57 = vadd.f32 %v2457_v20, %v2071_v43 }
 0x180   :  { %v6028_v59 = vpop.f32.mrf.mxu1  ;;  %v2077_v56 = vadd.f32 %v6013_v28, %v1875_v62 }
 0x181   :  { %v2048_v52 = vpop.f32.mrf.mxu0  ;;  %v2499_v49 = vadd.f32 %v6028_v59, %v2074_v53 }
 0x182   :  { %v2460_v9 = vpop.f32.mrf.mxu1  ;;  %v2075_v46 = vadd.f32 %v2048_v52, %v1873_v3 }
 0x183   :  { %v6014_v22 = vpop.f32.mrf.mxu0  ;;  %v2497_v63 = vadd.f32 %v2460_v9, %v2072_v18 }
 0x184   :  { %v2078_v37 = vadd.f32 %v6014_v22, %v1876_v36 }
 0x185   :  { %v2051_v29 = vpop.f32.mrf.mxu0 }
 0x186   :  { %v6031_v11 = vpop.f32.mrf.mxu1  ;;  %v2076_v34 = vadd.f32 %v2051_v29, %v1874_v21 }
 0x187   :  { %v2502_v42 = vadd.f32 %v6031_v11, %v2077_v56 }
 0x188   :  { %v2473_v55 = vpop.f32.mrf.mxu1 }
 0x189   :  { %v6037_v15 = vpop.f32.mrf.mxu0  ;;  %v2500_v51 = vadd.f32 %v2473_v55, %v2075_v46 }
 0x18a   :  { %v6032_v44 = vpop.f32.mrf.mxu1  ;;  %v2692_v19 = vadd.f32 %v6037_v15, %v2490_v33 }
 0x18b   :  { %v2627_v61 = vpop.f32.mrf.mxu0  ;;  %v2503_v1 = vadd.f32 %v6032_v44, %v2078_v37 }
 0x18c   :  { %v2476_v30 = vpop.f32.mrf.mxu1  ;;  %v2690_v50 = vadd.f32 %v2627_v61, %v2488_v40 }
 0x18d   :  { %v6038_v45 = vpop.f32.mrf.mxu0  ;;  %v2501_v26 = vadd.f32 %v2476_v30, %v2076_v34 }
 0x18e   :  { %v2693_v32 = vadd.f32 %v6038_v45, %v2491_v0 }
 0x18f   :  { %v2630_v5 = vpop.f32.mrf.mxu0 }
 0x190   :  { %v6055_v41 = vpop.f32.mrf.mxu1  ;;  %v2691_v58 = vadd.f32 %v2630_v5, %v2489_v8 }
 0x191   :  { %v8201_v31 = vadd.f32 %v6055_v41, %v2692_v19 }
 0x192   :  { %v3052_v23 = vpop.f32.mrf.mxu1 }
 0x193   :  { %v6041_v2 = vpop.f32.mrf.mxu0  ;;  %v8203_v60 = vadd.f32 %v3052_v23, %v2690_v50 }
 0x194   :  { %v6056_v25 = vpop.f32.mrf.mxu1  ;;  %v2696_v47 = vadd.f32 %v6041_v2, %v2494_v12 }
 0x195   :  { %v2643_v14 = vpop.f32.mrf.mxu0  ;;  %v8205_v62 = vadd.f32 %v6056_v25, %v2693_v32 }
 0x196   :  { %v3055_v24 = vpop.f32.mrf.mxu1  ;;  %v2694_v54 = vadd.f32 %v2643_v14, %v2492_v38 }
 0x197   :  { %v6042_v3 = vpop.f32.mrf.mxu0  ;;  %v8207_v6 = vadd.f32 %v3055_v24, %v2691_v58 }
 0x198   :  { %v2697_v36 = vadd.f32 %v6042_v3, %v2495_v39 }
 0x199   :  { %v2646_v21 = vpop.f32.mrf.mxu0 }
 0x19a   :  { %v6059_v33 = vpop.f32.mrf.mxu1  ;;  %v2695_v35 = vadd.f32 %v2646_v21, %v2493_v7 }
 0x19b   :  { %v8209_v17 = vadd.f32 %v6059_v33, %v2696_v47 }
 0x19c   :  { %v3068_v40 = vpop.f32.mrf.mxu1 }
 0x19d   :  { %v6045_v0 = vpop.f32.mrf.mxu0  ;;  %v8211_v8 = vadd.f32 %v3068_v40, %v2694_v54 }
 0x19e   :  { %v6060_v27 = vpop.f32.mrf.mxu1  ;;  %v2700_v12 = vadd.f32 %v6045_v0, %v2498_v16 }
 0x19f   :  { %v2659_v4 = vpop.f32.mrf.mxu0  ;;  %v8213_v43 = vadd.f32 %v6060_v27, %v2697_v36 }
 0x1a0   :  { %v3071_v10 = vpop.f32.mrf.mxu1  ;;  %v2698_v38 = vadd.f32 %v2659_v4, %v2496_v57 }
 0x1a1   :  { %v6046_v53 = vpop.f32.mrf.mxu0  ;;  %v8215_v13 = vadd.f32 %v3071_v10, %v2695_v35 }
 0x1a2   :  { %v2701_v39 = vadd.f32 %v6046_v53, %v2499_v49 }
 0x1a3   :  { %v2662_v48 = vpop.f32.mrf.mxu0 }
 0x1a4   :  { %v6063_v18 = vpop.f32.mrf.mxu1  ;;  %v2699_v7 = vadd.f32 %v2662_v48, %v2497_v63 }
 0x1a5   :  { %v3125_v20 = vadd.f32 %v6063_v18, %v2700_v12 }
 0x1a6   :  { %v3084_v28 = vpop.f32.mrf.mxu1 }
 0x1a7   :  { %v6049_v59 = vpop.f32.mrf.mxu0  ;;  %v3123_v56 = vadd.f32 %v3084_v28, %v2698_v38 }
 0x1a8   :  { %v6064_v52 = vpop.f32.mrf.mxu1  ;;  %v2704_v9 = vadd.f32 %v6049_v59, %v2502_v42 }
 0x1a9   :  { %v2675_v46 = vpop.f32.mrf.mxu0  ;;  %v8217_v16 = vadd.f32 %v6064_v52, %v2701_v39 }
 0x1aa   :  { %v3087_v22 = vpop.f32.mrf.mxu1  ;;  %v2702_v37 = vadd.f32 %v2675_v46, %v2500_v51 }
 0x1ab   :  { %v6050_v29 = vpop.f32.mrf.mxu0  ;;  %v8219_v57 = vadd.f32 %v3087_v22, %v2699_v7 }
 0x1ac   :  { %v2705_v11 = vadd.f32 %v6050_v29, %v2503_v1 }
 0x1ad   :  { %v2678_v34 = vpop.f32.mrf.mxu0 }
 0x1ae   :  { %v6067_v49 = vpop.f32.mrf.mxu1  ;;  %v2703_v55 = vadd.f32 %v2678_v34, %v2501_v26 }
 0x1af   :  { %v3129_v15 = vadd.f32 %v6067_v49, %v2704_v9 }
 0x1b0   :  { %v3100_v63 = vpop.f32.mrf.mxu1 }
 0x1b1   :  { %v8221_v44 = vpop.f32.mrf.mxu0  ;;  %v3127_v19 = vadd.f32 %v3100_v63, %v2702_v37 }
 0x1b2   :  { %v6068_v61 = vpop.f32.mrf.mxu1 }
 0x1b3   :  { %v8223_v30 = vpop.f32.mrf.mxu0  ;;  %v3130_v42 = vadd.f32 %v6068_v61, %v2705_v11 }
 0x1b4   :  { %v3103_v50 = vpop.f32.mrf.mxu1 }
 0x1b5   :  { %v8225_v45 = vpop.f32.mrf.mxu0  ;;  %v3128_v51 = vadd.f32 %v3103_v50, %v2703_v55 }
 0x1b7   :  { %v8227_v32 = vpop.f32.mrf.mxu0 }
 0x1b8   :  { %v8229_v5 = vpop.f32.mrf.mxu1 }
 0x1ba   :  { %v8231_v1 = vpop.f32.mrf.mxu1 }
 0x1bb   :  { %v8233_v26 = vpop.f32.mrf.mxu0 }
 0x1bc   :  { %v8235_v41 = vpop.f32.mrf.mxu1 }
 0x1bd   :  { %v8237_v58 = vpop.f32.mrf.mxu0 }
 0x1be   :  { %v8239_v23 = vpop.f32.mrf.mxu1 }
 0x1bf   :  { %v8241_v2 = vpop.f32.mrf.mxu0 }
 0x1c1   :  { %v8243_v25 = vpop.f32.mrf.mxu0 }
 0x1c2   :  { %v8245_v47 = vpop.f32.mrf.mxu1 }
 0x1c4   :  { %v8247_v14 = vpop.f32.mrf.mxu1 }
 0x1c5   :  { %v6081_v24 = vpop.f32.mrf.mxu0 }
 0x1c6   :  { %v8249_v54 = vpop.f32.mrf.mxu1  ;;  %v3327_v3 = vadd.f32 %v6081_v24, %v3125_v20 }
 0x1c7   :  { %v3286_v36 = vpop.f32.mrf.mxu0 }
 0x1c8   :  { %v8251_v21 = vpop.f32.mrf.mxu1  ;;  %v3325_v33 = vadd.f32 %v3286_v36, %v3123_v56 }
 0x1c9   :  { %v8253_v35 = vpop.f32.mrf.mxu0 }
 0x1cb   :  { %v8255_v40 = vpop.f32.mrf.mxu0 }
 0x1cc   :  { %v6099_v0 = vpop.f32.mrf.mxu1 }
 0x1cd   :  { %v8257_v27 = vadd.f32 %v6099_v0, %v3327_v3 }
 0x1ce   :  { %v3711_v12 = vpop.f32.mrf.mxu1 }
 0x1cf   :  { %v6085_v4 = vpop.f32.mrf.mxu0  ;;  %v8259_v10 = vadd.f32 %v3711_v12, %v3325_v33 }
 0x1d0   :  { %v8261_v38 = vpop.f32.mrf.mxu1  ;;  %v3331_v53 = vadd.f32 %v6085_v4, %v3129_v15 }
 0x1d1   :  { %v3302_v39 = vpop.f32.mrf.mxu0 }
 0x1d2   :  { %v8263_v48 = vpop.f32.mrf.mxu1  ;;  %v3329_v18 = vadd.f32 %v3302_v39, %v3127_v19 }
 0x1d3   :  { %v6086_v7 = vpop.f32.mrf.mxu0 }
 0x1d4   :  { %v3332_v20 = vadd.f32 %v6086_v7, %v3130_v42 }
 0x1d5   :  { %v3305_v28 = vpop.f32.mrf.mxu0 }
 0x1d6   :  { %v6103_v59 = vpop.f32.mrf.mxu1  ;;  %v3330_v56 = vadd.f32 %v3305_v28, %v3128_v51 }
 0x1d7   :  { %v8265_v52 = vadd.f32 %v6103_v59, %v3331_v53  ;;  %v3319_v59 = vadd.f32 %v8221_v44, %v8201_v31  ;;  %v3318_v31 = vadd.f32 %v8227_v32, %v8207_v6 }
 0x1d8   :  { %v3727_v9 = vpop.f32.mrf.mxu1 }
 0x1d9   :  { %8487 = vst [vmem:[#allocation8_spill] sm:$0xff] %v8265_v52  ;;  %v6109_v46 = vpop.f32.mrf.mxu0  ;;  %v8267_v22 = vadd.f32 %v3727_v9, %v3329_v18 }
 0x1da   :  { %v6104_v37 = vpop.f32.mrf.mxu1 }
 0x1db   :  { %8488 = vst [vmem:[#allocation9_spill] sm:$0xff] %v8267_v22  ;;  %v3881_v29 = vpop.f32.mrf.mxu0  ;;  %v8269_v11 = vadd.f32 %v6104_v37, %v3332_v20  ;;  %v3317_v37 = vadd.f32 %v8223_v30, %v8203_v60 }
 0x1dc   :  { %v3730_v34 = vpop.f32.mrf.mxu1 }
 0x1dd   :  { %8489 = vst [vmem:[#allocation10_spill] sm:$0xff] %v8269_v11  ;;  %v6110_v49 = vpop.f32.mrf.mxu0  ;;  %v8271_v55 = vadd.f32 %v3730_v34, %v3330_v56  ;;  %v3744_v11 = vadd.f32 %v8229_v5, %v3319_v59  ;;  %v3743_v5 = vadd.f32 %v8239_v23, %v3318_v31 }
 0x1df   :  { %8490 = vst [vmem:[#allocation11_spill] sm:$0xff] %v8271_v55  ;;  %v3884_v63 = vpop.f32.mrf.mxu0  ;;  %v3320_v55 = vadd.f32 %v8225_v45, %v8205_v62  ;;  %v3946_v44 = vadd.f32 %v6109_v46, %v3744_v11 }
 0x1e0   :  { %v6127_v15 = vpop.f32.mrf.mxu1 }
 0x1e1   :  { %v4371_v59 = vadd.f32 %v6127_v15, %v3946_v44 }
 0x1e2   :  { %v4306_v19 = vpop.f32.mrf.mxu1 }
 0x1e4   :  { %v6128_v61 = vpop.f32.mrf.mxu1  ;;  %v6113_v42 = vpop.f32.mrf.mxu0 }
 0x1e6   :  { %v4309_v50 = vpop.f32.mrf.mxu1  ;;  %v3897_v51 = vpop.f32.mrf.mxu0 }
 0x1e8   :  { %v8273_v24 = vpop.f32.mrf.mxu0 }
 0x1ea   :  { %v8275_v3 = vpop.f32.mrf.mxu1  ;;  %v8279_v33 = vpop.f32.mrf.mxu0 }
 0x1ec   :  { %v8277_v36 = vpop.f32.mrf.mxu1 }
 0x1ee   :  { %v8281_v0 = vpop.f32.mrf.mxu1 }
 0x1f0   :  { %v8283_v12 = vpop.f32.mrf.mxu1  ;;  %v8285_v4 = vpop.f32.mrf.mxu0 }
 0x1f2   :  { %v8287_v53 = vpop.f32.mrf.mxu0 }
 0x1f4   :  { %v8289_v39 = vpop.f32.mrf.mxu1  ;;  %v8291_v18 = vpop.f32.mrf.mxu0 }
 0x1f6   :  { %v8293_v7 = vpop.f32.mrf.mxu1  ;;  %v8295_v20 = vpop.f32.mrf.mxu0 }
 0x1f8   :  { %v8297_v28 = vpop.f32.mrf.mxu1 }
 0x1fa   :  { %v8301_v56 = vpop.f32.mrf.mxu1 }
 0x1fb   :  { %8491 = vst [vmem:[#allocation12_spill] sm:$0xff] %v8301_v56  ;;  %v8303_v9 = vpop.f32.mrf.mxu0 }
 0x1fc   :  { %8492 = vst [vmem:[#allocation13_spill] sm:$0xff] %v8303_v9  ;;  %v3742_v9 = vadd.f32 %v8231_v1, %v3317_v37  ;;  %v3945_v1 = vadd.f32 %v3884_v63, %v3743_v5  ;;  %v3322_v63 = vadd.f32 %v8243_v25, %v8215_v13 }
 0x1fd   :  { %v8307_v34 = vpop.f32.mrf.mxu0 }
 0x1fe   :  { %8493 = vst [vmem:[#allocation14_spill] sm:$0xff] %v8307_v34  ;;  %v3944_v30 = vadd.f32 %v3881_v29, %v3742_v9  ;;  %v3745_v34 = vadd.f32 %v8235_v41, %v3320_v55  ;;  %v3321_v29 = vadd.f32 %v8237_v58, %v8211_v8  ;;  %v8339_v58 = vld [vmem:[#allocation4] ss:$0 sm:$0xff]  ;;  %v3747_v13 = vadd.f32 %v8251_v21, %v3322_v63 }
 0x1ff   :  { %v8312_v22 = vpop.f32.mrf.mxu1  ;;  %v8314_v52 = vpop.f32.mrf.mxu0 }
 0x200   :  { %8494 = vst [vmem:[#allocation15_spill] sm:$0xff] %v8312_v22  ;;  %v3947_v45 = vadd.f32 %v6110_v49, %v3745_v34  ;;  %v3323_v22 = vadd.f32 %v8233_v26, %v8209_v17  ;;  %v4369_v11 = vadd.f32 %v4306_v19, %v3944_v30  ;;  %v3324_v49 = vadd.f32 %v8241_v2, %v8213_v43 }
 0x201   :  { %v8319_v56 = vpop.f32.mrf.mxu1  ;;  %v8321_v60 = vpop.f32.mrf.mxu0  ;;  %v4370_v34 = vadd.f32 %v4309_v50, %v3945_v1  ;;  %v3746_v31 = vadd.f32 %v8247_v14, %v3321_v29 }
 0x202   :  { %v4372_v55 = vadd.f32 %v6128_v61, %v3947_v45  ;;  %v3748_v23 = vadd.f32 %v8245_v47, %v3323_v22  ;;  %v3749_v2 = vadd.f32 %v8249_v54, %v3324_v49 }
 0x203   :  { %v8324_v62 = vpop.f32.mrf.mxu1  ;;  %v3948_v43 = vadd.f32 %v3897_v51, %v3746_v31  ;;  %v3949_v51 = vadd.f32 %v8279_v33, %v3747_v13 }
 0x204   :  { %v3950_v19 = vadd.f32 %v6113_v42, %v3748_v23  ;;  %v3951_v50 = vadd.f32 %v8273_v24, %v3749_v2 }
 0x205   :  { %v8329_v6 = vpop.f32.mrf.mxu1  ;;  %v4373_v1 = vadd.f32 %v8277_v36, %v3948_v43  ;;  %v4374_v36 = vadd.f32 %v8283_v12, %v3949_v51  ;;  %v8496_v51 = vld [vmem:[#allocation8_spill] sm:$0xff] }
 0x206   :  { %v6145_v32 = vpop.f32.mrf.mxu0  ;;  %v4375_v14 = vadd.f32 %v8275_v3, %v3950_v19  ;;  %v3328_v3 = vadd.f32 %v8253_v35, %v8217_v16  ;;  %v3952_v19 = vadd.f32 %v8287_v53, %v8259_v10 }
 0x207   :  { %v4573_v46 = vadd.f32 %v6145_v32, %v4371_v59 }
 0x208   :  { %v4508_v9 = vpop.f32.mrf.mxu0  ;;  %v3753_v12 = vadd.f32 %v8261_v38, %v3328_v3  ;;  %v4377_v2 = vadd.f32 %v8293_v7, %v3952_v19 }
 0x209   :  { %v4571_v41 = vadd.f32 %v4508_v9, %v4369_v11  ;;  %v4376_v9 = vadd.f32 %v8281_v0, %v3951_v50 }
 0x20a   :  { %v6163_v15 = vpop.f32.mrf.mxu1  ;;  %v6146_v37 = vpop.f32.mrf.mxu0 }
 0x20b   :  { %v4998_v17 = vadd.f32 %v6163_v15, %v4573_v46  ;;  %v4574_v26 = vadd.f32 %v6146_v37, %v4372_v55 }
 0x20c   :  { %v4933_v8 = vpop.f32.mrf.mxu1  ;;  %v4511_v61 = vpop.f32.mrf.mxu0 }
 0x20d   :  { %v4996_v44 = vadd.f32 %v4933_v8, %v4571_v41  ;;  %v4572_v30 = vadd.f32 %v4511_v61, %v4370_v34  ;;  %v5021_v22 = vadd.f32 %v8339_v58, %v4998_v17  ;;  %v3326_v17 = vadd.f32 %v8255_v40, %v8219_v57 }
 0x20e   :  { %v6164_v47 = vpop.f32.mrf.mxu1 }
 0x20f   :  { %v4999_v45 = vadd.f32 %v6164_v47, %v4574_v26  ;;  %v5019_v42 = vadd.f32 %v8339_v58, %v4996_v44  ;;  %v5037_v46 = vmax.f32 %v5021_v22, 0.0  ;;  %v3954_v26 = vadd.f32 %v8285_v4, %v8257_v27 }
 0x210   :  { %v4936_v25 = vpop.f32.mrf.mxu1  ;;  %v3955_v4 = vadd.f32 %v8291_v18, %v3753_v12  ;;  %v3751_v31 = vadd.f32 %v8263_v48, %v3326_v17 }
 0x211   :  { %v5022_v5 = vadd.f32 %v8339_v58, %v4999_v45  ;;  %v4997_v59 = vadd.f32 %v4936_v25, %v4572_v30  ;;  %v6149_v32 = vpop.f32.mrf.mxu0  ;;  %v5035_v41 = vmax.f32 %v5019_v42, 0.0  ;;  %v4379_v61 = vadd.f32 %v8289_v39, %v3954_v26 }
 0x212   :  { %v4577_v54 = vadd.f32 %v6149_v32, %v4375_v14  ;;  %v3953_v30 = vadd.f32 %v8295_v20, %v3751_v31  ;;  %v4380_v50 = vadd.f32 %v8297_v28, %v3955_v4  ;;  %v8495_v32 = vld [vmem:[#allocation12_spill] sm:$0xff] }
 0x213   :  { %v5038_v11 = vmax.f32 %v5022_v5, 0.0  ;;  %v5020_v24 = vadd.f32 %v8339_v58, %v4997_v59  ;;  %v4524_v29 = vpop.f32.mrf.mxu0 }
 0x214   :  { %v4575_v21 = vadd.f32 %v4524_v29, %v4373_v1  ;;  %v4378_v20 = vadd.f32 %v8495_v32, %v3953_v30  ;;  %v8498_v29 = vld [vmem:[#allocation9_spill] sm:$0xff] }
 0x215   :  { %v5706_v55 = vpack.c.bf16 %v5038_v11, %v5037_v46  ;;  %v6167_v49 = vpop.f32.mrf.mxu1  ;;  %v5036_v23 = vmax.f32 %v5020_v24, 0.0  ;;  %v6150_v15 = vpop.f32.mrf.mxu0 }
 0x216   :  { %v5002_v33 = vadd.f32 %v6167_v49, %v4577_v54  ;;  %v4578_v37 = vadd.f32 %v6150_v15, %v4376_v9  ;;  %v8497_v54 = vld [vmem:[#allocation13_spill] sm:$0xff]  ;;  %v8500_v49 = vld [vmem:[#allocation10_spill] sm:$0xff] }
 0x217   :  { %5738 = vst [vmem:[%s8420_s3 + $0x8] sm:$0xff] %v5706_v55   ;;  %v5701_v16 = vpack.c.bf16 %v5036_v23, %v5035_v41  ;;  %v4949_v35 = vpop.f32.mrf.mxu1  ;;  %v4527_v0 = vpop.f32.mrf.mxu0  ;;  %v3958_v7 = vadd.f32 %v8497_v54, %v8496_v51  ;;  %v3959_v23 = vadd.f32 %v8314_v52, %v8500_v49 }
 0x218   :  { %v5000_v34 = vadd.f32 %v4949_v35, %v4575_v21  ;;  %v4576_v63 = vadd.f32 %v4527_v0, %v4374_v36  ;;  %v5025_v40 = vadd.f32 %v8339_v58, %v5002_v33  ;;  %v8499_v21 = vld [vmem:[#allocation14_spill] sm:$0xff]  ;;  %v8501_v33 = vld [vmem:[#allocation15_spill] sm:$0xff] }
 0x219   :  { %5702 = vst [vmem:[%s8420_s3] sm:$0xff] %v5701_v16   ;;  %v6168_v57 = vpop.f32.mrf.mxu1  ;;  %v3956_v9 = vadd.f32 %v8499_v21, %v8498_v29  ;;  %v8502_v35 = vld [vmem:[#allocation11_spill] sm:$0xff] }
 0x21a   :  { %v5003_v27 = vadd.f32 %v6168_v57, %v4578_v37  ;;  %v5023_v44 = vadd.f32 %v8339_v58, %v5000_v34  ;;  %v5041_v47 = vmax.f32 %v5025_v40, 0.0  ;;  %v4383_v37 = vadd.f32 %v8501_v33, %v3958_v7 }
 0x21b   :  { %v4952_v8 = vpop.f32.mrf.mxu1  ;;  %v3957_v0 = vadd.f32 %v8321_v60, %v8502_v35 }
 0x21c   :  { %v5026_v10 = vadd.f32 %v8339_v58, %v5003_v27  ;;  %v5001_v38 = vadd.f32 %v4952_v8, %v4576_v63  ;;  %v6153_v53 = vpop.f32.mrf.mxu0  ;;  %v5039_v39 = vmax.f32 %v5023_v44, 0.0  ;;  %v4381_v63 = vadd.f32 %v8319_v56, %v3956_v9 }
 0x21d   :  { %v4581_v43 = vadd.f32 %v6153_v53, %v4379_v61  ;;  %v4384_v27 = vadd.f32 %v8324_v62, %v3959_v23  ;;  %v4382_v60 = vadd.f32 %v8329_v6, %v3957_v0 }
 0x21e   :  { %v5042_v22 = vmax.f32 %v5026_v10, 0.0  ;;  %v5024_v18 = vadd.f32 %v8339_v58, %v5001_v38  ;;  %v4540_v45 = vpop.f32.mrf.mxu0 }
 0x21f   :  { %v4579_v48 = vadd.f32 %v4540_v45, %v4377_v2 }
 0x220   :  { %v5716_v13 = vpack.c.bf16 %v5042_v22, %v5041_v47  ;;  %v6171_v25 = vpop.f32.mrf.mxu1  ;;  %v5040_v14 = vmax.f32 %v5024_v18, 0.0  ;;  %v6154_v42 = vpop.f32.mrf.mxu0 }
 0x221   :  { %v5006_v5 = vadd.f32 %v6171_v25, %v4581_v43  ;;  %v4582_v59 = vadd.f32 %v6154_v42, %v4380_v50 }
 0x222   :  { %5740 = vst [vmem:[%s8420_s3 + $0x18] sm:$0xff] %v5716_v13   ;;  %v5711_v1 = vpack.c.bf16 %v5040_v14, %v5039_v39  ;;  %v4965_v46 = vpop.f32.mrf.mxu1  ;;  %v4543_v11 = vpop.f32.mrf.mxu0 }
 0x223   :  { %v5004_v28 = vadd.f32 %v4965_v46, %v4579_v48  ;;  %v4580_v24 = vadd.f32 %v4543_v11, %v4378_v20  ;;  %v5029_v41 = vadd.f32 %v8339_v58, %v5006_v5 }
 0x224   :  { %5739 = vst [vmem:[%s8420_s3 + $0x10] sm:$0xff] %v5711_v1   ;;  %v6172_v3 = vpop.f32.mrf.mxu1 }
 0x225   :  { %v5007_v55 = vadd.f32 %v6172_v3, %v4582_v59  ;;  %v5027_v36 = vadd.f32 %v8339_v58, %v5004_v28  ;;  %v5045_v19 = vmax.f32 %v5029_v41, 0.0 }
 0x226   :  { %v4968_v15 = vpop.f32.mrf.mxu1 }
 0x227   :  { %v5030_v17 = vadd.f32 %v8339_v58, %v5007_v55  ;;  %v5005_v26 = vadd.f32 %v4968_v15, %v4580_v24  ;;  %v6157_v16 = vpop.f32.mrf.mxu0  ;;  %v5043_v4 = vmax.f32 %v5027_v36, 0.0 }
 0x228   :  { %v4585_v34 = vadd.f32 %v6157_v16, %v4383_v37 }
 0x229   :  { %v5046_v12 = vmax.f32 %v5030_v17, 0.0  ;;  %v5028_v57 = vadd.f32 %v8339_v58, %v5005_v26  ;;  %v4556_v52 = vpop.f32.mrf.mxu0 }
 0x22a   :  { %v4583_v40 = vadd.f32 %v4556_v52, %v4381_v63 }
 0x22b   :  { %v5726_v31 = vpack.c.bf16 %v5046_v12, %v5045_v19  ;;  %v6175_v8 = vpop.f32.mrf.mxu1  ;;  %v5044_v61 = vmax.f32 %v5028_v57, 0.0  ;;  %v6158_v44 = vpop.f32.mrf.mxu0 }
 0x22c   :  { %v5010_v10 = vadd.f32 %v6175_v8, %v4585_v34  ;;  %v4586_v38 = vadd.f32 %v6158_v44, %v4384_v27 }
 0x22d   :  { %5742 = vst [vmem:[%s8420_s3 + $0x28] sm:$0xff] %v5726_v31   ;;  %v5721_v56 = vpack.c.bf16 %v5044_v61, %v5043_v4  ;;  %v4981_v53 = vpop.f32.mrf.mxu1  ;;  %v4559_v30 = vpop.f32.mrf.mxu0 }
 0x22e   :  { %v5008_v43 = vadd.f32 %v4981_v53, %v4583_v40  ;;  %v4584_v2 = vadd.f32 %v4559_v30, %v4382_v60  ;;  %v5033_v47 = vadd.f32 %v8339_v58, %v5010_v10 }
 0x22f   :  { %5741 = vst [vmem:[%s8420_s3 + $0x20] sm:$0xff] %v5721_v56   ;;  %v6176_v62 = vpop.f32.mrf.mxu1 }
 0x230   :  { %v5011_v22 = vadd.f32 %v6176_v62, %v4586_v38  ;;  %v5031_v6 = vadd.f32 %v8339_v58, %v5008_v43  ;;  %v5049_v50 = vmax.f32 %v5033_v47, 0.0 }
 0x231   :  { %v4984_v18 = vpop.f32.mrf.mxu1 }
 0x232   :  { %v5034_v45 = vadd.f32 %v8339_v58, %v5011_v22  ;;  %v5009_v48 = vadd.f32 %v4984_v18, %v4584_v2  ;;  %v5047_v25 = vmax.f32 %v5031_v6, 0.0 }
 0x234   :  { %v5050_v39 = vmax.f32 %v5034_v45, 0.0  ;;  %v5032_v13 = vadd.f32 %v8339_v58, %v5009_v48 }
 0x236   :  { %v5736_v14 = vpack.c.bf16 %v5050_v39, %v5049_v50  ;;  %v5048_v42 = vmax.f32 %v5032_v13, 0.0 }
 0x238   :  { %5744 = vst [vmem:[%s8420_s3 + $0x38] sm:$0xff] %v5736_v14   ;;  %v5731_v5 = vpack.c.bf16 %v5048_v42, %v5047_v25 }
 0x23a   :  { %5743 = vst [vmem:[%s8420_s3 + $0x30] sm:$0xff] %v5731_v5  }
 0x23b   :  { %5087 = vsyncpa [#allocation3], 1 }
 0x23c   :  { %5088 = vsyncpa [#allocation5], 1 }

// kernel: forward.7
= control target key start
LH: loop header
LB: loop body
LE: loop exit
PB: predicated region body
PF: predicated region fallthrough
CT: control target
= control target key end

     0   :  { %v542_v32 = vlaneseq  ;;  %v6205_v33 = vmov 1966171168   ;;  %vm5179_vm1 = vcmask 1041408   ;;  %s8470_s1 = inlined_call_operand.vmem [shape: bf16[1024,1024], index: 1, kind: input, shape index: {}]   ;;  %s8471_s0 = inlined_call_operand.vmem [shape: bf16[2,1024], index: 0, kind: input, shape index: {}]   ;;  %s8472_s2 = inlined_call_operand.vmem [shape: f32[1,1024], index: 2, kind: input, shape index: {}]   ;;  %s8473_s3 = inlined_call_operand.vmem [shape: bf16[512,128], index: 3, kind: input, shape index: {}]   ;;  %s8474_s5 = inlined_call_operand.vmem [shape: bf16[512,512], index: 5, kind: input, shape index: {}]   ;;  %s8475_s4 = inlined_call_operand.vmem [shape: f32[1,128], index: 4, kind: input, shape index: {}]   ;;  %s8476_s6 = inlined_call_operand.vmem [shape: f32[1,512], index: 6, kind: input, shape index: {}]   ;;  %s8477_s7 = inlined_call_operand.vmem [shape: f32[2,512], index: 7, kind: output, shape index: {}]  }
   0x1   :  { %v84_v0 = vld [vmem:[%s8470_s1 + $0x1c0] sm:$0xff]  ;;  %v585_v34 = vunpack.c.l.s4 %v6205_v33 }
   0x2   :  { %v88_v1 = vld [vmem:[%s8470_s1 + $0x1e0] sm:$0xff]  ;;  %v6313_v43 = vshrl.u32 %v542_v32, 7 }
   0x3   :  { %v212_v2 = vld [vmem:[%s8470_s1 + $0x5c0] sm:$0xff]  ;;  %v5302_v3 = vcombine.high %v84_v0, %v88_v1  ;;  %v5301_v5 = vcombine.low %v84_v0, %v88_v1  ;;  %v586_v44 = vunpack.c.0.s8 %v585_v34 }
   0x4   :  { %v216_v4 = vld [vmem:[%s8470_s1 + $0x5e0] sm:$0xff] }
   0x5   :  { %v76_v6 = vld [vmem:[%s8470_s1 + $0x180] sm:$0xff]  ;;  %v5430_v8 = vcombine.high %v212_v2, %v216_v4  ;;  %v5429_v9 = vcombine.low %v212_v2, %v216_v4  ;;  %3200 = vmatprep.subr.bf16.mxu0 %v5302_v3  ;;  %v6328_v53 = vsub.s32 %v586_v44, %v6313_v43 }
   0x6   :  { %v80_v7 = vld [vmem:[%s8470_s1 + $0x1a0] sm:$0xff]  ;;  %3201 = vmatpush1.bf16.msra.mxu0 %v5301_v5 }
   0x7   :  { %v5294_v10 = vcombine.high %v76_v6, %v80_v7  ;;  %v204_v11 = vld [vmem:[%s8470_s1 + $0x580] sm:$0xff]  ;;  %3241 = vmatprep.subr.bf16.mxu1 %v5430_v8  ;;  %v5293_v18 = vcombine.low %v76_v6, %v80_v7 }
   0x8   :  { %v208_v12 = vld [vmem:[%s8470_s1 + $0x5a0] sm:$0xff]  ;;  %3242 = vmatpush1.bf16.msra.mxu1 %v5429_v9 }
   0x9   :  { %v68_v13 = vld [vmem:[%s8470_s1 + $0x140] sm:$0xff]  ;;  %v5422_v14 = vcombine.high %v204_v11, %v208_v12  ;;  %3202 = vmatprep.subr.bf16.mxu0 %v5294_v10  ;;  %v5421_v19 = vcombine.low %v204_v11, %v208_v12 }
   0xa   :  { %v72_v15 = vld [vmem:[%s8470_s1 + $0x160] sm:$0xff]  ;;  %3203 = vmatpush1.bf16.msra.mxu0 %v5293_v18 }
   0xb   :  { %v196_v16 = vld [vmem:[%s8470_s1 + $0x540] sm:$0xff]  ;;  %v5286_v20 = vcombine.high %v68_v13, %v72_v15  ;;  %3243 = vmatprep.subr.bf16.mxu1 %v5422_v14  ;;  %v5285_v26 = vcombine.low %v68_v13, %v72_v15 }
   0xc   :  { %v200_v17 = vld [vmem:[%s8470_s1 + $0x560] sm:$0xff]  ;;  %3244 = vmatpush1.bf16.msra.mxu1 %v5421_v19 }
   0xd   :  { %v5414_v21 = vcombine.high %v196_v16, %v200_v17  ;;  %v60_v22 = vld [vmem:[%s8470_s1 + $0x100] sm:$0xff]  ;;  %3204 = vmatprep.subr.bf16.mxu0 %v5286_v20  ;;  %v5413_v27 = vcombine.low %v196_v16, %v200_v17 }
   0xe   :  { %v64_v23 = vld [vmem:[%s8470_s1 + $0x120] sm:$0xff]  ;;  %3205 = vmatpush1.bf16.msra.mxu0 %v5285_v26 }
   0xf   :  { %v188_v24 = vld [vmem:[%s8470_s1 + $0x500] sm:$0xff]  ;;  %v5278_v28 = vcombine.high %v60_v22, %v64_v23  ;;  %3245 = vmatprep.subr.bf16.mxu1 %v5414_v21  ;;  %v5277_v37 = vcombine.low %v60_v22, %v64_v23 }
  0x10   :  { %v192_v25 = vld [vmem:[%s8470_s1 + $0x520] sm:$0xff]  ;;  %3246 = vmatpush1.bf16.msra.mxu1 %v5413_v27 }
  0x11   :  { %v5406_v29 = vcombine.high %v188_v24, %v192_v25  ;;  %v52_v30 = vld [vmem:[%s8470_s1 + $0xc0] sm:$0xff]  ;;  %3206 = vmatprep.subr.bf16.mxu0 %v5278_v28  ;;  %v5405_v38 = vcombine.low %v188_v24, %v192_v25 }
  0x12   :  { %v56_v31 = vld [vmem:[%s8470_s1 + $0xe0] sm:$0xff]  ;;  %3207 = vmatpush1.bf16.msra.mxu0 %v5277_v37 }
  0x13   :  { %v180_v35 = vld [vmem:[%s8470_s1 + $0x4c0] sm:$0xff]  ;;  %v5270_v39 = vcombine.high %v52_v30, %v56_v31  ;;  %3247 = vmatprep.subr.bf16.mxu1 %v5406_v29  ;;  %v5269_v47 = vcombine.low %v52_v30, %v56_v31 }
  0x14   :  { %v184_v36 = vld [vmem:[%s8470_s1 + $0x4e0] sm:$0xff]  ;;  %3248 = vmatpush1.bf16.msra.mxu1 %v5405_v38 }
  0x15   :  { %v5398_v40 = vcombine.high %v180_v35, %v184_v36  ;;  %v44_v41 = vld [vmem:[%s8470_s1 + $0x80] sm:$0xff]  ;;  %3208 = vmatprep.subr.bf16.mxu0 %v5270_v39  ;;  %v5397_v48 = vcombine.low %v180_v35, %v184_v36 }
  0x16   :  { %v48_v42 = vld [vmem:[%s8470_s1 + $0xa0] sm:$0xff]  ;;  %3209 = vmatpush1.bf16.msra.mxu0 %v5269_v47 }
  0x17   :  { %v172_v45 = vld [vmem:[%s8470_s1 + $0x480] sm:$0xff]  ;;  %v5262_v49 = vcombine.high %v44_v41, %v48_v42  ;;  %3249 = vmatprep.subr.bf16.mxu1 %v5398_v40  ;;  %v5261_v56 = vcombine.low %v44_v41, %v48_v42 }
  0x18   :  { %v176_v46 = vld [vmem:[%s8470_s1 + $0x4a0] sm:$0xff]  ;;  %3250 = vmatpush1.bf16.msra.mxu1 %v5397_v48 }
  0x19   :  { %v5390_v50 = vcombine.high %v172_v45, %v176_v46  ;;  %v36_v51 = vld [vmem:[%s8470_s1 + $0x40] sm:$0xff]  ;;  %3210 = vmatprep.subr.bf16.mxu0 %v5262_v49  ;;  %v5389_v57 = vcombine.low %v172_v45, %v176_v46 }
  0x1a   :  { %v40_v52 = vld [vmem:[%s8470_s1 + $0x60] sm:$0xff]  ;;  %3211 = vmatpush1.bf16.msra.mxu0 %v5261_v56 }
  0x1b   :  { %v164_v54 = vld [vmem:[%s8470_s1 + $0x440] sm:$0xff]  ;;  %v5254_v58 = vcombine.high %v36_v51, %v40_v52  ;;  %3251 = vmatprep.subr.bf16.mxu1 %v5390_v50  ;;  %v5253_v2 = vcombine.low %v36_v51, %v40_v52 }
  0x1c   :  { %v168_v55 = vld [vmem:[%s8470_s1 + $0x460] sm:$0xff]  ;;  %3252 = vmatpush1.bf16.msra.mxu1 %v5389_v57 }
  0x1d   :  { %v27_v59 = vld [vmem:[%s8471_s0] sm:$0xff]  ;;  %v5382_v60 = vcombine.high %v164_v54, %v168_v55  ;;  %3212 = vmatprep.subr.bf16.mxu0 %v5254_v58  ;;  %v5381_v4 = vcombine.low %v164_v54, %v168_v55 }
  0x1e   :  { %v28_v61 = vld [vmem:[%s8470_s1] sm:$0xff]  ;;  %v6346_v63 = vrot.slane %v27_v59, %v6328_v53  ;;  %3213 = vmatpush1.bf16.msra.mxu0 %v5253_v2  ;;  %v583_v19 = vcombine.high %v27_v59, %v27_v59 }
  0x1f   :  { %v32_v62 = vld [vmem:[%s8470_s1 + $0x20] sm:$0xff]  ;;  %3253 = vmatprep.subr.bf16.mxu1 %v5382_v60 }
  0x20   :  { %v156_v0 = vld [vmem:[%s8470_s1 + $0x400] sm:$0xff]  ;;  %v598_v3 = vcombine.high %v6346_v63, %v6346_v63  ;;  %v5246_v5 = vcombine.high %v28_v61, %v32_v62  ;;  %v5245_v12 = vcombine.low %v28_v61, %v32_v62  ;;  %3254 = vmatpush1.bf16.msra.mxu1 %v5381_v4  ;;  %v6396_v28 = vrot.slane %v583_v19, %v6328_v53 }
  0x21   :  { %v160_v1 = vld [vmem:[%s8470_s1 + $0x420] sm:$0xff] }
  0x22   :  { %v5374_v6 = vcombine.high %v156_v0, %v160_v1  ;;  %v148_v7 = vld [vmem:[%s8470_s1 + $0x3c0] sm:$0xff]  ;;  %v6363_v9 = vrot.slane %v598_v3, %v6328_v53  ;;  %3214 = vmatprep.subr.bf16.mxu0 %v5246_v5  ;;  %v5373_v14 = vcombine.low %v156_v0, %v160_v1  ;;  %v6406_v33 = vrot.slane %v6396_v28, %v6328_v53 }
  0x23   :  { %v152_v8 = vld [vmem:[%s8470_s1 + $0x3e0] sm:$0xff]  ;;  %3215 = vmatpush1.bf16.msra.mxu0 %v5245_v12 }
  0x24   :  { %v276_v10 = vld [vmem:[%s8470_s1 + $0x7c0] sm:$0xff]  ;;  %3232 = vmatprep.mubr.bf16.mxu0 %v6363_v9  ;;  %v6374_v13 = vcombine.high %v6363_v9, %v6363_v9  ;;  %v5366_v15 = vcombine.high %v148_v7, %v152_v8  ;;  %3255 = vmatprep.subr.bf16.mxu1 %v5374_v6  ;;  %v5365_v22 = vcombine.low %v148_v7, %v152_v8 }
  0x25   :  { %v280_v11 = vld [vmem:[%s8470_s1 + $0x7e0] sm:$0xff]  ;;  %3256 = vmatpush1.bf16.msra.mxu1 %v5373_v14 }
  0x26   :  { %v5494_v16 = vcombine.high %v276_v10, %v280_v11  ;;  %v140_v17 = vld [vmem:[%s8470_s1 + $0x380] sm:$0xff]  ;;  %3273 = vmatprep.mubr.bf16.mxu1 %v6374_v13  ;;  %3216 = vmatprep.subr.bf16.mxu0 %v5366_v15  ;;  %v5493_v23 = vcombine.low %v276_v10, %v280_v11 }
  0x27   :  { %v144_v18 = vld [vmem:[%s8470_s1 + $0x3a0] sm:$0xff]  ;;  %3217 = vmatpush2.bf16.msra.mxu0 %v5365_v22  ;;  %v599_v22 = vcombine.high %v6396_v28, %v6396_v28 }
  0x28   :  { %v268_v20 = vld [vmem:[%s8470_s1 + $0x780] sm:$0xff]  ;;  %v5358_v24 = vcombine.high %v140_v17, %v144_v18  ;;  %3257 = vmatprep.subr.bf16.mxu1 %v5494_v16  ;;  %v5357_v31 = vcombine.low %v140_v17, %v144_v18 }
  0x29   :  { %v272_v21 = vld [vmem:[%s8470_s1 + $0x7a0] sm:$0xff]  ;;  %3258 = vmatpush2.bf16.msra.mxu1 %v5493_v23 }
  0x2a   :  { %v5486_v25 = vcombine.high %v268_v20, %v272_v21  ;;  %v132_v26 = vld [vmem:[%s8470_s1 + $0x340] sm:$0xff]  ;;  %3218 = vmatprep.subr.bf16.mxu0 %v5358_v24  ;;  %v5485_v34 = vcombine.low %v268_v20, %v272_v21  ;;  %v6484_v24 = vrot.slane %v6346_v63, %v6328_v53 }
  0x2b   :  { %v136_v27 = vld [vmem:[%s8470_s1 + $0x360] sm:$0xff]  ;;  %3219 = vmatpush2.bf16.msra.mxu0 %v5357_v31  ;;  %v6499_v31 = vrot.slane %v599_v22, %v6328_v53 }
  0x2c   :  { %v260_v29 = vld [vmem:[%s8470_s1 + $0x740] sm:$0xff]  ;;  %v5350_v35 = vcombine.high %v132_v26, %v136_v27  ;;  %3259 = vmatprep.subr.bf16.mxu1 %v5486_v25  ;;  %v5349_v41 = vcombine.low %v132_v26, %v136_v27 }
  0x2d   :  { %v264_v30 = vld [vmem:[%s8470_s1 + $0x760] sm:$0xff]  ;;  %3260 = vmatpush2.bf16.msra.mxu1 %v5485_v34  ;;  %v6503_v34 = vcombine.high %v6484_v24, %v6484_v24 }
  0x2e   :  { %v5478_v36 = vcombine.high %v260_v29, %v264_v30  ;;  %v124_v37 = vld [vmem:[%s8470_s1 + $0x300] sm:$0xff]  ;;  %3220 = vmatprep.subr.bf16.mxu0 %v5350_v35  ;;  %v5477_v42 = vcombine.low %v260_v29, %v264_v30 }
  0x2f   :  { %v128_v38 = vld [vmem:[%s8470_s1 + $0x320] sm:$0xff]  ;;  %3221 = vmatpush2.bf16.msra.mxu0 %v5349_v41 }
  0x30   :  { %v252_v39 = vld [vmem:[%s8470_s1 + $0x700] sm:$0xff]  ;;  %v5342_v44 = vcombine.high %v124_v37, %v128_v38  ;;  %3261 = vmatprep.subr.bf16.mxu1 %v5478_v36  ;;  %v5341_v50 = vcombine.low %v124_v37, %v128_v38 }
  0x31   :  { %v256_v40 = vld [vmem:[%s8470_s1 + $0x720] sm:$0xff]  ;;  %3262 = vmatpush2.bf16.msra.mxu1 %v5477_v42  ;;  %v6520_v42 = vcombine.high %v6499_v31, %v6499_v31 }
  0x32   :  { %v5470_v45 = vcombine.high %v252_v39, %v256_v40  ;;  %v116_v46 = vld [vmem:[%s8470_s1 + $0x2c0] sm:$0xff]  ;;  %3222 = vmatprep.subr.bf16.mxu0 %v5342_v44  ;;  %v5469_v51 = vcombine.low %v252_v39, %v256_v40 }
  0x33   :  { %v120_v47 = vld [vmem:[%s8470_s1 + $0x2e0] sm:$0xff]  ;;  %3223 = vmatpush2.bf16.msra.mxu0 %v5341_v50 }
  0x34   :  { %v244_v48 = vld [vmem:[%s8470_s1 + $0x6c0] sm:$0xff]  ;;  %v5334_v52 = vcombine.high %v116_v46, %v120_v47  ;;  %3263 = vmatprep.subr.bf16.mxu1 %v5470_v45  ;;  %v5333_v59 = vcombine.low %v116_v46, %v120_v47 }
  0x35   :  { %v248_v49 = vld [vmem:[%s8470_s1 + $0x6e0] sm:$0xff]  ;;  %3264 = vmatpush2.bf16.msra.mxu1 %v5469_v51 }
  0x36   :  { %v5462_v54 = vcombine.high %v244_v48, %v248_v49  ;;  %v108_v55 = vld [vmem:[%s8470_s1 + $0x280] sm:$0xff]  ;;  %3224 = vmatprep.subr.bf16.mxu0 %v5334_v52  ;;  %v5461_v60 = vcombine.low %v244_v48, %v248_v49 }
  0x37   :  { %v112_v56 = vld [vmem:[%s8470_s1 + $0x2a0] sm:$0xff]  ;;  %3225 = vmatpush2.bf16.msra.mxu0 %v5333_v59 }
  0x38   :  { %v236_v57 = vld [vmem:[%s8470_s1 + $0x680] sm:$0xff]  ;;  %v5326_v61 = vcombine.high %v108_v55, %v112_v56  ;;  %3265 = vmatprep.subr.bf16.mxu1 %v5462_v54  ;;  %v5325_v4 = vcombine.low %v108_v55, %v112_v56 }
  0x39   :  { %v240_v58 = vld [vmem:[%s8470_s1 + $0x6a0] sm:$0xff]  ;;  %3266 = vmatpush2.bf16.msra.mxu1 %v5461_v60 }
  0x3a   :  { %v5454_v62 = vcombine.high %v236_v57, %v240_v58  ;;  %v100_v0 = vld [vmem:[%s8470_s1 + $0x240] sm:$0xff]  ;;  %3226 = vmatprep.subr.bf16.mxu0 %v5326_v61  ;;  %v5453_v5 = vcombine.low %v236_v57, %v240_v58 }
  0x3b   :  { %v104_v1 = vld [vmem:[%s8470_s1 + $0x260] sm:$0xff]  ;;  %3227 = vmatpush2.bf16.msra.mxu0 %v5325_v4 }
  0x3c   :  { %v228_v2 = vld [vmem:[%s8470_s1 + $0x640] sm:$0xff]  ;;  %v5318_v6 = vcombine.high %v100_v0, %v104_v1  ;;  %3267 = vmatprep.subr.bf16.mxu1 %v5454_v62  ;;  %v5317_v14 = vcombine.low %v100_v0, %v104_v1 }
  0x3d   :  { %v232_v3 = vld [vmem:[%s8470_s1 + $0x660] sm:$0xff]  ;;  %3268 = vmatpush2.bf16.msra.mxu1 %v5453_v5 }
  0x3e   :  { %v5446_v7 = vcombine.high %v228_v2, %v232_v3  ;;  %v92_v8 = vld [vmem:[%s8470_s1 + $0x200] sm:$0xff]  ;;  %3228 = vmatprep.subr.bf16.mxu0 %v5318_v6  ;;  %v5445_v15 = vcombine.low %v228_v2, %v232_v3 }
  0x3f   :  { %v96_v10 = vld [vmem:[%s8470_s1 + $0x220] sm:$0xff]  ;;  %3229 = vmatpush2.bf16.msra.mxu0 %v5317_v14 }
  0x40   :  { %v220_v11 = vld [vmem:[%s8470_s1 + $0x600] sm:$0xff]  ;;  %v5310_v16 = vcombine.high %v92_v8, %v96_v10  ;;  %3269 = vmatprep.subr.bf16.mxu1 %v5446_v7  ;;  %v5309_v23 = vcombine.low %v92_v8, %v96_v10 }
  0x41   :  { %v224_v12 = vld [vmem:[%s8470_s1 + $0x620] sm:$0xff]  ;;  %3270 = vmatpush2.bf16.msra.mxu1 %v5445_v15 }
  0x42   :  { %v5438_v17 = vcombine.high %v220_v11, %v224_v12  ;;  %v340_v18 = vld [vmem:[%s8470_s1 + $0x9c0] sm:$0xff]  ;;  %3230 = vmatprep.subr.bf16.mxu0 %v5310_v16  ;;  %v5437_v25 = vcombine.low %v220_v11, %v224_v12 }
  0x43   :  { %v344_v19 = vld [vmem:[%s8470_s1 + $0x9e0] sm:$0xff]  ;;  %3231 = vmatpush2.bf16.msra.mxu0 %v5309_v23 }
  0x44   :  { %v468_v20 = vld [vmem:[%s8470_s1 + $0xdc0] sm:$0xff]  ;;  %v5558_v26 = vcombine.high %v340_v18, %v344_v19  ;;  %3271 = vmatprep.subr.bf16.mxu1 %v5438_v17  ;;  %v5557_v35 = vcombine.low %v340_v18, %v344_v19 }
  0x45   :  { %v472_v21 = vld [vmem:[%s8470_s1 + $0xde0] sm:$0xff]  ;;  %3272 = vmatpush2.bf16.msra.mxu1 %v5437_v25 }
  0x46   :  { %v5686_v27 = vcombine.high %v468_v20, %v472_v21  ;;  %v332_v29 = vld [vmem:[%s8470_s1 + $0x980] sm:$0xff]  ;;  %3282 = vmatprep.subr.bf16.mxu0 %v5558_v26  ;;  %v5685_v36 = vcombine.low %v468_v20, %v472_v21  ;;  %3233 = vmatmul.mubr.bf16.vlgmr.msra.gmra.mxu0 %v6484_v24 }
  0x47   :  { %v336_v28 = vld [vmem:[%s8470_s1 + $0x9a0] sm:$0xff]  ;;  %3283 = vmatpush1.bf16.msra.mxu0 %v5557_v35  ;;  %3314 = vmatprep.mubr.bf16.mxu0 %v6499_v31 }
  0x48   :  { %v460_v30 = vld [vmem:[%s8470_s1 + $0xd80] sm:$0xff]  ;;  %v5550_v37 = vcombine.high %v332_v29, %v336_v28  ;;  %3323 = vmatprep.subr.bf16.mxu1 %v5686_v27  ;;  %3274 = vmatmul.mubr.bf16.vlgmr.msra.gmra.mxu1 %v6503_v34  ;;  %v5549_v44 = vcombine.low %v332_v29, %v336_v28 }
  0x49   :  { %v464_v63 = vld [vmem:[%s8470_s1 + $0xda0] sm:$0xff]  ;;  %3324 = vmatpush1.bf16.msra.mxu1 %v5685_v36  ;;  %3355 = vmatprep.mubr.bf16.mxu1 %v6520_v42 }
  0x4a   :  { %v5678_v38 = vcombine.high %v460_v30, %v464_v63  ;;  %v324_v39 = vld [vmem:[%s8470_s1 + $0x940] sm:$0xff]  ;;  %3284 = vmatprep.subr.bf16.mxu0 %v5550_v37  ;;  %v5677_v45 = vcombine.low %v460_v30, %v464_v63 }
  0x4b   :  { %v328_v53 = vld [vmem:[%s8470_s1 + $0x960] sm:$0xff]  ;;  %3285 = vmatpush1.bf16.msra.mxu0 %v5549_v44 }
  0x4c   :  { %v452_v40 = vld [vmem:[%s8470_s1 + $0xd40] sm:$0xff]  ;;  %v5542_v46 = vcombine.high %v324_v39, %v328_v53  ;;  %3325 = vmatprep.subr.bf16.mxu1 %v5678_v38  ;;  %v5541_v52 = vcombine.low %v324_v39, %v328_v53 }
  0x4d   :  { %v456_v41 = vld [vmem:[%s8470_s1 + $0xd60] sm:$0xff]  ;;  %3326 = vmatpush1.bf16.msra.mxu1 %v5677_v45 }
  0x4e   :  { %v5670_v47 = vcombine.high %v452_v40, %v456_v41  ;;  %v316_v48 = vld [vmem:[%s8470_s1 + $0x900] sm:$0xff]  ;;  %3286 = vmatprep.subr.bf16.mxu0 %v5542_v46  ;;  %v5669_v54 = vcombine.low %v452_v40, %v456_v41 }
  0x4f   :  { %v320_v49 = vld [vmem:[%s8470_s1 + $0x920] sm:$0xff]  ;;  %3287 = vmatpush1.bf16.msra.mxu0 %v5541_v52 }
  0x50   :  { %v444_v50 = vld [vmem:[%s8470_s1 + $0xd00] sm:$0xff]  ;;  %v5534_v55 = vcombine.high %v316_v48, %v320_v49  ;;  %3327 = vmatprep.subr.bf16.mxu1 %v5670_v47  ;;  %v5533_v61 = vcombine.low %v316_v48, %v320_v49 }
  0x51   :  { %v448_v51 = vld [vmem:[%s8470_s1 + $0xd20] sm:$0xff]  ;;  %3328 = vmatpush1.bf16.msra.mxu1 %v5669_v54 }
  0x52   :  { %v5662_v56 = vcombine.high %v444_v50, %v448_v51  ;;  %v308_v57 = vld [vmem:[%s8470_s1 + $0x8c0] sm:$0xff]  ;;  %3288 = vmatprep.subr.bf16.mxu0 %v5534_v55  ;;  %v5661_v62 = vcombine.low %v444_v50, %v448_v51 }
  0x53   :  { %v312_v58 = vld [vmem:[%s8470_s1 + $0x8e0] sm:$0xff]  ;;  %3289 = vmatpush1.bf16.msra.mxu0 %v5533_v61 }
  0x54   :  { %v436_v59 = vld [vmem:[%s8470_s1 + $0xcc0] sm:$0xff]  ;;  %v5526_v0 = vcombine.high %v308_v57, %v312_v58  ;;  %3329 = vmatprep.subr.bf16.mxu1 %v5662_v56  ;;  %v5525_v6 = vcombine.low %v308_v57, %v312_v58 }
  0x55   :  { %v440_v60 = vld [vmem:[%s8470_s1 + $0xce0] sm:$0xff]  ;;  %3330 = vmatpush1.bf16.msra.mxu1 %v5661_v62 }
  0x56   :  { %v5654_v1 = vcombine.high %v436_v59, %v440_v60  ;;  %v300_v2 = vld [vmem:[%s8470_s1 + $0x880] sm:$0xff]  ;;  %3290 = vmatprep.subr.bf16.mxu0 %v5526_v0  ;;  %v5653_v7 = vcombine.low %v436_v59, %v440_v60 }
  0x57   :  { %v304_v3 = vld [vmem:[%s8470_s1 + $0x8a0] sm:$0xff]  ;;  %3291 = vmatpush1.bf16.msra.mxu0 %v5525_v6 }
  0x58   :  { %v428_v4 = vld [vmem:[%s8470_s1 + $0xc80] sm:$0xff]  ;;  %v5518_v8 = vcombine.high %v300_v2, %v304_v3  ;;  %3331 = vmatprep.subr.bf16.mxu1 %v5654_v1  ;;  %v5517_v16 = vcombine.low %v300_v2, %v304_v3 }
  0x59   :  { %v432_v5 = vld [vmem:[%s8470_s1 + $0xca0] sm:$0xff]  ;;  %3332 = vmatpush1.bf16.msra.mxu1 %v5653_v7 }
  0x5a   :  { %v5646_v10 = vcombine.high %v428_v4, %v432_v5  ;;  %v292_v11 = vld [vmem:[%s8470_s1 + $0x840] sm:$0xff]  ;;  %3292 = vmatprep.subr.bf16.mxu0 %v5518_v8  ;;  %v5645_v17 = vcombine.low %v428_v4, %v432_v5 }
  0x5b   :  { %v296_v12 = vld [vmem:[%s8470_s1 + $0x860] sm:$0xff]  ;;  %3293 = vmatpush1.bf16.msra.mxu0 %v5517_v16 }
  0x5c   :  { %v420_v14 = vld [vmem:[%s8470_s1 + $0xc40] sm:$0xff]  ;;  %v5510_v18 = vcombine.high %v292_v11, %v296_v12  ;;  %3333 = vmatprep.subr.bf16.mxu1 %v5646_v10  ;;  %v5509_v25 = vcombine.low %v292_v11, %v296_v12 }
  0x5d   :  { %v424_v15 = vld [vmem:[%s8470_s1 + $0xc60] sm:$0xff]  ;;  %3334 = vmatpush1.bf16.msra.mxu1 %v5645_v17 }
  0x5e   :  { %v5638_v19 = vcombine.high %v420_v14, %v424_v15  ;;  %v284_v20 = vld [vmem:[%s8470_s1 + $0x800] sm:$0xff]  ;;  %3294 = vmatprep.subr.bf16.mxu0 %v5510_v18  ;;  %v5637_v26 = vcombine.low %v420_v14, %v424_v15 }
  0x5f   :  { %v288_v21 = vld [vmem:[%s8470_s1 + $0x820] sm:$0xff]  ;;  %3295 = vmatpush1.bf16.msra.mxu0 %v5509_v25 }
  0x60   :  { %v412_v22 = vld [vmem:[%s8470_s1 + $0xc00] sm:$0xff]  ;;  %v5502_v27 = vcombine.high %v284_v20, %v288_v21  ;;  %3335 = vmatprep.subr.bf16.mxu1 %v5638_v19  ;;  %v5501_v36 = vcombine.low %v284_v20, %v288_v21 }
  0x61   :  { %v416_v23 = vld [vmem:[%s8470_s1 + $0xc20] sm:$0xff]  ;;  %3336 = vmatpush1.bf16.msra.mxu1 %v5637_v26 }
  0x62   :  { %v5630_v29 = vcombine.high %v412_v22, %v416_v23  ;;  %v404_v28 = vld [vmem:[%s8470_s1 + $0xbc0] sm:$0xff]  ;;  %3296 = vmatprep.subr.bf16.mxu0 %v5502_v27  ;;  %v5629_v37 = vcombine.low %v412_v22, %v416_v23 }
  0x63   :  { %v408_v30 = vld [vmem:[%s8470_s1 + $0xbe0] sm:$0xff]  ;;  %3297 = vmatpush1.bf16.msra.mxu0 %v5501_v36 }
  0x64   :  { %v532_v63 = vld [vmem:[%s8470_s1 + $0xfc0] sm:$0xff]  ;;  %v5622_v38 = vcombine.high %v404_v28, %v408_v30  ;;  %3337 = vmatprep.subr.bf16.mxu1 %v5630_v29  ;;  %v5621_v45 = vcombine.low %v404_v28, %v408_v30 }
  0x65   :  { %v536_v35 = vld [vmem:[%s8470_s1 + $0xfe0] sm:$0xff]  ;;  %3338 = vmatpush1.bf16.msra.mxu1 %v5629_v37 }
  0x66   :  { %v5750_v39 = vcombine.high %v532_v63, %v536_v35  ;;  %v396_v53 = vld [vmem:[%s8470_s1 + $0xb80] sm:$0xff]  ;;  %3298 = vmatprep.subr.bf16.mxu0 %v5622_v38  ;;  %v5749_v46 = vcombine.low %v532_v63, %v536_v35 }
  0x67   :  { %v400_v40 = vld [vmem:[%s8470_s1 + $0xba0] sm:$0xff]  ;;  %3299 = vmatpush2.bf16.msra.mxu0 %v5621_v45  ;;  %v217_v45 = vld [vmem:[%s8470_s1 + $0x5e8] sm:$0xff] }
  0x68   :  { %v524_v41 = vld [vmem:[%s8470_s1 + $0xf80] sm:$0xff]  ;;  %v5614_v47 = vcombine.high %v396_v53, %v400_v40  ;;  %3339 = vmatprep.subr.bf16.mxu1 %v5750_v39  ;;  %v5613_v54 = vcombine.low %v396_v53, %v400_v40  ;;  %v85_v40 = vld [vmem:[%s8470_s1 + $0x1c8] sm:$0xff] }
  0x69   :  { %v528_v44 = vld [vmem:[%s8470_s1 + $0xfa0] sm:$0xff]  ;;  %3340 = vmatpush2.bf16.msra.mxu1 %v5749_v46 }
  0x6a   :  { %v5742_v48 = vcombine.high %v524_v41, %v528_v44  ;;  %v388_v49 = vld [vmem:[%s8470_s1 + $0xb40] sm:$0xff]  ;;  %3300 = vmatprep.subr.bf16.mxu0 %v5614_v47  ;;  %v5741_v55 = vcombine.low %v524_v41, %v528_v44  ;;  %v89_v41 = vld [vmem:[%s8470_s1 + $0x1e8] sm:$0xff] }
  0x6b   :  { %v392_v50 = vld [vmem:[%s8470_s1 + $0xb60] sm:$0xff]  ;;  %3301 = vmatpush2.bf16.msra.mxu0 %v5613_v54  ;;  %v213_v44 = vld [vmem:[%s8470_s1 + $0x5c8] sm:$0xff] }
  0x6c   :  { %v516_v51 = vld [vmem:[%s8470_s1 + $0xf40] sm:$0xff]  ;;  %v5606_v56 = vcombine.high %v388_v49, %v392_v50  ;;  %3341 = vmatprep.subr.bf16.mxu1 %v5742_v48  ;;  %v5605_v62 = vcombine.low %v388_v49, %v392_v50  ;;  %v5304_v48 = vcombine.high %v85_v40, %v89_v41  ;;  %v5432_v49 = vcombine.high %v213_v44, %v217_v45  ;;  %v77_v50 = vld [vmem:[%s8470_s1 + $0x188] sm:$0xff] }
  0x6d   :  { %v520_v52 = vld [vmem:[%s8470_s1 + $0xf60] sm:$0xff]  ;;  %3342 = vmatpush2.bf16.msra.mxu1 %v5741_v55  ;;  %v209_v54 = vld [vmem:[%s8470_s1 + $0x5a8] sm:$0xff]  ;;  %v6707_v55 = vcombine.high %v6406_v33, %v6406_v33 }
  0x6e   :  { %v5734_v57 = vcombine.high %v516_v51, %v520_v52  ;;  %v380_v58 = vld [vmem:[%s8470_s1 + $0xb00] sm:$0xff]  ;;  %3302 = vmatprep.subr.bf16.mxu0 %v5606_v56  ;;  %v5733_v0 = vcombine.low %v516_v51, %v520_v52  ;;  %v81_v51 = vld [vmem:[%s8470_s1 + $0x1a8] sm:$0xff]  ;;  %v5303_v56 = vcombine.low %v85_v40, %v89_v41 }
  0x6f   :  { %v384_v59 = vld [vmem:[%s8470_s1 + $0xb20] sm:$0xff]  ;;  %3303 = vmatpush2.bf16.msra.mxu0 %v5605_v62  ;;  %v205_v52 = vld [vmem:[%s8470_s1 + $0x588] sm:$0xff] }
  0x70   :  { %v508_v60 = vld [vmem:[%s8470_s1 + $0xf00] sm:$0xff]  ;;  %v5598_v1 = vcombine.high %v380_v58, %v384_v59  ;;  %3343 = vmatprep.subr.bf16.mxu1 %v5734_v57  ;;  %v5597_v7 = vcombine.low %v380_v58, %v384_v59  ;;  %v5431_v57 = vcombine.low %v213_v44, %v217_v45  ;;  %v5296_v58 = vcombine.high %v77_v50, %v81_v51  ;;  %v197_v62 = vld [vmem:[%s8470_s1 + $0x548] sm:$0xff] }
  0x71   :  { %v512_v61 = vld [vmem:[%s8470_s1 + $0xf20] sm:$0xff]  ;;  %3344 = vmatpush2.bf16.msra.mxu1 %v5733_v0  ;;  %v5424_v59 = vcombine.high %v205_v52, %v209_v54  ;;  %v201_v0 = vld [vmem:[%s8470_s1 + $0x568] sm:$0xff] }
  0x72   :  { %v5726_v2 = vcombine.high %v508_v60, %v512_v61  ;;  %v372_v3 = vld [vmem:[%s8470_s1 + $0xac0] sm:$0xff]  ;;  %3304 = vmatprep.subr.bf16.mxu0 %v5598_v1  ;;  %v5725_v8 = vcombine.low %v508_v60, %v512_v61  ;;  %v69_v60 = vld [vmem:[%s8470_s1 + $0x148] sm:$0xff]  ;;  %v5295_v1 = vcombine.low %v77_v50, %v81_v51 }
  0x73   :  { %v376_v4 = vld [vmem:[%s8470_s1 + $0xae0] sm:$0xff]  ;;  %3305 = vmatpush2.bf16.msra.mxu0 %v5597_v7  ;;  %v73_v61 = vld [vmem:[%s8470_s1 + $0x168] sm:$0xff] }
  0x74   :  { %v500_v5 = vld [vmem:[%s8470_s1 + $0xec0] sm:$0xff]  ;;  %v5590_v10 = vcombine.high %v372_v3, %v376_v4  ;;  %3345 = vmatprep.subr.bf16.mxu1 %v5726_v2  ;;  %v5589_v17 = vcombine.low %v372_v3, %v376_v4  ;;  %v5423_v2 = vcombine.low %v205_v52, %v209_v54  ;;  %v5288_v3 = vcombine.high %v69_v60, %v73_v61  ;;  %v189_v7 = vld [vmem:[%s8470_s1 + $0x508] sm:$0xff] }
  0x75   :  { %v504_v6 = vld [vmem:[%s8470_s1 + $0xee0] sm:$0xff]  ;;  %3346 = vmatpush2.bf16.msra.mxu1 %v5725_v8  ;;  %v5416_v4 = vcombine.high %v197_v62, %v201_v0  ;;  %v193_v8 = vld [vmem:[%s8470_s1 + $0x528] sm:$0xff] }
  0x76   :  { %v5718_v11 = vcombine.high %v500_v5, %v504_v6  ;;  %v364_v12 = vld [vmem:[%s8470_s1 + $0xa80] sm:$0xff]  ;;  %3306 = vmatprep.subr.bf16.mxu0 %v5590_v10  ;;  %v5717_v18 = vcombine.low %v500_v5, %v504_v6  ;;  %v61_v5 = vld [vmem:[%s8470_s1 + $0x108] sm:$0xff]  ;;  %v5287_v10 = vcombine.low %v69_v60, %v73_v61 }
  0x77   :  { %v368_v14 = vld [vmem:[%s8470_s1 + $0xaa0] sm:$0xff]  ;;  %3307 = vmatpush2.bf16.msra.mxu0 %v5589_v17  ;;  %v65_v6 = vld [vmem:[%s8470_s1 + $0x128] sm:$0xff] }
  0x78   :  { %v492_v15 = vld [vmem:[%s8470_s1 + $0xe80] sm:$0xff]  ;;  %v5582_v19 = vcombine.high %v364_v12, %v368_v14  ;;  %3347 = vmatprep.subr.bf16.mxu1 %v5718_v11  ;;  %v5581_v26 = vcombine.low %v364_v12, %v368_v14  ;;  %v5415_v11 = vcombine.low %v197_v62, %v201_v0  ;;  %v5280_v12 = vcombine.high %v61_v5, %v65_v6  ;;  %v181_v17 = vld [vmem:[%s8470_s1 + $0x4c8] sm:$0xff] }
  0x79   :  { %v496_v16 = vld [vmem:[%s8470_s1 + $0xea0] sm:$0xff]  ;;  %3348 = vmatpush2.bf16.msra.mxu1 %v5717_v18  ;;  %v5408_v14 = vcombine.high %v189_v7, %v193_v8  ;;  %v185_v18 = vld [vmem:[%s8470_s1 + $0x4e8] sm:$0xff] }
  0x7a   :  { %v5710_v20 = vcombine.high %v492_v15, %v496_v16  ;;  %v356_v21 = vld [vmem:[%s8470_s1 + $0xa40] sm:$0xff]  ;;  %3308 = vmatprep.subr.bf16.mxu0 %v5582_v19  ;;  %v5709_v27 = vcombine.low %v492_v15, %v496_v16  ;;  %v53_v15 = vld [vmem:[%s8470_s1 + $0xc8] sm:$0xff]  ;;  %v5279_v19 = vcombine.low %v61_v5, %v65_v6 }
  0x7b   :  { %v360_v22 = vld [vmem:[%s8470_s1 + $0xa60] sm:$0xff]  ;;  %3309 = vmatpush2.bf16.msra.mxu0 %v5581_v26  ;;  %v57_v16 = vld [vmem:[%s8470_s1 + $0xe8] sm:$0xff] }
  0x7c   :  { %v484_v23 = vld [vmem:[%s8470_s1 + $0xe40] sm:$0xff]  ;;  %v5574_v29 = vcombine.high %v356_v21, %v360_v22  ;;  %3349 = vmatprep.subr.bf16.mxu1 %v5710_v20  ;;  %v5573_v37 = vcombine.low %v356_v21, %v360_v22  ;;  %v5407_v20 = vcombine.low %v189_v7, %v193_v8  ;;  %v5272_v21 = vcombine.high %v53_v15, %v57_v16  ;;  %v173_v26 = vld [vmem:[%s8470_s1 + $0x488] sm:$0xff] }
  0x7d   :  { %v488_v25 = vld [vmem:[%s8470_s1 + $0xe60] sm:$0xff]  ;;  %3350 = vmatpush2.bf16.msra.mxu1 %v5709_v27  ;;  %v5400_v22 = vcombine.high %v181_v17, %v185_v18  ;;  %v177_v27 = vld [vmem:[%s8470_s1 + $0x4a8] sm:$0xff] }
  0x7e   :  { %v5702_v28 = vcombine.high %v484_v23, %v488_v25  ;;  %v348_v30 = vld [vmem:[%s8470_s1 + $0xa00] sm:$0xff]  ;;  %3310 = vmatprep.subr.bf16.mxu0 %v5574_v29  ;;  %v5701_v38 = vcombine.low %v484_v23, %v488_v25  ;;  %v45_v23 = vld [vmem:[%s8470_s1 + $0x88] sm:$0xff]  ;;  %v5271_v29 = vcombine.low %v53_v15, %v57_v16 }
  0x7f   :  { %v352_v63 = vld [vmem:[%s8470_s1 + $0xa20] sm:$0xff]  ;;  %3311 = vmatpush2.bf16.msra.mxu0 %v5573_v37  ;;  %v49_v25 = vld [vmem:[%s8470_s1 + $0xa8] sm:$0xff] }
  0x80   :  { %v476_v35 = vld [vmem:[%s8470_s1 + $0xe00] sm:$0xff]  ;;  %v5566_v39 = vcombine.high %v348_v30, %v352_v63  ;;  %3351 = vmatprep.subr.bf16.mxu1 %v5702_v28  ;;  %v5565_v46 = vcombine.low %v348_v30, %v352_v63  ;;  %v5399_v28 = vcombine.low %v181_v17, %v185_v18  ;;  %v5264_v30 = vcombine.high %v45_v23, %v49_v25  ;;  %v165_v37 = vld [vmem:[%s8470_s1 + $0x448] sm:$0xff] }
  0x81   :  { %v480_v36 = vld [vmem:[%s8470_s1 + $0xe20] sm:$0xff]  ;;  %3352 = vmatpush2.bf16.msra.mxu1 %v5701_v38  ;;  %v5392_v63 = vcombine.high %v173_v26, %v177_v27  ;;  %v169_v38 = vld [vmem:[%s8470_s1 + $0x468] sm:$0xff] }
  0x82   :  { %v5694_v53 = vcombine.high %v476_v35, %v480_v36  ;;  %3312 = vmatprep.subr.bf16.mxu0 %v5566_v39  ;;  %v5693_v47 = vcombine.low %v476_v35, %v480_v36  ;;  %v37_v35 = vld [vmem:[%s8470_s1 + $0x48] sm:$0xff]  ;;  %v5263_v39 = vcombine.low %v45_v23, %v49_v25  ;;  %v5384_v41 = vcombine.high %v165_v37, %v169_v38 }
  0x83   :  { %3313 = vmatpush2.bf16.msra.mxu0 %v5565_v46  ;;  %v41_v36 = vld [vmem:[%s8470_s1 + $0x68] sm:$0xff] }
  0x84   :  { %3353 = vmatprep.subr.bf16.mxu1 %v5694_v53  ;;  %3364 = vmatprep.subr.bf16.mxu0 %v5304_v48  ;;  %v5391_v53 = vcombine.low %v173_v26, %v177_v27  ;;  %v5256_v40 = vcombine.high %v37_v35, %v41_v36  ;;  %v29_v44 = vld [vmem:[%s8470_s1 + $0x8] sm:$0xff]  ;;  %v5255_v48 = vcombine.low %v37_v35, %v41_v36 }
  0x85   :  { %3354 = vmatpush2.bf16.msra.mxu1 %v5693_v47  ;;  %v33_v45 = vld [vmem:[%s8470_s1 + $0x28] sm:$0xff] }
  0x86   :  { %3405 = vmatprep.subr.bf16.mxu1 %v5432_v49  ;;  %3315 = vmatmul.mubr.bf16.vlgmr.msra.gmra.mxu0 %v6406_v33  ;;  %v157_v46 = vld [vmem:[%s8470_s1 + $0x408] sm:$0xff]  ;;  %v5383_v49 = vcombine.low %v165_v37, %v169_v38  ;;  %v5248_v50 = vcombine.high %v29_v44, %v33_v45 }
  0x87   :  { %3365 = vmatpush1.bf16.msra.mxu0 %v5303_v56  ;;  %3396 = vmatprep.mubr.bf16.mxu0 %v6363_v9  ;;  %v161_v47 = vld [vmem:[%s8470_s1 + $0x428] sm:$0xff] }
  0x88   :  { %3356 = vmatmul.mubr.bf16.vlgmr.msra.gmra.mxu1 %v6707_v55  ;;  %3366 = vmatprep.subr.bf16.mxu0 %v5296_v58  ;;  %v5376_v51 = vcombine.high %v157_v46, %v161_v47  ;;  %v149_v52 = vld [vmem:[%s8470_s1 + $0x3c8] sm:$0xff]  ;;  %v5247_v58 = vcombine.low %v29_v44, %v33_v45 }
  0x89   :  { %3406 = vmatpush1.bf16.msra.mxu1 %v5431_v57  ;;  %3437 = vmatprep.mubr.bf16.mxu1 %v6374_v13  ;;  %v153_v54 = vld [vmem:[%s8470_s1 + $0x3e8] sm:$0xff] }
  0x8a   :  { %3407 = vmatprep.subr.bf16.mxu1 %v5424_v59  ;;  %v277_v56 = vld [vmem:[%s8470_s1 + $0x7c8] sm:$0xff]  ;;  %v5375_v59 = vcombine.low %v157_v46, %v161_v47  ;;  %v5368_v60 = vcombine.high %v149_v52, %v153_v54 }
  0x8b   :  { %3367 = vmatpush1.bf16.msra.mxu0 %v5295_v1  ;;  %v281_v57 = vld [vmem:[%s8470_s1 + $0x7e8] sm:$0xff] }
  0x8c   :  { %3368 = vmatprep.subr.bf16.mxu0 %v5288_v3  ;;  %v5496_v61 = vcombine.high %v277_v56, %v281_v57  ;;  %v141_v62 = vld [vmem:[%s8470_s1 + $0x388] sm:$0xff]  ;;  %v5367_v3 = vcombine.low %v149_v52, %v153_v54 }
  0x8d   :  { %3408 = vmatpush1.bf16.msra.mxu1 %v5423_v2  ;;  %v145_v0 = vld [vmem:[%s8470_s1 + $0x3a8] sm:$0xff] }
  0x8e   :  { %3409 = vmatprep.subr.bf16.mxu1 %v5416_v4  ;;  %v269_v1 = vld [vmem:[%s8470_s1 + $0x788] sm:$0xff]  ;;  %v5495_v4 = vcombine.low %v277_v56, %v281_v57  ;;  %v5360_v5 = vcombine.high %v141_v62, %v145_v0 }
  0x8f   :  { %3369 = vmatpush1.bf16.msra.mxu0 %v5287_v10  ;;  %v273_v2 = vld [vmem:[%s8470_s1 + $0x7a8] sm:$0xff] }
  0x90   :  { %3370 = vmatprep.subr.bf16.mxu0 %v5280_v12  ;;  %v5488_v6 = vcombine.high %v269_v1, %v273_v2  ;;  %v133_v7 = vld [vmem:[%s8470_s1 + $0x348] sm:$0xff]  ;;  %v5359_v12 = vcombine.low %v141_v62, %v145_v0 }
  0x91   :  { %3410 = vmatpush1.bf16.msra.mxu1 %v5415_v11  ;;  %v137_v8 = vld [vmem:[%s8470_s1 + $0x368] sm:$0xff] }
  0x92   :  { %3411 = vmatprep.subr.bf16.mxu1 %v5408_v14  ;;  %v261_v10 = vld [vmem:[%s8470_s1 + $0x748] sm:$0xff]  ;;  %v5487_v14 = vcombine.low %v269_v1, %v273_v2  ;;  %v5352_v15 = vcombine.high %v133_v7, %v137_v8 }
  0x93   :  { %3371 = vmatpush1.bf16.msra.mxu0 %v5279_v19  ;;  %v265_v11 = vld [vmem:[%s8470_s1 + $0x768] sm:$0xff] }
  0x94   :  { %3372 = vmatprep.subr.bf16.mxu0 %v5272_v21  ;;  %v5480_v16 = vcombine.high %v261_v10, %v265_v11  ;;  %v125_v17 = vld [vmem:[%s8470_s1 + $0x308] sm:$0xff]  ;;  %v5351_v21 = vcombine.low %v133_v7, %v137_v8 }
  0x95   :  { %3412 = vmatpush1.bf16.msra.mxu1 %v5407_v20  ;;  %v129_v18 = vld [vmem:[%s8470_s1 + $0x328] sm:$0xff] }
  0x96   :  { %3413 = vmatprep.subr.bf16.mxu1 %v5400_v22  ;;  %v253_v19 = vld [vmem:[%s8470_s1 + $0x708] sm:$0xff]  ;;  %v5479_v22 = vcombine.low %v261_v10, %v265_v11  ;;  %v5344_v23 = vcombine.high %v125_v17, %v129_v18 }
  0x97   :  { %3373 = vmatpush1.bf16.msra.mxu0 %v5271_v29  ;;  %v257_v20 = vld [vmem:[%s8470_s1 + $0x728] sm:$0xff] }
  0x98   :  { %3374 = vmatprep.subr.bf16.mxu0 %v5264_v30  ;;  %v5472_v25 = vcombine.high %v253_v19, %v257_v20  ;;  %v117_v26 = vld [vmem:[%s8470_s1 + $0x2c8] sm:$0xff]  ;;  %v5343_v30 = vcombine.low %v125_v17, %v129_v18 }
  0x99   :  { %3414 = vmatpush1.bf16.msra.mxu1 %v5399_v28  ;;  %v121_v27 = vld [vmem:[%s8470_s1 + $0x2e8] sm:$0xff] }
  0x9a   :  { %3415 = vmatprep.subr.bf16.mxu1 %v5392_v63  ;;  %v245_v29 = vld [vmem:[%s8470_s1 + $0x6c8] sm:$0xff]  ;;  %v5471_v63 = vcombine.low %v253_v19, %v257_v20  ;;  %v5336_v35 = vcombine.high %v117_v26, %v121_v27 }
  0x9b   :  { %3375 = vmatpush1.bf16.msra.mxu0 %v5263_v39  ;;  %v249_v28 = vld [vmem:[%s8470_s1 + $0x6e8] sm:$0xff] }
  0x9c   :  { %3376 = vmatprep.subr.bf16.mxu0 %v5256_v40  ;;  %v5464_v36 = vcombine.high %v245_v29, %v249_v28  ;;  %v109_v37 = vld [vmem:[%s8470_s1 + $0x288] sm:$0xff]  ;;  %v5335_v40 = vcombine.low %v117_v26, %v121_v27 }
  0x9d   :  { %3416 = vmatpush1.bf16.msra.mxu1 %v5391_v53  ;;  %v113_v38 = vld [vmem:[%s8470_s1 + $0x2a8] sm:$0xff] }
  0x9e   :  { %3417 = vmatprep.subr.bf16.mxu1 %v5384_v41  ;;  %v237_v39 = vld [vmem:[%s8470_s1 + $0x688] sm:$0xff]  ;;  %v5463_v41 = vcombine.low %v245_v29, %v249_v28  ;;  %v5328_v44 = vcombine.high %v109_v37, %v113_v38 }
  0x9f   :  { %3377 = vmatpush1.bf16.msra.mxu0 %v5255_v48  ;;  %v241_v53 = vld [vmem:[%s8470_s1 + $0x6a8] sm:$0xff] }
  0xa0   :  { %3378 = vmatprep.subr.bf16.mxu0 %v5248_v50  ;;  %v5456_v45 = vcombine.high %v237_v39, %v241_v53  ;;  %v101_v46 = vld [vmem:[%s8470_s1 + $0x248] sm:$0xff]  ;;  %v5327_v50 = vcombine.low %v109_v37, %v113_v38 }
  0xa1   :  { %3418 = vmatpush1.bf16.msra.mxu1 %v5383_v49  ;;  %v105_v47 = vld [vmem:[%s8470_s1 + $0x268] sm:$0xff] }
  0xa2   :  { %3419 = vmatprep.subr.bf16.mxu1 %v5376_v51  ;;  %v229_v48 = vld [vmem:[%s8470_s1 + $0x648] sm:$0xff]  ;;  %v5455_v51 = vcombine.low %v237_v39, %v241_v53  ;;  %v5320_v52 = vcombine.high %v101_v46, %v105_v47 }
  0xa3   :  { %3379 = vmatpush1.bf16.msra.mxu0 %v5247_v58  ;;  %v233_v49 = vld [vmem:[%s8470_s1 + $0x668] sm:$0xff] }
  0xa4   :  { %3380 = vmatprep.subr.bf16.mxu0 %v5368_v60  ;;  %v5448_v54 = vcombine.high %v229_v48, %v233_v49  ;;  %v93_v56 = vld [vmem:[%s8470_s1 + $0x208] sm:$0xff]  ;;  %v5319_v60 = vcombine.low %v101_v46, %v105_v47 }
  0xa5   :  { %3420 = vmatpush1.bf16.msra.mxu1 %v5375_v59  ;;  %v97_v57 = vld [vmem:[%s8470_s1 + $0x228] sm:$0xff] }
  0xa6   :  { %3421 = vmatprep.subr.bf16.mxu1 %v5496_v61  ;;  %v221_v58 = vld [vmem:[%s8470_s1 + $0x608] sm:$0xff]  ;;  %v5447_v61 = vcombine.low %v229_v48, %v233_v49  ;;  %v5312_v62 = vcombine.high %v93_v56, %v97_v57 }
  0xa7   :  { %3381 = vmatpush2.bf16.msra.mxu0 %v5367_v3  ;;  %v225_v59 = vld [vmem:[%s8470_s1 + $0x628] sm:$0xff] }
  0xa8   :  { %3382 = vmatprep.subr.bf16.mxu0 %v5360_v5  ;;  %v5440_v0 = vcombine.high %v221_v58, %v225_v59  ;;  %v341_v1 = vld [vmem:[%s8470_s1 + $0x9c8] sm:$0xff]  ;;  %v5311_v5 = vcombine.low %v93_v56, %v97_v57 }
  0xa9   :  { %3422 = vmatpush2.bf16.msra.mxu1 %v5495_v4  ;;  %v345_v2 = vld [vmem:[%s8470_s1 + $0x9e8] sm:$0xff] }
  0xaa   :  { %3423 = vmatprep.subr.bf16.mxu1 %v5488_v6  ;;  %v469_v3 = vld [vmem:[%s8470_s1 + $0xdc8] sm:$0xff]  ;;  %v5439_v6 = vcombine.low %v221_v58, %v225_v59  ;;  %v5560_v7 = vcombine.high %v341_v1, %v345_v2 }
  0xab   :  { %3383 = vmatpush2.bf16.msra.mxu0 %v5359_v12  ;;  %v473_v4 = vld [vmem:[%s8470_s1 + $0xde8] sm:$0xff] }
  0xac   :  { %3384 = vmatprep.subr.bf16.mxu0 %v5352_v15  ;;  %v5688_v8 = vcombine.high %v469_v3, %v473_v4  ;;  %v333_v10 = vld [vmem:[%s8470_s1 + $0x988] sm:$0xff]  ;;  %v5559_v15 = vcombine.low %v341_v1, %v345_v2 }
  0xad   :  { %3424 = vmatpush2.bf16.msra.mxu1 %v5487_v14  ;;  %v337_v11 = vld [vmem:[%s8470_s1 + $0x9a8] sm:$0xff] }
  0xae   :  { %3425 = vmatprep.subr.bf16.mxu1 %v5480_v16  ;;  %v461_v12 = vld [vmem:[%s8470_s1 + $0xd88] sm:$0xff]  ;;  %v5687_v16 = vcombine.low %v469_v3, %v473_v4  ;;  %v5552_v17 = vcombine.high %v333_v10, %v337_v11 }
  0xaf   :  { %3385 = vmatpush2.bf16.msra.mxu0 %v5351_v21  ;;  %v465_v14 = vld [vmem:[%s8470_s1 + $0xda8] sm:$0xff] }
  0xb0   :  { %3386 = vmatprep.subr.bf16.mxu0 %v5344_v23  ;;  %v5680_v18 = vcombine.high %v461_v12, %v465_v14  ;;  %v325_v19 = vld [vmem:[%s8470_s1 + $0x948] sm:$0xff]  ;;  %v5551_v23 = vcombine.low %v333_v10, %v337_v11 }
  0xb1   :  { %3426 = vmatpush2.bf16.msra.mxu1 %v5479_v22  ;;  %v329_v20 = vld [vmem:[%s8470_s1 + $0x968] sm:$0xff] }
  0xb2   :  { %3427 = vmatprep.subr.bf16.mxu1 %v5472_v25  ;;  %v453_v21 = vld [vmem:[%s8470_s1 + $0xd48] sm:$0xff]  ;;  %v5679_v25 = vcombine.low %v461_v12, %v465_v14  ;;  %v5544_v26 = vcombine.high %v325_v19, %v329_v20 }
  0xb3   :  { %3387 = vmatpush2.bf16.msra.mxu0 %v5343_v30  ;;  %v457_v22 = vld [vmem:[%s8470_s1 + $0xd68] sm:$0xff] }
  0xb4   :  { %3388 = vmatprep.subr.bf16.mxu0 %v5336_v35  ;;  %v5672_v27 = vcombine.high %v453_v21, %v457_v22  ;;  %v317_v29 = vld [vmem:[%s8470_s1 + $0x908] sm:$0xff]  ;;  %v5543_v35 = vcombine.low %v325_v19, %v329_v20 }
  0xb5   :  { %3428 = vmatpush2.bf16.msra.mxu1 %v5471_v63  ;;  %v321_v28 = vld [vmem:[%s8470_s1 + $0x928] sm:$0xff] }
  0xb6   :  { %3429 = vmatprep.subr.bf16.mxu1 %v5464_v36  ;;  %v445_v30 = vld [vmem:[%s8470_s1 + $0xd08] sm:$0xff]  ;;  %v5671_v36 = vcombine.low %v453_v21, %v457_v22  ;;  %v5536_v37 = vcombine.high %v317_v29, %v321_v28 }
  0xb7   :  { %3389 = vmatpush2.bf16.msra.mxu0 %v5335_v40  ;;  %v449_v63 = vld [vmem:[%s8470_s1 + $0xd28] sm:$0xff] }
  0xb8   :  { %3390 = vmatprep.subr.bf16.mxu0 %v5328_v44  ;;  %v5664_v38 = vcombine.high %v445_v30, %v449_v63  ;;  %v309_v39 = vld [vmem:[%s8470_s1 + $0x8c8] sm:$0xff]  ;;  %v5535_v44 = vcombine.low %v317_v29, %v321_v28 }
  0xb9   :  { %3430 = vmatpush2.bf16.msra.mxu1 %v5463_v41  ;;  %v313_v53 = vld [vmem:[%s8470_s1 + $0x8e8] sm:$0xff] }
  0xba   :  { %3431 = vmatprep.subr.bf16.mxu1 %v5456_v45  ;;  %v437_v40 = vld [vmem:[%s8470_s1 + $0xcc8] sm:$0xff]  ;;  %v5663_v45 = vcombine.low %v445_v30, %v449_v63  ;;  %v5528_v46 = vcombine.high %v309_v39, %v313_v53 }
  0xbb   :  { %3391 = vmatpush2.bf16.msra.mxu0 %v5327_v50  ;;  %v441_v41 = vld [vmem:[%s8470_s1 + $0xce8] sm:$0xff] }
  0xbc   :  { %3392 = vmatprep.subr.bf16.mxu0 %v5320_v52  ;;  %v5656_v47 = vcombine.high %v437_v40, %v441_v41  ;;  %v301_v48 = vld [vmem:[%s8470_s1 + $0x888] sm:$0xff]  ;;  %v5527_v52 = vcombine.low %v309_v39, %v313_v53 }
  0xbd   :  { %3432 = vmatpush2.bf16.msra.mxu1 %v5455_v51  ;;  %v305_v49 = vld [vmem:[%s8470_s1 + $0x8a8] sm:$0xff] }
  0xbe   :  { %3433 = vmatprep.subr.bf16.mxu1 %v5448_v54  ;;  %v429_v50 = vld [vmem:[%s8470_s1 + $0xc88] sm:$0xff]  ;;  %v5655_v54 = vcombine.low %v437_v40, %v441_v41  ;;  %v5520_v56 = vcombine.high %v301_v48, %v305_v49 }
  0xbf   :  { %3393 = vmatpush2.bf16.msra.mxu0 %v5319_v60  ;;  %v433_v51 = vld [vmem:[%s8470_s1 + $0xca8] sm:$0xff] }
  0xc0   :  { %3394 = vmatprep.subr.bf16.mxu0 %v5312_v62  ;;  %v5648_v57 = vcombine.high %v429_v50, %v433_v51  ;;  %v293_v58 = vld [vmem:[%s8470_s1 + $0x848] sm:$0xff]  ;;  %v5519_v62 = vcombine.low %v301_v48, %v305_v49 }
  0xc1   :  { %3434 = vmatpush2.bf16.msra.mxu1 %v5447_v61  ;;  %v297_v59 = vld [vmem:[%s8470_s1 + $0x868] sm:$0xff] }
  0xc2   :  { %3435 = vmatprep.subr.bf16.mxu1 %v5440_v0  ;;  %v421_v60 = vld [vmem:[%s8470_s1 + $0xc48] sm:$0xff]  ;;  %v5647_v0 = vcombine.low %v429_v50, %v433_v51  ;;  %v5512_v1 = vcombine.high %v293_v58, %v297_v59 }
  0xc3   :  { %3395 = vmatpush2.bf16.msra.mxu0 %v5311_v5  ;;  %v425_v61 = vld [vmem:[%s8470_s1 + $0xc68] sm:$0xff] }
  0xc4   :  { %3446 = vmatprep.subr.bf16.mxu0 %v5560_v7  ;;  %v5640_v2 = vcombine.high %v421_v60, %v425_v61  ;;  %v285_v3 = vld [vmem:[%s8470_s1 + $0x808] sm:$0xff]  ;;  %v5511_v7 = vcombine.low %v293_v58, %v297_v59 }
  0xc5   :  { %3436 = vmatpush2.bf16.msra.mxu1 %v5439_v6  ;;  %v289_v4 = vld [vmem:[%s8470_s1 + $0x828] sm:$0xff] }
  0xc6   :  { %3487 = vmatprep.subr.bf16.mxu1 %v5688_v8  ;;  %3397 = vmatmul.mubr.bf16.vlgmr.msra.gmra.mxu0 %v6484_v24  ;;  %v413_v5 = vld [vmem:[%s8470_s1 + $0xc08] sm:$0xff]  ;;  %v5639_v8 = vcombine.low %v421_v60, %v425_v61  ;;  %v5504_v10 = vcombine.high %v285_v3, %v289_v4 }
  0xc7   :  { %3447 = vmatpush1.bf16.msra.mxu0 %v5559_v15  ;;  %3478 = vmatprep.mubr.bf16.mxu0 %v6499_v31  ;;  %v417_v6 = vld [vmem:[%s8470_s1 + $0xc28] sm:$0xff] }
  0xc8   :  { %3438 = vmatmul.mubr.bf16.vlgmr.msra.gmra.mxu1 %v6503_v34  ;;  %3448 = vmatprep.subr.bf16.mxu0 %v5552_v17  ;;  %v5632_v11 = vcombine.high %v413_v5, %v417_v6  ;;  %v405_v12 = vld [vmem:[%s8470_s1 + $0xbc8] sm:$0xff]  ;;  %v5503_v17 = vcombine.low %v285_v3, %v289_v4 }
  0xc9   :  { %3488 = vmatpush1.bf16.msra.mxu1 %v5687_v16  ;;  %3519 = vmatprep.mubr.bf16.mxu1 %v6520_v42  ;;  %v409_v14 = vld [vmem:[%s8470_s1 + $0xbe8] sm:$0xff] }
  0xca   :  { %3489 = vmatprep.subr.bf16.mxu1 %v5680_v18  ;;  %v533_v15 = vld [vmem:[%s8470_s1 + $0xfc8] sm:$0xff]  ;;  %v5631_v18 = vcombine.low %v413_v5, %v417_v6  ;;  %v5624_v19 = vcombine.high %v405_v12, %v409_v14 }
  0xcb   :  { %3449 = vmatpush1.bf16.msra.mxu0 %v5551_v23  ;;  %v537_v16 = vld [vmem:[%s8470_s1 + $0xfe8] sm:$0xff] }
  0xcc   :  { %3450 = vmatprep.subr.bf16.mxu0 %v5544_v26  ;;  %v5752_v20 = vcombine.high %v533_v15, %v537_v16  ;;  %v397_v21 = vld [vmem:[%s8470_s1 + $0xb88] sm:$0xff]  ;;  %v5623_v26 = vcombine.low %v405_v12, %v409_v14 }
  0xcd   :  { %3490 = vmatpush1.bf16.msra.mxu1 %v5679_v25  ;;  %v401_v22 = vld [vmem:[%s8470_s1 + $0xba8] sm:$0xff] }
  0xce   :  { %3491 = vmatprep.subr.bf16.mxu1 %v5672_v27  ;;  %v525_v23 = vld [vmem:[%s8470_s1 + $0xf88] sm:$0xff]  ;;  %v5751_v27 = vcombine.low %v533_v15, %v537_v16  ;;  %v5616_v29 = vcombine.high %v397_v21, %v401_v22 }
  0xcf   :  { %3451 = vmatpush1.bf16.msra.mxu0 %v5543_v35  ;;  %v529_v25 = vld [vmem:[%s8470_s1 + $0xfa8] sm:$0xff] }
  0xd0   :  { %3452 = vmatprep.subr.bf16.mxu0 %v5536_v37  ;;  %v5744_v28 = vcombine.high %v525_v23, %v529_v25  ;;  %v389_v30 = vld [vmem:[%s8470_s1 + $0xb48] sm:$0xff]  ;;  %v5615_v37 = vcombine.low %v397_v21, %v401_v22 }
  0xd1   :  { %3492 = vmatpush1.bf16.msra.mxu1 %v5671_v36  ;;  %v393_v63 = vld [vmem:[%s8470_s1 + $0xb68] sm:$0xff] }
  0xd2   :  { %3493 = vmatprep.subr.bf16.mxu1 %v5664_v38  ;;  %v517_v35 = vld [vmem:[%s8470_s1 + $0xf48] sm:$0xff]  ;;  %v5743_v38 = vcombine.low %v525_v23, %v529_v25  ;;  %v5608_v39 = vcombine.high %v389_v30, %v393_v63  ;;  %v86_v23 = vld [vmem:[%s8470_s1 + $0x1d0] sm:$0xff] }
  0xd3   :  { %3453 = vmatpush1.bf16.msra.mxu0 %v5535_v44  ;;  %v521_v36 = vld [vmem:[%s8470_s1 + $0xf68] sm:$0xff]  ;;  %v90_v25 = vld [vmem:[%s8470_s1 + $0x1f0] sm:$0xff] }
  0xd4   :  { %3454 = vmatprep.subr.bf16.mxu0 %v5528_v46  ;;  %v5736_v53 = vcombine.high %v517_v35, %v521_v36  ;;  %v381_v40 = vld [vmem:[%s8470_s1 + $0xb08] sm:$0xff]  ;;  %v5607_v46 = vcombine.low %v389_v30, %v393_v63  ;;  %v7093_v63 = vld [vmem:[%s8472_s2] sm:$0xff] }
  0xd5   :  { %3494 = vmatpush1.bf16.msra.mxu1 %v5663_v45  ;;  %v385_v41 = vld [vmem:[%s8470_s1 + $0xb28] sm:$0xff] }
  0xd6   :  { %3495 = vmatprep.subr.bf16.mxu1 %v5656_v47  ;;  %v509_v44 = vld [vmem:[%s8470_s1 + $0xf08] sm:$0xff]  ;;  %v5735_v47 = vcombine.low %v517_v35, %v521_v36  ;;  %v5600_v48 = vcombine.high %v381_v40, %v385_v41  ;;  %v5306_v35 = vcombine.high %v86_v23, %v90_v25 }
  0xd7   :  { %3455 = vmatpush1.bf16.msra.mxu0 %v5527_v52  ;;  %v513_v45 = vld [vmem:[%s8470_s1 + $0xf28] sm:$0xff] }
  0xd8   :  { %3456 = vmatprep.subr.bf16.mxu0 %v5520_v56  ;;  %v5728_v49 = vcombine.high %v509_v44, %v513_v45  ;;  %v373_v50 = vld [vmem:[%s8470_s1 + $0xac8] sm:$0xff]  ;;  %v5599_v56 = vcombine.low %v381_v40, %v385_v41  ;;  %v210_v40 = vld [vmem:[%s8470_s1 + $0x5b0] sm:$0xff] }
  0xd9   :  { %3496 = vmatpush1.bf16.msra.mxu1 %v5655_v54  ;;  %v377_v51 = vld [vmem:[%s8470_s1 + $0xae8] sm:$0xff] }
  0xda   :  { %3497 = vmatprep.subr.bf16.mxu1 %v5648_v57  ;;  %v501_v52 = vld [vmem:[%s8470_s1 + $0xec8] sm:$0xff]  ;;  %v5727_v57 = vcombine.low %v509_v44, %v513_v45  ;;  %v5592_v58 = vcombine.high %v373_v50, %v377_v51  ;;  %v5305_v44 = vcombine.low %v86_v23, %v90_v25 }
  0xdb   :  { %3457 = vmatpush1.bf16.msra.mxu0 %v5519_v62  ;;  %v505_v54 = vld [vmem:[%s8470_s1 + $0xee8] sm:$0xff] }
  0xdc   :  { %3458 = vmatprep.subr.bf16.mxu0 %v5512_v1  ;;  %v5720_v59 = vcombine.high %v501_v52, %v505_v54  ;;  %v365_v60 = vld [vmem:[%s8470_s1 + $0xa88] sm:$0xff]  ;;  %v5591_v1 = vcombine.low %v373_v50, %v377_v51  ;;  %v74_v50 = vld [vmem:[%s8470_s1 + $0x170] sm:$0xff] }
  0xdd   :  { %3498 = vmatpush1.bf16.msra.mxu1 %v5647_v0  ;;  %v369_v61 = vld [vmem:[%s8470_s1 + $0xaa8] sm:$0xff] }
  0xde   :  { %3499 = vmatprep.subr.bf16.mxu1 %v5640_v2  ;;  %v493_v62 = vld [vmem:[%s8470_s1 + $0xe88] sm:$0xff]  ;;  %v5719_v2 = vcombine.low %v501_v52, %v505_v54  ;;  %v5584_v3 = vcombine.high %v365_v60, %v369_v61  ;;  %v198_v52 = vld [vmem:[%s8470_s1 + $0x550] sm:$0xff] }
  0xdf   :  { %3459 = vmatpush1.bf16.msra.mxu0 %v5511_v7  ;;  %v497_v0 = vld [vmem:[%s8470_s1 + $0xea8] sm:$0xff]  ;;  %v202_v54 = vld [vmem:[%s8470_s1 + $0x570] sm:$0xff] }
  0xe0   :  { %3460 = vmatprep.subr.bf16.mxu0 %v5504_v10  ;;  %v5712_v4 = vcombine.high %v493_v62, %v497_v0  ;;  %v357_v5 = vld [vmem:[%s8470_s1 + $0xa48] sm:$0xff]  ;;  %v5583_v10 = vcombine.low %v365_v60, %v369_v61 }
  0xe1   :  { %3500 = vmatpush1.bf16.msra.mxu1 %v5639_v8  ;;  %v361_v6 = vld [vmem:[%s8470_s1 + $0xa68] sm:$0xff] }
  0xe2   :  { %3501 = vmatprep.subr.bf16.mxu1 %v5632_v11  ;;  %v485_v7 = vld [vmem:[%s8470_s1 + $0xe48] sm:$0xff]  ;;  %v5711_v11 = vcombine.low %v493_v62, %v497_v0  ;;  %v5576_v12 = vcombine.high %v357_v5, %v361_v6 }
  0xe3   :  { %3461 = vmatpush1.bf16.msra.mxu0 %v5503_v17  ;;  %v489_v8 = vld [vmem:[%s8470_s1 + $0xe68] sm:$0xff] }
  0xe4   :  { %3462 = vmatprep.subr.bf16.mxu0 %v5624_v19  ;;  %v5704_v14 = vcombine.high %v485_v7, %v489_v8  ;;  %v349_v15 = vld [vmem:[%s8470_s1 + $0xa08] sm:$0xff]  ;;  %v5575_v19 = vcombine.low %v357_v5, %v361_v6  ;;  %v190_v6 = vld [vmem:[%s8470_s1 + $0x510] sm:$0xff] }
  0xe5   :  { %3502 = vmatpush1.bf16.msra.mxu1 %v5631_v18  ;;  %v353_v16 = vld [vmem:[%s8470_s1 + $0xa28] sm:$0xff] }
  0xe6   :  { %3503 = vmatprep.subr.bf16.mxu1 %v5752_v20  ;;  %v477_v17 = vld [vmem:[%s8470_s1 + $0xe08] sm:$0xff]  ;;  %v5703_v20 = vcombine.low %v485_v7, %v489_v8  ;;  %v5568_v21 = vcombine.high %v349_v15, %v353_v16  ;;  %v194_v7 = vld [vmem:[%s8470_s1 + $0x530] sm:$0xff] }
  0xe7   :  { %3463 = vmatpush2.bf16.msra.mxu0 %v5623_v26  ;;  %v481_v18 = vld [vmem:[%s8470_s1 + $0xe28] sm:$0xff]  ;;  %v214_v26 = vld [vmem:[%s8470_s1 + $0x5d0] sm:$0xff]  ;;  %v5409_v23 = vcombine.low %v190_v6, %v194_v7 }
  0xe8   :  { %3464 = vmatprep.subr.bf16.mxu0 %v5616_v29  ;;  %v5696_v22 = vcombine.high %v477_v17, %v481_v18  ;;  %v5567_v29 = vcombine.low %v349_v15, %v353_v16  ;;  %v5695_v30 = vcombine.low %v477_v17, %v481_v18  ;;  %v5410_v17 = vcombine.high %v190_v6, %v194_v7  ;;  %v54_v18 = vld [vmem:[%s8470_s1 + $0xd0] sm:$0xff] }
  0xe9   :  { %3504 = vmatpush2.bf16.msra.mxu1 %v5751_v27  ;;  %v218_v27 = vld [vmem:[%s8470_s1 + $0x5f0] sm:$0xff] }
  0xea   :  { %3505 = vmatprep.subr.bf16.mxu1 %v5744_v28  ;;  %v544_v28 = vsub.s32 0, %v6313_v43  ;;  %v5434_v36 = vcombine.high %v214_v26, %v218_v27  ;;  %v5433_v45 = vcombine.low %v214_v26, %v218_v27  ;;  %v46_v27 = vld [vmem:[%s8470_s1 + $0x90] sm:$0xff] }
  0xeb   :  { %3465 = vmatpush2.bf16.msra.mxu0 %v5615_v37  ;;  %v548_v37 = vsub.s32 1, %v6313_v43  ;;  %v142_v6 = vld [vmem:[%s8470_s1 + $0x390] sm:$0xff] }
  0xec   :  { %3466 = vmatprep.subr.bf16.mxu0 %v5608_v39  ;;  %v82_v39 = vld [vmem:[%s8470_s1 + $0x1b0] sm:$0xff]  ;;  %v545_v41 = vrot.slane %v7093_v63, %v544_v28 }
  0xed   :  { %3506 = vmatpush2.bf16.msra.mxu1 %v5743_v38  ;;  %v78_v38 = vld [vmem:[%s8470_s1 + $0x190] sm:$0xff] }
  0xee   :  { %3507 = vmatprep.subr.bf16.mxu1 %v5736_v53  ;;  %v206_v53 = vld [vmem:[%s8470_s1 + $0x590] sm:$0xff] }
  0xef   :  { %3467 = vmatpush2.bf16.msra.mxu0 %v5607_v46  ;;  %v5298_v46 = vcombine.high %v78_v38, %v82_v39  ;;  %v5425_v60 = vcombine.low %v206_v53, %v210_v40  ;;  %v146_v7 = vld [vmem:[%s8470_s1 + $0x3b0] sm:$0xff] }
  0xf0   :  { %3468 = vmatprep.subr.bf16.mxu0 %v5600_v48  ;;  %v5426_v48 = vcombine.high %v206_v53, %v210_v40  ;;  %v38_v40 = vld [vmem:[%s8470_s1 + $0x50] sm:$0xff] }
  0xf1   :  { %3508 = vmatpush2.bf16.msra.mxu1 %v5735_v47  ;;  %v549_v47 = vrot.slane %v7093_v63, %v548_v37 }
  0xf2   :  { %3509 = vmatprep.subr.bf16.mxu1 %v5728_v49  ;;  %v70_v49 = vld [vmem:[%s8470_s1 + $0x150] sm:$0xff] }
  0xf3   :  { %3469 = vmatpush2.bf16.msra.mxu0 %v5599_v56  ;;  %v5290_v61 = vcombine.high %v70_v49, %v74_v50 }
  0xf4   :  { %3470 = vmatprep.subr.bf16.mxu0 %v5592_v58  ;;  %v5297_v58 = vcombine.low %v78_v38, %v82_v39 }
  0xf5   :  { %3510 = vmatpush2.bf16.msra.mxu1 %v5727_v57 }
  0xf6   :  { %3511 = vmatprep.subr.bf16.mxu1 %v5720_v59 }
  0xf7   :  { %3471 = vmatpush2.bf16.msra.mxu0 %v5591_v1 }
  0xf8   :  { %3472 = vmatprep.subr.bf16.mxu0 %v5584_v3  ;;  %v62_v3 = vld [vmem:[%s8470_s1 + $0x110] sm:$0xff] }
  0xf9   :  { %3512 = vmatpush2.bf16.msra.mxu1 %v5719_v2  ;;  %v5418_v2 = vcombine.high %v198_v52, %v202_v54 }
  0xfa   :  { %3513 = vmatprep.subr.bf16.mxu1 %v5712_v4  ;;  %v66_v4 = vld [vmem:[%s8470_s1 + $0x130] sm:$0xff] }
  0xfb   :  { %3473 = vmatpush2.bf16.msra.mxu0 %v5583_v10  ;;  %v5282_v15 = vcombine.high %v62_v3, %v66_v4 }
  0xfc   :  { %3474 = vmatprep.subr.bf16.mxu0 %v5576_v12 }
  0xfd   :  { %3514 = vmatpush2.bf16.msra.mxu1 %v5711_v11  ;;  %v5289_v11 = vcombine.low %v70_v49, %v74_v50  ;;  %v30_v50 = vld [vmem:[%s8470_s1 + $0x10] sm:$0xff] }
  0xfe   :  { %3515 = vmatprep.subr.bf16.mxu1 %v5704_v14  ;;  %v5417_v14 = vcombine.low %v198_v52, %v202_v54  ;;  %v158_v52 = vld [vmem:[%s8470_s1 + $0x410] sm:$0xff] }
  0xff   :  { %3475 = vmatpush2.bf16.msra.mxu0 %v5575_v19  ;;  %v58_v19 = vld [vmem:[%s8470_s1 + $0xf0] sm:$0xff] }
 0x100   :  { %3476 = vmatprep.subr.bf16.mxu0 %v5568_v21  ;;  %v186_v21 = vld [vmem:[%s8470_s1 + $0x4f0] sm:$0xff]  ;;  %v5274_v25 = vcombine.high %v54_v18, %v58_v19 }
 0x101   :  { %3516 = vmatpush2.bf16.msra.mxu1 %v5703_v20  ;;  %v182_v20 = vld [vmem:[%s8470_s1 + $0x4d0] sm:$0xff] }
 0x102   :  { %3517 = vmatprep.subr.bf16.mxu1 %v5696_v22  ;;  %v5281_v22 = vcombine.low %v62_v3, %v66_v4  ;;  %v5402_v26 = vcombine.high %v182_v20, %v186_v21  ;;  %v5401_v38 = vcombine.low %v182_v20, %v186_v21  ;;  %v162_v54 = vld [vmem:[%s8470_s1 + $0x430] sm:$0xff]  ;;  %v5361_v21 = vcombine.low %v142_v6, %v146_v7 }
 0x103   :  { %3477 = vmatpush2.bf16.msra.mxu0 %v5567_v29  ;;  %v50_v29 = vld [vmem:[%s8470_s1 + $0xb0] sm:$0xff]  ;;  %v5377_v3 = vcombine.low %v158_v52, %v162_v54 }
 0x104   :  { %3528 = vmatprep.subr.bf16.mxu0 %v5306_v35  ;;  %v178_v35 = vld [vmem:[%s8470_s1 + $0x4b0] sm:$0xff]  ;;  %v5266_v39 = vcombine.high %v46_v27, %v50_v29 }
 0x105   :  { %3518 = vmatpush2.bf16.msra.mxu1 %v5695_v30  ;;  %v174_v30 = vld [vmem:[%s8470_s1 + $0x490] sm:$0xff] }
 0x106   :  { %3569 = vmatprep.subr.bf16.mxu1 %v5434_v36  ;;  %v3234_v51 = vpop.f32.mrf.mxu0  ;;  %3479 = vmatmul.mubr.bf16.vlgmr.msra.gmra.mxu0 %v6406_v33  ;;  %v5273_v36 = vcombine.low %v54_v18, %v58_v19  ;;  %v5394_v53 = vcombine.high %v174_v30, %v178_v35  ;;  %v138_v18 = vld [vmem:[%s8470_s1 + $0x370] sm:$0xff] }
 0x107   :  { %v3235_v56 = vadd.f32 %v3234_v51, %v545_v41  ;;  %3529 = vmatpush1.bf16.msra.mxu0 %v5305_v44  ;;  %3560 = vmatprep.mubr.bf16.mxu0 %v6363_v9  ;;  %v42_v41 = vld [vmem:[%s8470_s1 + $0x70] sm:$0xff] }
 0x108   :  { %v3275_v57 = vpop.f32.mrf.mxu1  ;;  %3520 = vmatmul.mubr.bf16.vlgmr.msra.gmra.mxu1 %v6707_v55  ;;  %v3236_v59 = vpop.f32.mrf.mxu0  ;;  %3530 = vmatprep.subr.bf16.mxu0 %v5298_v46  ;;  %v166_v44 = vld [vmem:[%s8470_s1 + $0x450] sm:$0xff]  ;;  %v5265_v46 = vcombine.low %v46_v27, %v50_v29 }
 0x109   :  { %3570 = vmatpush1.bf16.msra.mxu1 %v5433_v45  ;;  %v7128_v62 = vadd.f32 %v3275_v57, %v3235_v56  ;;  %v3237_v0 = vadd.f32 %v3236_v59, %v549_v47  ;;  %3601 = vmatprep.mubr.bf16.mxu1 %v6374_v13  ;;  %v170_v45 = vld [vmem:[%s8470_s1 + $0x470] sm:$0xff]  ;;  %v5393_v47 = vcombine.low %v174_v30, %v178_v35 }
 0x10a   :  { %v3277_v1 = vpop.f32.mrf.mxu1  ;;  %3571 = vmatprep.subr.bf16.mxu1 %v5426_v48  ;;  %v3238_v5 = vpop.f32.mrf.mxu0  ;;  %v5258_v48 = vcombine.high %v38_v40, %v42_v41  ;;  %v5386_v49 = vcombine.high %v166_v44, %v170_v45  ;;  %v34_v51 = vld [vmem:[%s8470_s1 + $0x30] sm:$0xff]  ;;  %v5257_v56 = vcombine.low %v38_v40, %v42_v41  ;;  %v5385_v57 = vcombine.low %v166_v44, %v170_v45 }
 0x10b   :  { %v7144_v8 = vadd.f32 %v3277_v1, %v3237_v0  ;;  %3531 = vmatpush1.bf16.msra.mxu0 %v5297_v58  ;;  %v5250_v58 = vcombine.high %v30_v50, %v34_v51  ;;  %v5378_v59 = vcombine.high %v158_v52, %v162_v54  ;;  %v278_v0 = vld [vmem:[%s8470_s1 + $0x7d0] sm:$0xff] }
 0x10c   :  { %v3279_v10 = vpop.f32.mrf.mxu1  ;;  %v3239_v12 = vpop.f32.mrf.mxu0  ;;  %3532 = vmatprep.subr.bf16.mxu0 %v5290_v61  ;;  %v154_v61 = vld [vmem:[%s8470_s1 + $0x3f0] sm:$0xff] }
 0x10d   :  { %3572 = vmatpush1.bf16.msra.mxu1 %v5425_v60  ;;  %v150_v60 = vld [vmem:[%s8470_s1 + $0x3d0] sm:$0xff] }
 0x10e   :  { %v3280_v16 = vpop.f32.mrf.mxu1  ;;  %3573 = vmatprep.subr.bf16.mxu1 %v5418_v2  ;;  %v282_v1 = vld [vmem:[%s8470_s1 + $0x7f0] sm:$0xff]  ;;  %v5249_v2 = vcombine.low %v30_v50, %v34_v51  ;;  %v5370_v4 = vcombine.high %v150_v60, %v154_v61  ;;  %v5369_v12 = vcombine.low %v150_v60, %v154_v61 }
 0x10f   :  { %3533 = vmatpush1.bf16.msra.mxu0 %v5289_v11  ;;  %v5498_v5 = vcombine.high %v278_v0, %v282_v1  ;;  %v270_v10 = vld [vmem:[%s8470_s1 + $0x790] sm:$0xff] }
 0x110   :  { %3534 = vmatprep.subr.bf16.mxu0 %v5282_v15  ;;  %v274_v11 = vld [vmem:[%s8470_s1 + $0x7b0] sm:$0xff]  ;;  %v5362_v15 = vcombine.high %v142_v6, %v146_v7 }
 0x111   :  { %3574 = vmatpush1.bf16.msra.mxu1 %v5417_v14  ;;  %v5497_v14 = vcombine.low %v278_v0, %v282_v1  ;;  %v5490_v16 = vcombine.high %v270_v10, %v274_v11  ;;  %v262_v19 = vld [vmem:[%s8470_s1 + $0x750] sm:$0xff] }
 0x112   :  { %3575 = vmatprep.subr.bf16.mxu1 %v5410_v17  ;;  %v134_v17 = vld [vmem:[%s8470_s1 + $0x350] sm:$0xff] }
 0x113   :  { %3535 = vmatpush1.bf16.msra.mxu0 %v5281_v22  ;;  %v266_v20 = vld [vmem:[%s8470_s1 + $0x770] sm:$0xff]  ;;  %v5489_v22 = vcombine.low %v270_v10, %v274_v11  ;;  %v5353_v35 = vcombine.low %v134_v17, %v138_v18 }
 0x114   :  { %3536 = vmatprep.subr.bf16.mxu0 %v5274_v25  ;;  %v5482_v25 = vcombine.high %v262_v19, %v266_v20  ;;  %v130_v27 = vld [vmem:[%s8470_s1 + $0x330] sm:$0xff] }
 0x115   :  { %3576 = vmatpush1.bf16.msra.mxu1 %v5409_v23  ;;  %v5354_v23 = vcombine.high %v134_v17, %v138_v18  ;;  %v254_v29 = vld [vmem:[%s8470_s1 + $0x710] sm:$0xff] }
 0x116   :  { %3577 = vmatprep.subr.bf16.mxu1 %v5402_v26  ;;  %v126_v26 = vld [vmem:[%s8470_s1 + $0x310] sm:$0xff] }
 0x117   :  { %3537 = vmatpush1.bf16.msra.mxu0 %v5273_v36  ;;  %v258_v30 = vld [vmem:[%s8470_s1 + $0x730] sm:$0xff]  ;;  %v5481_v36 = vcombine.low %v262_v19, %v266_v20  ;;  %v5345_v45 = vcombine.low %v126_v26, %v130_v27 }
 0x118   :  { %3538 = vmatprep.subr.bf16.mxu0 %v5266_v39  ;;  %v5474_v39 = vcombine.high %v254_v29, %v258_v30  ;;  %v122_v40 = vld [vmem:[%s8470_s1 + $0x2f0] sm:$0xff] }
 0x119   :  { %3578 = vmatpush1.bf16.msra.mxu1 %v5401_v38  ;;  %v5346_v38 = vcombine.high %v126_v26, %v130_v27  ;;  %v246_v41 = vld [vmem:[%s8470_s1 + $0x6d0] sm:$0xff] }
 0x11a   :  { %3579 = vmatprep.subr.bf16.mxu1 %v5394_v53  ;;  %v118_v53 = vld [vmem:[%s8470_s1 + $0x2d0] sm:$0xff] }
 0x11b   :  { %3539 = vmatpush1.bf16.msra.mxu0 %v5265_v46  ;;  %v250_v44 = vld [vmem:[%s8470_s1 + $0x6f0] sm:$0xff]  ;;  %v5473_v46 = vcombine.low %v254_v29, %v258_v30  ;;  %v5337_v54 = vcombine.low %v118_v53, %v122_v40 }
 0x11c   :  { %3540 = vmatprep.subr.bf16.mxu0 %v5258_v48  ;;  %v5466_v48 = vcombine.high %v246_v41, %v250_v44  ;;  %v114_v50 = vld [vmem:[%s8470_s1 + $0x2b0] sm:$0xff] }
 0x11d   :  { %3580 = vmatpush1.bf16.msra.mxu1 %v5393_v47  ;;  %v5338_v47 = vcombine.high %v118_v53, %v122_v40  ;;  %v238_v51 = vld [vmem:[%s8470_s1 + $0x690] sm:$0xff] }
 0x11e   :  { %3581 = vmatprep.subr.bf16.mxu1 %v5386_v49  ;;  %v110_v49 = vld [vmem:[%s8470_s1 + $0x290] sm:$0xff] }
 0x11f   :  { %3541 = vmatpush1.bf16.msra.mxu0 %v5257_v56  ;;  %v242_v52 = vld [vmem:[%s8470_s1 + $0x6b0] sm:$0xff]  ;;  %v5465_v56 = vcombine.low %v246_v41, %v250_v44  ;;  %v5329_v1 = vcombine.low %v110_v49, %v114_v50 }
 0x120   :  { %3542 = vmatprep.subr.bf16.mxu0 %v5250_v58  ;;  %v5458_v58 = vcombine.high %v238_v51, %v242_v52  ;;  %v106_v60 = vld [vmem:[%s8470_s1 + $0x270] sm:$0xff] }
 0x121   :  { %3582 = vmatpush1.bf16.msra.mxu1 %v5385_v57  ;;  %v5330_v57 = vcombine.high %v110_v49, %v114_v50  ;;  %v230_v61 = vld [vmem:[%s8470_s1 + $0x650] sm:$0xff] }
 0x122   :  { %3583 = vmatprep.subr.bf16.mxu1 %v5378_v59  ;;  %v102_v59 = vld [vmem:[%s8470_s1 + $0x250] sm:$0xff] }
 0x123   :  { %3543 = vmatpush1.bf16.msra.mxu0 %v5249_v2  ;;  %v234_v0 = vld [vmem:[%s8470_s1 + $0x670] sm:$0xff]  ;;  %v5457_v2 = vcombine.low %v238_v51, %v242_v52  ;;  %v5321_v11 = vcombine.low %v102_v59, %v106_v60 }
 0x124   :  { %3544 = vmatprep.subr.bf16.mxu0 %v5370_v4  ;;  %v5450_v4 = vcombine.high %v230_v61, %v234_v0  ;;  %v98_v6 = vld [vmem:[%s8470_s1 + $0x230] sm:$0xff] }
 0x125   :  { %3584 = vmatpush1.bf16.msra.mxu1 %v5377_v3  ;;  %v5322_v3 = vcombine.high %v102_v59, %v106_v60  ;;  %v222_v7 = vld [vmem:[%s8470_s1 + $0x610] sm:$0xff] }
 0x126   :  { %3585 = vmatprep.subr.bf16.mxu1 %v5498_v5  ;;  %v94_v5 = vld [vmem:[%s8470_s1 + $0x210] sm:$0xff] }
 0x127   :  { %3545 = vmatpush2.bf16.msra.mxu0 %v5369_v12  ;;  %v226_v10 = vld [vmem:[%s8470_s1 + $0x630] sm:$0xff]  ;;  %v5449_v12 = vcombine.low %v230_v61, %v234_v0  ;;  %v5313_v20 = vcombine.low %v94_v5, %v98_v6 }
 0x128   :  { %3546 = vmatprep.subr.bf16.mxu0 %v5362_v15  ;;  %v5442_v15 = vcombine.high %v222_v7, %v226_v10  ;;  %v346_v17 = vld [vmem:[%s8470_s1 + $0x9f0] sm:$0xff] }
 0x129   :  { %3586 = vmatpush2.bf16.msra.mxu1 %v5497_v14  ;;  %v5314_v14 = vcombine.high %v94_v5, %v98_v6  ;;  %v470_v18 = vld [vmem:[%s8470_s1 + $0xdd0] sm:$0xff] }
 0x12a   :  { %3587 = vmatprep.subr.bf16.mxu1 %v5490_v16  ;;  %v342_v16 = vld [vmem:[%s8470_s1 + $0x9d0] sm:$0xff] }
 0x12b   :  { %3547 = vmatpush2.bf16.msra.mxu0 %v5361_v21  ;;  %v474_v19 = vld [vmem:[%s8470_s1 + $0xdf0] sm:$0xff]  ;;  %v5441_v21 = vcombine.low %v222_v7, %v226_v10  ;;  %v5561_v30 = vcombine.low %v342_v16, %v346_v17 }
 0x12c   :  { %3548 = vmatprep.subr.bf16.mxu0 %v5354_v23  ;;  %v5690_v23 = vcombine.high %v470_v18, %v474_v19  ;;  %v338_v26 = vld [vmem:[%s8470_s1 + $0x9b0] sm:$0xff] }
 0x12d   :  { %3588 = vmatpush2.bf16.msra.mxu1 %v5489_v22  ;;  %v5562_v22 = vcombine.high %v342_v16, %v346_v17  ;;  %v462_v27 = vld [vmem:[%s8470_s1 + $0xd90] sm:$0xff] }
 0x12e   :  { %3589 = vmatprep.subr.bf16.mxu1 %v5482_v25  ;;  %v334_v25 = vld [vmem:[%s8470_s1 + $0x990] sm:$0xff] }
 0x12f   :  { %3549 = vmatpush2.bf16.msra.mxu0 %v5353_v35  ;;  %v466_v29 = vld [vmem:[%s8470_s1 + $0xdb0] sm:$0xff]  ;;  %v5689_v35 = vcombine.low %v470_v18, %v474_v19 }
 0x130   :  { %3550 = vmatprep.subr.bf16.mxu0 %v5346_v38  ;;  %v5682_v38 = vcombine.high %v462_v27, %v466_v29  ;;  %v330_v53 = vld [vmem:[%s8470_s1 + $0x970] sm:$0xff]  ;;  %v5681_v49 = vcombine.low %v462_v27, %v466_v29 }
 0x131   :  { %3590 = vmatpush2.bf16.msra.mxu1 %v5481_v36  ;;  %v5554_v36 = vcombine.high %v334_v25, %v338_v26  ;;  %v454_v41 = vld [vmem:[%s8470_s1 + $0xd50] sm:$0xff] }
 0x132   :  { %3591 = vmatprep.subr.bf16.mxu1 %v5474_v39  ;;  %v326_v39 = vld [vmem:[%s8470_s1 + $0x950] sm:$0xff] }
 0x133   :  { %3551 = vmatpush2.bf16.msra.mxu0 %v5345_v45  ;;  %v458_v44 = vld [vmem:[%s8470_s1 + $0xd70] sm:$0xff]  ;;  %v5546_v50 = vcombine.high %v326_v39, %v330_v53  ;;  %v5545_v0 = vcombine.low %v326_v39, %v330_v53 }
 0x134   :  { %3552 = vmatprep.subr.bf16.mxu0 %v5338_v47  ;;  %v5553_v47 = vcombine.low %v334_v25, %v338_v26  ;;  %v446_v59 = vld [vmem:[%s8470_s1 + $0xd10] sm:$0xff] }
 0x135   :  { %3592 = vmatpush2.bf16.msra.mxu1 %v5473_v46  ;;  %v310_v6 = vld [vmem:[%s8470_s1 + $0x8d0] sm:$0xff] }
 0x136   :  { %3593 = vmatprep.subr.bf16.mxu1 %v5466_v48  ;;  %v314_v7 = vld [vmem:[%s8470_s1 + $0x8f0] sm:$0xff] }
 0x137   :  { %3553 = vmatpush2.bf16.msra.mxu0 %v5337_v54  ;;  %v438_v10 = vld [vmem:[%s8470_s1 + $0xcd0] sm:$0xff] }
 0x138   :  { %3554 = vmatprep.subr.bf16.mxu0 %v5330_v57  ;;  %v322_v57 = vld [vmem:[%s8470_s1 + $0x930] sm:$0xff] }
 0x139   :  { %3594 = vmatpush2.bf16.msra.mxu1 %v5465_v56  ;;  %v5674_v56 = vcombine.high %v454_v41, %v458_v44  ;;  %v302_v17 = vld [vmem:[%s8470_s1 + $0x890] sm:$0xff] }
 0x13a   :  { %3595 = vmatprep.subr.bf16.mxu1 %v5458_v58  ;;  %v306_v18 = vld [vmem:[%s8470_s1 + $0x8b0] sm:$0xff] }
 0x13b   :  { %3555 = vmatpush2.bf16.msra.mxu0 %v5329_v1  ;;  %v430_v19 = vld [vmem:[%s8470_s1 + $0xc90] sm:$0xff] }
 0x13c   :  { %3556 = vmatprep.subr.bf16.mxu0 %v5322_v3  ;;  %v294_v26 = vld [vmem:[%s8470_s1 + $0x850] sm:$0xff] }
 0x13d   :  { %3596 = vmatpush2.bf16.msra.mxu1 %v5457_v2  ;;  %v5673_v2 = vcombine.low %v454_v41, %v458_v44  ;;  %v298_v27 = vld [vmem:[%s8470_s1 + $0x870] sm:$0xff] }
 0x13e   :  { %3597 = vmatprep.subr.bf16.mxu1 %v5450_v4  ;;  %v422_v29 = vld [vmem:[%s8470_s1 + $0xc50] sm:$0xff] }
 0x13f   :  { %3557 = vmatpush2.bf16.msra.mxu0 %v5321_v11  ;;  %v442_v11 = vld [vmem:[%s8470_s1 + $0xcf0] sm:$0xff] }
 0x140   :  { %3558 = vmatprep.subr.bf16.mxu0 %v5314_v14  ;;  %v5658_v16 = vcombine.high %v438_v10, %v442_v11  ;;  %v286_v53 = vld [vmem:[%s8470_s1 + $0x810] sm:$0xff] }
 0x141   :  { %3598 = vmatpush2.bf16.msra.mxu1 %v5449_v12  ;;  %v414_v41 = vld [vmem:[%s8470_s1 + $0xc10] sm:$0xff] }
 0x142   :  { %3599 = vmatprep.subr.bf16.mxu1 %v5442_v15  ;;  %v5530_v15 = vcombine.high %v310_v6, %v314_v7  ;;  %v418_v44 = vld [vmem:[%s8470_s1 + $0xc30] sm:$0xff] }
 0x143   :  { %3559 = vmatpush2.bf16.msra.mxu0 %v5313_v20  ;;  %v434_v20 = vld [vmem:[%s8470_s1 + $0xcb0] sm:$0xff] }
 0x144   :  { %3610 = vmatprep.subr.bf16.mxu0 %v5562_v22  ;;  %v5657_v22 = vcombine.low %v438_v10, %v442_v11  ;;  %v5650_v25 = vcombine.high %v430_v19, %v434_v20  ;;  %v522_v10 = vld [vmem:[%s8470_s1 + $0xf70] sm:$0xff] }
 0x145   :  { %3600 = vmatpush2.bf16.msra.mxu1 %v5441_v21  ;;  %v5529_v21 = vcombine.low %v310_v6, %v314_v7  ;;  %v394_v6 = vld [vmem:[%s8470_s1 + $0xb70] sm:$0xff] }
 0x146   :  { %3651 = vmatprep.subr.bf16.mxu1 %v5690_v23  ;;  %v3316_v40 = vpop.f32.mrf.mxu0  ;;  %3561 = vmatmul.mubr.bf16.vlgmr.msra.gmra.mxu0 %v6484_v24  ;;  %v5522_v23 = vcombine.high %v302_v17, %v306_v18  ;;  %v518_v7 = vld [vmem:[%s8470_s1 + $0xf50] sm:$0xff] }
 0x147   :  { %v3317_v45 = vadd.f32 %v3316_v40, %v7128_v62  ;;  %3611 = vmatpush1.bf16.msra.mxu0 %v5561_v30  ;;  %v318_v62 = vld [vmem:[%s8470_s1 + $0x910] sm:$0xff]  ;;  %3642 = vmatprep.mubr.bf16.mxu0 %v6499_v31 }
 0x148   :  { %v3357_v46 = vpop.f32.mrf.mxu1  ;;  %3602 = vmatmul.mubr.bf16.vlgmr.msra.gmra.mxu1 %v6503_v34  ;;  %v3318_v48 = vpop.f32.mrf.mxu0  ;;  %3612 = vmatprep.subr.bf16.mxu0 %v5554_v36  ;;  %v5538_v3 = vcombine.high %v318_v62, %v322_v57  ;;  %v5537_v12 = vcombine.low %v318_v62, %v322_v57  ;;  %v426_v30 = vld [vmem:[%s8470_s1 + $0xc70] sm:$0xff]  ;;  %v5649_v36 = vcombine.low %v430_v19, %v434_v20 }
 0x149   :  { %3652 = vmatpush1.bf16.msra.mxu1 %v5689_v35  ;;  %v7329_v51 = vadd.f32 %v3357_v46, %v3317_v45  ;;  %v3319_v52 = vadd.f32 %v3318_v48, %v7144_v8  ;;  %v450_v8 = vld [vmem:[%s8470_s1 + $0xd30] sm:$0xff]  ;;  %3683 = vmatprep.mubr.bf16.mxu1 %v6520_v42  ;;  %v5521_v35 = vcombine.low %v302_v17, %v306_v18 }
 0x14a   :  { %v3359_v54 = vpop.f32.mrf.mxu1  ;;  %3653 = vmatprep.subr.bf16.mxu1 %v5682_v38  ;;  %v3320_v58 = vpop.f32.mrf.mxu0  ;;  %v5666_v5 = vcombine.high %v446_v59, %v450_v8  ;;  %v5665_v14 = vcombine.low %v446_v59, %v450_v8  ;;  %v5514_v38 = vcombine.high %v294_v26, %v298_v27  ;;  %v5642_v39 = vcombine.high %v422_v29, %v426_v30  ;;  %v290_v40 = vld [vmem:[%s8470_s1 + $0x830] sm:$0xff] }
 0x14b   :  { %v7346_v60 = vadd.f32 %v3359_v54, %v3319_v52  ;;  %3613 = vmatpush1.bf16.msra.mxu0 %v5553_v47  ;;  %v5513_v45 = vcombine.low %v294_v26, %v298_v27  ;;  %v5641_v46 = vcombine.low %v422_v29, %v426_v30  ;;  %v5506_v47 = vcombine.high %v286_v53, %v290_v40  ;;  %v534_v52 = vld [vmem:[%s8470_s1 + $0xfd0] sm:$0xff] }
 0x14c   :  { %v3361_v61 = vpop.f32.mrf.mxu1  ;;  %v3321_v1 = vpop.f32.mrf.mxu0  ;;  %3614 = vmatprep.subr.bf16.mxu0 %v5546_v50  ;;  %v5634_v48 = vcombine.high %v414_v41, %v418_v44  ;;  %v410_v50 = vld [vmem:[%s8470_s1 + $0xbf0] sm:$0xff]  ;;  %v5633_v62 = vcombine.low %v414_v41, %v418_v44 }
 0x14d   :  { %3654 = vmatpush1.bf16.msra.mxu1 %v5681_v49  ;;  %v406_v49 = vld [vmem:[%s8470_s1 + $0xbd0] sm:$0xff] }
 0x14e   :  { %v3362_v4 = vpop.f32.mrf.mxu1  ;;  %3655 = vmatprep.subr.bf16.mxu1 %v5674_v56  ;;  %v538_v54 = vld [vmem:[%s8470_s1 + $0xff0] sm:$0xff]  ;;  %v5505_v56 = vcombine.low %v286_v53, %v290_v40  ;;  %v5626_v57 = vcombine.high %v406_v49, %v410_v50  ;;  %v5625_v1 = vcombine.low %v406_v49, %v410_v50 }
 0x14f   :  { %3615 = vmatpush1.bf16.msra.mxu0 %v5545_v0  ;;  %v5754_v58 = vcombine.high %v534_v52, %v538_v54  ;;  %v398_v59 = vld [vmem:[%s8470_s1 + $0xb90] sm:$0xff] }
 0x150   :  { %3616 = vmatprep.subr.bf16.mxu0 %v5538_v3  ;;  %v402_v8 = vld [vmem:[%s8470_s1 + $0xbb0] sm:$0xff] }
 0x151   :  { %3656 = vmatpush1.bf16.msra.mxu1 %v5673_v2  ;;  %v526_v61 = vld [vmem:[%s8470_s1 + $0xf90] sm:$0xff]  ;;  %v5753_v2 = vcombine.low %v534_v52, %v538_v54  ;;  %v5618_v3 = vcombine.high %v398_v59, %v402_v8  ;;  %v5617_v11 = vcombine.low %v398_v59, %v402_v8 }
 0x152   :  { %3657 = vmatprep.subr.bf16.mxu1 %v5666_v5  ;;  %v530_v0 = vld [vmem:[%s8470_s1 + $0xfb0] sm:$0xff] }
 0x153   :  { %3617 = vmatpush1.bf16.msra.mxu0 %v5537_v12  ;;  %v5746_v4 = vcombine.high %v526_v61, %v530_v0  ;;  %v390_v5 = vld [vmem:[%s8470_s1 + $0xb50] sm:$0xff]  ;;  %v5745_v12 = vcombine.low %v526_v61, %v530_v0 }
 0x154   :  { %3618 = vmatprep.subr.bf16.mxu0 %v5530_v15  ;;  %v5738_v15 = vcombine.high %v518_v7, %v522_v10  ;;  %v386_v17 = vld [vmem:[%s8470_s1 + $0xb30] sm:$0xff]  ;;  %v5609_v20 = vcombine.low %v390_v5, %v394_v6 }
 0x155   :  { %3658 = vmatpush1.bf16.msra.mxu1 %v5665_v14  ;;  %v5610_v14 = vcombine.high %v390_v5, %v394_v6  ;;  %v510_v18 = vld [vmem:[%s8470_s1 + $0xf10] sm:$0xff]  ;;  %v91_v5 = vld [vmem:[%s8470_s1 + $0x1f8] sm:$0xff] }
 0x156   :  { %3659 = vmatprep.subr.bf16.mxu1 %v5658_v16  ;;  %v382_v16 = vld [vmem:[%s8470_s1 + $0xb10] sm:$0xff]  ;;  %v215_v6 = vld [vmem:[%s8470_s1 + $0x5d8] sm:$0xff] }
 0x157   :  { %3619 = vmatpush1.bf16.msra.mxu0 %v5529_v21  ;;  %v514_v19 = vld [vmem:[%s8470_s1 + $0xf30] sm:$0xff]  ;;  %v5737_v21 = vcombine.low %v518_v7, %v522_v10  ;;  %v5601_v30 = vcombine.low %v382_v16, %v386_v17  ;;  %v219_v7 = vld [vmem:[%s8470_s1 + $0x5f8] sm:$0xff] }
 0x158   :  { %3620 = vmatprep.subr.bf16.mxu0 %v5522_v23  ;;  %v5730_v23 = vcombine.high %v510_v18, %v514_v19  ;;  %v378_v26 = vld [vmem:[%s8470_s1 + $0xaf0] sm:$0xff] }
 0x159   :  { %3660 = vmatpush1.bf16.msra.mxu1 %v5657_v22  ;;  %v5602_v22 = vcombine.high %v382_v16, %v386_v17  ;;  %v502_v27 = vld [vmem:[%s8470_s1 + $0xed0] sm:$0xff]  ;;  %v556_v16 = vsub.s32 3, %v6313_v43  ;;  %v79_v17 = vld [vmem:[%s8470_s1 + $0x198] sm:$0xff] }
 0x15a   :  { %3661 = vmatprep.subr.bf16.mxu1 %v5650_v25  ;;  %v374_v25 = vld [vmem:[%s8470_s1 + $0xad0] sm:$0xff] }
 0x15b   :  { %3621 = vmatpush1.bf16.msra.mxu0 %v5521_v35  ;;  %v506_v29 = vld [vmem:[%s8470_s1 + $0xef0] sm:$0xff]  ;;  %v5729_v35 = vcombine.low %v510_v18, %v514_v19  ;;  %v5593_v44 = vcombine.low %v374_v25, %v378_v26  ;;  %v83_v18 = vld [vmem:[%s8470_s1 + $0x1b8] sm:$0xff] }
 0x15c   :  { %3622 = vmatprep.subr.bf16.mxu0 %v5514_v38  ;;  %v5722_v38 = vcombine.high %v502_v27, %v506_v29  ;;  %v370_v53 = vld [vmem:[%s8470_s1 + $0xab0] sm:$0xff]  ;;  %v207_v19 = vld [vmem:[%s8470_s1 + $0x598] sm:$0xff] }
 0x15d   :  { %3662 = vmatpush1.bf16.msra.mxu1 %v5649_v36  ;;  %v5594_v36 = vcombine.high %v374_v25, %v378_v26  ;;  %v494_v40 = vld [vmem:[%s8470_s1 + $0xe90] sm:$0xff]  ;;  %v5300_v25 = vcombine.high %v79_v17, %v83_v18  ;;  %v71_v26 = vld [vmem:[%s8470_s1 + $0x158] sm:$0xff] }
 0x15e   :  { %3663 = vmatprep.subr.bf16.mxu1 %v5642_v39  ;;  %v366_v39 = vld [vmem:[%s8470_s1 + $0xa90] sm:$0xff] }
 0x15f   :  { %3623 = vmatpush1.bf16.msra.mxu0 %v5513_v45  ;;  %v498_v41 = vld [vmem:[%s8470_s1 + $0xeb0] sm:$0xff]  ;;  %v5721_v45 = vcombine.low %v502_v27, %v506_v29  ;;  %v5585_v54 = vcombine.low %v366_v39, %v370_v53  ;;  %v75_v27 = vld [vmem:[%s8470_s1 + $0x178] sm:$0xff]  ;;  %v557_v29 = vrot.slane %v7093_v63, %v556_v16 }
 0x160   :  { %3624 = vmatprep.subr.bf16.mxu0 %v5506_v47  ;;  %v5714_v47 = vcombine.high %v494_v40, %v498_v41  ;;  %v362_v49 = vld [vmem:[%s8470_s1 + $0xa70] sm:$0xff] }
 0x161   :  { %3664 = vmatpush1.bf16.msra.mxu1 %v5641_v46  ;;  %v5586_v46 = vcombine.high %v366_v39, %v370_v53  ;;  %v486_v50 = vld [vmem:[%s8470_s1 + $0xe50] sm:$0xff] }
 0x162   :  { %3665 = vmatprep.subr.bf16.mxu1 %v5634_v48  ;;  %v358_v48 = vld [vmem:[%s8470_s1 + $0xa50] sm:$0xff] }
 0x163   :  { %3625 = vmatpush1.bf16.msra.mxu0 %v5505_v56  ;;  %v490_v52 = vld [vmem:[%s8470_s1 + $0xe70] sm:$0xff]  ;;  %v5713_v56 = vcombine.low %v494_v40, %v498_v41  ;;  %v5577_v0 = vcombine.low %v358_v48, %v362_v49  ;;  %v5299_v40 = vcombine.low %v79_v17, %v83_v18  ;;  %v39_v18 = vld [vmem:[%s8470_s1 + $0x58] sm:$0xff] }
 0x164   :  { %3626 = vmatprep.subr.bf16.mxu0 %v5626_v57  ;;  %v5706_v57 = vcombine.high %v486_v50, %v490_v52  ;;  %v354_v59 = vld [vmem:[%s8470_s1 + $0xa30] sm:$0xff] }
 0x165   :  { %3666 = vmatpush1.bf16.msra.mxu1 %v5633_v62  ;;  %v5578_v62 = vcombine.high %v358_v48, %v362_v49  ;;  %v478_v8 = vld [vmem:[%s8470_s1 + $0xe10] sm:$0xff] }
 0x166   :  { %3667 = vmatprep.subr.bf16.mxu1 %v5754_v58  ;;  %v350_v58 = vld [vmem:[%s8470_s1 + $0xa10] sm:$0xff] }
 0x167   :  { %3627 = vmatpush2.bf16.msra.mxu0 %v5625_v1  ;;  %v482_v61 = vld [vmem:[%s8470_s1 + $0xe30] sm:$0xff]  ;;  %v5705_v1 = vcombine.low %v486_v50, %v490_v52  ;;  %v5569_v10 = vcombine.low %v350_v58, %v354_v59 }
 0x168   :  { %3628 = vmatprep.subr.bf16.mxu0 %v5618_v3  ;;  %v5698_v3 = vcombine.high %v478_v8, %v482_v61 }
 0x169   :  { %3668 = vmatpush2.bf16.msra.mxu1 %v5753_v2  ;;  %v5570_v2 = vcombine.high %v350_v58, %v354_v59  ;;  %v5291_v58 = vcombine.low %v71_v26, %v75_v27 }
 0x16a   :  { %3669 = vmatprep.subr.bf16.mxu1 %v5746_v4  ;;  %v87_v4 = vld [vmem:[%s8470_s1 + $0x1d8] sm:$0xff] }
 0x16b   :  { %3629 = vmatpush2.bf16.msra.mxu0 %v5617_v11  ;;  %v552_v11 = vsub.s32 2, %v6313_v43 }
 0x16c   :  { %3630 = vmatprep.subr.bf16.mxu0 %v5610_v14  ;;  %v5308_v14 = vcombine.high %v87_v4, %v91_v5 }
 0x16d   :  { %3670 = vmatpush2.bf16.msra.mxu1 %v5745_v12  ;;  %v5697_v12 = vcombine.low %v478_v8, %v482_v61 }
 0x16e   :  { %3671 = vmatprep.subr.bf16.mxu1 %v5738_v15  ;;  %v5436_v15 = vcombine.high %v215_v6, %v219_v7 }
 0x16f   :  { %3631 = vmatpush2.bf16.msra.mxu0 %v5609_v20  ;;  %v211_v20 = vld [vmem:[%s8470_s1 + $0x5b8] sm:$0xff] }
 0x170   :  { %3632 = vmatprep.subr.bf16.mxu0 %v5602_v22  ;;  %v5307_v22 = vcombine.low %v87_v4, %v91_v5  ;;  %v47_v5 = vld [vmem:[%s8470_s1 + $0x98] sm:$0xff] }
 0x171   :  { %3672 = vmatpush2.bf16.msra.mxu1 %v5737_v21  ;;  %v553_v21 = vrot.slane %v7093_v63, %v552_v11  ;;  %v63_v63 = vld [vmem:[%s8470_s1 + $0x118] sm:$0xff] }
 0x172   :  { %3673 = vmatprep.subr.bf16.mxu1 %v5730_v23  ;;  %v5435_v23 = vcombine.low %v215_v6, %v219_v7 }
 0x173   :  { %3633 = vmatpush2.bf16.msra.mxu0 %v5601_v30  ;;  %v5428_v30 = vcombine.high %v207_v19, %v211_v20 }
 0x174   :  { %3634 = vmatprep.subr.bf16.mxu0 %v5594_v36 }
 0x175   :  { %3674 = vmatpush2.bf16.msra.mxu1 %v5729_v35  ;;  %v199_v35 = vld [vmem:[%s8470_s1 + $0x558] sm:$0xff] }
 0x176   :  { %3675 = vmatprep.subr.bf16.mxu1 %v5722_v38  ;;  %v203_v38 = vld [vmem:[%s8470_s1 + $0x578] sm:$0xff] }
 0x177   :  { %3635 = vmatpush2.bf16.msra.mxu0 %v5593_v44  ;;  %v5427_v44 = vcombine.low %v207_v19, %v211_v20  ;;  %v5420_v50 = vcombine.high %v199_v35, %v203_v38  ;;  %v5419_v8 = vcombine.low %v199_v35, %v203_v38  ;;  %v35_v35 = vld [vmem:[%s8470_s1 + $0x38] sm:$0xff] }
 0x178   :  { %3636 = vmatprep.subr.bf16.mxu0 %v5586_v46  ;;  %v67_v46 = vld [vmem:[%s8470_s1 + $0x138] sm:$0xff] }
 0x179   :  { %3676 = vmatpush2.bf16.msra.mxu1 %v5721_v45  ;;  %v5292_v45 = vcombine.high %v71_v26, %v75_v27  ;;  %v5284_v61 = vcombine.high %v63_v63, %v67_v46  ;;  %v5283_v4 = vcombine.low %v63_v63, %v67_v46  ;;  %v31_v27 = vld [vmem:[%s8470_s1 + $0x18] sm:$0xff] }
 0x17a   :  { %3677 = vmatprep.subr.bf16.mxu1 %v5714_v47  ;;  %v159_v38 = vld [vmem:[%s8470_s1 + $0x418] sm:$0xff] }
 0x17b   :  { %3637 = vmatpush2.bf16.msra.mxu0 %v5585_v54  ;;  %v191_v54 = vld [vmem:[%s8470_s1 + $0x518] sm:$0xff] }
 0x17c   :  { %3638 = vmatprep.subr.bf16.mxu0 %v5578_v62  ;;  %v279_v46 = vld [vmem:[%s8470_s1 + $0x7d8] sm:$0xff] }
 0x17d   :  { %3678 = vmatpush2.bf16.msra.mxu1 %v5713_v56  ;;  %v195_v56 = vld [vmem:[%s8470_s1 + $0x538] sm:$0xff] }
 0x17e   :  { %3679 = vmatprep.subr.bf16.mxu1 %v5706_v57  ;;  %v5411_v6 = vcombine.low %v191_v54, %v195_v56 }
 0x17f   :  { %3639 = vmatpush2.bf16.msra.mxu0 %v5577_v0  ;;  %v59_v0 = vld [vmem:[%s8470_s1 + $0xf8] sm:$0xff] }
 0x180   :  { %3640 = vmatprep.subr.bf16.mxu0 %v5570_v2  ;;  %v183_v2 = vld [vmem:[%s8470_s1 + $0x4d8] sm:$0xff] }
 0x181   :  { %3680 = vmatpush2.bf16.msra.mxu1 %v5705_v1 }
 0x182   :  { %3681 = vmatprep.subr.bf16.mxu1 %v5698_v3  ;;  %v187_v3 = vld [vmem:[%s8470_s1 + $0x4f8] sm:$0xff] }
 0x183   :  { %3641 = vmatpush2.bf16.msra.mxu0 %v5569_v10  ;;  %v51_v10 = vld [vmem:[%s8470_s1 + $0xb8] sm:$0xff]  ;;  %v5403_v19 = vcombine.low %v183_v2, %v187_v3 }
 0x184   :  { %3692 = vmatprep.subr.bf16.mxu0 %v5308_v14  ;;  %v175_v14 = vld [vmem:[%s8470_s1 + $0x498] sm:$0xff]  ;;  %v5268_v20 = vcombine.high %v47_v5, %v51_v10  ;;  %v5267_v26 = vcombine.low %v47_v5, %v51_v10 }
 0x185   :  { %3682 = vmatpush2.bf16.msra.mxu1 %v5697_v12  ;;  %v5404_v12 = vcombine.high %v183_v2, %v187_v3  ;;  %v263_v2 = vld [vmem:[%s8470_s1 + $0x758] sm:$0xff] }
 0x186   :  { %3733 = vmatprep.subr.bf16.mxu1 %v5436_v15  ;;  %v3398_v36 = vpop.f32.mrf.mxu0  ;;  %3643 = vmatmul.mubr.bf16.vlgmr.msra.gmra.mxu0 %v6406_v33  ;;  %v179_v15 = vld [vmem:[%s8470_s1 + $0x4b8] sm:$0xff] }
 0x187   :  { %v3399_v39 = vadd.f32 %v3398_v36, %v553_v21  ;;  %3693 = vmatpush1.bf16.msra.mxu0 %v5307_v22  ;;  %3724 = vmatprep.mubr.bf16.mxu0 %v6363_v9  ;;  %v55_v9 = vld [vmem:[%s8470_s1 + $0xd8] sm:$0xff]  ;;  %v5396_v22 = vcombine.high %v175_v14, %v179_v15 }
 0x188   :  { %v3439_v53 = vpop.f32.mrf.mxu1  ;;  %3684 = vmatmul.mubr.bf16.vlgmr.msra.gmra.mxu1 %v6707_v55  ;;  %v3400_v41 = vpop.f32.mrf.mxu0  ;;  %3694 = vmatprep.subr.bf16.mxu0 %v5300_v25  ;;  %v5276_v7 = vcombine.high %v55_v9, %v59_v0  ;;  %v5275_v17 = vcombine.low %v55_v9, %v59_v0  ;;  %v43_v21 = vld [vmem:[%s8470_s1 + $0x78] sm:$0xff] }
 0x189   :  { %3734 = vmatpush1.bf16.msra.mxu1 %v5435_v23  ;;  %v7544_v47 = vadd.f32 %v3439_v53, %v3399_v39  ;;  %v3401_v48 = vadd.f32 %v3400_v41, %v557_v29  ;;  %3765 = vmatprep.mubr.bf16.mxu1 %v6374_v13  ;;  %v5412_v13 = vcombine.high %v191_v54, %v195_v56  ;;  %v167_v23 = vld [vmem:[%s8470_s1 + $0x458] sm:$0xff] }
 0x18a   :  { %v3441_v49 = vpop.f32.mrf.mxu1  ;;  %3735 = vmatprep.subr.bf16.mxu1 %v5428_v30  ;;  %v3402_v52 = vpop.f32.mrf.mxu0  ;;  %v171_v25 = vld [vmem:[%s8470_s1 + $0x478] sm:$0xff]  ;;  %v5395_v29 = vcombine.low %v175_v14, %v179_v15  ;;  %v5260_v30 = vcombine.high %v39_v18, %v43_v21  ;;  %v5259_v53 = vcombine.low %v39_v18, %v43_v21  ;;  %v5252_v41 = vcombine.high %v31_v27, %v35_v35 }
 0x18b   :  { %v7554_v62 = vadd.f32 %v3441_v49, %v3401_v48  ;;  %3695 = vmatpush1.bf16.msra.mxu0 %v5299_v40  ;;  %v5388_v36 = vcombine.high %v167_v23, %v171_v25  ;;  %v163_v39 = vld [vmem:[%s8470_s1 + $0x438] sm:$0xff]  ;;  %v5387_v63 = vcombine.low %v167_v23, %v171_v25  ;;  %v5251_v49 = vcombine.low %v31_v27, %v35_v35 }
 0x18c   :  { %v3443_v57 = vpop.f32.mrf.mxu1  ;;  %v3403_v59 = vpop.f32.mrf.mxu0  ;;  %3696 = vmatprep.subr.bf16.mxu0 %v5292_v45  ;;  %v151_v40 = vld [vmem:[%s8470_s1 + $0x3d8] sm:$0xff]  ;;  %v5380_v45 = vcombine.high %v159_v38, %v163_v39  ;;  %v5379_v52 = vcombine.low %v159_v38, %v163_v39 }
 0x18d   :  { %3736 = vmatpush1.bf16.msra.mxu1 %v5427_v44  ;;  %v155_v44 = vld [vmem:[%s8470_s1 + $0x3f8] sm:$0xff] }
 0x18e   :  { %v3444_v1 = vpop.f32.mrf.mxu1  ;;  %3737 = vmatprep.subr.bf16.mxu1 %v5420_v50  ;;  %v283_v48 = vld [vmem:[%s8470_s1 + $0x7f8] sm:$0xff]  ;;  %v5372_v54 = vcombine.high %v151_v40, %v155_v44  ;;  %v5371_v59 = vcombine.low %v151_v40, %v155_v44 }
 0x18f   :  { %3697 = vmatpush1.bf16.msra.mxu0 %v5291_v58  ;;  %v143_v50 = vld [vmem:[%s8470_s1 + $0x398] sm:$0xff]  ;;  %v5500_v57 = vcombine.high %v279_v46, %v283_v48 }
 0x190   :  { %3698 = vmatprep.subr.bf16.mxu0 %v5284_v61  ;;  %v147_v56 = vld [vmem:[%s8470_s1 + $0x3b8] sm:$0xff] }
 0x191   :  { %3738 = vmatpush1.bf16.msra.mxu1 %v5419_v8  ;;  %v271_v58 = vld [vmem:[%s8470_s1 + $0x798] sm:$0xff]  ;;  %v5499_v8 = vcombine.low %v279_v46, %v283_v48  ;;  %v5364_v61 = vcombine.high %v143_v50, %v147_v56 }
 0x192   :  { %3739 = vmatprep.subr.bf16.mxu1 %v5412_v13  ;;  %v275_v9 = vld [vmem:[%s8470_s1 + $0x7b8] sm:$0xff] }
 0x193   :  { %3699 = vmatpush1.bf16.msra.mxu0 %v5283_v4  ;;  %v5492_v0 = vcombine.high %v271_v58, %v275_v9  ;;  %v135_v1 = vld [vmem:[%s8470_s1 + $0x358] sm:$0xff]  ;;  %v5363_v4 = vcombine.low %v143_v50, %v147_v56 }
 0x194   :  { %3700 = vmatprep.subr.bf16.mxu0 %v5276_v7  ;;  %v139_v13 = vld [vmem:[%s8470_s1 + $0x378] sm:$0xff]  ;;  %v5491_v7 = vcombine.low %v271_v58, %v275_v9 }
 0x195   :  { %3740 = vmatpush1.bf16.msra.mxu1 %v5411_v6  ;;  %v267_v3 = vld [vmem:[%s8470_s1 + $0x778] sm:$0xff]  ;;  %v5356_v10 = vcombine.high %v135_v1, %v139_v13 }
 0x196   :  { %3741 = vmatprep.subr.bf16.mxu1 %v5404_v12  ;;  %v127_v5 = vld [vmem:[%s8470_s1 + $0x318] sm:$0xff]  ;;  %v5484_v15 = vcombine.high %v263_v2, %v267_v3 }
 0x197   :  { %3701 = vmatpush1.bf16.msra.mxu0 %v5275_v17  ;;  %v131_v6 = vld [vmem:[%s8470_s1 + $0x338] sm:$0xff]  ;;  %v5355_v17 = vcombine.low %v135_v1, %v139_v13 }
 0x198   :  { %3702 = vmatprep.subr.bf16.mxu0 %v5268_v20  ;;  %v255_v12 = vld [vmem:[%s8470_s1 + $0x718] sm:$0xff]  ;;  %v5483_v20 = vcombine.low %v263_v2, %v267_v3  ;;  %v5348_v21 = vcombine.high %v127_v5, %v131_v6 }
 0x199   :  { %3742 = vmatpush1.bf16.msra.mxu1 %v5403_v19  ;;  %v259_v14 = vld [vmem:[%s8470_s1 + $0x738] sm:$0xff] }
 0x19a   :  { %3743 = vmatprep.subr.bf16.mxu1 %v5396_v22  ;;  %v119_v18 = vld [vmem:[%s8470_s1 + $0x2d8] sm:$0xff]  ;;  %v5476_v25 = vcombine.high %v255_v12, %v259_v14 }
 0x19b   :  { %3703 = vmatpush1.bf16.msra.mxu0 %v5267_v26  ;;  %v123_v19 = vld [vmem:[%s8470_s1 + $0x2f8] sm:$0xff]  ;;  %v5347_v26 = vcombine.low %v127_v5, %v131_v6 }
 0x19c   :  { %3704 = vmatprep.subr.bf16.mxu0 %v5260_v30  ;;  %v247_v22 = vld [vmem:[%s8470_s1 + $0x6d8] sm:$0xff]  ;;  %v5475_v30 = vcombine.low %v255_v12, %v259_v14  ;;  %v5340_v35 = vcombine.high %v119_v18, %v123_v19 }
 0x19d   :  { %3744 = vmatpush1.bf16.msra.mxu1 %v5395_v29  ;;  %v251_v23 = vld [vmem:[%s8470_s1 + $0x6f8] sm:$0xff] }
 0x19e   :  { %3745 = vmatprep.subr.bf16.mxu1 %v5388_v36  ;;  %v111_v27 = vld [vmem:[%s8470_s1 + $0x298] sm:$0xff]  ;;  %v5468_v39 = vcombine.high %v247_v22, %v251_v23 }
 0x19f   :  { %3705 = vmatpush1.bf16.msra.mxu0 %v5259_v53  ;;  %v115_v29 = vld [vmem:[%s8470_s1 + $0x2b8] sm:$0xff]  ;;  %v5339_v53 = vcombine.low %v119_v18, %v123_v19 }
 0x1a0   :  { %3706 = vmatprep.subr.bf16.mxu0 %v5252_v41  ;;  %v239_v36 = vld [vmem:[%s8470_s1 + $0x698] sm:$0xff]  ;;  %v5467_v41 = vcombine.low %v247_v22, %v251_v23  ;;  %v5332_v44 = vcombine.high %v111_v27, %v115_v29 }
 0x1a1   :  { %3746 = vmatpush1.bf16.msra.mxu1 %v5387_v63  ;;  %v243_v38 = vld [vmem:[%s8470_s1 + $0x6b8] sm:$0xff] }
 0x1a2   :  { %3747 = vmatprep.subr.bf16.mxu1 %v5380_v45  ;;  %v103_v40 = vld [vmem:[%s8470_s1 + $0x258] sm:$0xff]  ;;  %v5460_v48 = vcombine.high %v239_v36, %v243_v38 }
 0x1a3   :  { %3707 = vmatpush1.bf16.msra.mxu0 %v5251_v49  ;;  %v107_v63 = vld [vmem:[%s8470_s1 + $0x278] sm:$0xff]  ;;  %v5331_v49 = vcombine.low %v111_v27, %v115_v29 }
 0x1a4   :  { %3708 = vmatprep.subr.bf16.mxu0 %v5372_v54  ;;  %v231_v45 = vld [vmem:[%s8470_s1 + $0x658] sm:$0xff]  ;;  %v5459_v54 = vcombine.low %v239_v36, %v243_v38  ;;  %v5324_v56 = vcombine.high %v103_v40, %v107_v63 }
 0x1a5   :  { %3748 = vmatpush1.bf16.msra.mxu1 %v5379_v52  ;;  %v235_v46 = vld [vmem:[%s8470_s1 + $0x678] sm:$0xff] }
 0x1a6   :  { %3749 = vmatprep.subr.bf16.mxu1 %v5500_v57  ;;  %v95_v50 = vld [vmem:[%s8470_s1 + $0x218] sm:$0xff]  ;;  %v5452_v9 = vcombine.high %v231_v45, %v235_v46 }
 0x1a7   :  { %3709 = vmatpush2.bf16.msra.mxu0 %v5371_v59  ;;  %v99_v52 = vld [vmem:[%s8470_s1 + $0x238] sm:$0xff]  ;;  %v5323_v59 = vcombine.low %v103_v40, %v107_v63 }
 0x1a8   :  { %3710 = vmatprep.subr.bf16.mxu0 %v5364_v61  ;;  %v223_v57 = vld [vmem:[%s8470_s1 + $0x618] sm:$0xff]  ;;  %v5316_v1 = vcombine.high %v95_v50, %v99_v52 }
 0x1a9   :  { %3750 = vmatpush2.bf16.msra.mxu1 %v5499_v8  ;;  %v227_v58 = vld [vmem:[%s8470_s1 + $0x638] sm:$0xff] }
 0x1aa   :  { %3751 = vmatprep.subr.bf16.mxu1 %v5492_v0  ;;  %v343_v8 = vld [vmem:[%s8470_s1 + $0x9d8] sm:$0xff]  ;;  %v5451_v0 = vcombine.low %v231_v45, %v235_v46  ;;  %v5444_v3 = vcombine.high %v223_v57, %v227_v58 }
 0x1ab   :  { %3711 = vmatpush2.bf16.msra.mxu0 %v5363_v4  ;;  %v347_v61 = vld [vmem:[%s8470_s1 + $0x9f8] sm:$0xff]  ;;  %v5315_v4 = vcombine.low %v95_v50, %v99_v52 }
 0x1ac   :  { %3712 = vmatprep.subr.bf16.mxu0 %v5356_v10  ;;  %v471_v13 = vld [vmem:[%s8470_s1 + $0xdd8] sm:$0xff]  ;;  %v5564_v10 = vcombine.high %v343_v8, %v347_v61 }
 0x1ad   :  { %3752 = vmatpush2.bf16.msra.mxu1 %v5491_v7  ;;  %v475_v2 = vld [vmem:[%s8470_s1 + $0xdf8] sm:$0xff]  ;;  %v5443_v7 = vcombine.low %v223_v57, %v227_v58 }
 0x1ae   :  { %3753 = vmatprep.subr.bf16.mxu1 %v5484_v15  ;;  %v335_v5 = vld [vmem:[%s8470_s1 + $0x998] sm:$0xff]  ;;  %v5692_v15 = vcombine.high %v471_v13, %v475_v2 }
 0x1af   :  { %3713 = vmatpush2.bf16.msra.mxu0 %v5355_v17  ;;  %v339_v6 = vld [vmem:[%s8470_s1 + $0x9b8] sm:$0xff]  ;;  %v5563_v17 = vcombine.low %v343_v8, %v347_v61 }
 0x1b0   :  { %3714 = vmatprep.subr.bf16.mxu0 %v5348_v21  ;;  %v463_v12 = vld [vmem:[%s8470_s1 + $0xd98] sm:$0xff]  ;;  %v5556_v21 = vcombine.high %v335_v5, %v339_v6 }
 0x1b1   :  { %3754 = vmatpush2.bf16.msra.mxu1 %v5483_v20  ;;  %v467_v14 = vld [vmem:[%s8470_s1 + $0xdb8] sm:$0xff]  ;;  %v5691_v20 = vcombine.low %v471_v13, %v475_v2 }
 0x1b2   :  { %3755 = vmatprep.subr.bf16.mxu1 %v5476_v25  ;;  %v327_v18 = vld [vmem:[%s8470_s1 + $0x958] sm:$0xff]  ;;  %v5684_v23 = vcombine.high %v463_v12, %v467_v14  ;;  %v5683_v38 = vcombine.low %v463_v12, %v467_v14 }
 0x1b3   :  { %3715 = vmatpush2.bf16.msra.mxu0 %v5347_v26  ;;  %v331_v19 = vld [vmem:[%s8470_s1 + $0x978] sm:$0xff] }
 0x1b4   :  { %3716 = vmatprep.subr.bf16.mxu0 %v5340_v35  ;;  %v455_v22 = vld [vmem:[%s8470_s1 + $0xd58] sm:$0xff]  ;;  %v5547_v45 = vcombine.low %v327_v18, %v331_v19 }
 0x1b5   :  { %3756 = vmatpush2.bf16.msra.mxu1 %v5475_v30  ;;  %v459_v26 = vld [vmem:[%s8470_s1 + $0xd78] sm:$0xff]  ;;  %v5555_v30 = vcombine.low %v335_v5, %v339_v6 }
 0x1b6   :  { %3757 = vmatprep.subr.bf16.mxu1 %v5468_v39  ;;  %v319_v35 = vld [vmem:[%s8470_s1 + $0x918] sm:$0xff]  ;;  %v5548_v39 = vcombine.high %v327_v18, %v331_v19  ;;  %v5676_v40 = vcombine.high %v455_v22, %v459_v26 }
 0x1b7   :  { %3717 = vmatpush2.bf16.msra.mxu0 %v5339_v53  ;;  %v323_v36 = vld [vmem:[%s8470_s1 + $0x938] sm:$0xff] }
 0x1b8   :  { %3718 = vmatprep.subr.bf16.mxu0 %v5332_v44  ;;  %v311_v46 = vld [vmem:[%s8470_s1 + $0x8d8] sm:$0xff]  ;;  %v5540_v50 = vcombine.high %v319_v35, %v323_v36  ;;  %v5539_v57 = vcombine.low %v319_v35, %v323_v36 }
 0x1b9   :  { %3758 = vmatpush2.bf16.msra.mxu1 %v5467_v41  ;;  %v451_v41 = vld [vmem:[%s8470_s1 + $0xd38] sm:$0xff] }
 0x1ba   :  { %3759 = vmatprep.subr.bf16.mxu1 %v5460_v48  ;;  %v315_v48 = vld [vmem:[%s8470_s1 + $0x8f8] sm:$0xff] }
 0x1bb   :  { %3719 = vmatpush2.bf16.msra.mxu0 %v5331_v49  ;;  %v5675_v49 = vcombine.low %v455_v22, %v459_v26  ;;  %v303_v58 = vld [vmem:[%s8470_s1 + $0x898] sm:$0xff]  ;;  %v5532_v8 = vcombine.high %v311_v46, %v315_v48  ;;  %v5531_v13 = vcombine.low %v311_v46, %v315_v48 }
 0x1bc   :  { %3720 = vmatprep.subr.bf16.mxu0 %v5324_v56  ;;  %v443_v56 = vld [vmem:[%s8470_s1 + $0xcf8] sm:$0xff] }
 0x1bd   :  { %3760 = vmatpush2.bf16.msra.mxu1 %v5459_v54  ;;  %v295_v2 = vld [vmem:[%s8470_s1 + $0x858] sm:$0xff] }
 0x1be   :  { %3761 = vmatprep.subr.bf16.mxu1 %v5452_v9  ;;  %v307_v9 = vld [vmem:[%s8470_s1 + $0x8b8] sm:$0xff] }
 0x1bf   :  { %3721 = vmatpush2.bf16.msra.mxu0 %v5323_v59  ;;  %v5524_v5 = vcombine.high %v303_v58, %v307_v9  ;;  %v423_v6 = vld [vmem:[%s8470_s1 + $0xc58] sm:$0xff]  ;;  %v5523_v12 = vcombine.low %v303_v58, %v307_v9 }
 0x1c0   :  { %3722 = vmatprep.subr.bf16.mxu0 %v5316_v1  ;;  %v435_v1 = vld [vmem:[%s8470_s1 + $0xcb8] sm:$0xff] }
 0x1c1   :  { %3762 = vmatpush2.bf16.msra.mxu1 %v5451_v0  ;;  %v431_v0 = vld [vmem:[%s8470_s1 + $0xc98] sm:$0xff] }
 0x1c2   :  { %3763 = vmatprep.subr.bf16.mxu1 %v5444_v3  ;;  %v299_v3 = vld [vmem:[%s8470_s1 + $0x878] sm:$0xff] }
 0x1c3   :  { %3723 = vmatpush2.bf16.msra.mxu0 %v5315_v4  ;;  %v287_v14 = vld [vmem:[%s8470_s1 + $0x818] sm:$0xff]  ;;  %v5516_v18 = vcombine.high %v295_v2, %v299_v3  ;;  %v5515_v22 = vcombine.low %v295_v2, %v299_v3 }
 0x1c4   :  { %3774 = vmatprep.subr.bf16.mxu0 %v5564_v10  ;;  %v5652_v10 = vcombine.high %v431_v0, %v435_v1  ;;  %v539_v35 = vld [vmem:[%s8470_s1 + $0xff8] sm:$0xff] }
 0x1c5   :  { %3764 = vmatpush2.bf16.msra.mxu1 %v5443_v7  ;;  %v427_v7 = vld [vmem:[%s8470_s1 + $0xc78] sm:$0xff] }
 0x1c6   :  { %3815 = vmatprep.subr.bf16.mxu1 %v5692_v15  ;;  %v3480_v25 = vpop.f32.mrf.mxu0  ;;  %3725 = vmatmul.mubr.bf16.vlgmr.msra.gmra.mxu0 %v6484_v24  ;;  %v291_v15 = vld [vmem:[%s8470_s1 + $0x838] sm:$0xff]  ;;  %v5644_v19 = vcombine.high %v423_v6, %v427_v7 }
 0x1c7   :  { %v3481_v27 = vadd.f32 %v3480_v25, %v7544_v47  ;;  %3775 = vmatpush1.bf16.msra.mxu0 %v5563_v17  ;;  %3806 = vmatprep.mubr.bf16.mxu0 %v6499_v31  ;;  %v5651_v17 = vcombine.low %v431_v0, %v435_v1  ;;  %v5508_v25 = vcombine.high %v287_v14, %v291_v15  ;;  %v383_v9 = vld [vmem:[%s8470_s1 + $0xb18] sm:$0xff] }
 0x1c8   :  { %v3521_v29 = vpop.f32.mrf.mxu1  ;;  %3766 = vmatmul.mubr.bf16.vlgmr.msra.gmra.mxu1 %v6503_v34  ;;  %v7745_v24 = vpop.f32.mrf.mxu0  ;;  %3776 = vmatprep.subr.bf16.mxu0 %v5556_v21  ;;  %v447_v34 = vld [vmem:[%s8470_s1 + $0xd18] sm:$0xff]  ;;  %v5507_v36 = vcombine.low %v287_v14, %v291_v15 }
 0x1c9   :  { %3816 = vmatpush1.bf16.msra.mxu1 %v5691_v20  ;;  %v7750_v47 = vadd.f32 %v3521_v29, %v3481_v27  ;;  %3847 = vmatprep.mubr.bf16.mxu1 %v6520_v42  ;;  %v439_v42 = vld [vmem:[%s8470_s1 + $0xcd8] sm:$0xff]  ;;  %v5668_v54 = vcombine.high %v447_v34, %v451_v41  ;;  %v5667_v59 = vcombine.low %v447_v34, %v451_v41 }
 0x1ca   :  { %v7752_v53 = vpop.f32.mrf.mxu1  ;;  %3817 = vmatprep.subr.bf16.mxu1 %v5684_v23  ;;  %v3484_v63 = vpop.f32.mrf.mxu0  ;;  %v5660_v61 = vcombine.high %v439_v42, %v443_v56  ;;  %v5659_v4 = vcombine.low %v439_v42, %v443_v56  ;;  %v415_v20 = vld [vmem:[%s8470_s1 + $0xc18] sm:$0xff]  ;;  %v5643_v23 = vcombine.low %v423_v6, %v427_v7 }
 0x1cb   :  { %3777 = vmatpush1.bf16.msra.mxu0 %v5555_v30  ;;  %v419_v21 = vld [vmem:[%s8470_s1 + $0xc38] sm:$0xff] }
 0x1cc   :  { %v3525_v44 = vpop.f32.mrf.mxu1  ;;  %v3485_v31 = vpop.f32.mrf.mxu0  ;;  %3778 = vmatprep.subr.bf16.mxu0 %v5548_v39  ;;  %v5636_v26 = vcombine.high %v415_v20, %v419_v21  ;;  %v407_v27 = vld [vmem:[%s8470_s1 + $0xbd8] sm:$0xff] }
 0x1cd   :  { %3818 = vmatpush1.bf16.msra.mxu1 %v5683_v38  ;;  %v411_v29 = vld [vmem:[%s8470_s1 + $0xbf8] sm:$0xff]  ;;  %v5635_v38 = vcombine.low %v415_v20, %v419_v21 }
 0x1ce   :  { %v3526_v52 = vpop.f32.mrf.mxu1  ;;  %3819 = vmatprep.subr.bf16.mxu1 %v5676_v40  ;;  %v535_v30 = vld [vmem:[%s8470_s1 + $0xfd8] sm:$0xff]  ;;  %v5628_v39 = vcombine.high %v407_v27, %v411_v29 }
 0x1cf   :  { %3779 = vmatpush1.bf16.msra.mxu0 %v5547_v45  ;;  %v5756_v34 = vcombine.high %v535_v30, %v539_v35  ;;  %v399_v40 = vld [vmem:[%s8470_s1 + $0xb98] sm:$0xff]  ;;  %v5627_v45 = vcombine.low %v407_v27, %v411_v29  ;;  %v5755_v46 = vcombine.low %v535_v30, %v539_v35 }
 0x1d0   :  { %3780 = vmatprep.subr.bf16.mxu0 %v5540_v50  ;;  %v403_v63 = vld [vmem:[%s8470_s1 + $0xbb8] sm:$0xff] }
 0x1d1   :  { %3820 = vmatpush1.bf16.msra.mxu1 %v5675_v49  ;;  %v527_v41 = vld [vmem:[%s8470_s1 + $0xf98] sm:$0xff]  ;;  %v5620_v48 = vcombine.high %v399_v40, %v403_v63 }
 0x1d2   :  { %3821 = vmatprep.subr.bf16.mxu1 %v5668_v54  ;;  %v531_v44 = vld [vmem:[%s8470_s1 + $0xfb8] sm:$0xff]  ;;  %v5619_v54 = vcombine.low %v399_v40, %v403_v63 }
 0x1d3   :  { %3781 = vmatpush1.bf16.msra.mxu0 %v5539_v57  ;;  %v5748_v31 = vcombine.high %v527_v41, %v531_v44  ;;  %v391_v49 = vld [vmem:[%s8470_s1 + $0xb58] sm:$0xff]  ;;  %v5747_v56 = vcombine.low %v527_v41, %v531_v44  ;;  %v3483_v41 = vadd.f32 %v7745_v24, %v7554_v62 }
 0x1d4   :  { %3782 = vmatprep.subr.bf16.mxu0 %v5532_v8  ;;  %v395_v50 = vld [vmem:[%s8470_s1 + $0xb78] sm:$0xff] }
 0x1d5   :  { %3822 = vmatpush1.bf16.msra.mxu1 %v5667_v59  ;;  %v519_v42 = vld [vmem:[%s8470_s1 + $0xf58] sm:$0xff]  ;;  %v5612_v57 = vcombine.high %v391_v49, %v395_v50  ;;  %v5611_v0 = vcombine.low %v391_v49, %v395_v50  ;;  %v560_v50 = vsub.s32 4, %v6313_v43 }
 0x1d6   :  { %3823 = vmatprep.subr.bf16.mxu1 %v5660_v61  ;;  %v523_v52 = vld [vmem:[%s8470_s1 + $0xf78] sm:$0xff] }
 0x1d7   :  { %3783 = vmatpush1.bf16.msra.mxu0 %v5531_v13  ;;  %v5740_v58 = vcombine.high %v519_v42, %v523_v52  ;;  %v387_v59 = vld [vmem:[%s8470_s1 + $0xb38] sm:$0xff]  ;;  %v5739_v1 = vcombine.low %v519_v42, %v523_v52  ;;  %v3857_v52 = vmax.f32 %v7346_v60, 0.0  ;;  %v5968_v60 = vld [vmem:[%s8473_s3 + $0x70] sm:$0xff]  }
 0x1d8   :  { %3784 = vmatprep.subr.bf16.mxu0 %v5524_v5  ;;  %v511_v8 = vld [vmem:[%s8470_s1 + $0xf18] sm:$0xff]  ;;  %v5604_v13 = vcombine.high %v383_v9, %v387_v59  ;;  %v5603_v7 = vcombine.low %v383_v9, %v387_v59 }
 0x1d9   :  { %3824 = vmatpush1.bf16.msra.mxu1 %v5659_v4  ;;  %v515_v61 = vld [vmem:[%s8470_s1 + $0xf38] sm:$0xff]  ;;  %v3865_v9 = vpack.c.bf16 %v3857_v52, %v3857_v52  ;;  %v6083_v52 = vld [vmem:[%s8474_s5 + $0x2c0] ss:$16 sps:$4 sm:$0xff]  }
 0x1da   :  { %3825 = vmatprep.subr.bf16.mxu1 %v5652_v10  ;;  %v5732_v2 = vcombine.high %v511_v8, %v515_v61  ;;  %v375_v3 = vld [vmem:[%s8470_s1 + $0xad8] sm:$0xff]  ;;  %v5731_v10 = vcombine.low %v511_v8, %v515_v61  ;;  %v5969_v8 = vld [vmem:[%s8473_s3 + $0xf0] sm:$0xff]  }
 0x1db   :  { %3785 = vmatpush1.bf16.msra.mxu0 %v5523_v12  ;;  %v379_v4 = vld [vmem:[%s8470_s1 + $0xaf8] sm:$0xff] }
 0x1dc   :  { %3786 = vmatprep.subr.bf16.mxu0 %v5516_v18  ;;  %v503_v5 = vld [vmem:[%s8470_s1 + $0xed8] sm:$0xff]  ;;  %v5596_v12 = vcombine.high %v375_v3, %v379_v4  ;;  %v5595_v20 = vcombine.low %v375_v3, %v379_v4  ;;  %v5972_v3 = vld [vmem:[%s8473_s3 + $0x68] sm:$0xff]  }
 0x1dd   :  { %3826 = vmatpush1.bf16.msra.mxu1 %v5651_v17  ;;  %v507_v6 = vld [vmem:[%s8470_s1 + $0xef8] sm:$0xff] }
 0x1de   :  { %3827 = vmatprep.subr.bf16.mxu1 %v5644_v19  ;;  %v5724_v14 = vcombine.high %v503_v5, %v507_v6  ;;  %v367_v15 = vld [vmem:[%s8470_s1 + $0xa98] sm:$0xff]  ;;  %v5723_v21 = vcombine.low %v503_v5, %v507_v6  ;;  %v5973_v5 = vld [vmem:[%s8473_s3 + $0xe8] sm:$0xff]  }
 0x1df   :  { %3787 = vmatpush1.bf16.msra.mxu0 %v5515_v22  ;;  %v371_v17 = vld [vmem:[%s8470_s1 + $0xab8] sm:$0xff] }
 0x1e0   :  { %3788 = vmatprep.subr.bf16.mxu0 %v5508_v25  ;;  %v495_v18 = vld [vmem:[%s8470_s1 + $0xe98] sm:$0xff]  ;;  %v5588_v22 = vcombine.high %v367_v15, %v371_v17  ;;  %v5587_v30 = vcombine.low %v367_v15, %v371_v17  ;;  %v5976_v15 = vld [vmem:[%s8473_s3 + $0x60] sm:$0xff]  }
 0x1e1   :  { %3828 = vmatpush1.bf16.msra.mxu1 %v5643_v23  ;;  %v499_v19 = vld [vmem:[%s8470_s1 + $0xeb8] sm:$0xff] }
 0x1e2   :  { %3829 = vmatprep.subr.bf16.mxu1 %v5636_v26  ;;  %v5716_v23 = vcombine.high %v495_v18, %v499_v19  ;;  %v359_v25 = vld [vmem:[%s8470_s1 + $0xa58] sm:$0xff]  ;;  %v5715_v35 = vcombine.low %v495_v18, %v499_v19  ;;  %v5977_v18 = vld [vmem:[%s8473_s3 + $0xe0] sm:$0xff]  }
 0x1e3   :  { %3789 = vmatpush1.bf16.msra.mxu0 %v5507_v36  ;;  %v363_v26 = vld [vmem:[%s8470_s1 + $0xa78] sm:$0xff]  ;;  %v5978_v19 = vld [vmem:[%s8473_s3 + $0x20] sm:$0xff]  }
 0x1e4   :  { %3790 = vmatprep.subr.bf16.mxu0 %v5628_v39  ;;  %v487_v27 = vld [vmem:[%s8470_s1 + $0xe58] sm:$0xff]  ;;  %v5580_v36 = vcombine.high %v359_v25, %v363_v26  ;;  %v5579_v44 = vcombine.low %v359_v25, %v363_v26  ;;  %v5984_v26 = vld [vmem:[%s8473_s3 + $0x50] sm:$0xff]  }
 0x1e5   :  { %3830 = vmatpush1.bf16.msra.mxu1 %v5635_v38  ;;  %v491_v29 = vld [vmem:[%s8470_s1 + $0xe78] sm:$0xff] }
 0x1e6   :  { %3831 = vmatprep.subr.bf16.mxu1 %v5756_v34  ;;  %v5708_v38 = vcombine.high %v487_v27, %v491_v29  ;;  %v351_v39 = vld [vmem:[%s8470_s1 + $0xa18] sm:$0xff] }
 0x1e7   :  { %3791 = vmatpush2.bf16.msra.mxu0 %v5627_v45  ;;  %v355_v34 = vld [vmem:[%s8470_s1 + $0xa38] sm:$0xff]  ;;  %v5707_v45 = vcombine.low %v487_v27, %v491_v29  ;;  %v5985_v27 = vld [vmem:[%s8473_s3 + $0xd0] sm:$0xff]  }
 0x1e8   :  { %3792 = vmatprep.subr.bf16.mxu0 %v5620_v48  ;;  %v479_v40 = vld [vmem:[%s8470_s1 + $0xe18] sm:$0xff]  ;;  %v5571_v49 = vcombine.low %v351_v39, %v355_v34  ;;  %v5986_v29 = vld [vmem:[%s8473_s3 + $0x10] sm:$0xff]  }
 0x1e9   :  { %3832 = vmatpush2.bf16.msra.mxu1 %v5755_v46  ;;  %v483_v63 = vld [vmem:[%s8470_s1 + $0xe38] sm:$0xff]  ;;  %v5572_v46 = vcombine.high %v351_v39, %v355_v34  ;;  %v5991_v39 = vld [vmem:[%s8473_s3 + $0x88] sm:$0xff]   ;;  %v5992_v34 = vld [vmem:[%s8473_s3 + $0x40] sm:$0xff]  }
 0x1ea   :  { %3833 = vmatprep.subr.bf16.mxu1 %v5748_v31  ;;  %v5700_v48 = vcombine.high %v479_v40, %v483_v63  ;;  %v3524_v31 = vadd.f32 %v7752_v53, %v3483_v41  ;;  %v5699_v42 = vcombine.low %v479_v40, %v483_v63  ;;  %v5964_v62 = vld [vmem:[%s8473_s3 + $0x78] sm:$0xff]   ;;  %v7917_v53 = vld [vmem:[%s8472_s2] sm:$0xff]  ;;  %v3856_v41 = vmax.f32 %v7329_v51, 0.0 }
 0x1eb   :  { %3793 = vmatpush2.bf16.msra.mxu0 %v5619_v54  ;;  %v5965_v24 = vld [vmem:[%s8473_s3 + $0xf8] sm:$0xff]   ;;  %v5993_v40 = vld [vmem:[%s8473_s3 + $0xc0] sm:$0xff]  }
 0x1ec   :  { %3794 = vmatprep.subr.bf16.mxu0 %v5612_v57  ;;  %v3859_v54 = vmax.f32 %v3524_v31, 0.0  ;;  %v5966_v57 = vld [vmem:[%s8473_s3 + $0x38] sm:$0xff]   ;;  %v5994_v63 = vld [vmem:[%s8473_s3] sm:$0xff]   ;;  %v3864_v31 = vpack.c.bf16 %v3856_v41, %v3856_v41 }
 0x1ed   :  { %3834 = vmatpush2.bf16.msra.mxu1 %v5747_v56  ;;  %v561_v56 = vrot.slane %v7917_v53, %v560_v50  ;;  %v5983_v25 = vld [vmem:[%s8473_s3 + $0x98] sm:$0xff]   ;;  %v5996_v51 = vld [vmem:[%s8474_s5 + $0xe0] ss:$16 sps:$4 sm:$0xff]  }
 0x1ee   :  { %3835 = vmatprep.subr.bf16.mxu1 %v5740_v58  ;;  %v5967_v58 = vld [vmem:[%s8473_s3 + $0xb8] sm:$0xff]   ;;  %v3867_v61 = vpack.c.bf16 %v3859_v54, %v3859_v54  ;;  %v6091_v54 = vld [vmem:[%s8474_s5 + $0x2a4] ss:$16 sps:$4 sm:$0xff]  }
 0x1ef   :  { %3795 = vmatpush2.bf16.msra.mxu0 %v5611_v0 }
 0x1f0   :  { %3796 = vmatprep.subr.bf16.mxu0 %v5604_v13  ;;  %v5970_v13 = vld [vmem:[%s8473_s3 + $0x30] sm:$0xff]  }
 0x1f1   :  { %3836 = vmatpush2.bf16.msra.mxu1 %v5739_v1 }
 0x1f2   :  { %3837 = vmatprep.subr.bf16.mxu1 %v5732_v2 }
 0x1f3   :  { %3797 = vmatpush2.bf16.msra.mxu0 %v5603_v7 }
 0x1f4   :  { %3798 = vmatprep.subr.bf16.mxu0 %v5596_v12 }
 0x1f5   :  { %3838 = vmatpush2.bf16.msra.mxu1 %v5731_v10  ;;  %v5974_v10 = vld [vmem:[%s8473_s3 + $0x28] sm:$0xff]  }
 0x1f6   :  { %3839 = vmatprep.subr.bf16.mxu1 %v5724_v14  ;;  %v5975_v14 = vld [vmem:[%s8473_s3 + $0xa8] sm:$0xff]  }
 0x1f7   :  { %3799 = vmatpush2.bf16.msra.mxu0 %v5595_v20  ;;  %v5979_v20 = vld [vmem:[%s8473_s3 + $0xa0] sm:$0xff]  }
 0x1f8   :  { %3800 = vmatprep.subr.bf16.mxu0 %v5588_v22  ;;  %v5981_v22 = vld [vmem:[%s8473_s3 + $0xd8] sm:$0xff]  }
 0x1f9   :  { %3840 = vmatpush2.bf16.msra.mxu1 %v5723_v21  ;;  %v5980_v21 = vld [vmem:[%s8473_s3 + $0x58] sm:$0xff]  }
 0x1fa   :  { %3841 = vmatprep.subr.bf16.mxu1 %v5716_v23  ;;  %v5982_v23 = vld [vmem:[%s8473_s3 + $0x18] sm:$0xff]  }
 0x1fb   :  { %3801 = vmatpush2.bf16.msra.mxu0 %v5587_v30  ;;  %v5987_v30 = vld [vmem:[%s8473_s3 + $0x90] sm:$0xff]  }
 0x1fc   :  { %3802 = vmatprep.subr.bf16.mxu0 %v5580_v36  ;;  %v5989_v36 = vld [vmem:[%s8473_s3 + $0xc8] sm:$0xff]  }
 0x1fd   :  { %3842 = vmatpush2.bf16.msra.mxu1 %v5715_v35  ;;  %v5988_v35 = vld [vmem:[%s8473_s3 + $0x48] sm:$0xff]  }
 0x1fe   :  { %3843 = vmatprep.subr.bf16.mxu1 %v5708_v38  ;;  %v5990_v38 = vld [vmem:[%s8473_s3 + $0x8] sm:$0xff]  }
 0x1ff   :  { %3803 = vmatpush2.bf16.msra.mxu0 %v5579_v44  ;;  %v5995_v44 = vld [vmem:[%s8473_s3 + $0x80] sm:$0xff]  }
 0x200   :  { %3804 = vmatprep.subr.bf16.mxu0 %v5572_v46  ;;  %v3858_v46 = vmax.f32 %v7750_v47, 0.0  ;;  %v6077_v47 = vld [vmem:[%s8474_s5 + $0x2e0] ss:$16 sps:$4 sm:$0xff]  }
 0x201   :  { %3844 = vmatpush2.bf16.msra.mxu1 %v5707_v45  ;;  %v5998_v45 = vld [vmem:[%s8474_s5 + $0xe4] ss:$16 sps:$4 sm:$0xff]  }
 0x202   :  { %3845 = vmatprep.subr.bf16.mxu1 %v5700_v48  ;;  %v6079_v48 = vld [vmem:[%s8474_s5 + $0x2e4] ss:$16 sps:$4 sm:$0xff]   ;;  %v3866_v50 = vpack.c.bf16 %v3858_v46, %v3858_v46  ;;  %v6026_v46 = vld [vmem:[%s8474_s5 + $0x1a0] ss:$16 sps:$4 sm:$0xff]  }
 0x203   :  { %3805 = vmatpush2.bf16.msra.mxu0 %v5571_v49  ;;  %v6001_v49 = vld [vmem:[%s8474_s5 + $0xc4] ss:$16 sps:$4 sm:$0xff]  }
 0x204   :  { %5918 = vmatprep.subr.bf16.mxu0 %v5964_v62  ;;  %v5999_v62 = vld [vmem:[%s8474_s5 + $0xc0] ss:$16 sps:$4 sm:$0xff]  }
 0x205   :  { %3846 = vmatpush2.bf16.msra.mxu1 %v5699_v42  ;;  %v6085_v42 = vld [vmem:[%s8474_s5 + $0x2c4] ss:$16 sps:$4 sm:$0xff]  }
 0x206   :  { %5940 = vmatprep.subr.bf16.mxu1 %v5965_v24  ;;  %v3562_v59 = vpop.f32.mrf.mxu0  ;;  %3807 = vmatmul.mubr.bf16.vlgmr.msra.gmra.mxu0 %v6406_v33  ;;  %v5971_v33 = vld [vmem:[%s8473_s3 + $0xb0] sm:$0xff]  }
 0x207   :  { %v3563_v0 = vadd.f32 %v3562_v59, %v561_v56  ;;  %5919 = vmatpush3.bf16.msra.mxu0 %v5966_v57  ;;  %4167 = vmatprep.mubr.bf16.mxu0 %v3865_v9  ;;  %v6004_v24 = vld [vmem:[%s8474_s5 + $0xa4] ss:$16 sps:$4 sm:$0xff]   ;;  %v6002_v56 = vld [vmem:[%s8474_s5 + $0xa0] ss:$16 sps:$4 sm:$0xff]  }
 0x208   :  { %v3603_v1 = vpop.f32.mrf.mxu1  ;;  %3848 = vmatmul.mubr.bf16.vlgmr.msra.gmra.mxu1 %v6707_v55  ;;  %v7937_v2 = vpop.f32.mrf.mxu0  ;;  %5920 = vmatprep.subr.bf16.mxu0 %v5968_v60  ;;  %v6007_v57 = vld [vmem:[%s8474_s5 + $0x84] ss:$16 sps:$4 sm:$0xff]   ;;  %v6005_v9 = vld [vmem:[%s8474_s5 + $0x80] ss:$16 sps:$4 sm:$0xff]  }
 0x209   :  { %5941 = vmatpush3.bf16.msra.mxu1 %v5967_v58  ;;  %v7945_v4 = vadd.f32 %v3603_v1, %v3563_v0  ;;  %4207 = vmatprep.mubr.bf16.mxu1 %v3867_v61  ;;  %v6089_v58 = vld [vmem:[%s8474_s5 + $0x2a0] ss:$16 sps:$4 sm:$0xff]   ;;  %v6097_v60 = vld [vmem:[%s8474_s5 + $0x284] ss:$16 sps:$4 sm:$0xff]  }
 0x20a   :  { %v7947_v55 = vpop.f32.mrf.mxu1  ;;  %v3566_v6 = vpop.f32.mrf.mxu0  ;;  %5942 = vmatprep.subr.bf16.mxu1 %v5969_v8  ;;  %v6010_v59 = vld [vmem:[%s8474_s5 + $0x64] ss:$16 sps:$4 sm:$0xff]   ;;  %v6095_v8 = vld [vmem:[%s8474_s5 + $0x280] ss:$16 sps:$4 sm:$0xff]  }
 0x20b   :  { %5921 = vmatpush3.bf16.msra.mxu0 %v5970_v13  ;;  %v6103_v61 = vld [vmem:[%s8474_s5 + $0x264] ss:$16 sps:$4 sm:$0xff]   ;;  %v6008_v0 = vld [vmem:[%s8474_s5 + $0x60] ss:$16 sps:$4 sm:$0xff]  }
 0x20c   :  { %v3607_v7 = vpop.f32.mrf.mxu1  ;;  %v3567_v12 = vpop.f32.mrf.mxu0  ;;  %5922 = vmatprep.subr.bf16.mxu0 %v5972_v3  ;;  %v6013_v1 = vld [vmem:[%s8474_s5 + $0x44] ss:$16 sps:$4 sm:$0xff]   ;;  %v6101_v13 = vld [vmem:[%s8474_s5 + $0x260] ss:$16 sps:$4 sm:$0xff]  }
 0x20d   :  { %5943 = vmatpush3.bf16.msra.mxu1 %v5971_v33  ;;  %v6109_v33 = vld [vmem:[%s8474_s5 + $0x244] ss:$16 sps:$4 sm:$0xff]   ;;  %v6011_v3 = vld [vmem:[%s8474_s5 + $0x40] ss:$16 sps:$4 sm:$0xff]  }
 0x20e   :  { %v3608_v17 = vpop.f32.mrf.mxu1  ;;  %5944 = vmatprep.subr.bf16.mxu1 %v5973_v5  ;;  %v6016_v5 = vld [vmem:[%s8474_s5 + $0x24] ss:$16 sps:$4 sm:$0xff]   ;;  %v6107_v6 = vld [vmem:[%s8474_s5 + $0x240] ss:$16 sps:$4 sm:$0xff]  }
 0x20f   :  { %5923 = vmatpush3.bf16.msra.mxu0 %v5974_v10  ;;  %v6112_v7 = vld [vmem:[%s8474_s5 + $0x224] ss:$16 sps:$4 sm:$0xff]   ;;  %v564_v10 = vsub.s32 5, %v6313_v43  ;;  %v6014_v12 = vld [vmem:[%s8474_s5 + $0x20] ss:$16 sps:$4 sm:$0xff]  }
 0x210   :  { %5924 = vmatprep.subr.bf16.mxu0 %v5976_v15  ;;  %v6110_v15 = vld [vmem:[%s8474_s5 + $0x220] ss:$16 sps:$4 sm:$0xff]   ;;  %v6115_v17 = vld [vmem:[%s8474_s5 + $0x204] ss:$16 sps:$4 sm:$0xff]  }
 0x211   :  { %5945 = vmatpush3.bf16.msra.mxu1 %v5975_v14  ;;  %v6019_v14 = vld [vmem:[%s8474_s5 + $0x4] ss:$16 sps:$4 sm:$0xff]  }
 0x212   :  { %5946 = vmatprep.subr.bf16.mxu1 %v5977_v18  ;;  %v565_v18 = vrot.slane %v7917_v53, %v564_v10  ;;  %v6137_v10 = vld [vmem:[%s8474_s5 + $0x300] ss:$16 sps:$4 sm:$0xff]  }
 0x213   :  { %5925 = vmatpush3.bf16.msra.mxu0 %v5978_v19  ;;  %v6017_v19 = vld [vmem:[%s8474_s5] ss:$16 sps:$4 sm:$0xff]  }
 0x214   :  { %5926 = vmatprep.subr.bf16.mxu0 %v5980_v21  ;;  %v6113_v21 = vld [vmem:[%s8474_s5 + $0x200] ss:$16 sps:$4 sm:$0xff]  }
 0x215   :  { %5947 = vmatpush3.bf16.msra.mxu1 %v5979_v20  ;;  %v6022_v20 = vld [vmem:[%s8474_s5 + $0x1e4] ss:$16 sps:$4 sm:$0xff]  }
 0x216   :  { %5948 = vmatprep.subr.bf16.mxu1 %v5981_v22  ;;  %v6118_v22 = vld [vmem:[%s8474_s5 + $0x3e4] ss:$16 sps:$4 sm:$0xff]  }
 0x217   :  { %5927 = vmatpush3.bf16.msra.mxu0 %v5982_v23  ;;  %v3565_v23 = vadd.f32 %v7937_v2, %v565_v18  ;;  %v6121_v2 = vld [vmem:[%s8474_s5 + $0x3c4] ss:$16 sps:$4 sm:$0xff]   ;;  %v6047_v18 = vld [vmem:[%s8474_s5 + $0xc8] ss:$16 sps:$4 sm:$0xff]  }
 0x218   :  { %5928 = vmatprep.subr.bf16.mxu0 %v5984_v26  ;;  %v6025_v26 = vld [vmem:[%s8474_s5 + $0x1c4] ss:$16 sps:$4 sm:$0xff]  }
 0x219   :  { %5949 = vmatpush3.bf16.msra.mxu1 %v5983_v25  ;;  %v6020_v25 = vld [vmem:[%s8474_s5 + $0x1e0] ss:$16 sps:$4 sm:$0xff]  }
 0x21a   :  { %5950 = vmatprep.subr.bf16.mxu1 %v5985_v27  ;;  %v6116_v27 = vld [vmem:[%s8474_s5 + $0x3e0] ss:$16 sps:$4 sm:$0xff]  }
 0x21b   :  { %5929 = vmatpush3.bf16.msra.mxu0 %v5986_v29 }
 0x21c   :  { %5930 = vmatprep.subr.bf16.mxu0 %v5988_v35 }
 0x21d   :  { %5951 = vmatpush3.bf16.msra.mxu1 %v5987_v30  ;;  %v3606_v30 = vadd.f32 %v7947_v55, %v3565_v23  ;;  %v6124_v55 = vld [vmem:[%s8474_s5 + $0x3a4] ss:$16 sps:$4 sm:$0xff]   ;;  %v6058_v23 = vld [vmem:[%s8474_s5 + $0x6c] ss:$16 sps:$4 sm:$0xff]  }
 0x21e   :  { %5952 = vmatprep.subr.bf16.mxu1 %v5989_v36  ;;  %v6023_v36 = vld [vmem:[%s8474_s5 + $0x1c0] ss:$16 sps:$4 sm:$0xff]  }
 0x21f   :  { %5931 = vmatpush3.bf16.msra.mxu0 %v5990_v38 }
 0x220   :  { %5932 = vmatprep.subr.bf16.mxu0 %v5992_v34  ;;  %v6119_v34 = vld [vmem:[%s8474_s5 + $0x3c0] ss:$16 sps:$4 sm:$0xff]  }
 0x221   :  { %5953 = vmatpush3.bf16.msra.mxu1 %v5991_v39  ;;  %v6028_v39 = vld [vmem:[%s8474_s5 + $0x1a4] ss:$16 sps:$4 sm:$0xff]  }
 0x222   :  { %5954 = vmatprep.subr.bf16.mxu1 %v5993_v40 }
 0x223   :  { %5933 = vmatpush3.bf16.msra.mxu0 %v5994_v63 }
 0x224   :  { %5005 = vmatprep.subr.bf16.mxu0 %v5998_v45 }
 0x225   :  { %5955 = vmatpush3.bf16.msra.mxu1 %v5995_v44 }
 0x226   :  { %5046 = vmatprep.subr.bf16.mxu1 %v6079_v48  ;;  %4168 = vmatmul.mubr.bf16.vlgmr.msra.gmra.mxu0 %v3864_v31  ;;  %v6122_v31 = vld [vmem:[%s8474_s5 + $0x3a0] ss:$16 sps:$4 sm:$0xff]  }
 0x227   :  { %5006 = vmatpush1.bf16.msra.mxu0 %v5996_v51  ;;  %v6031_v51 = vld [vmem:[%s8474_s5 + $0x184] ss:$16 sps:$4 sm:$0xff]  }
 0x228   :  { %4208 = vmatmul.mubr.bf16.vlgmr.msra.gmra.mxu1 %v3866_v50  ;;  %5007 = vmatprep.subr.bf16.mxu0 %v6001_v49  ;;  %v6127_v50 = vld [vmem:[%s8474_s5 + $0x384] ss:$16 sps:$4 sm:$0xff]  }
 0x229   :  { %5047 = vmatpush1.bf16.msra.mxu1 %v6077_v47 }
 0x22a   :  { %5048 = vmatprep.subr.bf16.mxu1 %v6085_v42 }
 0x22b   :  { %5008 = vmatpush1.bf16.msra.mxu0 %v5999_v62  ;;  %v6029_v62 = vld [vmem:[%s8474_s5 + $0x180] ss:$16 sps:$4 sm:$0xff]  }
 0x22c   :  { %5009 = vmatprep.subr.bf16.mxu0 %v6004_v24  ;;  %v6034_v24 = vld [vmem:[%s8474_s5 + $0x164] ss:$16 sps:$4 sm:$0xff]  }
 0x22d   :  { %5049 = vmatpush1.bf16.msra.mxu1 %v6083_v52  ;;  %v6125_v52 = vld [vmem:[%s8474_s5 + $0x380] ss:$16 sps:$4 sm:$0xff]  }
 0x22e   :  { %5050 = vmatprep.subr.bf16.mxu1 %v6091_v54  ;;  %v6130_v54 = vld [vmem:[%s8474_s5 + $0x364] ss:$16 sps:$4 sm:$0xff]  }
 0x22f   :  { %5010 = vmatpush1.bf16.msra.mxu0 %v6002_v56  ;;  %v6032_v56 = vld [vmem:[%s8474_s5 + $0x160] ss:$16 sps:$4 sm:$0xff]  }
 0x230   :  { %5011 = vmatprep.subr.bf16.mxu0 %v6007_v57  ;;  %v6037_v57 = vld [vmem:[%s8474_s5 + $0x144] ss:$16 sps:$4 sm:$0xff]  }
 0x231   :  { %5051 = vmatpush1.bf16.msra.mxu1 %v6089_v58  ;;  %v6128_v58 = vld [vmem:[%s8474_s5 + $0x360] ss:$16 sps:$4 sm:$0xff]  }
 0x232   :  { %5052 = vmatprep.subr.bf16.mxu1 %v6097_v60  ;;  %v6133_v60 = vld [vmem:[%s8474_s5 + $0x344] ss:$16 sps:$4 sm:$0xff]  }
 0x233   :  { %5012 = vmatpush1.bf16.msra.mxu0 %v6005_v9  ;;  %v6035_v9 = vld [vmem:[%s8474_s5 + $0x140] ss:$16 sps:$4 sm:$0xff]  }
 0x234   :  { %5013 = vmatprep.subr.bf16.mxu0 %v6010_v59 }
 0x235   :  { %5053 = vmatpush1.bf16.msra.mxu1 %v6095_v8  ;;  %v6040_v8 = vld [vmem:[%s8474_s5 + $0x124] ss:$16 sps:$4 sm:$0xff]  }
 0x236   :  { %5054 = vmatprep.subr.bf16.mxu1 %v6103_v61  ;;  %v6131_v61 = vld [vmem:[%s8474_s5 + $0x340] ss:$16 sps:$4 sm:$0xff]  }
 0x237   :  { %5014 = vmatpush1.bf16.msra.mxu0 %v6008_v0  ;;  %v6136_v0 = vld [vmem:[%s8474_s5 + $0x324] ss:$16 sps:$4 sm:$0xff]  }
 0x238   :  { %5015 = vmatprep.subr.bf16.mxu0 %v6013_v1 }
 0x239   :  { %5055 = vmatpush1.bf16.msra.mxu1 %v6101_v13  ;;  %v6043_v13 = vld [vmem:[%s8474_s5 + $0x104] ss:$16 sps:$4 sm:$0xff]  }
 0x23a   :  { %5056 = vmatprep.subr.bf16.mxu1 %v6109_v33  ;;  %v6134_v33 = vld [vmem:[%s8474_s5 + $0x320] ss:$16 sps:$4 sm:$0xff]  }
 0x23b   :  { %5016 = vmatpush1.bf16.msra.mxu0 %v6011_v3  ;;  %v6139_v3 = vld [vmem:[%s8474_s5 + $0x304] ss:$16 sps:$4 sm:$0xff]  }
 0x23c   :  { %5017 = vmatprep.subr.bf16.mxu0 %v6016_v5  ;;  %v6041_v5 = vld [vmem:[%s8474_s5 + $0x100] ss:$16 sps:$4 sm:$0xff]  }
 0x23d   :  { %5057 = vmatpush1.bf16.msra.mxu1 %v6107_v6 }
 0x23e   :  { %5058 = vmatprep.subr.bf16.mxu1 %v6112_v7  ;;  %v6046_v7 = vld [vmem:[%s8474_s5 + $0xec] ss:$16 sps:$4 sm:$0xff]  }
 0x23f   :  { %5018 = vmatpush1.bf16.msra.mxu0 %v6014_v12  ;;  %v6142_v12 = vld [vmem:[%s8474_s5 + $0x2ec] ss:$16 sps:$4 sm:$0xff]  }
 0x240   :  { %5019 = vmatprep.subr.bf16.mxu0 %v6019_v14  ;;  %v6044_v14 = vld [vmem:[%s8474_s5 + $0xe8] ss:$16 sps:$4 sm:$0xff]  }
 0x241   :  { %5059 = vmatpush1.bf16.msra.mxu1 %v6110_v15 }
 0x242   :  { %5060 = vmatprep.subr.bf16.mxu1 %v6115_v17  ;;  %v6049_v17 = vld [vmem:[%s8474_s5 + $0xcc] ss:$16 sps:$4 sm:$0xff]  }
 0x243   :  { %5020 = vmatpush1.bf16.msra.mxu0 %v6017_v19  ;;  %v6052_v19 = vld [vmem:[%s8474_s5 + $0xac] ss:$16 sps:$4 sm:$0xff]  }
 0x244   :  { %5021 = vmatprep.subr.bf16.mxu0 %v6022_v20  ;;  %v6050_v20 = vld [vmem:[%s8474_s5 + $0xa8] ss:$16 sps:$4 sm:$0xff]  }
 0x245   :  { %5061 = vmatpush1.bf16.msra.mxu1 %v6113_v21  ;;  %v6055_v21 = vld [vmem:[%s8474_s5 + $0x8c] ss:$16 sps:$4 sm:$0xff]  }
 0x246   :  { %5062 = vmatprep.subr.bf16.mxu1 %v6118_v22  ;;  %v3644_v29 = vpop.f32.mrf.mxu0  ;;  %v6053_v22 = vld [vmem:[%s8474_s5 + $0x88] ss:$16 sps:$4 sm:$0xff]  }
 0x247   :  { %5022 = vmatpush2.bf16.msra.mxu0 %v6020_v25  ;;  %v3645_v59 = vadd.f32 %v3644_v29, %v7945_v4  ;;  %v6038_v4 = vld [vmem:[%s8474_s5 + $0x120] ss:$16 sps:$4 sm:$0xff]   ;;  %v6056_v25 = vld [vmem:[%s8474_s5 + $0x68] ss:$16 sps:$4 sm:$0xff]  }
 0x248   :  { %v3685_v35 = vpop.f32.mrf.mxu1  ;;  %v3646_v38 = vpop.f32.mrf.mxu0  ;;  %5023 = vmatprep.subr.bf16.mxu0 %v6025_v26  ;;  %v6061_v26 = vld [vmem:[%s8474_s5 + $0x4c] ss:$16 sps:$4 sm:$0xff]   ;;  %v6062_v29 = vld [vmem:[%s8474_s5 + $0x28] ss:$16 sps:$4 sm:$0xff]  }
 0x249   :  { %5063 = vmatpush2.bf16.msra.mxu1 %v6116_v27  ;;  %v3647_v40 = vadd.f32 %v3646_v38, %v3606_v30  ;;  %v3686_v1 = vadd.f32 %v3685_v35, %v3645_v59  ;;  %v6059_v27 = vld [vmem:[%s8474_s5 + $0x48] ss:$16 sps:$4 sm:$0xff]   ;;  %v6067_v30 = vld [vmem:[%s8474_s5 + $0xc] ss:$16 sps:$4 sm:$0xff]  }
 0x24a   :  { %v3687_v63 = vpop.f32.mrf.mxu1  ;;  %5064 = vmatprep.subr.bf16.mxu1 %v6121_v2  ;;  %v3648_v41 = vpop.f32.mrf.mxu0  ;;  %v6064_v2 = vld [vmem:[%s8474_s5 + $0x2c] ss:$16 sps:$4 sm:$0xff]   ;;  %v6065_v35 = vld [vmem:[%s8474_s5 + $0x8] ss:$16 sps:$4 sm:$0xff]  }
 0x24b   :  { %v3688_v44 = vadd.f32 %v3687_v63, %v3647_v40  ;;  %5024 = vmatpush2.bf16.msra.mxu0 %v6023_v36  ;;  %v3860_v6 = vmax.f32 %v3686_v1, 0.0  ;;  %v6070_v36 = vld [vmem:[%s8474_s5 + $0x1ec] ss:$16 sps:$4 sm:$0xff]   ;;  %v6068_v38 = vld [vmem:[%s8474_s5 + $0x1e8] ss:$16 sps:$4 sm:$0xff]  }
 0x24c   :  { %v3689_v45 = vpop.f32.mrf.mxu1  ;;  %v3649_v48 = vpop.f32.mrf.mxu0  ;;  %5025 = vmatprep.subr.bf16.mxu0 %v6028_v39  ;;  %v6073_v39 = vld [vmem:[%s8474_s5 + $0x1cc] ss:$16 sps:$4 sm:$0xff]   ;;  %v6071_v63 = vld [vmem:[%s8474_s5 + $0x1c8] ss:$16 sps:$4 sm:$0xff]  }
 0x24d   :  { %5065 = vmatpush2.bf16.msra.mxu1 %v6119_v34  ;;  %v3861_v49 = vmax.f32 %v3688_v44, 0.0  ;;  %v8226_v15 = vpack.c.bf16 %v3860_v6, %v3860_v6  ;;  %v6076_v41 = vld [vmem:[%s8474_s5 + $0x1ac] ss:$16 sps:$4 sm:$0xff]   ;;  %v6074_v48 = vld [vmem:[%s8474_s5 + $0x1a8] ss:$16 sps:$4 sm:$0xff]  }
 0x24e   :  { %v3690_v47 = vpop.f32.mrf.mxu1  ;;  %5066 = vmatprep.subr.bf16.mxu1 %v6124_v55 }
 0x24f   :  { %v3869_v42 = vpack.c.bf16 %v3861_v49, %v3861_v49  ;;  %5026 = vmatpush2.bf16.msra.mxu0 %v6026_v46  ;;  %v6080_v47 = vld [vmem:[%s8474_s5 + $0x188] ss:$16 sps:$4 sm:$0xff]  }
 0x250   :  { %5027 = vmatprep.subr.bf16.mxu0 %v6031_v51 }
 0x251   :  { %5067 = vmatpush2.bf16.msra.mxu1 %v6122_v31  ;;  %5037 = vmatprep.mubr.bf16.mxu0 %v3869_v42  ;;  %v6082_v31 = vld [vmem:[%s8474_s5 + $0x18c] ss:$16 sps:$4 sm:$0xff]  }
 0x252   :  { %5068 = vmatprep.subr.bf16.mxu1 %v6127_v50  ;;  %v6088_v50 = vld [vmem:[%s8474_s5 + $0x16c] ss:$16 sps:$4 sm:$0xff]  }
 0x253   :  { %5028 = vmatpush2.bf16.msra.mxu0 %v6029_v62  ;;  %v6094_v62 = vld [vmem:[%s8474_s5 + $0x14c] ss:$16 sps:$4 sm:$0xff]  }
 0x254   :  { %5029 = vmatprep.subr.bf16.mxu0 %v6034_v24  ;;  %v6092_v24 = vld [vmem:[%s8474_s5 + $0x148] ss:$16 sps:$4 sm:$0xff]  }
 0x255   :  { %5069 = vmatpush2.bf16.msra.mxu1 %v6125_v52  ;;  %v6100_v52 = vld [vmem:[%s8474_s5 + $0x12c] ss:$16 sps:$4 sm:$0xff]  }
 0x256   :  { %5070 = vmatprep.subr.bf16.mxu1 %v6130_v54  ;;  %v6098_v54 = vld [vmem:[%s8474_s5 + $0x128] ss:$16 sps:$4 sm:$0xff]  }
 0x257   :  { %5030 = vmatpush2.bf16.msra.mxu0 %v6032_v56  ;;  %v6106_v56 = vld [vmem:[%s8474_s5 + $0x10c] ss:$16 sps:$4 sm:$0xff]  }
 0x258   :  { %5031 = vmatprep.subr.bf16.mxu0 %v6037_v57  ;;  %v6104_v57 = vld [vmem:[%s8474_s5 + $0x108] ss:$16 sps:$4 sm:$0xff]  }
 0x259   :  { %5071 = vmatpush2.bf16.msra.mxu1 %v6128_v58  ;;  %v568_v58 = vsub.s32 6, %v6313_v43 }
 0x25a   :  { %5072 = vmatprep.subr.bf16.mxu1 %v6133_v60  ;;  %v572_v60 = vsub.s32 7, %v6313_v43 }
 0x25b   :  { %5032 = vmatpush2.bf16.msra.mxu0 %v6035_v9  ;;  %v569_v9 = vrot.slane %v7917_v53, %v568_v58  ;;  %v6175_v58 = vld [vmem:[%s8474_s5 + $0x38c] ss:$16 sps:$4 sm:$0xff]  }
 0x25c   :  { %5033 = vmatprep.subr.bf16.mxu0 %v6040_v8  ;;  %v573_v59 = vrot.slane %v7917_v53, %v572_v60  ;;  %v6140_v53 = vld [vmem:[%s8474_s5 + $0x2e8] ss:$16 sps:$4 sm:$0xff]  }
 0x25d   :  { %5073 = vmatpush2.bf16.msra.mxu1 %v6131_v61  ;;  %v6173_v60 = vld [vmem:[%s8474_s5 + $0x388] ss:$16 sps:$4 sm:$0xff]  }
 0x25e   :  { %5074 = vmatprep.subr.bf16.mxu1 %v6136_v0 }
 0x25f   :  { %5034 = vmatpush2.bf16.msra.mxu0 %v6038_v4 }
 0x260   :  { %5035 = vmatprep.subr.bf16.mxu0 %v6043_v13 }
 0x261   :  { %5075 = vmatpush2.bf16.msra.mxu1 %v6134_v33 }
 0x262   :  { %5076 = vmatprep.subr.bf16.mxu1 %v6139_v3 }
 0x263   :  { %5036 = vmatpush2.bf16.msra.mxu0 %v6041_v5 }
 0x264   :  { %5087 = vmatprep.subr.bf16.mxu0 %v6046_v7 }
 0x265   :  { %5077 = vmatpush2.bf16.msra.mxu1 %v6137_v10 }
 0x266   :  { %5128 = vmatprep.subr.bf16.mxu1 %v6142_v12  ;;  %5038 = vmatmul.mubr.bf16.vlgmr.msra.gmra.mxu0 %v8226_v15 }
 0x267   :  { %5088 = vmatpush1.bf16.msra.mxu0 %v6044_v14  ;;  %5119 = vmatprep.mubr.bf16.mxu0 %v3869_v42  ;;  %v6086_v42 = vld [vmem:[%s8474_s5 + $0x168] ss:$16 sps:$4 sm:$0xff]  }
 0x268   :  { %5089 = vmatprep.subr.bf16.mxu0 %v6049_v17 }
 0x26b   :  { %5090 = vmatpush1.bf16.msra.mxu0 %v6047_v18 }
 0x26c   :  { %5091 = vmatprep.subr.bf16.mxu0 %v6052_v19 }
 0x26f   :  { %5092 = vmatpush1.bf16.msra.mxu0 %v6050_v20 }
 0x270   :  { %5093 = vmatprep.subr.bf16.mxu0 %v6055_v21 }
 0x273   :  { %5094 = vmatpush1.bf16.msra.mxu0 %v6053_v22  ;;  %v6145_v22 = vld [vmem:[%s8474_s5 + $0x2cc] ss:$16 sps:$4 sm:$0xff]  }
 0x274   :  { %5095 = vmatprep.subr.bf16.mxu0 %v6058_v23  ;;  %v6143_v23 = vld [vmem:[%s8474_s5 + $0x2c8] ss:$16 sps:$4 sm:$0xff]  }
 0x277   :  { %5096 = vmatpush1.bf16.msra.mxu0 %v6056_v25  ;;  %v6148_v25 = vld [vmem:[%s8474_s5 + $0x2ac] ss:$16 sps:$4 sm:$0xff]  }
 0x278   :  { %5097 = vmatprep.subr.bf16.mxu0 %v6061_v26  ;;  %v6146_v26 = vld [vmem:[%s8474_s5 + $0x2a8] ss:$16 sps:$4 sm:$0xff]  }
 0x27b   :  { %5098 = vmatpush1.bf16.msra.mxu0 %v6059_v27  ;;  %v6151_v27 = vld [vmem:[%s8474_s5 + $0x28c] ss:$16 sps:$4 sm:$0xff]  }
 0x27c   :  { %5099 = vmatprep.subr.bf16.mxu0 %v6064_v2  ;;  %v6149_v2 = vld [vmem:[%s8474_s5 + $0x288] ss:$16 sps:$4 sm:$0xff]  }
 0x27f   :  { %5100 = vmatpush1.bf16.msra.mxu0 %v6062_v29  ;;  %v6154_v29 = vld [vmem:[%s8474_s5 + $0x26c] ss:$16 sps:$4 sm:$0xff]  }
 0x280   :  { %5101 = vmatprep.subr.bf16.mxu0 %v6067_v30  ;;  %v6152_v30 = vld [vmem:[%s8474_s5 + $0x268] ss:$16 sps:$4 sm:$0xff]  }
 0x283   :  { %5102 = vmatpush1.bf16.msra.mxu0 %v6065_v35  ;;  %v6157_v35 = vld [vmem:[%s8474_s5 + $0x24c] ss:$16 sps:$4 sm:$0xff]  }
 0x284   :  { %5103 = vmatprep.subr.bf16.mxu0 %v6070_v36  ;;  %v6155_v36 = vld [vmem:[%s8474_s5 + $0x248] ss:$16 sps:$4 sm:$0xff]  }
 0x286   :  { %v3726_v34 = vpop.f32.mrf.mxu0 }
 0x287   :  { %5104 = vmatpush2.bf16.msra.mxu0 %v6068_v38  ;;  %v3727_v8 = vadd.f32 %v3726_v34, %v569_v9  ;;  %v6160_v38 = vld [vmem:[%s8474_s5 + $0x22c] ss:$16 sps:$4 sm:$0xff]  }
 0x288   :  { %v3767_v40 = vpop.f32.mrf.mxu1  ;;  %v3728_v55 = vpop.f32.mrf.mxu0  ;;  %5105 = vmatprep.subr.bf16.mxu0 %v6073_v39  ;;  %v6178_v9 = vld [vmem:[%s8474_s5 + $0x36c] ss:$16 sps:$4 sm:$0xff]  }
 0x289   :  { %v3729_v61 = vadd.f32 %v3728_v55, %v573_v59  ;;  %v3768_v0 = vadd.f32 %v3767_v40, %v3727_v8  ;;  %v6158_v40 = vld [vmem:[%s8474_s5 + $0x228] ss:$16 sps:$4 sm:$0xff]   ;;  %v6181_v8 = vld [vmem:[%s8474_s5 + $0x34c] ss:$16 sps:$4 sm:$0xff]  }
 0x28a   :  { %v3769_v44 = vpop.f32.mrf.mxu1  ;;  %v3730_v45 = vpop.f32.mrf.mxu0  ;;  %v6176_v59 = vld [vmem:[%s8474_s5 + $0x368] ss:$16 sps:$4 sm:$0xff]  }
 0x28b   :  { %5106 = vmatpush2.bf16.msra.mxu0 %v6071_v63  ;;  %v3770_v1 = vadd.f32 %v3769_v44, %v3729_v61  ;;  %v5757_v63 = vld [vmem:[%s8475_s4] ss:$0 sm:$0xff]  ;;  %v6179_v61 = vld [vmem:[%s8474_s5 + $0x348] ss:$16 sps:$4 sm:$0xff]  }
 0x28c   :  { %v3771_v46 = vpop.f32.mrf.mxu1  ;;  %v3731_v51 = vpop.f32.mrf.mxu0  ;;  %5107 = vmatprep.subr.bf16.mxu0 %v6076_v41  ;;  %v6163_v41 = vld [vmem:[%s8474_s5 + $0x20c] ss:$16 sps:$4 sm:$0xff]  }
 0x28e   :  { %v3772_v49 = vpop.f32.mrf.mxu1 }
 0x28f   :  { %5108 = vmatpush2.bf16.msra.mxu0 %v6074_v48  ;;  %v6161_v49 = vld [vmem:[%s8474_s5 + $0x208] ss:$16 sps:$4 sm:$0xff]  }
 0x290   :  { %5109 = vmatprep.subr.bf16.mxu0 %v6082_v31 }
 0x293   :  { %5110 = vmatpush2.bf16.msra.mxu0 %v6080_v47 }
 0x294   :  { %5111 = vmatprep.subr.bf16.mxu0 %v6088_v50  ;;  %v6166_v50 = vld [vmem:[%s8474_s5 + $0x3ec] ss:$16 sps:$4 sm:$0xff]  }
 0x297   :  { %5112 = vmatpush2.bf16.msra.mxu0 %v6086_v42 }
 0x298   :  { %5113 = vmatprep.subr.bf16.mxu0 %v6094_v62 }
 0x29b   :  { %5114 = vmatpush2.bf16.msra.mxu0 %v6092_v24  ;;  %v6164_v24 = vld [vmem:[%s8474_s5 + $0x3e8] ss:$16 sps:$4 sm:$0xff]  }
 0x29c   :  { %5115 = vmatprep.subr.bf16.mxu0 %v6100_v52  ;;  %v6169_v52 = vld [vmem:[%s8474_s5 + $0x3cc] ss:$16 sps:$4 sm:$0xff]  }
 0x29f   :  { %5116 = vmatpush2.bf16.msra.mxu0 %v6098_v54  ;;  %v6167_v54 = vld [vmem:[%s8474_s5 + $0x3c8] ss:$16 sps:$4 sm:$0xff]  }
 0x2a0   :  { %5117 = vmatprep.subr.bf16.mxu0 %v6106_v56  ;;  %v6172_v56 = vld [vmem:[%s8474_s5 + $0x3ac] ss:$16 sps:$4 sm:$0xff]  }
 0x2a3   :  { %5118 = vmatpush2.bf16.msra.mxu0 %v6104_v57  ;;  %v6170_v57 = vld [vmem:[%s8474_s5 + $0x3a8] ss:$16 sps:$4 sm:$0xff]  }
 0x2a6   :  { %5120 = vmatmul.mubr.bf16.vlgmr.msra.gmra.mxu0 %v8226_v15 }
 0x2c6   :  { %v3808_v4 = vpop.f32.mrf.mxu0 }
 0x2c7   :  { %v3809_v13 = vadd.f32 %v3808_v4, %v3768_v0  ;;  %v6184_v0 = vld [vmem:[%s8474_s5 + $0x32c] ss:$16 sps:$4 sm:$0xff]   ;;  %v6182_v4 = vld [vmem:[%s8474_s5 + $0x328] ss:$16 sps:$4 sm:$0xff]  }
 0x2c8   :  { %v3849_v33 = vpop.f32.mrf.mxu1  ;;  %v3810_v3 = vpop.f32.mrf.mxu0 }
 0x2c9   :  { %v3850_v5 = vadd.f32 %v3849_v33, %v3809_v13  ;;  %v3811_v6 = vadd.f32 %v3810_v3, %v3770_v1  ;;  %v6187_v1 = vld [vmem:[%s8474_s5 + $0x30c] ss:$16 sps:$4 sm:$0xff]   ;;  %v6185_v13 = vld [vmem:[%s8474_s5 + $0x308] ss:$16 sps:$4 sm:$0xff]  }
 0x2ca   :  { %v3851_v7 = vpop.f32.mrf.mxu1  ;;  %v3812_v10 = vpop.f32.mrf.mxu0 }
 0x2cb   :  { %v3852_v12 = vadd.f32 %v3851_v7, %v3811_v6  ;;  %v3862_v15 = vmax.f32 %v3850_v5, 0.0 }
 0x2cc   :  { %v3853_v14 = vpop.f32.mrf.mxu1  ;;  %v3813_v17 = vpop.f32.mrf.mxu0 }
 0x2cd   :  { %v3863_v18 = vmax.f32 %v3852_v12, 0.0  ;;  %v8327_v21 = vpack.c.bf16 %v3862_v15, %v3862_v15  ;;  %v4343_v15 = vld [vmem:[%s8476_s6] sm:$0xf] }
 0x2ce   :  { %v3854_v19 = vpop.f32.mrf.mxu1  ;;  %v4348_v17 = vrot.slane %v4343_v15, %v544_v28  ;;  %v4360_v28 = vrot.slane %v4343_v15, %v556_v16 }
 0x2cf   :  { %v3871_v20 = vpack.c.bf16 %v3863_v18, %v3863_v18  ;;  %v4352_v18 = vrot.slane %v4343_v15, %v548_v37 }
 0x2d1   :  { %5078 = vmatprep.mubr.bf16.mxu1 %v3871_v20 }
 0x2d2   :  { %5079 = vmatmul.mubr.bf16.vlgmr.msra.gmra.mxu1 %v8327_v21 }
 0x2d3   :  { %5129 = vmatpush1.bf16.msra.mxu1 %v6140_v53  ;;  %5160 = vmatprep.mubr.bf16.mxu1 %v3871_v20 }
 0x2d4   :  { %5130 = vmatprep.subr.bf16.mxu1 %v6145_v22 }
 0x2d7   :  { %5131 = vmatpush1.bf16.msra.mxu1 %v6143_v23 }
 0x2d8   :  { %5132 = vmatprep.subr.bf16.mxu1 %v6148_v25 }
 0x2db   :  { %5133 = vmatpush1.bf16.msra.mxu1 %v6146_v26 }
 0x2dc   :  { %5134 = vmatprep.subr.bf16.mxu1 %v6151_v27 }
 0x2df   :  { %5135 = vmatpush1.bf16.msra.mxu1 %v6149_v2 }
 0x2e0   :  { %5136 = vmatprep.subr.bf16.mxu1 %v6154_v29 }
 0x2e3   :  { %5137 = vmatpush1.bf16.msra.mxu1 %v6152_v30  ;;  %v4356_v30 = vrot.slane %v4343_v15, %v552_v11 }
 0x2e4   :  { %5138 = vmatprep.subr.bf16.mxu1 %v6157_v35 }
 0x2e6   :  { %v5934_v39 = vpop.f32.mrf.mxu0 }
 0x2e7   :  { %5139 = vmatpush1.bf16.msra.mxu1 %v6155_v36 }
 0x2e8   :  { %v5956_v34 = vpop.f32.mrf.mxu1  ;;  %v5935_v55 = vpop.f32.mrf.mxu0  ;;  %5140 = vmatprep.subr.bf16.mxu1 %v6160_v38 }
 0x2e9   :  { %v5936_v44 = vadd.f32 %v5935_v55, %v5934_v39 }
 0x2ea   :  { %v5957_v45 = vpop.f32.mrf.mxu1  ;;  %v5937_v48 = vpop.f32.mrf.mxu0 }
 0x2eb   :  { %v5958_v46 = vadd.f32 %v5957_v45, %v5956_v34  ;;  %v4170_v51 = vadd.f32 %v5936_v44, %v5757_v63  ;;  %5141 = vmatpush1.bf16.msra.mxu1 %v6158_v40 }
 0x2ec   :  { %v5959_v31 = vpop.f32.mrf.mxu1  ;;  %v5938_v47 = vpop.f32.mrf.mxu0  ;;  %5142 = vmatprep.subr.bf16.mxu1 %v6163_v41  ;;  %v5174_v41 = vand.u32 127, %v542_v32 }
 0x2ed   :  { %v8378_v42 = vadd.f32 %v5958_v46, %v4170_v51 }
 0x2ee   :  { %v5960_v62 = vpop.f32.mrf.mxu1  ;;  %vm5175_vm0 = vcmp.lt.s32.totalorder %v5174_v41, 51 }
 0x2ef   :  { %5143 = vmatpush1.bf16.msra.mxu1 %v6161_v49 }
 0x2f0   :  { %5144 = vmatprep.subr.bf16.mxu1 %v6166_v50 }
 0x2f3   :  { %5145 = vmatpush2.bf16.msra.mxu1 %v6164_v24 }
 0x2f4   :  { %5146 = vmatprep.subr.bf16.mxu1 %v6169_v52 }
 0x2f7   :  { %5147 = vmatpush2.bf16.msra.mxu1 %v6167_v54 }
 0x2f8   :  { %5148 = vmatprep.subr.bf16.mxu1 %v6172_v56 }
 0x2fb   :  { %5149 = vmatpush2.bf16.msra.mxu1 %v6170_v57 }
 0x2fc   :  { %5150 = vmatprep.subr.bf16.mxu1 %v6175_v58 }
 0x2ff   :  { %5151 = vmatpush2.bf16.msra.mxu1 %v6173_v60 }
 0x300   :  { %5152 = vmatprep.subr.bf16.mxu1 %v6178_v9 }
 0x303   :  { %5153 = vmatpush2.bf16.msra.mxu1 %v6176_v59 }
 0x304   :  { %5154 = vmatprep.subr.bf16.mxu1 %v6181_v8 }
 0x307   :  { %5155 = vmatpush2.bf16.msra.mxu1 %v6179_v61 }
 0x308   :  { %5156 = vmatprep.subr.bf16.mxu1 %v6184_v0 }
 0x30b   :  { %5157 = vmatpush2.bf16.msra.mxu1 %v6182_v4 }
 0x30c   :  { %5158 = vmatprep.subr.bf16.mxu1 %v6187_v1 }
 0x30f   :  { %5159 = vmatpush2.bf16.msra.mxu1 %v6185_v13 }
 0x312   :  { %5161 = vmatmul.mubr.bf16.vlgmr.msra.gmra.mxu1 %v8327_v21 }
 0x326   :  { %v5039_v33 = vpop.f32.mrf.mxu0 }
 0x327   :  { %v5040_v19 = vadd.f32 %v5039_v33, %v4348_v17 }
 0x328   :  { %v5041_v3 = vpop.f32.mrf.mxu0 }
 0x329   :  { %v5042_v53 = vadd.f32 %v5041_v3, %v4352_v18 }
 0x32a   :  { %v5043_v5 = vpop.f32.mrf.mxu0 }
 0x32c   :  { %v5044_v6 = vpop.f32.mrf.mxu0 }
 0x366   :  { %v5121_v7 = vpop.f32.mrf.mxu0 }
 0x367   :  { %v5122_v37 = vadd.f32 %v5121_v7, %v4356_v30 }
 0x368   :  { %v5123_v10 = vpop.f32.mrf.mxu0 }
 0x369   :  { %v5124_v36 = vadd.f32 %v5123_v10, %v4360_v28 }
 0x36a   :  { %v5125_v12 = vpop.f32.mrf.mxu0 }
 0x36c   :  { %v5126_v14 = vpop.f32.mrf.mxu0 }
 0x392   :  { %v5080_v20 = vpop.f32.mrf.mxu1 }
 0x393   :  { %v5081_v21 = vadd.f32 %v5080_v20, %v5040_v19 }
 0x394   :  { %v5082_v22 = vpop.f32.mrf.mxu1 }
 0x395   :  { %v5176_v23 = vadd.f32 %v5081_v21, %v8378_v42  ;;  %v5083_v25 = vadd.f32 %v5082_v22, %v5042_v53 }
 0x396   :  { %v5084_v26 = vpop.f32.mrf.mxu1 }
 0x397   :  { %v5169_v27 = vadd.f32 %v5083_v25, %v5081_v21  ;;  %v5193_v2 = vadd.f32 %v5083_v25, %v8378_v42 }
 0x398   :  { %v5085_v29 = vpop.f32.mrf.mxu1 }
 0x3d2   :  { %v5162_v35 = vpop.f32.mrf.mxu1 }
 0x3d3   :  { %v5163_v38 = vadd.f32 %v5162_v35, %v5122_v37 }
 0x3d4   :  { %v5164_v39 = vpop.f32.mrf.mxu1 }
 0x3d5   :  { %v5170_v34 = vadd.f32 %v5169_v27, %v5163_v38  ;;  %v5209_v40 = vadd.f32 %v5163_v38, %v8378_v42  ;;  %v5165_v63 = vadd.f32 %v5164_v39, %v5124_v36 }
 0x3d6   :  { %v5166_v55 = vpop.f32.mrf.mxu1 }
 0x3d7   :  { %v5171_v44 = vadd.f32 %v5170_v34, %v5165_v63  ;;  %v5225_v45 = vadd.f32 %v5165_v63, %v8378_v42 }
 0x3d8   :  { %v5167_v46 = vpop.f32.mrf.mxu1 }
 0x3d9   :  { %v5172_v11 = vmul.f32 0.25, %v5171_v44 }
 0x3db   :  { %v5210_v43 = vsub.f32 %v5209_v40, %v5172_v11  ;;  %v5177_v16 = vsub.f32 %v5176_v23, %v5172_v11  ;;  %v5226_v48 = vsub.f32 %v5225_v45, %v5172_v11  ;;  %v5194_v51 = vsub.f32 %v5193_v2, %v5172_v11 }
 0x3dd   :  { %v5211_v31 = vsel %vm5175_vm0, %v5210_v43, -3.4028235e+38  ;;  %v5178_v49 = vsel %vm5175_vm0, %v5177_v16, -3.4028235e+38  ;;  %v5227_v32 = vsel %vm5175_vm0, %v5226_v48, -3.4028235e+38 }
 0x3de   :  { %v5212_v47 = vsel %vm5179_vm1, %v5211_v31, -inf  ;;  %v5180_v50 = vsel %vm5179_vm1, %v5178_v49, -inf  ;;  %v5195_v42 = vsel %vm5175_vm0, %v5194_v51, -3.4028235e+38  ;;  %v5228_v62 = vsel %vm5179_vm1, %v5227_v32, -inf }
 0x3df   :  { %5213 = vmax.xlane.f32.xlu1 %v5212_v47  ;;  %5181 = vmax.xlane.f32.xlu0 %v5180_v50  ;;  %v5196_v24 = vsel %vm5179_vm1, %v5195_v42, -inf }
 0x3e3   :  { %5229 = vmax.xlane.f32.xlu1 %v5228_v62  ;;  %5197 = vmax.xlane.f32.xlu0 %v5196_v24 }
 0x468   :  { %v5214_v52 = vpop.xlane.xlu1 %5213  ;;  %v5182_v54 = vpop.xlane.xlu0 %5181 }
 0x469   :  { %v5215_v56 = vsub.f32 %v5210_v43, %v5214_v52  ;;  %v5183_v57 = vsub.f32 %v5177_v16, %v5182_v54 }
 0x46b   :  { %v5216_v58 = vmul.f32 1.442695, %v5215_v56  ;;  %v5184_v60 = vmul.f32 1.442695, %v5183_v57 }
 0x46c   :  { %v5230_v9 = vpop.xlane.xlu1 %5229  ;;  %v5198_v59 = vpop.xlane.xlu0 %5197 }
 0x46d   :  { %6188 = vpow2.f32 %v5216_v58  ;;  %v5231_v8 = vsub.f32 %v5226_v48, %v5230_v9  ;;  %v5199_v61 = vsub.f32 %v5194_v51, %v5198_v59 }
 0x46e   :  { %6190 = vpow2.f32 %v5184_v60 }
 0x46f   :  { %v5232_v0 = vmul.f32 1.442695, %v5231_v8  ;;  %v5200_v4 = vmul.f32 1.442695, %v5199_v61 }
 0x471   :  { %6192 = vpow2.f32 %v5232_v0 }
 0x472   :  { %6194 = vpow2.f32 %v5200_v4 }
 0x47a   :  { %v6189_v1 = vpop.eup %6188 }
 0x47b   :  { %v6191_v13 = vpop.eup %6190  ;;  %v5218_v6 = vsel %vm5175_vm0, %v6189_v1, 0.0 }
 0x47c   :  { %v5186_v33 = vsel %vm5175_vm0, %v6191_v13, 0.0  ;;  %v5219_v12 = vsel %vm5179_vm1, %v5218_v6, 0.0 }
 0x47d   :  { %v5187_v3 = vsel %vm5179_vm1, %v5186_v33, 0.0 }
 0x47e   :  { %v6193_v5 = vpop.eup %6192  ;;  %5188 = vadd.xlane.f32.xlu0 %v5187_v3 }
 0x47f   :  { %v6195_v7 = vpop.eup %6194  ;;  %v5234_v15 = vsel %vm5175_vm0, %v6193_v5, 0.0 }
 0x480   :  { %v5202_v10 = vsel %vm5175_vm0, %v6195_v7, 0.0  ;;  %v5235_v17 = vsel %vm5179_vm1, %v5234_v15, 0.0 }
 0x481   :  { %v5203_v14 = vsel %vm5179_vm1, %v5202_v10, 0.0 }
 0x482   :  { %5220 = vadd.xlane.f32.xlu0 %v5219_v12  ;;  %5204 = vadd.xlane.f32.xlu1 %v5203_v14 }
 0x486   :  { %5236 = vadd.xlane.f32.xlu1 %v5235_v17 }
 0x507   :  { %v5189_v18 = vpop.xlane.xlu0 %5188 }
 0x508   :  { %6196 = vrcp.f32 %v5189_v18 }
 0x50b   :  { %v5205_v19 = vpop.xlane.xlu1 %5204  ;;  %v5221_v20 = vpop.xlane.xlu0 %5220 }
 0x50c   :  { %6198 = vrcp.f32 %v5205_v19 }
 0x50d   :  { %6200 = vrcp.f32 %v5221_v20 }
 0x50f   :  { %v5237_v53 = vpop.xlane.xlu1 %5236 }
 0x510   :  { %6202 = vrcp.f32 %v5237_v53 }
 0x515   :  { %v6197_v21 = vpop.eup %6196 }
 0x516   :  { %v5191_v22 = vmul.f32 %v6197_v21, %v5186_v33 }
 0x518   :  { %5192 = vst [vmem:[%s8477_s7] sm:$0x3] %v5191_v22 }
 0x519   :  { %v6199_v23 = vpop.eup %6198 }
 0x51a   :  { %v6201_v25 = vpop.eup %6200  ;;  %v5207_v26 = vmul.f32 %v6199_v23, %v5202_v10 }
 0x51b   :  { %v5223_v27 = vmul.f32 %v6201_v25, %v5218_v6 }
 0x51c   :  { %5208 = vst [vmem:[%s8477_s7 + $0x2] sm:$0x3] %v5207_v26 }
 0x51d   :  { %v6203_v2 = vpop.eup %6202  ;;  %5224 = vst [vmem:[%s8477_s7 + $0x4] sm:$0x3] %v5223_v27 }
 0x51e   :  { %v5239_v29 = vmul.f32 %v6203_v2, %v5234_v15 }
 0x520   :  { %5240 = vst [vmem:[%s8477_s7 + $0x6] sm:$0x3] %v5239_v29 }

</bundles_post_ra>
